<compile_context>
chip_gen: v7x
topology: tpu7x:2x2x1
jax: 0.10.0
libtpu: 0.0.40
codegen_flags: <defaults>
</compile_context>

<pallas_src>
import functools

import numpy as np
import jax
import jax.numpy as jnp
from jax import lax
from jax.experimental import pallas as pl
from jax.experimental.pallas import tpu as pltpu

EPS = 1e-5        # PyTorch BatchNorm2d default
CONV1_OUT = 128
CONV2_OUT = 768
FC_OUT = 1000
FC_PAD = 1024     # lane-dense (zero-padded) fc output width


# ---------------------------------------------------------------------------
# Fused kernel: avgpool -> conv1(BN,ReLU) -> conv2(BN,ReLU) -> fc
# ---------------------------------------------------------------------------
def _aux_fused_kernel(x_ref, pt_ref, w1_ref, b_ref, w2_hbm, wfc_hbm, o_ref,
                      x2_scratch, w2_vmem, wfc_vmem, dma_sem,
                      *, n_batch, n_pool):
    # Kick off both big weight DMAs immediately (single-buffered, grid=(1,)).
    w2_copy = pltpu.make_async_copy(w2_hbm, w2_vmem, dma_sem.at[0])
    wfc_copy = pltpu.make_async_copy(wfc_hbm, wfc_vmem, dma_sem.at[1])
    w2_copy.start()
    wfc_copy.start()

    pt = pt_ref[...]                     # (n_pool, HW_PAD) pooling matrix
    w1 = w1_ref[...]                     # (C, 128) 1x1 conv weight (BN scale folded)
    b1 = b_ref[:, 0:CONV1_OUT]                                   # (1, 128)
    b2 = b_ref[:, CONV1_OUT:CONV1_OUT + CONV2_OUT]               # (1, 768)
    bfc = b_ref[:, CONV1_OUT + CONV2_OUT:CONV1_OUT + CONV2_OUT + FC_PAD]  # (1, 1024)

    # --- stages 0+1 per sample: avgpool + 1x1 conv + BN + ReLU --------------
    # (tiny f32 work; runs concurrently with / hidden under the w2 DMA)
    for n in range(n_batch):
        xs = x_ref[n]                                                   # (HW_PAD, C)
        pooled = jnp.dot(pt, xs, preferred_element_type=jnp.float32)    # (n_pool, C)
        y1 = jnp.dot(pooled, w1, preferred_element_type=jnp.float32)    # (n_pool, 128)
        y1 = jnp.maximum(y1 + b1, 0.0)
        # Relayout (p, ic) -> flat column p*128+ic of the conv2 input row.
        # (~25 small stores/sample; fully hidden under the conv2-weight DMA.)
        for p in range(n_pool):
            x2_scratch[pl.ds(n, 1), pl.ds(p * 128, 128)] = y1[p:p + 1, :]

    # --- stage 2: 5x5 conv (full contraction) as one bf16 matmul ------------
    w2_copy.wait()
    x2 = x2_scratch[...].astype(jnp.bfloat16)                            # (N, 3200)
    y2 = jnp.dot(x2, w2_vmem[...], preferred_element_type=jnp.float32)   # (N, 768)
    y2 = jnp.maximum(y2 + b2, 0.0)

    # --- stage 3: fc (output zero-padded to 1024 lanes = lane-dense store) --
    wfc_copy.wait()
    y3 = jnp.dot(y2.astype(jnp.bfloat16), wfc_vmem[...],
                 preferred_element_type=jnp.float32) + bfc               # (N, 1024)
    o_ref[...] = y3


# ---------------------------------------------------------------------------
# One-time host-side packing helpers (run ONCE, outside the jitted forward)
# ---------------------------------------------------------------------------
def build_pool_matrix_t(H, W, k, s, hw_pad):
    """PT of shape (OH*OW, hw_pad) so that PT @ x_flat == AvgPool2d(k, s)."""
    OH = (H - k) // s + 1
    OW = (W - k) // s + 1
    PT = np.zeros((OH * OW, hw_pad), dtype=np.float32)
    for oh in range(OH):
        for ow in range(OW):
            for kh in range(k):
                for kw in range(k):
                    PT[oh * OW + ow, (oh * s + kh) * W + (ow * s + kw)] = 1.0 / (k * k)
    return jnp.asarray(PT), OH, OW


def bn_fold(conv_bias, gamma, beta, mean, var):
    scale = gamma / jnp.sqrt(var + EPS)
    shift = beta + (conv_bias - mean) * scale
    return scale.astype(jnp.float32), shift.astype(jnp.float32)


def pack_params(params, in_channels, H=17, W=17):
    """Fold BN, repack / cast weights.  Called once; results reused every call."""
    C = in_channels
    HW = H * W
    HW_PAD = ((HW + 127) // 128) * 128
    PT, OH, OW = build_pool_matrix_t(H, W, 5, 3, HW_PAD)
    n_pool = OH * OW

    s1, shift1 = bn_fold(params["conv1_b"], params["bn1_g"], params["bn1_b"],
                         params["bn1_m"], params["bn1_v"])
    # 1x1 conv weight, transposed to (C, 128); BN scale folded into columns.
    w1 = params["conv1_w"].reshape(CONV1_OUT, C).T.astype(jnp.float32) * s1[None, :]

    s2, shift2 = bn_fold(params["conv2_b"], params["bn2_g"], params["bn2_b"],
                         params["bn2_m"], params["bn2_v"])
    # conv2 weight (768, 128, 5, 5) -> rows ordered p*128+ic to match x2 layout,
    # BN scale folded into the output-channel columns, then cast to bf16.
    w2 = params["conv2_w"].reshape(CONV2_OUT, CONV1_OUT, n_pool).transpose(2, 1, 0)
    w2 = (w2.reshape(CONV1_OUT * n_pool, CONV2_OUT) * s2[None, :]).astype(jnp.bfloat16)

    wfc = jnp.pad(params["fc_w"].T, ((0, 0), (0, FC_PAD - FC_OUT))).astype(jnp.bfloat16)
    bfc = jnp.pad(params["fc_b"], (0, FC_PAD - FC_OUT)).astype(jnp.float32)

    # Pack the three small per-channel vectors into one lane-aligned operand.
    bias_vec = jnp.concatenate([shift1, shift2, bfc]).reshape(1, -1)   # (1, 1920)

    return {"pt": PT, "w1": w1, "bias": bias_vec, "w2": w2, "wfc": wfc}


# ---------------------------------------------------------------------------
# Per-call forward (jitted): only x re-layout + the fused pallas_call
# ---------------------------------------------------------------------------
def inception_aux_forward(x, packed):
    """x: (N, C, 17, 17) float32 NCHW -> (N, 1000) float32."""
    N, C, H, W = x.shape
    HW = H * W
    HW_PAD = ((HW + 127) // 128) * 128
    OH = (H - 5) // 3 + 1
    OW = (W - 5) // 3 + 1
    n_pool = OH * OW
    BIAS_W = CONV1_OUT + CONV2_OUT + FC_PAD

    # NCHW -> (N, HW_PAD, C); spatial tail zero-padded to a lane-aligned K dim.
    x_hwc = x.transpose(0, 2, 3, 1).reshape(N, HW, C).astype(jnp.float32)
    x_hwc = jnp.pad(x_hwc, ((0, 0), (0, HW_PAD - HW), (0, 0)))

    kernel = functools.partial(_aux_fused_kernel, n_batch=N, n_pool=n_pool)
    out = pl.pallas_call(
        kernel,
        out_shape=jax.ShapeDtypeStruct((N, FC_PAD), jnp.float32),
        grid=(1,),
        in_specs=[
            pl.BlockSpec((N, HW_PAD, C), lambda i: (0, 0, 0)),       # x (VMEM)
            pl.BlockSpec((n_pool, HW_PAD), lambda i: (0, 0)),        # pooling matrix
            pl.BlockSpec((C, CONV1_OUT), lambda i: (0, 0)),          # conv1 weight
            pl.BlockSpec((1, BIAS_W), lambda i: (0, 0)),             # packed biases
            pl.BlockSpec(memory_space=pl.ANY),                       # conv2 weight (HBM)
            pl.BlockSpec(memory_space=pl.ANY),                       # fc weight (HBM)
        ],
        out_specs=pl.BlockSpec((N, FC_PAD), lambda i: (0, 0)),
        scratch_shapes=[
            pltpu.VMEM((N, CONV1_OUT * n_pool), jnp.float32),        # conv2 input staging
            pltpu.VMEM((CONV1_OUT * n_pool, CONV2_OUT), jnp.bfloat16),  # conv2 W (1-buffered)
            pltpu.VMEM((CONV2_OUT, FC_PAD), jnp.bfloat16),           # fc W (1-buffered)
            pltpu.SemaphoreType.DMA((2,)),
        ],
        compiler_params=pltpu.CompilerParams(
            dimension_semantics=("arbitrary",),
            vmem_limit_bytes=32 * 1024 * 1024),
    )(x_hwc, packed["pt"], packed["w1"], packed["bias"], packed["w2"], packed["wfc"])
    return out[:, :FC_OUT]


# ---------------------------------------------------------------------------
# Pure-JAX f32 reference (lax conv / reduce_window) for correctness check
# ---------------------------------------------------------------------------
def reference_forward(x, params):
    def conv_bn_relu(h, w, cb, g, b, m, v):
        y = lax.conv_general_dilated(
            h, w, window_strides=(1, 1), padding="VALID",
            dimension_numbers=("NCHW", "OIHW", "NCHW"))
        y = y + cb[None, :, None, None]
        y = g[None, :, None, None] * (y - m[None, :, None, None]) / \
            jnp.sqrt(v[None, :, None, None] + EPS) + b[None, :, None, None]
        return jnp.maximum(y, 0.0)

    xp = lax.reduce_window(x, 0.0, lax.add, (1, 1, 5, 5), (1, 1, 3, 3), "VALID") / 25.0
    h = conv_bn_relu(xp, params["conv1_w"], params["conv1_b"], params["bn1_g"],
                     params["bn1_b"], params["bn1_m"], params["bn1_v"])
    h = conv_bn_relu(h, params["conv2_w"], params["conv2_b"], params["bn2_g"],
                     params["bn2_b"], params["bn2_m"], params["bn2_v"])
    h = h.reshape(h.shape[0], -1)
    return h @ params["fc_w"].T + params["fc_b"]


# ---------------------------------------------------------------------------
# Deterministic synthetic parameters (no checkpoint)
# ---------------------------------------------------------------------------
def init_params(key, in_channels):
    ks = jax.random.split(key, 16)
    return {
        "conv1_w": 0.05 * jax.random.normal(ks[0], (128, in_channels, 1, 1), jnp.float32),
        "conv1_b": 0.05 * jax.random.normal(ks[1], (128,), jnp.float32),
        "bn1_g":   1.0 + 0.1 * jax.random.normal(ks[2], (128,), jnp.float32),
        "bn1_b":   0.05 * jax.random.normal(ks[3], (128,), jnp.float32),
        "bn1_m":   0.05 * jax.random.normal(ks[4], (128,), jnp.float32),
        "bn1_v":   jax.random.uniform(ks[5], (128,), jnp.float32, 0.5, 1.5),
        "conv2_w": 0.02 * jax.random.normal(ks[6], (768, 128, 5, 5), jnp.float32),
        "conv2_b": 0.05 * jax.random.normal(ks[7], (768,), jnp.float32),
        "bn2_g":   1.0 + 0.1 * jax.random.normal(ks[8], (768,), jnp.float32),
        "bn2_b":   0.05 * jax.random.normal(ks[9], (768,), jnp.float32),
        "bn2_m":   0.05 * jax.random.normal(ks[10], (768,), jnp.float32),
        "bn2_v":   jax.random.uniform(ks[11], (768,), jnp.float32, 0.5, 1.5),
        "fc_w":    0.03 * jax.random.normal(ks[12], (1000, 768), jnp.float32),
        "fc_b":    0.05 * jax.random.normal(ks[13], (1000,), jnp.float32),
    }


if __name__ == "__main__":
    # Spatial size must be 17x17 so avgpool(5,3)->5x5 and conv2(5x5 valid)->1x1,
    # making flatten produce exactly 768 features for the fc layer.
    N, C_IN, H, W = 2, 8, 17, 17

    key = jax.random.PRNGKey(0)
    k_x, k_p = jax.random.split(key)
    x = jax.random.normal(k_x, (N, C_IN, H, W), jnp.float32)
    params = init_params(k_p, C_IN)

    # One-time weight repacking (cached; NOT part of the per-call jitted path).
    packed = jax.block_until_ready(pack_params(params, C_IN, H, W))

    fwd = jax.jit(inception_aux_forward)
    out = jax.block_until_ready(fwd(x, packed))
    assert out.shape == (N, 1000), out.shape

    ref = jax.block_until_ready(reference_forward(x, params))
    # bf16 weights/activations on conv2+fc -> looser tolerance than the f32 path.
    np.testing.assert_allclose(np.asarray(out), np.asarray(ref), rtol=2e-2, atol=2e-2)

    print("KERNEL_OK")
</pallas_src>

<mosaic_0001>
module attributes {stable_mosaic.version = 11 : i64} {
  func.func @_aux_fused_kernel(%arg0: i32, %arg1: memref<2x384x8xf32, #tpu.memory_space<vmem>>, %arg2: memref<25x384xf32, #tpu.memory_space<vmem>>, %arg3: memref<8x128xf32, #tpu.memory_space<vmem>>, %arg4: memref<1x1920xf32, #tpu.memory_space<vmem>>, %arg5: memref<3200x768xbf16, #tpu.memory_space<any>>, %arg6: memref<768x1024xbf16, #tpu.memory_space<any>>, %arg7: memref<2x1024xf32, #tpu.memory_space<vmem>>, %arg8: memref<2x3200xf32, #tpu.memory_space<vmem>>, %arg9: memref<3200x768xbf16, #tpu.memory_space<vmem>>, %arg10: memref<768x1024xbf16, #tpu.memory_space<vmem>>, %arg11: memref<2x!tpu.dma_semaphore, #tpu.memory_space<semaphore_mem>>) attributes {dimension_semantics = [#tpu.dimension_semantics<arbitrary>], iteration_bounds = array<i64: 1>, scalar_prefetch = 0 : i64, scratch_operands = 4 : i64, tpu.core_type = #tpu.core_type<tc>, window_params = [{pipeline_mode = #tpu.pipeline_mode<synchronous>, transform_indices = @transform_0, window_bounds = array<i64: 2, 384, 8>}, {pipeline_mode = #tpu.pipeline_mode<synchronous>, transform_indices = @transform_1, window_bounds = array<i64: 25, 384>}, {pipeline_mode = #tpu.pipeline_mode<synchronous>, transform_indices = @transform_2, window_bounds = array<i64: 8, 128>}, {pipeline_mode = #tpu.pipeline_mode<synchronous>, transform_indices = @transform_3, window_bounds = array<i64: 1, 1920>}, {}, {}, {pipeline_mode = #tpu.pipeline_mode<synchronous>, transform_indices = @transform_6, window_bounds = array<i64: 2, 1024>}]} {
    %c0_i32 = arith.constant 0 : i32
    %0 = tpu.memref_slice %arg11[%c0_i32] : memref<2x!tpu.dma_semaphore, #tpu.memory_space<semaphore_mem>> -> memref<1x!tpu.dma_semaphore, #tpu.memory_space<semaphore_mem>>
    %1 = tpu.memref_squeeze %0 : memref<1x!tpu.dma_semaphore, #tpu.memory_space<semaphore_mem>> -> memref<!tpu.dma_semaphore, #tpu.memory_space<semaphore_mem>>
    tpu.enqueue_dma source(%arg5 : memref<3200x768xbf16, #tpu.memory_space<any>>) target(%arg9 : memref<3200x768xbf16, #tpu.memory_space<vmem>>) target_semaphore(%1 : memref<!tpu.dma_semaphore, #tpu.memory_space<semaphore_mem>>)
    %c1_i32 = arith.constant 1 : i32
    %2 = tpu.memref_slice %arg11[%c1_i32] : memref<2x!tpu.dma_semaphore, #tpu.memory_space<semaphore_mem>> -> memref<1x!tpu.dma_semaphore, #tpu.memory_space<semaphore_mem>>
    %3 = tpu.memref_squeeze %2 : memref<1x!tpu.dma_semaphore, #tpu.memory_space<semaphore_mem>> -> memref<!tpu.dma_semaphore, #tpu.memory_space<semaphore_mem>>
    tpu.enqueue_dma source(%arg6 : memref<768x1024xbf16, #tpu.memory_space<any>>) target(%arg10 : memref<768x1024xbf16, #tpu.memory_space<vmem>>) target_semaphore(%3 : memref<!tpu.dma_semaphore, #tpu.memory_space<semaphore_mem>>)
    %c0 = arith.constant 0 : index
    %c0_0 = arith.constant 0 : index
    %4 = vector.load %arg2[%c0, %c0_0] : memref<25x384xf32, #tpu.memory_space<vmem>>, vector<25x384xf32>
    %c0_1 = arith.constant 0 : index
    %c0_2 = arith.constant 0 : index
    %5 = vector.load %arg3[%c0_1, %c0_2] : memref<8x128xf32, #tpu.memory_space<vmem>>, vector<8x128xf32>
    %c0_3 = arith.constant 0 : index
    %c0_4 = arith.constant 0 : index
    %6 = vector.load %arg4[%c0_3, %c0_4] : memref<1x1920xf32, #tpu.memory_space<vmem>>, vector<1x128xf32>
    %c0_5 = arith.constant 0 : index
    %c128 = arith.constant 128 : index
    %7 = vector.load %arg4[%c0_5, %c128] : memref<1x1920xf32, #tpu.memory_space<vmem>>, vector<1x768xf32>
    %c0_6 = arith.constant 0 : index
    %c896 = arith.constant 896 : index
    %8 = vector.load %arg4[%c0_6, %c896] : memref<1x1920xf32, #tpu.memory_space<vmem>>, vector<1x1024xf32>
    %c0_7 = arith.constant 0 : index
    %c0_8 = arith.constant 0 : index
    %c0_9 = arith.constant 0 : index
    %9 = vector.load %arg1[%c0_7, %c0_8, %c0_9] : memref<2x384x8xf32, #tpu.memory_space<vmem>>, vector<1x384x8xf32>
    %10 = vector.shape_cast %9 : vector<1x384x8xf32> to vector<384x8xf32>
    %cst = arith.constant dense<0.000000e+00> : vector<25x8xf32>
    %11 = tpu.matmul %4, %10, %cst {dimension_numbers = #tpu.dot_dimension_numbers<[1], [0], [0], [1], [0, 0, 1, 1], [], []>} : vector<25x384xf32>, vector<384x8xf32>, vector<25x8xf32> -> vector<25x8xf32>
    %cst_10 = arith.constant dense<0.000000e+00> : vector<25x128xf32>
    %12 = tpu.matmul %11, %5, %cst_10 {dimension_numbers = #tpu.dot_dimension_numbers<[1], [0], [0], [1], [0, 0, 1, 1], [], []>} : vector<25x8xf32>, vector<8x128xf32>, vector<25x128xf32> -> vector<25x128xf32>
    %13 = vector.broadcast %6 : vector<1x128xf32> to vector<25x128xf32>
    %14 = arith.addf %12, %13 : vector<25x128xf32>
    %cst_11 = arith.constant 0.000000e+00 : f32
    %15 = vector.broadcast %cst_11 : f32 to vector<25x128xf32>
    %16 = arith.maximumf %14, %15 : vector<25x128xf32>
    %17 = vector.extract_strided_slice %16 {offsets = [0, 0], sizes = [1, 128], strides = [1, 1]} : vector<25x128xf32> to vector<1x128xf32>
    %c0_12 = arith.constant 0 : index
    %c0_13 = arith.constant 0 : index
    %18 = vector.load %arg8[%c0_12, %c0_13] : memref<2x3200xf32, #tpu.memory_space<vmem>>, vector<1x128xf32>
    tpu.vector_store %arg8[%c0_12, %c0_13], %17 {strides = array<i32>} : memref<2x3200xf32, #tpu.memory_space<vmem>>, vector<1x128xf32>,
    %19 = vector.extract_strided_slice %16 {offsets = [1, 0], sizes = [1, 128], strides = [1, 1]} : vector<25x128xf32> to vector<1x128xf32>
    %c0_14 = arith.constant 0 : index
    %c128_15 = arith.constant 128 : index
    %20 = vector.load %arg8[%c0_14, %c128_15] : memref<2x3200xf32, #tpu.memory_space<vmem>>, vector<1x128xf32>
    tpu.vector_store %arg8[%c0_14, %c128_15], %19 {strides = array<i32>} : memref<2x3200xf32, #tpu.memory_space<vmem>>, vector<1x128xf32>,
    %21 = vector.extract_strided_slice %16 {offsets = [2, 0], sizes = [1, 128], strides = [1, 1]} : vector<25x128xf32> to vector<1x128xf32>
    %c0_16 = arith.constant 0 : index
    %c256 = arith.constant 256 : index
    %22 = vector.load %arg8[%c0_16, %c256] : memref<2x3200xf32, #tpu.memory_space<vmem>>, vector<1x128xf32>
    tpu.vector_store %arg8[%c0_16, %c256], %21 {strides = array<i32>} : memref<2x3200xf32, #tpu.memory_space<vmem>>, vector<1x128xf32>,
    %23 = vector.extract_strided_slice %16 {offsets = [3, 0], sizes = [1, 128], strides = [1, 1]} : vector<25x128xf32> to vector<1x128xf32>
    %c0_17 = arith.constant 0 : index
    %c384 = arith.constant 384 : index
    %24 = vector.load %arg8[%c0_17, %c384] : memref<2x3200xf32, #tpu.memory_space<vmem>>, vector<1x128xf32>
    tpu.vector_store %arg8[%c0_17, %c384], %23 {strides = array<i32>} : memref<2x3200xf32, #tpu.memory_space<vmem>>, vector<1x128xf32>,
    %25 = vector.extract_strided_slice %16 {offsets = [4, 0], sizes = [1, 128], strides = [1, 1]} : vector<25x128xf32> to vector<1x128xf32>
    %c0_18 = arith.constant 0 : index
    %c512 = arith.constant 512 : index
    %26 = vector.load %arg8[%c0_18, %c512] : memref<2x3200xf32, #tpu.memory_space<vmem>>, vector<1x128xf32>
    tpu.vector_store %arg8[%c0_18, %c512], %25 {strides = array<i32>} : memref<2x3200xf32, #tpu.memory_space<vmem>>, vector<1x128xf32>,
    %27 = vector.extract_strided_slice %16 {offsets = [5, 0], sizes = [1, 128], strides = [1, 1]} : vector<25x128xf32> to vector<1x128xf32>
    %c0_19 = arith.constant 0 : index
    %c640 = arith.constant 640 : index
    %28 = vector.load %arg8[%c0_19, %c640] : memref<2x3200xf32, #tpu.memory_space<vmem>>, vector<1x128xf32>
    tpu.vector_store %arg8[%c0_19, %c640], %27 {strides = array<i32>} : memref<2x3200xf32, #tpu.memory_space<vmem>>, vector<1x128xf32>,
    %29 = vector.extract_strided_slice %16 {offsets = [6, 0], sizes = [1, 128], strides = [1, 1]} : vector<25x128xf32> to vector<1x128xf32>
    %c0_20 = arith.constant 0 : index
    %c768 = arith.constant 768 : index
    %30 = vector.load %arg8[%c0_20, %c768] : memref<2x3200xf32, #tpu.memory_space<vmem>>, vector<1x128xf32>
    tpu.vector_store %arg8[%c0_20, %c768], %29 {strides = array<i32>} : memref<2x3200xf32, #tpu.memory_space<vmem>>, vector<1x128xf32>,
    %31 = vector.extract_strided_slice %16 {offsets = [7, 0], sizes = [1, 128], strides = [1, 1]} : vector<25x128xf32> to vector<1x128xf32>
    %c0_21 = arith.constant 0 : index
    %c896_22 = arith.constant 896 : index
    %32 = vector.load %arg8[%c0_21, %c896_22] : memref<2x3200xf32, #tpu.memory_space<vmem>>, vector<1x128xf32>
    tpu.vector_store %arg8[%c0_21, %c896_22], %31 {strides = array<i32>} : memref<2x3200xf32, #tpu.memory_space<vmem>>, vector<1x128xf32>,
    %33 = vector.extract_strided_slice %16 {offsets = [8, 0], sizes = [1, 128], strides = [1, 1]} : vector<25x128xf32> to vector<1x128xf32>
    %c0_23 = arith.constant 0 : index
    %c1024 = arith.constant 1024 : index
    %34 = vector.load %arg8[%c0_23, %c1024] : memref<2x3200xf32, #tpu.memory_space<vmem>>, vector<1x128xf32>
    tpu.vector_store %arg8[%c0_23, %c1024], %33 {strides = array<i32>} : memref<2x3200xf32, #tpu.memory_space<vmem>>, vector<1x128xf32>,
    %35 = vector.extract_strided_slice %16 {offsets = [9, 0], sizes = [1, 128], strides = [1, 1]} : vector<25x128xf32> to vector<1x128xf32>
    %c0_24 = arith.constant 0 : index
    %c1152 = arith.constant 1152 : index
    %36 = vector.load %arg8[%c0_24, %c1152] : memref<2x3200xf32, #tpu.memory_space<vmem>>, vector<1x128xf32>
    tpu.vector_store %arg8[%c0_24, %c1152], %35 {strides = array<i32>} : memref<2x3200xf32, #tpu.memory_space<vmem>>, vector<1x128xf32>,
    %37 = vector.extract_strided_slice %16 {offsets = [10, 0], sizes = [1, 128], strides = [1, 1]} : vector<25x128xf32> to vector<1x128xf32>
    %c0_25 = arith.constant 0 : index
    %c1280 = arith.constant 1280 : index
    %38 = vector.load %arg8[%c0_25, %c1280] : memref<2x3200xf32, #tpu.memory_space<vmem>>, vector<1x128xf32>
    tpu.vector_store %arg8[%c0_25, %c1280], %37 {strides = array<i32>} : memref<2x3200xf32, #tpu.memory_space<vmem>>, vector<1x128xf32>,
    %39 = vector.extract_strided_slice %16 {offsets = [11, 0], sizes = [1, 128], strides = [1, 1]} : vector<25x128xf32> to vector<1x128xf32>
    %c0_26 = arith.constant 0 : index
    %c1408 = arith.constant 1408 : index
    %40 = vector.load %arg8[%c0_26, %c1408] : memref<2x3200xf32, #tpu.memory_space<vmem>>, vector<1x128xf32>
    tpu.vector_store %arg8[%c0_26, %c1408], %39 {strides = array<i32>} : memref<2x3200xf32, #tpu.memory_space<vmem>>, vector<1x128xf32>,
    %41 = vector.extract_strided_slice %16 {offsets = [12, 0], sizes = [1, 128], strides = [1, 1]} : vector<25x128xf32> to vector<1x128xf32>
    %c0_27 = arith.constant 0 : index
    %c1536 = arith.constant 1536 : index
    %42 = vector.load %arg8[%c0_27, %c1536] : memref<2x3200xf32, #tpu.memory_space<vmem>>, vector<1x128xf32>
    tpu.vector_store %arg8[%c0_27, %c1536], %41 {strides = array<i32>} : memref<2x3200xf32, #tpu.memory_space<vmem>>, vector<1x128xf32>,
    %43 = vector.extract_strided_slice %16 {offsets = [13, 0], sizes = [1, 128], strides = [1, 1]} : vector<25x128xf32> to vector<1x128xf32>
    %c0_28 = arith.constant 0 : index
    %c1664 = arith.constant 1664 : index
    %44 = vector.load %arg8[%c0_28, %c1664] : memref<2x3200xf32, #tpu.memory_space<vmem>>, vector<1x128xf32>
    tpu.vector_store %arg8[%c0_28, %c1664], %43 {strides = array<i32>} : memref<2x3200xf32, #tpu.memory_space<vmem>>, vector<1x128xf32>,
    %45 = vector.extract_strided_slice %16 {offsets = [14, 0], sizes = [1, 128], strides = [1, 1]} : vector<25x128xf32> to vector<1x128xf32>
    %c0_29 = arith.constant 0 : index
    %c1792 = arith.constant 1792 : index
    %46 = vector.load %arg8[%c0_29, %c1792] : memref<2x3200xf32, #tpu.memory_space<vmem>>, vector<1x128xf32>
    tpu.vector_store %arg8[%c0_29, %c1792], %45 {strides = array<i32>} : memref<2x3200xf32, #tpu.memory_space<vmem>>, vector<1x128xf32>,
    %47 = vector.extract_strided_slice %16 {offsets = [15, 0], sizes = [1, 128], strides = [1, 1]} : vector<25x128xf32> to vector<1x128xf32>
    %c0_30 = arith.constant 0 : index
    %c1920 = arith.constant 1920 : index
    %48 = vector.load %arg8[%c0_30, %c1920] : memref<2x3200xf32, #tpu.memory_space<vmem>>, vector<1x128xf32>
    tpu.vector_store %arg8[%c0_30, %c1920], %47 {strides = array<i32>} : memref<2x3200xf32, #tpu.memory_space<vmem>>, vector<1x128xf32>,
    %49 = vector.extract_strided_slice %16 {offsets = [16, 0], sizes = [1, 128], strides = [1, 1]} : vector<25x128xf32> to vector<1x128xf32>
    %c0_31 = arith.constant 0 : index
    %c2048 = arith.constant 2048 : index
    %50 = vector.load %arg8[%c0_31, %c2048] : memref<2x3200xf32, #tpu.memory_space<vmem>>, vector<1x128xf32>
    tpu.vector_store %arg8[%c0_31, %c2048], %49 {strides = array<i32>} : memref<2x3200xf32, #tpu.memory_space<vmem>>, vector<1x128xf32>,
    %51 = vector.extract_strided_slice %16 {offsets = [17, 0], sizes = [1, 128], strides = [1, 1]} : vector<25x128xf32> to vector<1x128xf32>
    %c0_32 = arith.constant 0 : index
    %c2176 = arith.constant 2176 : index
    %52 = vector.load %arg8[%c0_32, %c2176] : memref<2x3200xf32, #tpu.memory_space<vmem>>, vector<1x128xf32>
    tpu.vector_store %arg8[%c0_32, %c2176], %51 {strides = array<i32>} : memref<2x3200xf32, #tpu.memory_space<vmem>>, vector<1x128xf32>,
    %53 = vector.extract_strided_slice %16 {offsets = [18, 0], sizes = [1, 128], strides = [1, 1]} : vector<25x128xf32> to vector<1x128xf32>
    %c0_33 = arith.constant 0 : index
    %c2304 = arith.constant 2304 : index
    %54 = vector.load %arg8[%c0_33, %c2304] : memref<2x3200xf32, #tpu.memory_space<vmem>>, vector<1x128xf32>
    tpu.vector_store %arg8[%c0_33, %c2304], %53 {strides = array<i32>} : memref<2x3200xf32, #tpu.memory_space<vmem>>, vector<1x128xf32>,
    %55 = vector.extract_strided_slice %16 {offsets = [19, 0], sizes = [1, 128], strides = [1, 1]} : vector<25x128xf32> to vector<1x128xf32>
    %c0_34 = arith.constant 0 : index
    %c2432 = arith.constant 2432 : index
    %56 = vector.load %arg8[%c0_34, %c2432] : memref<2x3200xf32, #tpu.memory_space<vmem>>, vector<1x128xf32>
    tpu.vector_store %arg8[%c0_34, %c2432], %55 {strides = array<i32>} : memref<2x3200xf32, #tpu.memory_space<vmem>>, vector<1x128xf32>,
    %57 = vector.extract_strided_slice %16 {offsets = [20, 0], sizes = [1, 128], strides = [1, 1]} : vector<25x128xf32> to vector<1x128xf32>
    %c0_35 = arith.constant 0 : index
    %c2560 = arith.constant 2560 : index
    %58 = vector.load %arg8[%c0_35, %c2560] : memref<2x3200xf32, #tpu.memory_space<vmem>>, vector<1x128xf32>
    tpu.vector_store %arg8[%c0_35, %c2560], %57 {strides = array<i32>} : memref<2x3200xf32, #tpu.memory_space<vmem>>, vector<1x128xf32>,
    %59 = vector.extract_strided_slice %16 {offsets = [21, 0], sizes = [1, 128], strides = [1, 1]} : vector<25x128xf32> to vector<1x128xf32>
    %c0_36 = arith.constant 0 : index
    %c2688 = arith.constant 2688 : index
    %60 = vector.load %arg8[%c0_36, %c2688] : memref<2x3200xf32, #tpu.memory_space<vmem>>, vector<1x128xf32>
    tpu.vector_store %arg8[%c0_36, %c2688], %59 {strides = array<i32>} : memref<2x3200xf32, #tpu.memory_space<vmem>>, vector<1x128xf32>,
    %61 = vector.extract_strided_slice %16 {offsets = [22, 0], sizes = [1, 128], strides = [1, 1]} : vector<25x128xf32> to vector<1x128xf32>
    %c0_37 = arith.constant 0 : index
    %c2816 = arith.constant 2816 : index
    %62 = vector.load %arg8[%c0_37, %c2816] : memref<2x3200xf32, #tpu.memory_space<vmem>>, vector<1x128xf32>
    tpu.vector_store %arg8[%c0_37, %c2816], %61 {strides = array<i32>} : memref<2x3200xf32, #tpu.memory_space<vmem>>, vector<1x128xf32>,
    %63 = vector.extract_strided_slice %16 {offsets = [23, 0], sizes = [1, 128], strides = [1, 1]} : vector<25x128xf32> to vector<1x128xf32>
    %c0_38 = arith.constant 0 : index
    %c2944 = arith.constant 2944 : index
    %64 = vector.load %arg8[%c0_38, %c2944] : memref<2x3200xf32, #tpu.memory_space<vmem>>, vector<1x128xf32>
    tpu.vector_store %arg8[%c0_38, %c2944], %63 {strides = array<i32>} : memref<2x3200xf32, #tpu.memory_space<vmem>>, vector<1x128xf32>,
    %65 = vector.extract_strided_slice %16 {offsets = [24, 0], sizes = [1, 128], strides = [1, 1]} : vector<25x128xf32> to vector<1x128xf32>
    %c0_39 = arith.constant 0 : index
    %c3072 = arith.constant 3072 : index
    %66 = vector.load %arg8[%c0_39, %c3072] : memref<2x3200xf32, #tpu.memory_space<vmem>>, vector<1x128xf32>
    tpu.vector_store %arg8[%c0_39, %c3072], %65 {strides = array<i32>} : memref<2x3200xf32, #tpu.memory_space<vmem>>, vector<1x128xf32>,
    %c1 = arith.constant 1 : index
    %c0_40 = arith.constant 0 : index
    %c0_41 = arith.constant 0 : index
    %67 = vector.load %arg1[%c1, %c0_40, %c0_41] : memref<2x384x8xf32, #tpu.memory_space<vmem>>, vector<1x384x8xf32>
    %68 = vector.shape_cast %67 : vector<1x384x8xf32> to vector<384x8xf32>
    %cst_42 = arith.constant dense<0.000000e+00> : vector<25x8xf32>
    %69 = tpu.matmul %4, %68, %cst_42 {dimension_numbers = #tpu.dot_dimension_numbers<[1], [0], [0], [1], [0, 0, 1, 1], [], []>} : vector<25x384xf32>, vector<384x8xf32>, vector<25x8xf32> -> vector<25x8xf32>
    %cst_43 = arith.constant dense<0.000000e+00> : vector<25x128xf32>
    %70 = tpu.matmul %69, %5, %cst_43 {dimension_numbers = #tpu.dot_dimension_numbers<[1], [0], [0], [1], [0, 0, 1, 1], [], []>} : vector<25x8xf32>, vector<8x128xf32>, vector<25x128xf32> -> vector<25x128xf32>
    %71 = vector.broadcast %6 : vector<1x128xf32> to vector<25x128xf32>
    %72 = arith.addf %70, %71 : vector<25x128xf32>
    %cst_44 = arith.constant 0.000000e+00 : f32
    %73 = vector.broadcast %cst_44 : f32 to vector<25x128xf32>
    %74 = arith.maximumf %72, %73 : vector<25x128xf32>
    %75 = vector.extract_strided_slice %74 {offsets = [0, 0], sizes = [1, 128], strides = [1, 1]} : vector<25x128xf32> to vector<1x128xf32>
    %c1_45 = arith.constant 1 : index
    %c0_46 = arith.constant 0 : index
    %76 = vector.load %arg8[%c1_45, %c0_46] : memref<2x3200xf32, #tpu.memory_space<vmem>>, vector<1x128xf32>
    tpu.vector_store %arg8[%c1_45, %c0_46], %75 {strides = array<i32>} : memref<2x3200xf32, #tpu.memory_space<vmem>>, vector<1x128xf32>,
    %77 = vector.extract_strided_slice %74 {offsets = [1, 0], sizes = [1, 128], strides = [1, 1]} : vector<25x128xf32> to vector<1x128xf32>
    %c1_47 = arith.constant 1 : index
    %c128_48 = arith.constant 128 : index
    %78 = vector.load %arg8[%c1_47, %c128_48] : memref<2x3200xf32, #tpu.memory_space<vmem>>, vector<1x128xf32>
    tpu.vector_store %arg8[%c1_47, %c128_48], %77 {strides = array<i32>} : memref<2x3200xf32, #tpu.memory_space<vmem>>, vector<1x128xf32>,
    %79 = vector.extract_strided_slice %74 {offsets = [2, 0], sizes = [1, 128], strides = [1, 1]} : vector<25x128xf32> to vector<1x128xf32>
    %c1_49 = arith.constant 1 : index
    %c256_50 = arith.constant 256 : index
    %80 = vector.load %arg8[%c1_49, %c256_50] : memref<2x3200xf32, #tpu.memory_space<vmem>>, vector<1x128xf32>
    tpu.vector_store %arg8[%c1_49, %c256_50], %79 {strides = array<i32>} : memref<2x3200xf32, #tpu.memory_space<vmem>>, vector<1x128xf32>,
    %81 = vector.extract_strided_slice %74 {offsets = [3, 0], sizes = [1, 128], strides = [1, 1]} : vector<25x128xf32> to vector<1x128xf32>
    %c1_51 = arith.constant 1 : index
    %c384_52 = arith.constant 384 : index
    %82 = vector.load %arg8[%c1_51, %c384_52] : memref<2x3200xf32, #tpu.memory_space<vmem>>, vector<1x128xf32>
    tpu.vector_store %arg8[%c1_51, %c384_52], %81 {strides = array<i32>} : memref<2x3200xf32, #tpu.memory_space<vmem>>, vector<1x128xf32>,
    %83 = vector.extract_strided_slice %74 {offsets = [4, 0], sizes = [1, 128], strides = [1, 1]} : vector<25x128xf32> to vector<1x128xf32>
    %c1_53 = arith.constant 1 : index
    %c512_54 = arith.constant 512 : index
    %84 = vector.load %arg8[%c1_53, %c512_54] : memref<2x3200xf32, #tpu.memory_space<vmem>>, vector<1x128xf32>
    tpu.vector_store %arg8[%c1_53, %c512_54], %83 {strides = array<i32>} : memref<2x3200xf32, #tpu.memory_space<vmem>>, vector<1x128xf32>,
    %85 = vector.extract_strided_slice %74 {offsets = [5, 0], sizes = [1, 128], strides = [1, 1]} : vector<25x128xf32> to vector<1x128xf32>
    %c1_55 = arith.constant 1 : index
    %c640_56 = arith.constant 640 : index
    %86 = vector.load %arg8[%c1_55, %c640_56] : memref<2x3200xf32, #tpu.memory_space<vmem>>, vector<1x128xf32>
    tpu.vector_store %arg8[%c1_55, %c640_56], %85 {strides = array<i32>} : memref<2x3200xf32, #tpu.memory_space<vmem>>, vector<1x128xf32>,
    %87 = vector.extract_strided_slice %74 {offsets = [6, 0], sizes = [1, 128], strides = [1, 1]} : vector<25x128xf32> to vector<1x128xf32>
    %c1_57 = arith.constant 1 : index
    %c768_58 = arith.constant 768 : index
    %88 = vector.load %arg8[%c1_57, %c768_58] : memref<2x3200xf32, #tpu.memory_space<vmem>>, vector<1x128xf32>
    tpu.vector_store %arg8[%c1_57, %c768_58], %87 {strides = array<i32>} : memref<2x3200xf32, #tpu.memory_space<vmem>>, vector<1x128xf32>,
    %89 = vector.extract_strided_slice %74 {offsets = [7, 0], sizes = [1, 128], strides = [1, 1]} : vector<25x128xf32> to vector<1x128xf32>
    %c1_59 = arith.constant 1 : index
    %c896_60 = arith.constant 896 : index
    %90 = vector.load %arg8[%c1_59, %c896_60] : memref<2x3200xf32, #tpu.memory_space<vmem>>, vector<1x128xf32>
    tpu.vector_store %arg8[%c1_59, %c896_60], %89 {strides = array<i32>} : memref<2x3200xf32, #tpu.memory_space<vmem>>, vector<1x128xf32>,
    %91 = vector.extract_strided_slice %74 {offsets = [8, 0], sizes = [1, 128], strides = [1, 1]} : vector<25x128xf32> to vector<1x128xf32>
    %c1_61 = arith.constant 1 : index
    %c1024_62 = arith.constant 1024 : index
    %92 = vector.load %arg8[%c1_61, %c1024_62] : memref<2x3200xf32, #tpu.memory_space<vmem>>, vector<1x128xf32>
    tpu.vector_store %arg8[%c1_61, %c1024_62], %91 {strides = array<i32>} : memref<2x3200xf32, #tpu.memory_space<vmem>>, vector<1x128xf32>,
    %93 = vector.extract_strided_slice %74 {offsets = [9, 0], sizes = [1, 128], strides = [1, 1]} : vector<25x128xf32> to vector<1x128xf32>
    %c1_63 = arith.constant 1 : index
    %c1152_64 = arith.constant 1152 : index
    %94 = vector.load %arg8[%c1_63, %c1152_64] : memref<2x3200xf32, #tpu.memory_space<vmem>>, vector<1x128xf32>
    tpu.vector_store %arg8[%c1_63, %c1152_64], %93 {strides = array<i32>} : memref<2x3200xf32, #tpu.memory_space<vmem>>, vector<1x128xf32>,
    %95 = vector.extract_strided_slice %74 {offsets = [10, 0], sizes = [1, 128], strides = [1, 1]} : vector<25x128xf32> to vector<1x128xf32>
    %c1_65 = arith.constant 1 : index
    %c1280_66 = arith.constant 1280 : index
    %96 = vector.load %arg8[%c1_65, %c1280_66] : memref<2x3200xf32, #tpu.memory_space<vmem>>, vector<1x128xf32>
    tpu.vector_store %arg8[%c1_65, %c1280_66], %95 {strides = array<i32>} : memref<2x3200xf32, #tpu.memory_space<vmem>>, vector<1x128xf32>,
    %97 = vector.extract_strided_slice %74 {offsets = [11, 0], sizes = [1, 128], strides = [1, 1]} : vector<25x128xf32> to vector<1x128xf32>
    %c1_67 = arith.constant 1 : index
    %c1408_68 = arith.constant 1408 : index
    %98 = vector.load %arg8[%c1_67, %c1408_68] : memref<2x3200xf32, #tpu.memory_space<vmem>>, vector<1x128xf32>
    tpu.vector_store %arg8[%c1_67, %c1408_68], %97 {strides = array<i32>} : memref<2x3200xf32, #tpu.memory_space<vmem>>, vector<1x128xf32>,
    %99 = vector.extract_strided_slice %74 {offsets = [12, 0], sizes = [1, 128], strides = [1, 1]} : vector<25x128xf32> to vector<1x128xf32>
    %c1_69 = arith.constant 1 : index
    %c1536_70 = arith.constant 1536 : index
    %100 = vector.load %arg8[%c1_69, %c1536_70] : memref<2x3200xf32, #tpu.memory_space<vmem>>, vector<1x128xf32>
    tpu.vector_store %arg8[%c1_69, %c1536_70], %99 {strides = array<i32>} : memref<2x3200xf32, #tpu.memory_space<vmem>>, vector<1x128xf32>,
    %101 = vector.extract_strided_slice %74 {offsets = [13, 0], sizes = [1, 128], strides = [1, 1]} : vector<25x128xf32> to vector<1x128xf32>
    %c1_71 = arith.constant 1 : index
    %c1664_72 = arith.constant 1664 : index
    %102 = vector.load %arg8[%c1_71, %c1664_72] : memref<2x3200xf32, #tpu.memory_space<vmem>>, vector<1x128xf32>
    tpu.vector_store %arg8[%c1_71, %c1664_72], %101 {strides = array<i32>} : memref<2x3200xf32, #tpu.memory_space<vmem>>, vector<1x128xf32>,
    %103 = vector.extract_strided_slice %74 {offsets = [14, 0], sizes = [1, 128], strides = [1, 1]} : vector<25x128xf32> to vector<1x128xf32>
    %c1_73 = arith.constant 1 : index
    %c1792_74 = arith.constant 1792 : index
    %104 = vector.load %arg8[%c1_73, %c1792_74] : memref<2x3200xf32, #tpu.memory_space<vmem>>, vector<1x128xf32>
    tpu.vector_store %arg8[%c1_73, %c1792_74], %103 {strides = array<i32>} : memref<2x3200xf32, #tpu.memory_space<vmem>>, vector<1x128xf32>,
    %105 = vector.extract_strided_slice %74 {offsets = [15, 0], sizes = [1, 128], strides = [1, 1]} : vector<25x128xf32> to vector<1x128xf32>
    %c1_75 = arith.constant 1 : index
    %c1920_76 = arith.constant 1920 : index
    %106 = vector.load %arg8[%c1_75, %c1920_76] : memref<2x3200xf32, #tpu.memory_space<vmem>>, vector<1x128xf32>
    tpu.vector_store %arg8[%c1_75, %c1920_76], %105 {strides = array<i32>} : memref<2x3200xf32, #tpu.memory_space<vmem>>, vector<1x128xf32>,
    %107 = vector.extract_strided_slice %74 {offsets = [16, 0], sizes = [1, 128], strides = [1, 1]} : vector<25x128xf32> to vector<1x128xf32>
    %c1_77 = arith.constant 1 : index
    %c2048_78 = arith.constant 2048 : index
    %108 = vector.load %arg8[%c1_77, %c2048_78] : memref<2x3200xf32, #tpu.memory_space<vmem>>, vector<1x128xf32>
    tpu.vector_store %arg8[%c1_77, %c2048_78], %107 {strides = array<i32>} : memref<2x3200xf32, #tpu.memory_space<vmem>>, vector<1x128xf32>,
    %109 = vector.extract_strided_slice %74 {offsets = [17, 0], sizes = [1, 128], strides = [1, 1]} : vector<25x128xf32> to vector<1x128xf32>
    %c1_79 = arith.constant 1 : index
    %c2176_80 = arith.constant 2176 : index
    %110 = vector.load %arg8[%c1_79, %c2176_80] : memref<2x3200xf32, #tpu.memory_space<vmem>>, vector<1x128xf32>
    tpu.vector_store %arg8[%c1_79, %c2176_80], %109 {strides = array<i32>} : memref<2x3200xf32, #tpu.memory_space<vmem>>, vector<1x128xf32>,
    %111 = vector.extract_strided_slice %74 {offsets = [18, 0], sizes = [1, 128], strides = [1, 1]} : vector<25x128xf32> to vector<1x128xf32>
    %c1_81 = arith.constant 1 : index
    %c2304_82 = arith.constant 2304 : index
    %112 = vector.load %arg8[%c1_81, %c2304_82] : memref<2x3200xf32, #tpu.memory_space<vmem>>, vector<1x128xf32>
    tpu.vector_store %arg8[%c1_81, %c2304_82], %111 {strides = array<i32>} : memref<2x3200xf32, #tpu.memory_space<vmem>>, vector<1x128xf32>,
    %113 = vector.extract_strided_slice %74 {offsets = [19, 0], sizes = [1, 128], strides = [1, 1]} : vector<25x128xf32> to vector<1x128xf32>
    %c1_83 = arith.constant 1 : index
    %c2432_84 = arith.constant 2432 : index
    %114 = vector.load %arg8[%c1_83, %c2432_84] : memref<2x3200xf32, #tpu.memory_space<vmem>>, vector<1x128xf32>
    tpu.vector_store %arg8[%c1_83, %c2432_84], %113 {strides = array<i32>} : memref<2x3200xf32, #tpu.memory_space<vmem>>, vector<1x128xf32>,
    %115 = vector.extract_strided_slice %74 {offsets = [20, 0], sizes = [1, 128], strides = [1, 1]} : vector<25x128xf32> to vector<1x128xf32>
    %c1_85 = arith.constant 1 : index
    %c2560_86 = arith.constant 2560 : index
    %116 = vector.load %arg8[%c1_85, %c2560_86] : memref<2x3200xf32, #tpu.memory_space<vmem>>, vector<1x128xf32>
    tpu.vector_store %arg8[%c1_85, %c2560_86], %115 {strides = array<i32>} : memref<2x3200xf32, #tpu.memory_space<vmem>>, vector<1x128xf32>,
    %117 = vector.extract_strided_slice %74 {offsets = [21, 0], sizes = [1, 128], strides = [1, 1]} : vector<25x128xf32> to vector<1x128xf32>
    %c1_87 = arith.constant 1 : index
    %c2688_88 = arith.constant 2688 : index
    %118 = vector.load %arg8[%c1_87, %c2688_88] : memref<2x3200xf32, #tpu.memory_space<vmem>>, vector<1x128xf32>
    tpu.vector_store %arg8[%c1_87, %c2688_88], %117 {strides = array<i32>} : memref<2x3200xf32, #tpu.memory_space<vmem>>, vector<1x128xf32>,
    %119 = vector.extract_strided_slice %74 {offsets = [22, 0], sizes = [1, 128], strides = [1, 1]} : vector<25x128xf32> to vector<1x128xf32>
    %c1_89 = arith.constant 1 : index
    %c2816_90 = arith.constant 2816 : index
    %120 = vector.load %arg8[%c1_89, %c2816_90] : memref<2x3200xf32, #tpu.memory_space<vmem>>, vector<1x128xf32>
    tpu.vector_store %arg8[%c1_89, %c2816_90], %119 {strides = array<i32>} : memref<2x3200xf32, #tpu.memory_space<vmem>>, vector<1x128xf32>,
    %121 = vector.extract_strided_slice %74 {offsets = [23, 0], sizes = [1, 128], strides = [1, 1]} : vector<25x128xf32> to vector<1x128xf32>
    %c1_91 = arith.constant 1 : index
    %c2944_92 = arith.constant 2944 : index
    %122 = vector.load %arg8[%c1_91, %c2944_92] : memref<2x3200xf32, #tpu.memory_space<vmem>>, vector<1x128xf32>
    tpu.vector_store %arg8[%c1_91, %c2944_92], %121 {strides = array<i32>} : memref<2x3200xf32, #tpu.memory_space<vmem>>, vector<1x128xf32>,
    %123 = vector.extract_strided_slice %74 {offsets = [24, 0], sizes = [1, 128], strides = [1, 1]} : vector<25x128xf32> to vector<1x128xf32>
    %c1_93 = arith.constant 1 : index
    %c3072_94 = arith.constant 3072 : index
    %124 = vector.load %arg8[%c1_93, %c3072_94] : memref<2x3200xf32, #tpu.memory_space<vmem>>, vector<1x128xf32>
    tpu.vector_store %arg8[%c1_93, %c3072_94], %123 {strides = array<i32>} : memref<2x3200xf32, #tpu.memory_space<vmem>>, vector<1x128xf32>,
    %c0_i32_95 = arith.constant 0 : i32
    %125 = tpu.memref_slice %arg11[%c0_i32_95] : memref<2x!tpu.dma_semaphore, #tpu.memory_space<semaphore_mem>> -> memref<1x!tpu.dma_semaphore, #tpu.memory_space<semaphore_mem>>
    %126 = tpu.memref_squeeze %125 : memref<1x!tpu.dma_semaphore, #tpu.memory_space<semaphore_mem>> -> memref<!tpu.dma_semaphore, #tpu.memory_space<semaphore_mem>>
    tpu.wait_dma2 semaphore(%126 : memref<!tpu.dma_semaphore, #tpu.memory_space<semaphore_mem>>) src(%arg5 : memref<3200x768xbf16, #tpu.memory_space<any>>) dst(%arg9 : memref<3200x768xbf16, #tpu.memory_space<vmem>>)
    %c0_96 = arith.constant 0 : index
    %c0_97 = arith.constant 0 : index
    %127 = vector.load %arg8[%c0_96, %c0_97] : memref<2x3200xf32, #tpu.memory_space<vmem>>, vector<2x3200xf32>
    %128 = arith.truncf %127 : vector<2x3200xf32> to vector<2x3200xbf16>
    %c0_98 = arith.constant 0 : index
    %c0_99 = arith.constant 0 : index
    %129 = vector.load %arg9[%c0_98, %c0_99] : memref<3200x768xbf16, #tpu.memory_space<vmem>>, vector<3200x768xbf16>
    %cst_100 = arith.constant dense<0.000000e+00> : vector<2x768xf32>
    %130 = tpu.matmul %128, %129, %cst_100 {dimension_numbers = #tpu.dot_dimension_numbers<[1], [0], [0], [1], [0, 0, 1, 1], [], []>} : vector<2x3200xbf16>, vector<3200x768xbf16>, vector<2x768xf32> -> vector<2x768xf32>
    %131 = vector.broadcast %7 : vector<1x768xf32> to vector<2x768xf32>
    %132 = arith.addf %130, %131 : vector<2x768xf32>
    %cst_101 = arith.constant 0.000000e+00 : f32
    %133 = vector.broadcast %cst_101 : f32 to vector<2x768xf32>
    %134 = arith.maximumf %132, %133 : vector<2x768xf32>
    %c1_i32_102 = arith.constant 1 : i32
    %135 = tpu.memref_slice %arg11[%c1_i32_102] : memref<2x!tpu.dma_semaphore, #tpu.memory_space<semaphore_mem>> -> memref<1x!tpu.dma_semaphore, #tpu.memory_space<semaphore_mem>>
    %136 = tpu.memref_squeeze %135 : memref<1x!tpu.dma_semaphore, #tpu.memory_space<semaphore_mem>> -> memref<!tpu.dma_semaphore, #tpu.memory_space<semaphore_mem>>
    tpu.wait_dma2 semaphore(%136 : memref<!tpu.dma_semaphore, #tpu.memory_space<semaphore_mem>>) src(%arg6 : memref<768x1024xbf16, #tpu.memory_space<any>>) dst(%arg10 : memref<768x1024xbf16, #tpu.memory_space<vmem>>)
    %137 = arith.truncf %134 : vector<2x768xf32> to vector<2x768xbf16>
    %c0_103 = arith.constant 0 : index
    %c0_104 = arith.constant 0 : index
    %138 = vector.load %arg10[%c0_103, %c0_104] : memref<768x1024xbf16, #tpu.memory_space<vmem>>, vector<768x1024xbf16>
    %cst_105 = arith.constant dense<0.000000e+00> : vector<2x1024xf32>
    %139 = tpu.matmul %137, %138, %cst_105 {dimension_numbers = #tpu.dot_dimension_numbers<[1], [0], [0], [1], [0, 0, 1, 1], [], []>} : vector<2x768xbf16>, vector<768x1024xbf16>, vector<2x1024xf32> -> vector<2x1024xf32>
    %140 = vector.broadcast %8 : vector<1x1024xf32> to vector<2x1024xf32>
    %141 = arith.addf %139, %140 : vector<2x1024xf32>
    %c0_106 = arith.constant 0 : index
    %c0_107 = arith.constant 0 : index
    %142 = vector.load %arg7[%c0_106, %c0_107] : memref<2x1024xf32, #tpu.memory_space<vmem>>, vector<2x1024xf32>
    tpu.vector_store %arg7[%c0_106, %c0_107], %141 {strides = array<i32>} : memref<2x1024xf32, #tpu.memory_space<vmem>>, vector<2x1024xf32>,
    return
  }
  func.func @transform_0(%arg0: i32) -> (i32, i32, i32) {
    %c0_i32 = arith.constant 0 : i32
    %c0_i32_0 = arith.constant 0 : i32
    %c0_i32_1 = arith.constant 0 : i32
    %c0_i32_2 = arith.constant 0 : i32
    return %c0_i32, %c0_i32_0, %c0_i32_1 : i32, i32, i32
  }
  func.func @transform_1(%arg0: i32) -> (i32, i32) {
    %c0_i32 = arith.constant 0 : i32
    %c0_i32_0 = arith.constant 0 : i32
    %c0_i32_1 = arith.constant 0 : i32
    return %c0_i32, %c0_i32_0 : i32, i32
  }
  func.func @transform_2(%arg0: i32) -> (i32, i32) {
    %c0_i32 = arith.constant 0 : i32
    %c0_i32_0 = arith.constant 0 : i32
    %c0_i32_1 = arith.constant 0 : i32
    return %c0_i32, %c0_i32_0 : i32, i32
  }
  func.func @transform_3(%arg0: i32) -> (i32, i32) {
    %c0_i32 = arith.constant 0 : i32
    %c0_i32_0 = arith.constant 0 : i32
    %c0_i32_1 = arith.constant 0 : i32
    return %c0_i32, %c0_i32_0 : i32, i32
  }
  func.func @transform_6(%arg0: i32) -> (i32, i32) {
    %c0_i32 = arith.constant 0 : i32
    %c0_i32_0 = arith.constant 0 : i32
    %c0_i32_1 = arith.constant 0 : i32
    return %c0_i32, %c0_i32_0 : i32, i32
  }
}

</mosaic_0001>

<bundles_post_ra>
// kernel: inception_aux_forward.1
= control target key start
LH: loop header
LB: loop body
LE: loop exit
PB: predicated region body
PF: predicated region fallthrough
CT: control target
= control target key end

     0   :  { %11 = vsyncpa [#allocation7], 0  ;;  %s6706_s0 = inlined_call_operand.vmem [shape: f32[2,384,8], index: 0, kind: input, shape index: {}]   ;;  %s6707_s1 = inlined_call_operand.hbm [shape: f32[25,384], index: 1, kind: input, shape index: {}]   ;;  %s6708_s2 = inlined_call_operand.hbm [shape: f32[8,128], index: 2, kind: input, shape index: {}]   ;;  %s6709_s3 = inlined_call_operand.hbm [shape: f32[1,1920], index: 3, kind: input, shape index: {}]   ;;  %s6710_s4 = inlined_call_operand.hbm [shape: bf16[3200,768], index: 4, kind: input, shape index: {}]   ;;  %s6711_s5 = inlined_call_operand.hbm [shape: bf16[768,1024], index: 5, kind: input, shape index: {}]   ;;  %s6712_s6 = inlined_call_operand.hbm [shape: f32[2,1024], index: 6, kind: output, shape index: {}]  }
   0x1   :  { %12 = vsyncpa [#allocation10], 0 }
   0x2   :  { %13 = vsyncpa [#allocation8], 0  ;;  %s5822_s21 = smov [#allocation9]   ;;  %s5823_s23 = smov [#allocation6]  }
   0x3   :  { %s34_s22 = sshll.u32 %s5822_s21, 4  ;;  %s21_s24 = sshll.u32 %s5823_s23, 4  ;;  %s35_s22 = int_to_ptr.vmem [resolvable:$true] %s34_s22  ;;  %s5880_s24 = int_to_ptr.vmem [resolvable:$true] %s21_s24 }
   0x4   :  { %s5724_s27 = scalar_lea.hbm %s6708_s2, 128 }
   0x5   :  { %p5725_p0 = scmp.ne.s32.totalorder %s6708_s2, %s5724_s27  ;;  %p5728_p1 = scmp.lt.u32.totalorder %s5724_s27, %s6708_s2 }
   0x7   :  { %p5730_p2 = pnand %p5728_p1, %p5725_p0 }
   0x9   :  { %5733 = shalt.err (!%p5730_p2)
}
   0xa   :  { %s5734_s8 = scalar_lea.vmem %s35_s22, 128  ;;  %p5739_p4 = scmp.lt.s32.totalorder %s35_s22, %s35_s22 }
   0xb   :  { %p5735_p3 = scmp.ne.s32.totalorder %s35_s22, %s5734_s8  ;;  %p5740_p5 = scmp.lt.s32.totalorder %s5734_s8, %s5734_s8 }
   0xd   :  { %p5741_p6 = por %p5740_p5, %p5739_p4 }
   0xf   :  { %p5742_p7 = pnand %p5741_p6, %p5735_p3 }
  0x11   :  { %5745 = shalt.err (!%p5742_p7)
}
  0x12   :  { %37 = dma.hbm_to_vmem [thread:$0]  %s6708_s2, 128, %s35_s22, [#allocation10]  }
  0x13   :  { %s5746_s13 = scalar_lea.hbm %s6707_s1, 1536 }
  0x14   :  { %p5747_p8 = scmp.ne.s32.totalorder %s6707_s1, %s5746_s13  ;;  %p5750_p9 = scmp.lt.u32.totalorder %s5746_s13, %s6707_s1 }
  0x16   :  { %p5752_p10 = pnand %p5750_p9, %p5747_p8 }
  0x18   :  { %5755 = shalt.err (!%p5752_p10)
}
  0x19   :  { %s5756_s18 = scalar_lea.vmem %s5880_s24, 1536  ;;  %p5761_p12 = scmp.lt.s32.totalorder %s5880_s24, %s5880_s24 }
  0x1a   :  { %p5757_p11 = scmp.ne.s32.totalorder %s5880_s24, %s5756_s18  ;;  %p5762_p13 = scmp.lt.s32.totalorder %s5756_s18, %s5756_s18 }
  0x1c   :  { %p5763_p0 = por %p5762_p13, %p5761_p12 }
  0x1e   :  { %p5764_p1 = pnand %p5763_p0, %p5757_p11 }
  0x20   :  { %5767 = shalt.err (!%p5764_p1)
}
  0x21   :  { %s5824_s2 = smov 384   ;;  %s5825_s19 = smov 24  }
  0x22   :  { %27 = dma.hbm_to_vmem [thread:$0]  %s6707_s1, 1536, %s5880_s24, [#allocation7], %s5824_s2, %s5824_s2, %s5825_s19  }
  0x23   :  { %s5826_s22 = smov [#allocation11]   ;;  %s5768_s27 = scalar_lea.hbm %s6709_s3, 240 }
  0x24   :  { %s44_s23 = sshll.u32 %s5826_s22, 4  ;;  %p5769_p2 = scmp.ne.s32.totalorder %s6709_s3, %s5768_s27  ;;  %s45_s23 = int_to_ptr.vmem [resolvable:$true] %s44_s23 }
  0x25   :  { %p5772_p3 = scmp.lt.u32.totalorder %s5768_s27, %s6709_s3 }
  0x27   :  { %p5774_p4 = pnand %p5772_p3, %p5769_p2 }
  0x29   :  { %5777 = shalt.err (!%p5774_p4)
}
  0x2a   :  { %s5778_s8 = scalar_lea.vmem %s45_s23, 240  ;;  %s5782_s1 = scalar_lea.vmem %s45_s23, 256 }
  0x2b   :  { %p5779_p5 = scmp.ne.s32.totalorder %s45_s23, %s5778_s8  ;;  %p5783_p6 = scmp.lt.s32.totalorder %s45_s23, %s45_s23 }
  0x2c   :  { %p5784_p7 = scmp.lt.s32.totalorder %s5782_s1, %s5778_s8 }
  0x2e   :  { %p5785_p8 = por %p5784_p7, %p5783_p6 }
  0x30   :  { %p5786_p9 = pnand %p5785_p8, %p5779_p5 }
  0x32   :  { %5789 = shalt.err (!%p5786_p9)
}
  0x33   :  { %47 = dma.hbm_to_vmem [thread:$0]  %s6709_s3, 240, %s45_s23, [#allocation10]  }
  0x34   :  { %5812 = dma.done.wait [#allocation7], 1536  }
  0x35   :  { %5813 = vsyncadd [#allocation7], 4294965760 }
  0x36   :  { %5814 = dma.done.wait [#allocation10], 368  }
  0x37   :  { %5815 = vsyncadd [#allocation10], 4294966928  ;;  %s62_s10 = sld [smem:[#allocation0]]   ;;  %s5827_s11 = smov 768   ;;  %vm368_vm0 = vcmask 64512  }
  0x38   :  { %74 = sst [smem:[#allocation14]] %s5827_s11  ;;  %s5828_s12 = smov 6  }
  0x39   :  { %76 = sst [smem:[#allocation14 + $0x1]] %s5827_s11  ;;  %s5829_s13 = smov [#allocation3]  }
  0x3a   :  { %78 = sst [smem:[#allocation14 + $0x2]] %s5828_s12  ;;  %s70_s14 = sshll.u32 %s5829_s13, 4  ;;  %s71_s14 = int_to_ptr.vmem [resolvable:$true] %s70_s14 }
  0x3b   :  { %86 = sst [smem:[#allocation14 + $0x6]] %s5824_s2  ;;  %s5830_s15 = smov 64  }
  0x3c   :  { %80 = sst [smem:[#allocation14 + $0x3]] %s5830_s15  ;;  %s5831_s17 = smov 128  }
  0x3d   :  { %s5053_s16 = sshll.u32 %s62_s10, 26  ;;  %82 = sst [smem:[#allocation14 + $0x4]] %s5831_s17 }
  0x3e   :  { %s5926_s3 = sadd.s32 134217728, %s5053_s16  ;;  %s5832_s18 = smov 2  }
  0x3f   :  { %84 = sst [smem:[#allocation14 + $0x5]] %s5832_s18  ;;  %s5833_s19 = smov 4  }
  0x40   :  { %88 = sst [smem:[#allocation14 + $0x7]] %s5830_s15  ;;  %s5834_s20 = smov [#allocation5]  }
  0x41   :  { %90 = sst [smem:[#allocation14 + $0x8]] %s5833_s19  ;;  %s5835_s21 = smov [#allocation13]  }
  0x42   :  { %92 = dma.general %s6710_s4, 153600, %s71_s14, %s5834_s20, %s5835_s21, [#allocation14], %s5926_s3, 0  }
  0x43   :  { %s5836_s2 = smov 1024   ;;  %s5837_s25 = smov 8  }
  0x44   :  { %109 = sst [smem:[#allocation16]] %s5836_s2  ;;  %s5838_s26 = smov [#allocation4]  }
  0x45   :  { %111 = sst [smem:[#allocation16 + $0x1]] %s5836_s2  ;;  %s105_s27 = sshll.u32 %s5838_s26, 4  ;;  %s106_s27 = int_to_ptr.vmem [resolvable:$true] %s105_s27 }
  0x46   :  { %113 = sst [smem:[#allocation16 + $0x2]] %s5837_s25  ;;  %s5839_s28 = smov 512  }
  0x47   :  { %115 = sst [smem:[#allocation16 + $0x3]] %s5830_s15  ;;  %s5840_s29 = smov [#allocation5 + $0x1]  }
  0x48   :  { %117 = sst [smem:[#allocation16 + $0x4]] %s5831_s17  ;;  %s5841_s30 = smov [#allocation15]  }
  0x49   :  { %119 = sst [smem:[#allocation16 + $0x5]] %s5832_s18 }
  0x4a   :  { %121 = sst [smem:[#allocation16 + $0x6]] %s5839_s28 }
  0x4b   :  { %123 = sst [smem:[#allocation16 + $0x7]] %s5830_s15 }
  0x4c   :  { %125 = sst [smem:[#allocation16 + $0x8]] %s5833_s19 }
  0x4d   :  { %127 = dma.general %s6711_s5, 49152, %s106_s27, %s5840_s29, %s5841_s30, [#allocation16], %s5926_s3, 0  }
  0x4e   :  { %v5936_v0 = vld [vmem:[#allocation11 + $0x1] sm:$0x3f]  ;;  %v5938_v1 = vld [vmem:[#allocation11 + $0x7] sm:$0xff]  ;;  %v162_v10 = vld [vmem:[%s6706_s0 + $0x90] sm:$0xff] }
  0x4f   :  { %v160_v2 = vld [vmem:[%s6706_s0 + $0x80] sm:$0xff]  ;;  %v161_v3 = vld [vmem:[%s6706_s0 + $0x88] sm:$0xff]  ;;  %v163_v12 = vld [vmem:[%s6706_s0 + $0x98] sm:$0xff] }
  0x50   :  { %v144_v4 = vld [vmem:[%s6706_s0] sm:$0xff]  ;;  %v145_v5 = vld [vmem:[%s6706_s0 + $0x8] sm:$0xff]  ;;  %v5377_v6 = vpack.c.bf16 %v161_v3, %v160_v2  ;;  %v146_v13 = vld [vmem:[%s6706_s0 + $0x10] sm:$0xff]  ;;  %v5381_v15 = vpack.c.bf16 %v163_v12, %v162_v10 }
  0x51   :  { %v5379_v7 = vpack.c.bf16 %v145_v5, %v144_v4  ;;  %v176_v8 = vld [vmem:[%s6706_s0 + $0x100] sm:$0xff]  ;;  %v177_v9 = vld [vmem:[%s6706_s0 + $0x108] sm:$0xff]  ;;  %v147_v14 = vld [vmem:[%s6706_s0 + $0x18] sm:$0xff] }
  0x52   :  { %v5409_v11 = vpack.c.bf16 %v177_v9, %v176_v8  ;;  %5378 = vmatprep.subr.bf16.mxu0 %v5377_v6  ;;  %v178_v16 = vld [vmem:[%s6706_s0 + $0x110] sm:$0xff]  ;;  %v179_v17 = vld [vmem:[%s6706_s0 + $0x118] sm:$0xff]  ;;  %v164_v18 = vld [vmem:[%s6706_s0 + $0xa0] sm:$0xff]  ;;  %v5383_v19 = vpack.c.bf16 %v147_v14, %v146_v13 }
  0x53   :  { %5380 = vmatpush3.bf16.msra.mxu0 %v5379_v7  ;;  %v5413_v20 = vpack.c.bf16 %v179_v17, %v178_v16  ;;  %v165_v21 = vld [vmem:[%s6706_s0 + $0xa8] sm:$0xff]  ;;  %v148_v22 = vld [vmem:[%s6706_s0 + $0x20] sm:$0xff]  ;;  %v166_v28 = vld [vmem:[%s6706_s0 + $0xb0] sm:$0xff] }
  0x54   :  { %5410 = vmatprep.subr.bf16.mxu1 %v5409_v11  ;;  %5382 = vmatprep.subr.bf16.mxu0 %v5381_v15  ;;  %v5385_v23 = vpack.c.bf16 %v165_v21, %v164_v18  ;;  %v149_v24 = vld [vmem:[%s6706_s0 + $0x28] sm:$0xff]  ;;  %v180_v25 = vld [vmem:[%s6706_s0 + $0x120] sm:$0xff]  ;;  %v167_v29 = vld [vmem:[%s6706_s0 + $0xb8] sm:$0xff] }
  0x55   :  { %5412 = vmatpush3.bf16.msra.mxu1 %v5409_v11  ;;  %v181_v26 = vld [vmem:[%s6706_s0 + $0x128] sm:$0xff]  ;;  %v182_v30 = vld [vmem:[%s6706_s0 + $0x130] sm:$0xff]  ;;  %v183_v31 = vld [vmem:[%s6706_s0 + $0x138] sm:$0xff]  ;;  %v5387_v32 = vpack.c.bf16 %v149_v24, %v148_v22  ;;  %v5389_v33 = vpack.c.bf16 %v167_v29, %v166_v28 }
  0x56   :  { %5414 = vmatprep.subr.bf16.mxu1 %v5413_v20  ;;  %v5417_v27 = vpack.c.bf16 %v181_v26, %v180_v25  ;;  %v150_v34 = vld [vmem:[%s6706_s0 + $0x30] sm:$0xff]  ;;  %v151_v35 = vld [vmem:[%s6706_s0 + $0x38] sm:$0xff]  ;;  %v5421_v36 = vpack.c.bf16 %v183_v31, %v182_v30  ;;  %v168_v37 = vld [vmem:[%s6706_s0 + $0xc0] sm:$0xff] }
  0x57   :  { %5384 = vmatpush3.bf16.msra.mxu0 %v5383_v19  ;;  %v169_v38 = vld [vmem:[%s6706_s0 + $0xc8] sm:$0xff]  ;;  %v184_v39 = vld [vmem:[%s6706_s0 + $0x140] sm:$0xff]  ;;  %v5391_v41 = vpack.c.bf16 %v151_v35, %v150_v34  ;;  %v170_v46 = vld [vmem:[%s6706_s0 + $0xd0] sm:$0xff] }
  0x58   :  { %5386 = vmatprep.subr.bf16.mxu0 %v5385_v23  ;;  %v185_v40 = vld [vmem:[%s6706_s0 + $0x148] sm:$0xff]  ;;  %v5393_v42 = vpack.c.bf16 %v169_v38, %v168_v37  ;;  %v152_v43 = vld [vmem:[%s6706_s0 + $0x40] sm:$0xff]  ;;  %v171_v47 = vld [vmem:[%s6706_s0 + $0xd8] sm:$0xff] }
  0x59   :  { %5416 = vmatpush3.bf16.msra.mxu1 %v5413_v20  ;;  %v153_v44 = vld [vmem:[%s6706_s0 + $0x48] sm:$0xff]  ;;  %v5425_v45 = vpack.c.bf16 %v185_v40, %v184_v39  ;;  %v186_v48 = vld [vmem:[%s6706_s0 + $0x150] sm:$0xff]  ;;  %v187_v49 = vld [vmem:[%s6706_s0 + $0x158] sm:$0xff]  ;;  %v5397_v53 = vpack.c.bf16 %v171_v47, %v170_v46 }
  0x5a   :  { %5418 = vmatprep.subr.bf16.mxu1 %v5417_v27  ;;  %v6042_v50 = vld [vmem:[#allocation6 + $0x8] sm:$0xff]  ;;  %v5395_v51 = vpack.c.bf16 %v153_v44, %v152_v43  ;;  %v130_v52 = vld [vmem:[#allocation6 + $0x10] sm:$0xff]  ;;  %v154_v54 = vld [vmem:[%s6706_s0 + $0x50] sm:$0xff]  ;;  %v5429_v56 = vpack.c.bf16 %v187_v49, %v186_v48 }
  0x5b   :  { %5388 = vmatpush3.bf16.msra.mxu0 %v5387_v32  ;;  %256 = vmatprep.mubr.f32.mxu0 %v6042_v50  ;;  %v155_v55 = vld [vmem:[%s6706_s0 + $0x58] sm:$0xff]  ;;  %v172_v57 = vld [vmem:[%s6706_s0 + $0xe0] sm:$0xff]  ;;  %v173_v58 = vld [vmem:[%s6706_s0 + $0xe8] sm:$0xff] }
  0x5c   :  { %5390 = vmatprep.subr.bf16.mxu0 %v5389_v33  ;;  %5317 = vmatprep.mubr.f32.mxu1 %v130_v52  ;;  %v188_v59 = vld [vmem:[%s6706_s0 + $0x160] sm:$0xff]  ;;  %v189_v60 = vld [vmem:[%s6706_s0 + $0x168] sm:$0xff]  ;;  %v5399_v61 = vpack.c.bf16 %v155_v55, %v154_v54  ;;  %v5401_v62 = vpack.c.bf16 %v173_v58, %v172_v57  ;;  %v174_v4 = vld [vmem:[%s6706_s0 + $0xf0] sm:$0xff] }
  0x5d   :  { %5420 = vmatpush3.bf16.msra.mxu1 %v5417_v27  ;;  %v156_v63 = vld [vmem:[%s6706_s0 + $0x60] sm:$0xff]  ;;  %v157_v2 = vld [vmem:[%s6706_s0 + $0x68] sm:$0xff]  ;;  %v5433_v3 = vpack.c.bf16 %v189_v60, %v188_v59  ;;  %v175_v5 = vld [vmem:[%s6706_s0 + $0xf8] sm:$0xff] }
  0x5e   :  { %5422 = vmatprep.subr.bf16.mxu1 %v5421_v36  ;;  %v190_v6 = vld [vmem:[%s6706_s0 + $0x170] sm:$0xff]  ;;  %v191_v7 = vld [vmem:[%s6706_s0 + $0x178] sm:$0xff]  ;;  %v5403_v8 = vpack.c.bf16 %v157_v2, %v156_v63  ;;  %v5405_v9 = vpack.c.bf16 %v175_v5, %v174_v4  ;;  %v139_v21 = vld [vmem:[#allocation6 + $0x58] sm:$0x1] }
  0x5f   :  { %5392 = vmatpush3.bf16.msra.mxu0 %v5391_v41  ;;  %v158_v10 = vld [vmem:[%s6706_s0 + $0x70] sm:$0xff]  ;;  %v159_v11 = vld [vmem:[%s6706_s0 + $0x78] sm:$0xff]  ;;  %v5437_v12 = vpack.c.bf16 %v191_v7, %v190_v6  ;;  %v6109_v22 = vld [vmem:[#allocation6 + $0x30] sm:$0xff] }
  0x60   :  { %5394 = vmatprep.subr.bf16.mxu0 %v5393_v42  ;;  %v5407_v13 = vpack.c.bf16 %v159_v11, %v158_v10  ;;  %v6087_v14 = vld [vmem:[#allocation9] sm:$0xff]  ;;  %v6091_v16 = vld [vmem:[#allocation6 + $0x28] sm:$0xff]  ;;  %v6101_v19 = vld [vmem:[#allocation6 + $0x18] sm:$0xff] }
  0x61   :  { %5424 = vmatpush3.bf16.msra.mxu1 %v5421_v36  ;;  %v6089_v15 = vld [vmem:[#allocation6] sm:$0xff]  ;;  %v6103_v20 = vld [vmem:[#allocation6 + $0x38] sm:$0xff]  ;;  %v6111_v23 = vld [vmem:[#allocation6 + $0x50] sm:$0x1] }
  0x62   :  { %5426 = vmatprep.subr.bf16.mxu1 %v5425_v45  ;;  %v6093_v17 = vld [vmem:[#allocation6 + $0x20] sm:$0xff]  ;;  %v6115_v24 = vld [vmem:[#allocation6 + $0x48] sm:$0x1]  ;;  %v5093_v25 = vld [vmem:[%s6706_s0 + $0x200] sm:$0xff] }
  0x63   :  { %5396 = vmatpush3.bf16.msra.mxu0 %v5395_v51  ;;  %v6096_v18 = vld [vmem:[#allocation6 + $0x40] sm:$0xff]  ;;  %v5094_v26 = vld [vmem:[%s6706_s0 + $0x208] sm:$0xff]  ;;  %v5109_v28 = vld [vmem:[%s6706_s0 + $0x280] sm:$0xff] }
  0x64   :  { %5398 = vmatprep.subr.bf16.mxu0 %v5397_v53  ;;  %v5441_v27 = vpack.c.bf16 %v5094_v26, %v5093_v25  ;;  %v5110_v29 = vld [vmem:[%s6706_s0 + $0x288] sm:$0xff]  ;;  %v5111_v31 = vld [vmem:[%s6706_s0 + $0x290] sm:$0xff]  ;;  %v5112_v32 = vld [vmem:[%s6706_s0 + $0x298] sm:$0xff] }
  0x65   :  { %5428 = vmatpush3.bf16.msra.mxu1 %v5425_v45  ;;  %v5473_v30 = vpack.c.bf16 %v5110_v29, %v5109_v28  ;;  %v5477_v33 = vpack.c.bf16 %v5112_v32, %v5111_v31  ;;  %v5113_v34 = vld [vmem:[%s6706_s0 + $0x2a0] sm:$0xff]  ;;  %v5114_v35 = vld [vmem:[%s6706_s0 + $0x2a8] sm:$0xff]  ;;  %v5115_v37 = vld [vmem:[%s6706_s0 + $0x2b0] sm:$0xff] }
  0x66   :  { %5430 = vmatprep.subr.bf16.mxu1 %v5429_v56  ;;  %v5481_v36 = vpack.c.bf16 %v5114_v35, %v5113_v34  ;;  %v5116_v38 = vld [vmem:[%s6706_s0 + $0x2b8] sm:$0xff]  ;;  %v5117_v40 = vld [vmem:[%s6706_s0 + $0x2c0] sm:$0xff]  ;;  %v5118_v41 = vld [vmem:[%s6706_s0 + $0x2c8] sm:$0xff] }
  0x67   :  { %5400 = vmatpush3.bf16.msra.mxu0 %v5399_v61  ;;  %v5485_v39 = vpack.c.bf16 %v5116_v38, %v5115_v37  ;;  %v5489_v42 = vpack.c.bf16 %v5118_v41, %v5117_v40  ;;  %v5119_v43 = vld [vmem:[%s6706_s0 + $0x2d0] sm:$0xff]  ;;  %v5120_v44 = vld [vmem:[%s6706_s0 + $0x2d8] sm:$0xff]  ;;  %v5121_v46 = vld [vmem:[%s6706_s0 + $0x2e0] sm:$0xff] }
  0x68   :  { %5402 = vmatprep.subr.bf16.mxu0 %v5401_v62  ;;  %v5493_v45 = vpack.c.bf16 %v5120_v44, %v5119_v43  ;;  %v5122_v47 = vld [vmem:[%s6706_s0 + $0x2e8] sm:$0xff]  ;;  %v5123_v49 = vld [vmem:[%s6706_s0 + $0x2f0] sm:$0xff]  ;;  %v5124_v51 = vld [vmem:[%s6706_s0 + $0x2f8] sm:$0xff] }
  0x69   :  { %5432 = vmatpush3.bf16.msra.mxu1 %v5429_v56  ;;  %v5497_v48 = vpack.c.bf16 %v5122_v47, %v5121_v46  ;;  %v5077_v60 = vld [vmem:[%s6706_s0 + $0x180] sm:$0xff]  ;;  %v5078_v61 = vld [vmem:[%s6706_s0 + $0x188] sm:$0xff]  ;;  %v5095_v63 = vld [vmem:[%s6706_s0 + $0x210] sm:$0xff] }
  0x6a   :  { %5434 = vmatprep.subr.bf16.mxu1 %v5433_v3  ;;  %v5096_v2 = vld [vmem:[%s6706_s0 + $0x218] sm:$0xff]  ;;  %v5443_v6 = vpack.c.bf16 %v5078_v61, %v5077_v60  ;;  %v5081_v26 = vld [vmem:[%s6706_s0 + $0x1a0] sm:$0xff]  ;;  %v5102_v40 = vld [vmem:[%s6706_s0 + $0x248] sm:$0xff] }
  0x6b   :  { %5404 = vmatpush3.bf16.msra.mxu0 %v5403_v8  ;;  %v5445_v8 = vpack.c.bf16 %v5096_v2, %v5095_v63  ;;  %v5080_v10 = vld [vmem:[%s6706_s0 + $0x198] sm:$0xff]  ;;  %v5085_v43 = vld [vmem:[%s6706_s0 + $0x1c0] sm:$0xff]  ;;  %v5086_v44 = vld [vmem:[%s6706_s0 + $0x1c8] sm:$0xff] }
  0x6c   :  { %5406 = vmatprep.subr.bf16.mxu0 %v5405_v9  ;;  %v5079_v9 = vld [vmem:[%s6706_s0 + $0x190] sm:$0xff]  ;;  %v5100_v31 = vld [vmem:[%s6706_s0 + $0x238] sm:$0xff] }
  0x6d   :  { %5436 = vmatpush3.bf16.msra.mxu1 %v5433_v3  ;;  %v5084_v37 = vld [vmem:[%s6706_s0 + $0x1b8] sm:$0xff]  ;;  %v5091_v61 = vld [vmem:[%s6706_s0 + $0x1f0] sm:$0xff] }
  0x6e   :  { %5438 = vmatprep.subr.bf16.mxu1 %v5437_v12  ;;  %v5104_v46 = vld [vmem:[%s6706_s0 + $0x258] sm:$0xff] }
  0x6f   :  { %5408 = vmatpush3.bf16.msra.mxu0 %v5407_v13  ;;  %v5098_v13 = vld [vmem:[%s6706_s0 + $0x228] sm:$0xff] }
  0x70   :  { %5323 = vmatprep.subr.mxu0 %v6087_v14 }
  0x71   :  { %5440 = vmatpush3.bf16.msra.mxu1 %v5437_v12  ;;  %v5097_v12 = vld [vmem:[%s6706_s0 + $0x220] sm:$0xff] }
  0x72   :  { %257 = vmatmul.mubr.f32.vlgmr.msra.gmra.mrb[0].mxu0 %v6089_v15  ;;  %5474 = vmatprep.subr.bf16.mxu1 %v5473_v30  ;;  %v5449_v25 = vpack.c.bf16 %v5098_v13, %v5097_v12 }
  0x73   :  { %261 = vmatprep.mubr.f32.mxu0 %v6093_v17  ;;  %5324 = vmatpush3.msra.mxu0 %v6087_v14 }
  0x74   :  { %5318 = vmatmul.mubr.f32.vlgmr.msra.gmra.mrb[0].mxu1 %v6091_v16  ;;  %5442 = vmatprep.subr.bf16.mxu0 %v5441_v27  ;;  %v5082_v27 = vld [vmem:[%s6706_s0 + $0x1a8] sm:$0xff] }
  0x75   :  { %5320 = vmatprep.mubr.f32.mxu1 %v6096_v18  ;;  %5476 = vmatpush3.bf16.msra.mxu1 %v5473_v30  ;;  %v5099_v30 = vld [vmem:[%s6706_s0 + $0x230] sm:$0xff]  ;;  %v5451_v34 = vpack.c.bf16 %v5082_v27, %v5081_v26 }
  0x76   :  { %262 = vmatmul.mubr.f32.gmra.mrb[2].mxu0 %v6101_v19  ;;  %5478 = vmatprep.subr.bf16.mxu1 %v5477_v33  ;;  %v5453_v35 = vpack.c.bf16 %v5100_v31, %v5099_v30 }
  0x77   :  { %266 = vmatprep.mubr.f32.mxu0 %v6103_v20 }
  0x78   :  { %5321 = vmatmul.mubr.f32.gmra.mrb[2].mxu1 %v139_v21 }
  0x79   :  { %5363 = vmatprep.mubr.f32.mxu1 %v130_v52  ;;  %5480 = vmatpush3.bf16.msra.mxu1 %v5477_v33  ;;  %v5501_v52 = vpack.c.bf16 %v5124_v51, %v5123_v49  ;;  %v5088_v49 = vld [vmem:[%s6706_s0 + $0x1d8] sm:$0xff]  ;;  %v5105_v51 = vld [vmem:[%s6706_s0 + $0x260] sm:$0xff] }
  0x7a   :  { %267 = vmatmul.mubr.f32.gmra.mrb[4].mxu0 %v6109_v22  ;;  %5482 = vmatprep.subr.bf16.mxu1 %v5481_v36 }
  0x7b   :  { %271 = vmatprep.mubr.f32.mxu0 %v6111_v23 }
  0x7d   :  { %5484 = vmatpush3.bf16.msra.mxu1 %v5481_v36  ;;  %v5083_v36 = vld [vmem:[%s6706_s0 + $0x1b0] sm:$0xff] }
  0x7e   :  { %272 = vmatmul.mubr.f32.gmra.mrb[6].mxu0 %v6115_v24  ;;  %5486 = vmatprep.subr.bf16.mxu1 %v5485_v39  ;;  %v5455_v41 = vpack.c.bf16 %v5084_v37, %v5083_v36 }
  0x81   :  { %5488 = vmatpush3.bf16.msra.mxu1 %v5485_v39  ;;  %v5101_v39 = vld [vmem:[%s6706_s0 + $0x240] sm:$0xff] }
  0x82   :  { %5490 = vmatprep.subr.bf16.mxu1 %v5489_v42 }
  0x85   :  { %5492 = vmatpush3.bf16.msra.mxu1 %v5489_v42  ;;  %v5457_v42 = vpack.c.bf16 %v5102_v40, %v5101_v39 }
  0x86   :  { %5494 = vmatprep.subr.bf16.mxu1 %v5493_v45 }
  0x89   :  { %5496 = vmatpush3.bf16.msra.mxu1 %v5493_v45  ;;  %v5103_v45 = vld [vmem:[%s6706_s0 + $0x250] sm:$0xff] }
  0x8a   :  { %5498 = vmatprep.subr.bf16.mxu1 %v5497_v48  ;;  %v5461_v47 = vpack.c.bf16 %v5104_v46, %v5103_v45 }
  0x8d   :  { %5500 = vmatpush3.bf16.msra.mxu1 %v5497_v48  ;;  %v5087_v48 = vld [vmem:[%s6706_s0 + $0x1d0] sm:$0xff] }
  0x8e   :  { %5502 = vmatprep.subr.bf16.mxu1 %v5501_v52 }
  0x91   :  { %5504 = vmatpush3.bf16.msra.mxu1 %v5501_v52  ;;  %v5106_v52 = vld [vmem:[%s6706_s0 + $0x268] sm:$0xff] }
  0x94   :  { %5364 = vmatmul.mubr.f32.vlgmr.msra.gmra.mrb[4].mxu1 %v6091_v16 }
  0x95   :  { %5366 = vmatprep.mubr.f32.mxu1 %v6096_v18 }
  0x98   :  { %5367 = vmatmul.mubr.f32.gmra.mrb[6].mxu1 %v139_v21  ;;  %v5447_v21 = vpack.c.bf16 %v5080_v10, %v5079_v9 }
 0x145   :  { %v5179_v53 = vpop.f32.mrb[0].mxu0 }
 0x146   :  { %v5180_v54 = vpop.f32.mrb[1].mxu0 }
 0x147   :  { %v5319_v55 = vpop.f32.mrb[0].mxu1  ;;  %v5181_v56 = vadd.f32 %v5180_v54, %v5179_v53  ;;  %v5463_v53 = vpack.c.bf16 %v5088_v49, %v5087_v48  ;;  %v5465_v54 = vpack.c.bf16 %v5106_v52, %v5105_v51 }
 0x148   :  { %v343_v57 = vpop.f32.mrb[1].mxu1 }
 0x149   :  { %v344_v58 = vadd.f32 %v5181_v56, %v343_v57  ;;  %v5182_v59 = vpop.f32.mrb[2].mxu0  ;;  %v5090_v56 = vld [vmem:[%s6706_s0 + $0x1e8] sm:$0xff]  ;;  %v5107_v57 = vld [vmem:[%s6706_s0 + $0x270] sm:$0xff] }
 0x14a   :  { %v5183_v62 = vpop.f32.mrb[3].mxu0 }
 0x14b   :  { %v5322_v3 = vpop.f32.mrb[2].mxu1  ;;  %v5184_v4 = vadd.f32 %v5183_v62, %v5182_v59  ;;  %5325 = vmatprep.mubr.msk.f32.mxu0 %vm368_vm0, %v344_v58  ;;  %v5108_v58 = vld [vmem:[%s6706_s0 + $0x278] sm:$0xff] }
 0x14c   :  { %v353_v5 = vpop.f32.mrb[3].mxu1  ;;  %v5469_v60 = vpack.c.bf16 %v5108_v58, %v5107_v57  ;;  %v5092_v62 = vld [vmem:[%s6706_s0 + $0x1f8] sm:$0xff] }
 0x14d   :  { %v349_v7 = vadd.f32 %v5319_v55, %v5184_v4  ;;  %v5185_v11 = vpop.f32.mrb[4].mxu0  ;;  %v5089_v55 = vld [vmem:[%s6706_s0 + $0x1e0] sm:$0xff]  ;;  %v5471_v63 = vpack.c.bf16 %v5092_v62, %v5091_v61 }
 0x14e   :  { %v5186_v16 = vpop.f32.mrb[5].mxu0  ;;  %v5467_v59 = vpack.c.bf16 %v5090_v56, %v5089_v55 }
 0x14f   :  { %5326 = vmatmul.mubr.msk.f32.vlgmr.msra.gmra.mrb[8].mxu0 %vm368_vm0, %v349_v7  ;;  %v5187_v18 = vadd.f32 %v5186_v16, %v5185_v11 }
 0x150   :  { %5444 = vmatpush3.bf16.msra.mxu0 %v5443_v6 }
 0x151   :  { %5446 = vmatprep.subr.bf16.mxu0 %v5445_v8  ;;  %v5188_v28 = vpop.f32.mrb[6].mxu0  ;;  %v354_v29 = vadd.f32 %v5187_v18, %v353_v5  ;;  %v475_v5 = vlaneseq }
 0x152   :  { %v5189_v32 = vpop.f32.mrb[7].mxu0 }
 0x153   :  { %v5190_v33 = vadd.f32 %v5189_v32, %v5188_v28  ;;  %5328 = vmatprep.mubr.msk.f32.mxu0 %vm368_vm0, %v354_v29  ;;  %v6286_v6 = vshrl.u32 %v475_v5, 7 }
 0x154   :  { %5448 = vmatpush3.bf16.msra.mxu0 %v5447_v21 }
 0x155   :  { %5450 = vmatprep.subr.bf16.mxu0 %v5449_v25  ;;  %v359_v38 = vadd.f32 %v5322_v3, %v5190_v33 }
 0x157   :  { %5329 = vmatmul.mubr.msk.f32.gmra.mrb[10].mxu0 %vm368_vm0, %v359_v38 }
 0x158   :  { %5452 = vmatpush3.bf16.msra.mxu0 %v5451_v34  ;;  %707 = vmatprep.mubr.f32.mxu0 %v6042_v50  ;;  %v5459_v50 = vpack.c.bf16 %v5086_v44, %v5085_v43 }
 0x159   :  { %5454 = vmatprep.subr.bf16.mxu0 %v5453_v35 }
 0x15c   :  { %5456 = vmatpush3.bf16.msra.mxu0 %v5455_v41 }
 0x15d   :  { %5458 = vmatprep.subr.bf16.mxu0 %v5457_v42 }
 0x160   :  { %5460 = vmatpush3.bf16.msra.mxu0 %v5459_v50 }
 0x161   :  { %5462 = vmatprep.subr.bf16.mxu0 %v5461_v47 }
 0x164   :  { %5464 = vmatpush3.bf16.msra.mxu0 %v5463_v53 }
 0x165   :  { %5466 = vmatprep.subr.bf16.mxu0 %v5465_v54 }
 0x167   :  { %v6278_v2 = vpop.f32.mrb[4].mxu1 }
 0x168   :  { %5468 = vmatpush3.bf16.msra.mxu0 %v5467_v59  ;;  %v6280_v3 = vpop.f32.mrb[5].mxu1 }
 0x169   :  { %5470 = vmatprep.subr.bf16.mxu0 %v5469_v60 }
 0x16b   :  { %v6282_v4 = vpop.f32.mrb[6].mxu1 }
 0x16c   :  { %5472 = vmatpush3.bf16.msra.mxu0 %v5471_v63 }
 0x16d   :  { %5369 = vmatprep.subr.mxu0 %v6087_v14 }
 0x16f   :  { %708 = vmatmul.mubr.f32.vlgmr.msra.gmra.mrb[12].mxu0 %v6089_v15  ;;  %v6284_v15 = vpop.f32.mrb[7].mxu1 }
 0x170   :  { %712 = vmatprep.mubr.f32.mxu0 %v6093_v17  ;;  %5370 = vmatpush3.msra.mxu0 %v6087_v14  ;;  %v5842_v17 = vmov 1983009808  }
 0x171   :  { %v473_v14 = vunpack.c.l.s4 %v5842_v17 }
 0x173   :  { %713 = vmatmul.mubr.f32.gmra.mrb[14].mxu0 %v6101_v19  ;;  %v474_v19 = vunpack.c.0.s8 %v473_v14 }
 0x174   :  { %717 = vmatprep.mubr.f32.mxu0 %v6103_v20  ;;  %v6288_v20 = vld [vmem:[#allocation11] ss:$0 sm:$0xff] }
 0x177   :  { %718 = vmatmul.mubr.f32.gmra.mrb[16].mxu0 %v6109_v22 }
 0x178   :  { %722 = vmatprep.mubr.f32.mxu0 %v6111_v23 }
 0x17b   :  { %723 = vmatmul.mubr.f32.gmra.mrb[18].mxu0 %v6115_v24  ;;  %v6292_v24 = vsub.s32 %v474_v19, %v6286_v6 }
 0x222   :  { %v5327_v22 = vpop.f32.mrb[8].mxu0 }
 0x223   :  { %v453_v23 = vadd.f32 %v5327_v22, %v6288_v20  ;;  %v447_v7 = vpop.f32.mrb[9].mxu0 }
 0x224   :  { %v448_v8 = vadd.f32 %v6288_v20, %v447_v7 }
 0x225   :  { %v467_v9 = vmax.f32 %v453_v23, 0.0 }
 0x226   :  { %v466_v10 = vmax.f32 %v448_v8, 0.0 }
 0x227   :  { %511 = vst [vmem:[#allocation2 + $0x10] sm:$0x1] %v467_v9  ;;  %v519_v11 = vrot.slane %v467_v9, %v6292_v24  ;;  %v531_v12 = vcombine.high %v467_v9, %v467_v9 }
 0x228   :  { %470 = vst [vmem:[#allocation2] sm:$0x1] %v466_v10  ;;  %v478_v13 = vrot.slane %v466_v10, %v6292_v24  ;;  %v490_v16 = vcombine.high %v466_v10, %v466_v10 }
 0x229   :  { %v5067_v18 = vrot.slane %v519_v11, 9  ;;  %v524_v21 = vcombine.high %v519_v11, %v519_v11  ;;  %v538_v25 = vrot.slane %v531_v12, %v6292_v24  ;;  %5069 = vst.sshfl [vmem:[#allocation2 + $0x18] sm:$0x1 pattern:$0x76325410] %v531_v12 }
 0x22a   :  { %v5062_v26 = vrot.slane %v478_v13, 9  ;;  %v483_v27 = vcombine.high %v478_v13, %v478_v13  ;;  %v497_v28 = vrot.slane %v490_v16, %v6292_v24  ;;  %5064 = vst.sshfl [vmem:[#allocation2 + $0x8] sm:$0x1 pattern:$0x76325410] %v490_v16  ;;  %v5330_v29 = vpop.f32.mrb[10].mxu0 }
 0x22b   :  { %523 = vst [vmem:[#allocation2 + $0x12] sm:$0x1] %v5067_v18  ;;  %526 = vst [vmem:[#allocation2 + $0x14] sm:$0x1] %v524_v21  ;;  %v5068_v30 = vrot.slane %v524_v21, 9  ;;  %v5070_v31 = vrot.slane %v538_v25, 9  ;;  %v545_v32 = vcombine.high %v538_v25, %v538_v25  ;;  %v463_v33 = vadd.f32 %v5330_v29, %v6288_v20 }
 0x22c   :  { %v457_v34 = vpop.f32.mrb[11].mxu0  ;;  %482 = vst [vmem:[#allocation2 + $0x2] sm:$0x1] %v5062_v26  ;;  %485 = vst [vmem:[#allocation2 + $0x4] sm:$0x1] %v483_v27  ;;  %v5063_v35 = vrot.slane %v483_v27, 9  ;;  %v504_v37 = vcombine.high %v497_v28, %v497_v28 }
 0x22d   :  { %v5065_v36 = vrot.slane %v497_v28, 9  ;;  %v458_v38 = vadd.f32 %v6288_v20, %v457_v34  ;;  %530 = vst [vmem:[#allocation2 + $0x16] sm:$0x1] %v5068_v30  ;;  %544 = vst [vmem:[#allocation2 + $0x1a] sm:$0x1] %v5070_v31  ;;  %v5071_v39 = vrot.slane %v545_v32, 9 }
 0x22e   :  { %547 = vst [vmem:[#allocation2 + $0x1c] sm:$0x1] %v545_v32  ;;  %v469_v40 = vmax.f32 %v463_v33, 0.0  ;;  %489 = vst [vmem:[#allocation2 + $0x6] sm:$0x1] %v5063_v35  ;;  %v5066_v41 = vrot.slane %v504_v37, 9 }
 0x22f   :  { %503 = vst [vmem:[#allocation2 + $0xa] sm:$0x1] %v5065_v36  ;;  %506 = vst [vmem:[#allocation2 + $0xc] sm:$0x1] %v504_v37  ;;  %v468_v42 = vmax.f32 %v458_v38, 0.0 }
 0x230   :  { %551 = vst [vmem:[#allocation2 + $0x1e] sm:$0x1] %v5071_v39  ;;  %593 = vst [vmem:[#allocation2 + $0x30] sm:$0x1] %v469_v40 }
 0x231   :  { %510 = vst [vmem:[#allocation2 + $0xe] sm:$0x1] %v5066_v41  ;;  %552 = vst [vmem:[#allocation2 + $0x20] sm:$0x1] %v468_v42  ;;  %v560_v43 = vrot.slane %v468_v42, %v6292_v24  ;;  %v572_v44 = vcombine.high %v468_v42, %v468_v42 }
 0x233   :  { %v5072_v45 = vrot.slane %v560_v43, 9  ;;  %v565_v46 = vcombine.high %v560_v43, %v560_v43  ;;  %v579_v50 = vrot.slane %v572_v44, %v6292_v24  ;;  %5074 = vst.sshfl [vmem:[#allocation2 + $0x28] sm:$0x1 pattern:$0x76325410] %v572_v44 }
 0x235   :  { %564 = vst [vmem:[#allocation2 + $0x22] sm:$0x1] %v5072_v45  ;;  %567 = vst [vmem:[#allocation2 + $0x24] sm:$0x1] %v565_v46  ;;  %v5073_v47 = vrot.slane %v565_v46, 9  ;;  %v5075_v48 = vrot.slane %v579_v50, 9  ;;  %v586_v49 = vcombine.high %v579_v50, %v579_v50 }
 0x237   :  { %571 = vst [vmem:[#allocation2 + $0x26] sm:$0x1] %v5073_v47  ;;  %585 = vst [vmem:[#allocation2 + $0x2a] sm:$0x1] %v5075_v48  ;;  %v5076_v51 = vrot.slane %v586_v49, 9 }
 0x238   :  { %588 = vst [vmem:[#allocation2 + $0x2c] sm:$0x1] %v586_v49 }
 0x239   :  { %592 = vst [vmem:[#allocation2 + $0x2e] sm:$0x1] %v5076_v51 }
 0x242   :  { %v5248_v52 = vpop.f32.mrb[12].mxu0 }
 0x243   :  { %v5249_v53 = vpop.f32.mrb[13].mxu0 }
 0x244   :  { %v5250_v54 = vadd.f32 %v5249_v53, %v5248_v52 }
 0x246   :  { %v795_v55 = vadd.f32 %v5250_v54, %v6280_v3  ;;  %v5251_v56 = vpop.f32.mrb[14].mxu0 }
 0x247   :  { %v5252_v57 = vpop.f32.mrb[15].mxu0 }
 0x248   :  { %v5253_v58 = vadd.f32 %v5252_v57, %v5251_v56  ;;  %5371 = vmatprep.mubr.msk.f32.mxu0 %vm368_vm0, %v795_v55 }
 0x24a   :  { %v800_v59 = vadd.f32 %v6278_v2, %v5253_v58  ;;  %v5254_v60 = vpop.f32.mrb[16].mxu0 }
 0x24b   :  { %v5255_v61 = vpop.f32.mrb[17].mxu0 }
 0x24c   :  { %v5256_v62 = vadd.f32 %v5255_v61, %v5254_v60  ;;  %5372 = vmatmul.mubr.msk.f32.vlgmr.msra.gmra.mrb[20].mxu0 %vm368_vm0, %v800_v59 }
 0x24e   :  { %v805_v63 = vadd.f32 %v5256_v62, %v6284_v15  ;;  %v5257_v17 = vpop.f32.mrb[18].mxu0 }
 0x24f   :  { %v5258_v14 = vpop.f32.mrb[19].mxu0 }
 0x250   :  { %v5259_v5 = vadd.f32 %v5258_v14, %v5257_v17  ;;  %5374 = vmatprep.mubr.msk.f32.mxu0 %vm368_vm0, %v805_v63 }
 0x252   :  { %v810_v3 = vadd.f32 %v6282_v4, %v5259_v5 }
 0x254   :  { %5375 = vmatmul.mubr.msk.f32.gmra.mrb[22].mxu0 %vm368_vm0, %v810_v3 }
 0x31f   :  { %v5373_v19 = vpop.f32.mrb[20].mxu0 }
 0x320   :  { %v897_v22 = vadd.f32 %v5373_v19, %v6288_v20  ;;  %v891_v2 = vpop.f32.mrb[21].mxu0 }
 0x321   :  { %v892_v23 = vadd.f32 %v6288_v20, %v891_v2 }
 0x322   :  { %v911_v7 = vmax.f32 %v897_v22, 0.0 }
 0x323   :  { %v910_v8 = vmax.f32 %v892_v23, 0.0 }
 0x324   :  { %955 = vst [vmem:[#allocation2 + $0x11] sm:$0x1] %v911_v7  ;;  %v963_v15 = vrot.slane %v911_v7, %v6292_v24  ;;  %v975_v9 = vcombine.high %v911_v7, %v911_v7 }
 0x325   :  { %914 = vst [vmem:[#allocation2 + $0x1] sm:$0x1] %v910_v8  ;;  %v922_v10 = vrot.slane %v910_v8, %v6292_v24  ;;  %v934_v11 = vcombine.high %v910_v8, %v910_v8 }
 0x326   :  { %v5134_v12 = vrot.slane %v963_v15, 9  ;;  %v968_v4 = vcombine.high %v963_v15, %v963_v15  ;;  %v982_v13 = vrot.slane %v975_v9, %v6292_v24  ;;  %5136 = vst.sshfl [vmem:[#allocation2 + $0x19] sm:$0x1 pattern:$0x76325410] %v975_v9 }
 0x327   :  { %v5129_v16 = vrot.slane %v922_v10, 9  ;;  %v927_v18 = vcombine.high %v922_v10, %v922_v10  ;;  %v941_v21 = vrot.slane %v934_v11, %v6292_v24  ;;  %5131 = vst.sshfl [vmem:[#allocation2 + $0x9] sm:$0x1 pattern:$0x76325410] %v934_v11  ;;  %v5376_v25 = vpop.f32.mrb[22].mxu0 }
 0x328   :  { %967 = vst [vmem:[#allocation2 + $0x13] sm:$0x1] %v5134_v12  ;;  %970 = vst [vmem:[#allocation2 + $0x15] sm:$0x1] %v968_v4  ;;  %v5135_v26 = vrot.slane %v968_v4, 9  ;;  %v5137_v27 = vrot.slane %v982_v13, 9  ;;  %v989_v28 = vcombine.high %v982_v13, %v982_v13  ;;  %v907_v29 = vadd.f32 %v5376_v25, %v6288_v20 }
 0x329   :  { %v901_v30 = vpop.f32.mrb[23].mxu0  ;;  %926 = vst [vmem:[#allocation2 + $0x3] sm:$0x1] %v5129_v16  ;;  %929 = vst [vmem:[#allocation2 + $0x5] sm:$0x1] %v927_v18  ;;  %v5130_v31 = vrot.slane %v927_v18, 9  ;;  %v948_v33 = vcombine.high %v941_v21, %v941_v21 }
 0x32a   :  { %v5132_v32 = vrot.slane %v941_v21, 9  ;;  %v902_v34 = vadd.f32 %v6288_v20, %v901_v30  ;;  %974 = vst [vmem:[#allocation2 + $0x17] sm:$0x1] %v5135_v26  ;;  %988 = vst [vmem:[#allocation2 + $0x1b] sm:$0x1] %v5137_v27  ;;  %v5138_v35 = vrot.slane %v989_v28, 9 }
 0x32b   :  { %991 = vst [vmem:[#allocation2 + $0x1d] sm:$0x1] %v989_v28  ;;  %v913_v36 = vmax.f32 %v907_v29, 0.0  ;;  %933 = vst [vmem:[#allocation2 + $0x7] sm:$0x1] %v5130_v31  ;;  %v5133_v37 = vrot.slane %v948_v33, 9 }
 0x32c   :  { %947 = vst [vmem:[#allocation2 + $0xb] sm:$0x1] %v5132_v32  ;;  %950 = vst [vmem:[#allocation2 + $0xd] sm:$0x1] %v948_v33  ;;  %v912_v38 = vmax.f32 %v902_v34, 0.0 }
 0x32d   :  { %995 = vst [vmem:[#allocation2 + $0x1f] sm:$0x1] %v5138_v35  ;;  %1037 = vst [vmem:[#allocation2 + $0x31] sm:$0x1] %v913_v36 }
 0x32e   :  { %954 = vst [vmem:[#allocation2 + $0xf] sm:$0x1] %v5133_v37  ;;  %996 = vst [vmem:[#allocation2 + $0x21] sm:$0x1] %v912_v38  ;;  %v1004_v39 = vrot.slane %v912_v38, %v6292_v24  ;;  %v1016_v40 = vcombine.high %v912_v38, %v912_v38 }
 0x330   :  { %v5139_v41 = vrot.slane %v1004_v39, 9  ;;  %v1009_v42 = vcombine.high %v1004_v39, %v1004_v39  ;;  %v1023_v20 = vrot.slane %v1016_v40, %v6292_v24  ;;  %5141 = vst.sshfl [vmem:[#allocation2 + $0x29] sm:$0x1 pattern:$0x76325410] %v1016_v40 }
 0x332   :  { %1008 = vst [vmem:[#allocation2 + $0x23] sm:$0x1] %v5139_v41  ;;  %1011 = vst [vmem:[#allocation2 + $0x25] sm:$0x1] %v1009_v42  ;;  %v5140_v43 = vrot.slane %v1009_v42, 9  ;;  %v5142_v44 = vrot.slane %v1023_v20, 9  ;;  %v1030_v45 = vcombine.high %v1023_v20, %v1023_v20 }
 0x334   :  { %1015 = vst [vmem:[#allocation2 + $0x27] sm:$0x1] %v5140_v43  ;;  %1029 = vst [vmem:[#allocation2 + $0x2b] sm:$0x1] %v5142_v44  ;;  %v5143_v46 = vrot.slane %v1030_v45, 9 }
 0x335   :  { %1032 = vst [vmem:[#allocation2 + $0x2d] sm:$0x1] %v1030_v45 }
 0x336   :  { %1036 = vst [vmem:[#allocation2 + $0x2f] sm:$0x1] %v5143_v46 }
 0x337   :  { %5816 = dma.done.wait [#allocation5], 153600 }
 0x338   :  { %5817 = vsyncadd [#allocation5], 4294813696  ;;  %v1216_v50 = vld [vmem:[#allocation3 + $0x8] sm:$0xff]  ;;  %v1215_v47 = vld [vmem:[#allocation3] sm:$0xff] }
 0x339   :  { %v1222_v48 = vld [vmem:[#allocation3 + $0x38] sm:$0xff]  ;;  %2446 = vmatprep.subr.bf16.mxu1 %v1216_v50  ;;  %v1221_v49 = vld [vmem:[#allocation3 + $0x30] sm:$0xff]  ;;  %v1228_v51 = vld [vmem:[#allocation3 + $0x68] sm:$0xff] }
 0x33a   :  { %2447 = vmatpush1.bf16.msra.mxu1 %v1215_v47  ;;  %v1227_v52 = vld [vmem:[#allocation3 + $0x60] sm:$0xff]  ;;  %v1234_v53 = vld [vmem:[#allocation3 + $0x98] sm:$0xff]  ;;  %v1233_v55 = vld [vmem:[#allocation3 + $0x90] sm:$0xff] }
 0x33b   :  { %2448 = vmatprep.subr.bf16.mxu1 %v1222_v48  ;;  %v1218_v54 = vld [vmem:[#allocation3 + $0x18] sm:$0xff]  ;;  %v1217_v56 = vld [vmem:[#allocation3 + $0x10] sm:$0xff]  ;;  %v1240_v58 = vld [vmem:[#allocation3 + $0xc8] sm:$0xff] }
 0x33c   :  { %2979 = vmatprep.subr.bf16.mxu0 %v1218_v54  ;;  %v6321_v57 = vld [vmem:[#allocation2] sm:$0xff]  ;;  %v1223_v61 = vld [vmem:[#allocation3 + $0x40] sm:$0xff]  ;;  %v1230_v63 = vld [vmem:[#allocation3 + $0x78] sm:$0xff] }
 0x33d   :  { %2980 = vmatpush1.bf16.msra.mxu0 %v1217_v56  ;;  %v6325_v59 = vrot.slane %v6321_v57, %v6292_v24  ;;  %v1224_v60 = vld [vmem:[#allocation3 + $0x48] sm:$0xff]  ;;  %v1239_v17 = vld [vmem:[#allocation3 + $0xc0] sm:$0xff]  ;;  %v1246_v14 = vld [vmem:[#allocation3 + $0xf8] sm:$0xff]  ;;  %v1056_v42 = vcombine.high %v6321_v57, %v6321_v57 }
 0x33e   :  { %2449 = vmatpush1.bf16.msra.mxu1 %v1221_v49  ;;  %2981 = vmatprep.subr.bf16.mxu0 %v1224_v60  ;;  %v1229_v3 = vld [vmem:[#allocation3 + $0x70] sm:$0xff]  ;;  %v1236_v19 = vld [vmem:[#allocation3 + $0xa8] sm:$0xff]  ;;  %v1235_v23 = vld [vmem:[#allocation3 + $0xa0] sm:$0xff] }
 0x33f   :  { %2450 = vmatprep.subr.bf16.mxu1 %v1228_v51  ;;  %v1071_v62 = vcombine.high %v6325_v59, %v6325_v59  ;;  %v1245_v22 = vld [vmem:[#allocation3 + $0xf0] sm:$0xff]  ;;  %v1252_v2 = vld [vmem:[#allocation3 + $0x128] sm:$0xff]  ;;  %v1242_v7 = vld [vmem:[#allocation3 + $0xd8] sm:$0xff]  ;;  %v6336_v46 = vrot.slane %v1056_v42, %v6292_v24  ;;  %v6342_v54 = vpack.c.bf16 %v6325_v59, %v6325_v59 }
 0x340   :  { %v1251_v8 = vld [vmem:[#allocation3 + $0x120] sm:$0xff]  ;;  %v1258_v15 = vld [vmem:[#allocation3 + $0x158] sm:$0xff]  ;;  %v1241_v9 = vld [vmem:[#allocation3 + $0xd0] sm:$0xff] }
 0x341   :  { %v6329_v5 = vpack.c.bf16 %v1071_v62, %v1071_v62  ;;  %2982 = vmatpush1.bf16.msra.mxu0 %v1223_v61  ;;  %v1248_v10 = vld [vmem:[#allocation3 + $0x108] sm:$0xff]  ;;  %v1257_v11 = vld [vmem:[#allocation3 + $0x150] sm:$0xff]  ;;  %v1247_v4 = vld [vmem:[#allocation3 + $0x100] sm:$0xff]  ;;  %v1072_v51 = vcombine.high %v6336_v46, %v6336_v46 }
 0x342   :  { %2451 = vmatpush1.bf16.msra.mxu1 %v1227_v52  ;;  %2983 = vmatprep.subr.bf16.mxu0 %v1230_v63  ;;  %v1264_v12 = vld [vmem:[#allocation3 + $0x188] sm:$0xff]  ;;  %v1254_v13 = vld [vmem:[#allocation3 + $0x138] sm:$0xff]  ;;  %v1263_v16 = vld [vmem:[#allocation3 + $0x180] sm:$0xff] }
 0x343   :  { %2452 = vmatprep.subr.bf16.mxu1 %v1234_v53  ;;  %2478 = vmatprep.mubr.bf16.mxu1 %v6329_v5  ;;  %v1270_v18 = vld [vmem:[#allocation3 + $0x1b8] sm:$0xff]  ;;  %v1253_v21 = vld [vmem:[#allocation3 + $0x130] sm:$0xff]  ;;  %v1260_v25 = vld [vmem:[#allocation3 + $0x168] sm:$0xff]  ;;  %v6344_v57 = vpack.c.bf16 %v1072_v51, %v1072_v51 }
 0x344   :  { %3011 = vmatprep.mubr.bf16.mxu0 %v6329_v5  ;;  %v1269_v26 = vld [vmem:[#allocation3 + $0x1b0] sm:$0xff]  ;;  %v1276_v27 = vld [vmem:[#allocation3 + $0x1e8] sm:$0xff]  ;;  %v1259_v28 = vld [vmem:[#allocation3 + $0x160] sm:$0xff] }
 0x345   :  { %2984 = vmatpush1.bf16.msra.mxu0 %v1229_v3  ;;  %v1266_v29 = vld [vmem:[#allocation3 + $0x198] sm:$0xff]  ;;  %v1275_v30 = vld [vmem:[#allocation3 + $0x1e0] sm:$0xff]  ;;  %v1265_v32 = vld [vmem:[#allocation3 + $0x190] sm:$0xff] }
 0x346   :  { %2453 = vmatpush1.bf16.msra.mxu1 %v1233_v55  ;;  %2985 = vmatprep.subr.bf16.mxu0 %v1236_v19  ;;  %v1282_v31 = vld [vmem:[#allocation3 + $0x218] sm:$0xff]  ;;  %v1272_v33 = vld [vmem:[#allocation3 + $0x1c8] sm:$0xff]  ;;  %v1281_v34 = vld [vmem:[#allocation3 + $0x210] sm:$0xff] }
 0x347   :  { %2454 = vmatprep.subr.bf16.mxu1 %v1240_v58  ;;  %v1288_v35 = vld [vmem:[#allocation3 + $0x248] sm:$0xff]  ;;  %v1271_v36 = vld [vmem:[#allocation3 + $0x1c0] sm:$0xff]  ;;  %v1278_v37 = vld [vmem:[#allocation3 + $0x1f8] sm:$0xff] }
 0x348   :  { %v1287_v38 = vld [vmem:[#allocation3 + $0x240] sm:$0xff]  ;;  %v1294_v39 = vld [vmem:[#allocation3 + $0x278] sm:$0xff]  ;;  %v1277_v40 = vld [vmem:[#allocation3 + $0x1f0] sm:$0xff] }
 0x349   :  { %2986 = vmatpush1.bf16.msra.mxu0 %v1235_v23  ;;  %v1284_v41 = vld [vmem:[#allocation3 + $0x228] sm:$0xff]  ;;  %v1293_v20 = vld [vmem:[#allocation3 + $0x270] sm:$0xff]  ;;  %v1283_v44 = vld [vmem:[#allocation3 + $0x220] sm:$0xff] }
 0x34a   :  { %2455 = vmatpush1.bf16.msra.mxu1 %v1239_v17  ;;  %2987 = vmatprep.subr.bf16.mxu0 %v1242_v7  ;;  %v1300_v43 = vld [vmem:[#allocation3 + $0x2a8] sm:$0xff]  ;;  %v1290_v45 = vld [vmem:[#allocation3 + $0x258] sm:$0xff]  ;;  %v1299_v50 = vld [vmem:[#allocation3 + $0x2a0] sm:$0xff] }
 0x34b   :  { %2456 = vmatprep.subr.bf16.mxu1 %v1246_v14  ;;  %v1306_v47 = vld [vmem:[#allocation3 + $0x2d8] sm:$0xff]  ;;  %v1289_v48 = vld [vmem:[#allocation3 + $0x250] sm:$0xff]  ;;  %v1296_v49 = vld [vmem:[#allocation3 + $0x288] sm:$0xff] }
 0x34c   :  { %v1305_v52 = vld [vmem:[#allocation3 + $0x2d0] sm:$0xff]  ;;  %v1312_v53 = vld [vmem:[#allocation3 + $0x308] sm:$0xff]  ;;  %v1295_v55 = vld [vmem:[#allocation3 + $0x280] sm:$0xff] }
 0x34d   :  { %2988 = vmatpush1.bf16.msra.mxu0 %v1241_v9  ;;  %v1302_v56 = vld [vmem:[#allocation3 + $0x2b8] sm:$0xff]  ;;  %v1311_v58 = vld [vmem:[#allocation3 + $0x300] sm:$0xff]  ;;  %v1301_v61 = vld [vmem:[#allocation3 + $0x2b0] sm:$0xff] }
 0x34e   :  { %2457 = vmatpush1.bf16.msra.mxu1 %v1245_v22  ;;  %2989 = vmatprep.subr.bf16.mxu0 %v1248_v10  ;;  %v1318_v60 = vld [vmem:[#allocation3 + $0x338] sm:$0xff]  ;;  %v1308_v62 = vld [vmem:[#allocation3 + $0x2e8] sm:$0xff]  ;;  %v1317_v59 = vld [vmem:[#allocation3 + $0x330] sm:$0xff] }
 0x34f   :  { %2458 = vmatprep.subr.bf16.mxu1 %v1252_v2  ;;  %v1324_v63 = vld [vmem:[#allocation3 + $0x368] sm:$0xff]  ;;  %v1307_v17 = vld [vmem:[#allocation3 + $0x2e0] sm:$0xff]  ;;  %v1314_v14 = vld [vmem:[#allocation3 + $0x318] sm:$0xff] }
 0x350   :  { %v1323_v3 = vld [vmem:[#allocation3 + $0x360] sm:$0xff]  ;;  %v1330_v19 = vld [vmem:[#allocation3 + $0x398] sm:$0xff]  ;;  %v1313_v22 = vld [vmem:[#allocation3 + $0x310] sm:$0xff] }
 0x351   :  { %2990 = vmatpush1.bf16.msra.mxu0 %v1247_v4  ;;  %v1320_v2 = vld [vmem:[#allocation3 + $0x348] sm:$0xff]  ;;  %v1329_v23 = vld [vmem:[#allocation3 + $0x390] sm:$0xff]  ;;  %v1335_v9 = vld [vmem:[#allocation3 + $0x3c0] sm:$0xff] }
 0x352   :  { %2459 = vmatpush1.bf16.msra.mxu1 %v1251_v8  ;;  %2991 = vmatprep.subr.bf16.mxu0 %v1254_v13  ;;  %v1336_v7 = vld [vmem:[#allocation3 + $0x3c8] sm:$0xff]  ;;  %v1319_v8 = vld [vmem:[#allocation3 + $0x340] sm:$0xff]  ;;  %v1342_v10 = vld [vmem:[#allocation3 + $0x3f8] sm:$0xff] }
 0x353   :  { %2460 = vmatprep.subr.bf16.mxu1 %v1258_v15  ;;  %v1326_v15 = vld [vmem:[#allocation3 + $0x378] sm:$0xff]  ;;  %v1341_v4 = vld [vmem:[#allocation3 + $0x3f0] sm:$0xff]  ;;  %v1348_v13 = vld [vmem:[#allocation3 + $0x428] sm:$0xff] }
 0x354   :  { %v1361_v42 = vld [vmem:[#allocation3 + $0x490] sm:$0xff]  ;;  %v1380_v51 = vld [vmem:[#allocation3 + $0x528] sm:$0xff] }
 0x355   :  { %2992 = vmatpush1.bf16.msra.mxu0 %v1253_v21  ;;  %v1347_v21 = vld [vmem:[#allocation3 + $0x420] sm:$0xff] }
 0x356   :  { %2461 = vmatpush1.bf16.msra.mxu1 %v1257_v11  ;;  %2993 = vmatprep.subr.bf16.mxu0 %v1260_v25  ;;  %v1325_v11 = vld [vmem:[#allocation3 + $0x370] sm:$0xff]  ;;  %v1354_v25 = vld [vmem:[#allocation3 + $0x458] sm:$0xff] }
 0x357   :  { %2462 = vmatprep.subr.bf16.mxu1 %v1264_v12  ;;  %v1332_v12 = vld [vmem:[#allocation3 + $0x3a8] sm:$0xff] }
 0x359   :  { %2994 = vmatpush1.bf16.msra.mxu0 %v1259_v28  ;;  %v1353_v28 = vld [vmem:[#allocation3 + $0x450] sm:$0xff] }
 0x35a   :  { %2463 = vmatpush1.bf16.msra.mxu1 %v1263_v16  ;;  %2995 = vmatprep.subr.bf16.mxu0 %v1266_v29  ;;  %v1331_v16 = vld [vmem:[#allocation3 + $0x3a0] sm:$0xff]  ;;  %v1360_v29 = vld [vmem:[#allocation3 + $0x488] sm:$0xff] }
 0x35b   :  { %2464 = vmatprep.subr.bf16.mxu1 %v1270_v18  ;;  %v1338_v18 = vld [vmem:[#allocation3 + $0x3d8] sm:$0xff] }
 0x35d   :  { %2996 = vmatpush1.bf16.msra.mxu0 %v1265_v32  ;;  %v1359_v32 = vld [vmem:[#allocation3 + $0x480] sm:$0xff] }
 0x35e   :  { %2465 = vmatpush1.bf16.msra.mxu1 %v1269_v26  ;;  %2997 = vmatprep.subr.bf16.mxu0 %v1272_v33  ;;  %v1337_v26 = vld [vmem:[#allocation3 + $0x3d0] sm:$0xff]  ;;  %v1366_v33 = vld [vmem:[#allocation3 + $0x4b8] sm:$0xff] }
 0x35f   :  { %2466 = vmatprep.subr.bf16.mxu1 %v1276_v27  ;;  %v1344_v27 = vld [vmem:[#allocation3 + $0x408] sm:$0xff] }
 0x361   :  { %2998 = vmatpush1.bf16.msra.mxu0 %v1271_v36  ;;  %v1365_v36 = vld [vmem:[#allocation3 + $0x4b0] sm:$0xff] }
 0x362   :  { %2467 = vmatpush1.bf16.msra.mxu1 %v1275_v30  ;;  %2999 = vmatprep.subr.bf16.mxu0 %v1278_v37  ;;  %v1343_v30 = vld [vmem:[#allocation3 + $0x400] sm:$0xff]  ;;  %v1372_v37 = vld [vmem:[#allocation3 + $0x4e8] sm:$0xff] }
 0x363   :  { %2468 = vmatprep.subr.bf16.mxu1 %v1282_v31  ;;  %v1350_v31 = vld [vmem:[#allocation3 + $0x438] sm:$0xff] }
 0x365   :  { %3000 = vmatpush1.bf16.msra.mxu0 %v1277_v40  ;;  %v1371_v40 = vld [vmem:[#allocation3 + $0x4e0] sm:$0xff] }
 0x366   :  { %2469 = vmatpush1.bf16.msra.mxu1 %v1281_v34  ;;  %3001 = vmatprep.subr.bf16.mxu0 %v1284_v41  ;;  %v1349_v34 = vld [vmem:[#allocation3 + $0x430] sm:$0xff]  ;;  %v1378_v41 = vld [vmem:[#allocation3 + $0x518] sm:$0xff] }
 0x367   :  { %2470 = vmatprep.subr.bf16.mxu1 %v1288_v35  ;;  %v1356_v35 = vld [vmem:[#allocation3 + $0x468] sm:$0xff] }
 0x369   :  { %3002 = vmatpush1.bf16.msra.mxu0 %v1283_v44  ;;  %v1384_v44 = vld [vmem:[#allocation3 + $0x548] sm:$0xff] }
 0x36a   :  { %2471 = vmatpush1.bf16.msra.mxu1 %v1287_v38  ;;  %3003 = vmatprep.subr.bf16.mxu0 %v1290_v45  ;;  %v1355_v38 = vld [vmem:[#allocation3 + $0x460] sm:$0xff] }
 0x36b   :  { %2472 = vmatprep.subr.bf16.mxu1 %v1294_v39  ;;  %v1362_v39 = vld [vmem:[#allocation3 + $0x498] sm:$0xff]  ;;  %v1367_v45 = vld [vmem:[#allocation3 + $0x4c0] sm:$0xff] }
 0x36d   :  { %3004 = vmatpush1.bf16.msra.mxu0 %v1289_v48  ;;  %v1390_v48 = vld [vmem:[#allocation3 + $0x578] sm:$0xff] }
 0x36e   :  { %2473 = vmatpush1.bf16.msra.mxu1 %v1293_v20  ;;  %3005 = vmatprep.subr.bf16.mxu0 %v1296_v49  ;;  %v1368_v20 = vld [vmem:[#allocation3 + $0x4c8] sm:$0xff]  ;;  %v1373_v49 = vld [vmem:[#allocation3 + $0x4f0] sm:$0xff] }
 0x36f   :  { %2474 = vmatprep.subr.bf16.mxu1 %v1300_v43  ;;  %v1377_v43 = vld [vmem:[#allocation3 + $0x510] sm:$0xff] }
 0x371   :  { %3006 = vmatpush1.bf16.msra.mxu0 %v1295_v55  ;;  %v1396_v55 = vld [vmem:[#allocation3 + $0x5a8] sm:$0xff] }
 0x372   :  { %2475 = vmatpush1.bf16.msra.mxu1 %v1299_v50  ;;  %3007 = vmatprep.subr.bf16.mxu0 %v1302_v56  ;;  %v1374_v50 = vld [vmem:[#allocation3 + $0x4f8] sm:$0xff]  ;;  %v1379_v56 = vld [vmem:[#allocation3 + $0x520] sm:$0xff] }
 0x373   :  { %2476 = vmatprep.subr.bf16.mxu1 %v1306_v47  ;;  %v1383_v47 = vld [vmem:[#allocation3 + $0x540] sm:$0xff] }
 0x375   :  { %3008 = vmatpush1.bf16.msra.mxu0 %v1301_v61  ;;  %v1395_v61 = vld [vmem:[#allocation3 + $0x5a0] sm:$0xff] }
 0x376   :  { %2477 = vmatpush1.bf16.msra.mxu1 %v1305_v52  ;;  %3009 = vmatprep.subr.bf16.mxu0 %v1308_v62  ;;  %v1389_v52 = vld [vmem:[#allocation3 + $0x570] sm:$0xff]  ;;  %v1402_v62 = vld [vmem:[#allocation3 + $0x5d8] sm:$0xff] }
 0x377   :  { %2487 = vmatprep.subr.bf16.mxu1 %v1312_v53  ;;  %v6350_v53 = vld [vmem:[#allocation2 + $0x8] sm:$0xff] }
 0x379   :  { %2479 = vmatmul.mubr.bf16.vlgmr.msra.gmra.mrb[8].mxu1 %v6342_v54  ;;  %3010 = vmatpush1.bf16.msra.mxu0 %v1307_v17 }
 0x37a   :  { %2488 = vmatpush1.bf16.msra.mxu1 %v1311_v58  ;;  %2519 = vmatprep.mubr.bf16.mxu1 %v6344_v57  ;;  %v1386_v58 = vld [vmem:[#allocation3 + $0x558] sm:$0xff] }
 0x37b   :  { %2489 = vmatprep.subr.bf16.mxu1 %v1318_v60  ;;  %3020 = vmatprep.subr.bf16.mxu0 %v1314_v14  ;;  %v6354_v60 = vrot.slane %v6350_v53, %v6292_v24  ;;  %v1401_v14 = vld [vmem:[#allocation3 + $0x5d0] sm:$0xff] }
 0x37c   :  { %3012 = vmatmul.mubr.bf16.vlgmr.msra.gmra.mrb[24].mxu0 %v6342_v54 }
 0x37d   :  { %3021 = vmatpush1.bf16.msra.mxu0 %v1313_v22  ;;  %3052 = vmatprep.mubr.bf16.mxu0 %v6344_v57  ;;  %v1088_v17 = vcombine.high %v6354_v60, %v6354_v60  ;;  %v1391_v22 = vld [vmem:[#allocation3 + $0x580] sm:$0xff] }
 0x37e   :  { %2490 = vmatpush1.bf16.msra.mxu1 %v1317_v59  ;;  %3022 = vmatprep.subr.bf16.mxu0 %v1320_v2  ;;  %v1385_v59 = vld [vmem:[#allocation3 + $0x550] sm:$0xff]  ;;  %v1398_v2 = vld [vmem:[#allocation3 + $0x5b8] sm:$0xff] }
 0x37f   :  { %2491 = vmatprep.subr.bf16.mxu1 %v1324_v63  ;;  %v1392_v63 = vld [vmem:[#allocation3 + $0x588] sm:$0xff] }
 0x381   :  { %3023 = vmatpush1.bf16.msra.mxu0 %v1319_v8  ;;  %v1414_v8 = vld [vmem:[#allocation3 + $0x638] sm:$0xff] }
 0x382   :  { %2492 = vmatpush1.bf16.msra.mxu1 %v1323_v3  ;;  %3024 = vmatprep.subr.bf16.mxu0 %v1326_v15  ;;  %v1408_v3 = vld [vmem:[#allocation3 + $0x608] sm:$0xff]  ;;  %v1397_v15 = vld [vmem:[#allocation3 + $0x5b0] sm:$0xff] }
 0x383   :  { %2493 = vmatprep.subr.bf16.mxu1 %v1330_v19  ;;  %v6360_v19 = vpack.c.bf16 %v6336_v46, %v6336_v46  ;;  %v1413_v46 = vld [vmem:[#allocation3 + $0x630] sm:$0xff] }
 0x385   :  { %3025 = vmatpush1.bf16.msra.mxu0 %v1325_v11  ;;  %v1403_v11 = vld [vmem:[#allocation3 + $0x5e0] sm:$0xff] }
 0x386   :  { %2494 = vmatpush1.bf16.msra.mxu1 %v1329_v23  ;;  %3026 = vmatprep.subr.bf16.mxu0 %v1332_v12  ;;  %v6362_v23 = vpack.c.bf16 %v1088_v17, %v1088_v17  ;;  %v1410_v12 = vld [vmem:[#allocation3 + $0x618] sm:$0xff]  ;;  %v1479_v17 = vld [vmem:[#allocation3 + $0x840] sm:$0xff] }
 0x387   :  { %2495 = vmatprep.subr.bf16.mxu1 %v1336_v7  ;;  %v1407_v7 = vld [vmem:[#allocation3 + $0x600] sm:$0xff] }
 0x389   :  { %3027 = vmatpush1.bf16.msra.mxu0 %v1331_v16  ;;  %v1409_v16 = vld [vmem:[#allocation3 + $0x610] sm:$0xff] }
 0x38a   :  { %2496 = vmatpush1.bf16.msra.mxu1 %v1335_v9  ;;  %3028 = vmatprep.subr.bf16.mxu0 %v1338_v18  ;;  %v1404_v9 = vld [vmem:[#allocation3 + $0x5e8] sm:$0xff] }
 0x38b   :  { %2497 = vmatprep.subr.bf16.mxu1 %v1342_v10  ;;  %v1420_v10 = vld [vmem:[#allocation3 + $0x668] sm:$0xff] }
 0x38c   :  { %v1416_v18 = vld [vmem:[#allocation3 + $0x648] sm:$0xff] }
 0x38d   :  { %3029 = vmatpush1.bf16.msra.mxu0 %v1337_v26  ;;  %v1415_v26 = vld [vmem:[#allocation3 + $0x640] sm:$0xff] }
 0x38e   :  { %2498 = vmatpush1.bf16.msra.mxu1 %v1341_v4  ;;  %3030 = vmatprep.subr.bf16.mxu0 %v1344_v27  ;;  %v1419_v4 = vld [vmem:[#allocation3 + $0x660] sm:$0xff]  ;;  %v1422_v27 = vld [vmem:[#allocation3 + $0x678] sm:$0xff] }
 0x38f   :  { %2499 = vmatprep.subr.bf16.mxu1 %v1348_v13  ;;  %v1426_v13 = vld [vmem:[#allocation3 + $0x698] sm:$0xff] }
 0x391   :  { %3031 = vmatpush1.bf16.msra.mxu0 %v1343_v30  ;;  %v1421_v30 = vld [vmem:[#allocation3 + $0x670] sm:$0xff] }
 0x392   :  { %2500 = vmatpush1.bf16.msra.mxu1 %v1347_v21  ;;  %3032 = vmatprep.subr.bf16.mxu0 %v1350_v31  ;;  %v1425_v21 = vld [vmem:[#allocation3 + $0x690] sm:$0xff]  ;;  %v1428_v31 = vld [vmem:[#allocation3 + $0x6a8] sm:$0xff] }
 0x393   :  { %2501 = vmatprep.subr.bf16.mxu1 %v1354_v25  ;;  %v1432_v25 = vld [vmem:[#allocation3 + $0x6c8] sm:$0xff] }
 0x395   :  { %3033 = vmatpush1.bf16.msra.mxu0 %v1349_v34  ;;  %v1427_v34 = vld [vmem:[#allocation3 + $0x6a0] sm:$0xff] }
 0x396   :  { %2502 = vmatpush1.bf16.msra.mxu1 %v1353_v28  ;;  %3034 = vmatprep.subr.bf16.mxu0 %v1356_v35  ;;  %v1431_v28 = vld [vmem:[#allocation3 + $0x6c0] sm:$0xff]  ;;  %v1434_v35 = vld [vmem:[#allocation3 + $0x6d8] sm:$0xff] }
 0x397   :  { %2503 = vmatprep.subr.bf16.mxu1 %v1360_v29  ;;  %v1438_v29 = vld [vmem:[#allocation3 + $0x6f8] sm:$0xff] }
 0x399   :  { %3035 = vmatpush1.bf16.msra.mxu0 %v1355_v38  ;;  %v1433_v38 = vld [vmem:[#allocation3 + $0x6d0] sm:$0xff] }
 0x39a   :  { %2504 = vmatpush1.bf16.msra.mxu1 %v1359_v32  ;;  %3036 = vmatprep.subr.bf16.mxu0 %v1362_v39  ;;  %v1437_v32 = vld [vmem:[#allocation3 + $0x6f0] sm:$0xff]  ;;  %v1440_v39 = vld [vmem:[#allocation3 + $0x708] sm:$0xff] }
 0x39b   :  { %2505 = vmatprep.subr.bf16.mxu1 %v1366_v33  ;;  %v1444_v33 = vld [vmem:[#allocation3 + $0x728] sm:$0xff] }
 0x39d   :  { %3037 = vmatpush1.bf16.msra.mxu0 %v1361_v42  ;;  %v1439_v42 = vld [vmem:[#allocation3 + $0x700] sm:$0xff] }
 0x39e   :  { %2506 = vmatpush1.bf16.msra.mxu1 %v1365_v36  ;;  %3038 = vmatprep.subr.bf16.mxu0 %v1368_v20  ;;  %v1443_v36 = vld [vmem:[#allocation3 + $0x720] sm:$0xff]  ;;  %v1446_v20 = vld [vmem:[#allocation3 + $0x738] sm:$0xff] }
 0x39f   :  { %2507 = vmatprep.subr.bf16.mxu1 %v1372_v37  ;;  %v1450_v37 = vld [vmem:[#allocation3 + $0x758] sm:$0xff] }
 0x3a1   :  { %3039 = vmatpush1.bf16.msra.mxu0 %v1367_v45  ;;  %v1445_v45 = vld [vmem:[#allocation3 + $0x730] sm:$0xff] }
 0x3a2   :  { %2508 = vmatpush1.bf16.msra.mxu1 %v1371_v40  ;;  %3040 = vmatprep.subr.bf16.mxu0 %v1374_v50  ;;  %v1449_v40 = vld [vmem:[#allocation3 + $0x750] sm:$0xff]  ;;  %v1452_v50 = vld [vmem:[#allocation3 + $0x768] sm:$0xff] }
 0x3a3   :  { %2509 = vmatprep.subr.bf16.mxu1 %v1378_v41  ;;  %v1456_v41 = vld [vmem:[#allocation3 + $0x788] sm:$0xff] }
 0x3a5   :  { %3041 = vmatpush1.bf16.msra.mxu0 %v1373_v49  ;;  %v1451_v49 = vld [vmem:[#allocation3 + $0x760] sm:$0xff] }
 0x3a6   :  { %2510 = vmatpush1.bf16.msra.mxu1 %v1377_v43  ;;  %3042 = vmatprep.subr.bf16.mxu0 %v1380_v51  ;;  %v1455_v43 = vld [vmem:[#allocation3 + $0x780] sm:$0xff]  ;;  %v1458_v51 = vld [vmem:[#allocation3 + $0x798] sm:$0xff] }
 0x3a7   :  { %2511 = vmatprep.subr.bf16.mxu1 %v1384_v44  ;;  %v1462_v44 = vld [vmem:[#allocation3 + $0x7b8] sm:$0xff] }
 0x3a9   :  { %3043 = vmatpush1.bf16.msra.mxu0 %v1379_v56  ;;  %v1457_v56 = vld [vmem:[#allocation3 + $0x790] sm:$0xff] }
 0x3aa   :  { %2512 = vmatpush1.bf16.msra.mxu1 %v1383_v47  ;;  %3044 = vmatprep.subr.bf16.mxu0 %v1386_v58  ;;  %v1461_v47 = vld [vmem:[#allocation3 + $0x7b0] sm:$0xff]  ;;  %v1464_v58 = vld [vmem:[#allocation3 + $0x7c8] sm:$0xff] }
 0x3ab   :  { %2513 = vmatprep.subr.bf16.mxu1 %v1390_v48  ;;  %v1468_v48 = vld [vmem:[#allocation3 + $0x7e8] sm:$0xff] }
 0x3ad   :  { %3045 = vmatpush1.bf16.msra.mxu0 %v1385_v59  ;;  %v1463_v59 = vld [vmem:[#allocation3 + $0x7c0] sm:$0xff] }
 0x3ae   :  { %2514 = vmatpush1.bf16.msra.mxu1 %v1389_v52  ;;  %3046 = vmatprep.subr.bf16.mxu0 %v1392_v63  ;;  %v1467_v52 = vld [vmem:[#allocation3 + $0x7e0] sm:$0xff]  ;;  %v1470_v63 = vld [vmem:[#allocation3 + $0x7f8] sm:$0xff] }
 0x3af   :  { %2515 = vmatprep.subr.bf16.mxu1 %v1396_v55  ;;  %v1474_v55 = vld [vmem:[#allocation3 + $0x818] sm:$0xff] }
 0x3b1   :  { %3047 = vmatpush1.bf16.msra.mxu0 %v1391_v22  ;;  %v1476_v22 = vld [vmem:[#allocation3 + $0x828] sm:$0xff] }
 0x3b2   :  { %2516 = vmatpush1.bf16.msra.mxu1 %v1395_v61  ;;  %3048 = vmatprep.subr.bf16.mxu0 %v1398_v2  ;;  %v1473_v61 = vld [vmem:[#allocation3 + $0x810] sm:$0xff]  ;;  %v1073_v2 = vcombine.high %v6350_v53, %v6350_v53 }
 0x3b3   :  { %2517 = vmatprep.subr.bf16.mxu1 %v1402_v62  ;;  %v1480_v62 = vld [vmem:[#allocation3 + $0x848] sm:$0xff] }
 0x3b5   :  { %3049 = vmatpush1.bf16.msra.mxu0 %v1397_v15  ;;  %v1475_v15 = vld [vmem:[#allocation3 + $0x820] sm:$0xff] }
 0x3b6   :  { %2518 = vmatpush1.bf16.msra.mxu1 %v1401_v14  ;;  %3050 = vmatprep.subr.bf16.mxu0 %v1404_v9  ;;  %v1486_v14 = vld [vmem:[#allocation3 + $0x878] sm:$0xff] }
 0x3b7   :  { %2528 = vmatprep.subr.bf16.mxu1 %v1408_v3  ;;  %v1469_v3 = vld [vmem:[#allocation3 + $0x7f0] sm:$0xff]  ;;  %v1482_v9 = vld [vmem:[#allocation3 + $0x858] sm:$0xff] }
 0x3b9   :  { %2520 = vmatmul.mubr.bf16.vlgmr.msra.gmra.mrb[8].mxu1 %v6360_v19  ;;  %3051 = vmatpush1.bf16.msra.mxu0 %v1403_v11  ;;  %v1498_v11 = vld [vmem:[#allocation3 + $0x8d8] sm:$0xff] }
 0x3ba   :  { %2529 = vmatpush1.bf16.msra.mxu1 %v1407_v7  ;;  %2560 = vmatprep.mubr.bf16.mxu1 %v6362_v23  ;;  %v1485_v7 = vld [vmem:[#allocation3 + $0x870] sm:$0xff] }
 0x3bb   :  { %2530 = vmatprep.subr.bf16.mxu1 %v1414_v8  ;;  %3061 = vmatprep.subr.bf16.mxu0 %v1410_v12  ;;  %v1492_v8 = vld [vmem:[#allocation3 + $0x8a8] sm:$0xff]  ;;  %v1481_v12 = vld [vmem:[#allocation3 + $0x850] sm:$0xff] }
 0x3bc   :  { %3053 = vmatmul.mubr.bf16.vlgmr.msra.gmra.mrb[24].mxu0 %v6360_v19 }
 0x3bd   :  { %3062 = vmatpush1.bf16.msra.mxu0 %v1409_v16  ;;  %3093 = vmatprep.mubr.bf16.mxu0 %v6362_v23  ;;  %v1504_v16 = vld [vmem:[#allocation3 + $0x908] sm:$0xff] }
 0x3be   :  { %2531 = vmatpush1.bf16.msra.mxu1 %v1413_v46  ;;  %3063 = vmatprep.subr.bf16.mxu0 %v1416_v18  ;;  %v6371_v46 = vrot.slane %v1073_v2, %v6292_v24  ;;  %v6377_v18 = vpack.c.bf16 %v6354_v60, %v6354_v60  ;;  %v1509_v60 = vld [vmem:[#allocation3 + $0x930] sm:$0xff]  ;;  %v1547_v2 = vld [vmem:[#allocation3 + $0xa60] sm:$0xff] }
 0x3bf   :  { %2532 = vmatprep.subr.bf16.mxu1 %v1420_v10  ;;  %v1491_v10 = vld [vmem:[#allocation3 + $0x8a0] sm:$0xff] }
 0x3c0   :  { %v1089_v53 = vcombine.high %v6371_v46, %v6371_v46 }
 0x3c1   :  { %3064 = vmatpush1.bf16.msra.mxu0 %v1415_v26 }
 0x3c2   :  { %2533 = vmatpush1.bf16.msra.mxu1 %v1419_v4  ;;  %3065 = vmatprep.subr.bf16.mxu0 %v1422_v27  ;;  %v1488_v4 = vld [vmem:[#allocation3 + $0x888] sm:$0xff]  ;;  %v6379_v26 = vpack.c.bf16 %v1089_v53, %v1089_v53  ;;  %v1503_v27 = vld [vmem:[#allocation3 + $0x900] sm:$0xff]  ;;  %v1566_v53 = vld [vmem:[#allocation3 + $0xaf8] sm:$0xff] }
 0x3c3   :  { %2534 = vmatprep.subr.bf16.mxu1 %v1426_v13  ;;  %v1497_v13 = vld [vmem:[#allocation3 + $0x8d0] sm:$0xff] }
 0x3c5   :  { %3066 = vmatpush1.bf16.msra.mxu0 %v1421_v30  ;;  %v1500_v30 = vld [vmem:[#allocation3 + $0x8e8] sm:$0xff] }
 0x3c6   :  { %2535 = vmatpush1.bf16.msra.mxu1 %v1425_v21  ;;  %3067 = vmatprep.subr.bf16.mxu0 %v1428_v31  ;;  %v1487_v21 = vld [vmem:[#allocation3 + $0x880] sm:$0xff]  ;;  %v1516_v31 = vld [vmem:[#allocation3 + $0x968] sm:$0xff] }
 0x3c7   :  { %2536 = vmatprep.subr.bf16.mxu1 %v1432_v25  ;;  %v1494_v25 = vld [vmem:[#allocation3 + $0x8b8] sm:$0xff] }
 0x3c9   :  { %3068 = vmatpush1.bf16.msra.mxu0 %v1427_v34  ;;  %v1515_v34 = vld [vmem:[#allocation3 + $0x960] sm:$0xff] }
 0x3ca   :  { %2537 = vmatpush1.bf16.msra.mxu1 %v1431_v28  ;;  %3069 = vmatprep.subr.bf16.mxu0 %v1434_v35  ;;  %v1510_v28 = vld [vmem:[#allocation3 + $0x938] sm:$0xff] }
 0x3cb   :  { %2538 = vmatprep.subr.bf16.mxu1 %v1438_v29  ;;  %v1493_v29 = vld [vmem:[#allocation3 + $0x8b0] sm:$0xff]  ;;  %v1522_v35 = vld [vmem:[#allocation3 + $0x998] sm:$0xff] }
 0x3cd   :  { %3070 = vmatpush1.bf16.msra.mxu0 %v1433_v38  ;;  %v1521_v38 = vld [vmem:[#allocation3 + $0x990] sm:$0xff] }
 0x3ce   :  { %2539 = vmatpush1.bf16.msra.mxu1 %v1437_v32  ;;  %3071 = vmatprep.subr.bf16.mxu0 %v1440_v39  ;;  %v1499_v32 = vld [vmem:[#allocation3 + $0x8e0] sm:$0xff]  ;;  %v1528_v39 = vld [vmem:[#allocation3 + $0x9c8] sm:$0xff] }
 0x3cf   :  { %2540 = vmatprep.subr.bf16.mxu1 %v1444_v33  ;;  %v1506_v33 = vld [vmem:[#allocation3 + $0x918] sm:$0xff] }
 0x3d1   :  { %3072 = vmatpush1.bf16.msra.mxu0 %v1439_v42  ;;  %v1527_v42 = vld [vmem:[#allocation3 + $0x9c0] sm:$0xff] }
 0x3d2   :  { %2541 = vmatpush1.bf16.msra.mxu1 %v1443_v36  ;;  %3073 = vmatprep.subr.bf16.mxu0 %v1446_v20  ;;  %v1505_v36 = vld [vmem:[#allocation3 + $0x910] sm:$0xff]  ;;  %v1534_v20 = vld [vmem:[#allocation3 + $0x9f8] sm:$0xff] }
 0x3d3   :  { %2542 = vmatprep.subr.bf16.mxu1 %v1450_v37  ;;  %v1512_v37 = vld [vmem:[#allocation3 + $0x948] sm:$0xff] }
 0x3d5   :  { %3074 = vmatpush1.bf16.msra.mxu0 %v1445_v45  ;;  %v1533_v45 = vld [vmem:[#allocation3 + $0x9f0] sm:$0xff] }
 0x3d6   :  { %2543 = vmatpush1.bf16.msra.mxu1 %v1449_v40  ;;  %3075 = vmatprep.subr.bf16.mxu0 %v1452_v50  ;;  %v1511_v40 = vld [vmem:[#allocation3 + $0x940] sm:$0xff]  ;;  %v1540_v50 = vld [vmem:[#allocation3 + $0xa28] sm:$0xff] }
 0x3d7   :  { %2544 = vmatprep.subr.bf16.mxu1 %v1456_v41  ;;  %v1518_v41 = vld [vmem:[#allocation3 + $0x978] sm:$0xff] }
 0x3d9   :  { %3076 = vmatpush1.bf16.msra.mxu0 %v1451_v49  ;;  %v1539_v49 = vld [vmem:[#allocation3 + $0xa20] sm:$0xff] }
 0x3da   :  { %2545 = vmatpush1.bf16.msra.mxu1 %v1455_v43  ;;  %3077 = vmatprep.subr.bf16.mxu0 %v1458_v51  ;;  %v1517_v43 = vld [vmem:[#allocation3 + $0x970] sm:$0xff]  ;;  %v1546_v51 = vld [vmem:[#allocation3 + $0xa58] sm:$0xff] }
 0x3db   :  { %2546 = vmatprep.subr.bf16.mxu1 %v1462_v44  ;;  %v1524_v44 = vld [vmem:[#allocation3 + $0x9a8] sm:$0xff] }
 0x3dd   :  { %3078 = vmatpush1.bf16.msra.mxu0 %v1457_v56  ;;  %v1545_v56 = vld [vmem:[#allocation3 + $0xa50] sm:$0xff] }
 0x3de   :  { %2547 = vmatpush1.bf16.msra.mxu1 %v1461_v47  ;;  %3079 = vmatprep.subr.bf16.mxu0 %v1464_v58  ;;  %v1523_v47 = vld [vmem:[#allocation3 + $0x9a0] sm:$0xff]  ;;  %v1552_v58 = vld [vmem:[#allocation3 + $0xa88] sm:$0xff] }
 0x3df   :  { %2548 = vmatprep.subr.bf16.mxu1 %v1468_v48  ;;  %v1530_v48 = vld [vmem:[#allocation3 + $0x9d8] sm:$0xff] }
 0x3e1   :  { %3080 = vmatpush1.bf16.msra.mxu0 %v1463_v59  ;;  %v1551_v59 = vld [vmem:[#allocation3 + $0xa80] sm:$0xff] }
 0x3e2   :  { %2549 = vmatpush1.bf16.msra.mxu1 %v1467_v52  ;;  %3081 = vmatprep.subr.bf16.mxu0 %v1470_v63  ;;  %v1529_v52 = vld [vmem:[#allocation3 + $0x9d0] sm:$0xff]  ;;  %v1558_v63 = vld [vmem:[#allocation3 + $0xab8] sm:$0xff] }
 0x3e3   :  { %2550 = vmatprep.subr.bf16.mxu1 %v1474_v55  ;;  %v1536_v55 = vld [vmem:[#allocation3 + $0xa08] sm:$0xff] }
 0x3e5   :  { %3082 = vmatpush1.bf16.msra.mxu0 %v1469_v3  ;;  %v1557_v3 = vld [vmem:[#allocation3 + $0xab0] sm:$0xff] }
 0x3e6   :  { %2551 = vmatpush1.bf16.msra.mxu1 %v1473_v61  ;;  %3083 = vmatprep.subr.bf16.mxu0 %v1476_v22  ;;  %v1535_v61 = vld [vmem:[#allocation3 + $0xa00] sm:$0xff]  ;;  %v1564_v22 = vld [vmem:[#allocation3 + $0xae8] sm:$0xff] }
 0x3e7   :  { %2552 = vmatprep.subr.bf16.mxu1 %v1480_v62  ;;  %v1542_v62 = vld [vmem:[#allocation3 + $0xa38] sm:$0xff] }
 0x3e9   :  { %3084 = vmatpush1.bf16.msra.mxu0 %v1475_v15  ;;  %v1570_v15 = vld [vmem:[#allocation3 + $0xb18] sm:$0xff] }
 0x3ea   :  { %2553 = vmatpush1.bf16.msra.mxu1 %v1479_v17  ;;  %3085 = vmatprep.subr.bf16.mxu0 %v1482_v9  ;;  %v1541_v17 = vld [vmem:[#allocation3 + $0xa30] sm:$0xff] }
 0x3eb   :  { %2554 = vmatprep.subr.bf16.mxu1 %v1486_v14  ;;  %v1548_v14 = vld [vmem:[#allocation3 + $0xa68] sm:$0xff]  ;;  %v1553_v9 = vld [vmem:[#allocation3 + $0xa90] sm:$0xff] }
 0x3ed   :  { %3086 = vmatpush1.bf16.msra.mxu0 %v1481_v12  ;;  %v1576_v12 = vld [vmem:[#allocation3 + $0xb48] sm:$0xff] }
 0x3ee   :  { %2555 = vmatpush1.bf16.msra.mxu1 %v1485_v7  ;;  %3087 = vmatprep.subr.bf16.mxu0 %v1488_v4  ;;  %v1554_v7 = vld [vmem:[#allocation3 + $0xa98] sm:$0xff]  ;;  %v1559_v4 = vld [vmem:[#allocation3 + $0xac0] sm:$0xff] }
 0x3ef   :  { %2556 = vmatprep.subr.bf16.mxu1 %v1492_v8  ;;  %v1563_v8 = vld [vmem:[#allocation3 + $0xae0] sm:$0xff] }
 0x3f1   :  { %3088 = vmatpush1.bf16.msra.mxu0 %v1487_v21  ;;  %v1565_v21 = vld [vmem:[#allocation3 + $0xaf0] sm:$0xff] }
 0x3f2   :  { %2557 = vmatpush1.bf16.msra.mxu1 %v1491_v10  ;;  %3089 = vmatprep.subr.bf16.mxu0 %v1494_v25  ;;  %v1560_v10 = vld [vmem:[#allocation3 + $0xac8] sm:$0xff] }
 0x3f3   :  { %2558 = vmatprep.subr.bf16.mxu1 %v1498_v11  ;;  %v1569_v11 = vld [vmem:[#allocation3 + $0xb10] sm:$0xff]  ;;  %v1572_v25 = vld [vmem:[#allocation3 + $0xb28] sm:$0xff] }
 0x3f5   :  { %3090 = vmatpush1.bf16.msra.mxu0 %v1493_v29  ;;  %v1588_v29 = vld [vmem:[#allocation3 + $0xba8] sm:$0xff] }
 0x3f6   :  { %2559 = vmatpush1.bf16.msra.mxu1 %v1497_v13  ;;  %3091 = vmatprep.subr.bf16.mxu0 %v1500_v30  ;;  %v1575_v13 = vld [vmem:[#allocation3 + $0xb40] sm:$0xff] }
 0x3f7   :  { %2569 = vmatprep.subr.bf16.mxu1 %v1504_v16  ;;  %v1582_v16 = vld [vmem:[#allocation3 + $0xb78] sm:$0xff]  ;;  %v1571_v30 = vld [vmem:[#allocation3 + $0xb20] sm:$0xff] }
 0x3f9   :  { %2561 = vmatmul.mubr.bf16.vlgmr.msra.gmra.mrb[8].mxu1 %v6377_v18  ;;  %3092 = vmatpush1.bf16.msra.mxu0 %v1499_v32  ;;  %v1587_v32 = vld [vmem:[#allocation3 + $0xba0] sm:$0xff] }
 0x3fa   :  { %2570 = vmatpush1.bf16.msra.mxu1 %v1503_v27  ;;  %2601 = vmatprep.mubr.bf16.mxu1 %v6379_v26  ;;  %v1581_v27 = vld [vmem:[#allocation3 + $0xb70] sm:$0xff] }
 0x3fb   :  { %2571 = vmatprep.subr.bf16.mxu1 %v1510_v28  ;;  %3102 = vmatprep.subr.bf16.mxu0 %v1506_v33  ;;  %v6385_v28 = vld [vmem:[#allocation2 + $0x10] sm:$0xff] }
 0x3fc   :  { %3094 = vmatmul.mubr.bf16.vlgmr.msra.gmra.mrb[24].mxu0 %v6377_v18  ;;  %v1594_v33 = vld [vmem:[#allocation3 + $0xbd8] sm:$0xff] }
 0x3fd   :  { %3103 = vmatpush1.bf16.msra.mxu0 %v1505_v36  ;;  %3134 = vmatprep.mubr.bf16.mxu0 %v6379_v26 }
 0x3fe   :  { %2572 = vmatpush1.bf16.msra.mxu1 %v1509_v60  ;;  %3104 = vmatprep.subr.bf16.mxu0 %v1512_v37  ;;  %v1578_v60 = vld [vmem:[#allocation3 + $0xb58] sm:$0xff]  ;;  %v1593_v37 = vld [vmem:[#allocation3 + $0xbd0] sm:$0xff] }
 0x3ff   :  { %2573 = vmatprep.subr.bf16.mxu1 %v1516_v31  ;;  %v6389_v31 = vrot.slane %v6385_v28, %v6292_v24 }
 0x401   :  { %3105 = vmatpush1.bf16.msra.mxu0 %v1511_v40  ;;  %v1105_v36 = vcombine.high %v6389_v31, %v6389_v31  ;;  %v1583_v40 = vld [vmem:[#allocation3 + $0xb80] sm:$0xff] }
 0x402   :  { %2574 = vmatpush1.bf16.msra.mxu1 %v1515_v34  ;;  %3106 = vmatprep.subr.bf16.mxu0 %v1518_v41  ;;  %v1577_v34 = vld [vmem:[#allocation3 + $0xb50] sm:$0xff]  ;;  %v1590_v41 = vld [vmem:[#allocation3 + $0xbb8] sm:$0xff] }
 0x403   :  { %2575 = vmatprep.subr.bf16.mxu1 %v1522_v35  ;;  %v1584_v35 = vld [vmem:[#allocation3 + $0xb88] sm:$0xff] }
 0x405   :  { %3107 = vmatpush1.bf16.msra.mxu0 %v1517_v43  ;;  %v1606_v43 = vld [vmem:[#allocation3 + $0xc38] sm:$0xff] }
 0x406   :  { %2576 = vmatpush1.bf16.msra.mxu1 %v1521_v38  ;;  %3108 = vmatprep.subr.bf16.mxu0 %v1524_v44  ;;  %v1600_v38 = vld [vmem:[#allocation3 + $0xc08] sm:$0xff]  ;;  %v1589_v44 = vld [vmem:[#allocation3 + $0xbb0] sm:$0xff] }
 0x407   :  { %2577 = vmatprep.subr.bf16.mxu1 %v1528_v39  ;;  %v6395_v39 = vpack.c.bf16 %v6371_v46, %v6371_v46  ;;  %v1605_v46 = vld [vmem:[#allocation3 + $0xc30] sm:$0xff] }
 0x409   :  { %3109 = vmatpush1.bf16.msra.mxu0 %v1523_v47  ;;  %v1595_v47 = vld [vmem:[#allocation3 + $0xbe0] sm:$0xff] }
 0x40a   :  { %2578 = vmatpush1.bf16.msra.mxu1 %v1527_v42  ;;  %3110 = vmatprep.subr.bf16.mxu0 %v1530_v48  ;;  %v6397_v42 = vpack.c.bf16 %v1105_v36, %v1105_v36  ;;  %v1602_v48 = vld [vmem:[#allocation3 + $0xc18] sm:$0xff]  ;;  %v1665_v36 = vld [vmem:[#allocation3 + $0xe10] sm:$0xff] }
 0x40b   :  { %2579 = vmatprep.subr.bf16.mxu1 %v1534_v20  ;;  %v1599_v20 = vld [vmem:[#allocation3 + $0xc00] sm:$0xff] }
 0x40d   :  { %3111 = vmatpush1.bf16.msra.mxu0 %v1529_v52  ;;  %v1601_v52 = vld [vmem:[#allocation3 + $0xc10] sm:$0xff] }
 0x40e   :  { %2580 = vmatpush1.bf16.msra.mxu1 %v1533_v45  ;;  %3112 = vmatprep.subr.bf16.mxu0 %v1536_v55  ;;  %v1596_v45 = vld [vmem:[#allocation3 + $0xbe8] sm:$0xff] }
 0x40f   :  { %2581 = vmatprep.subr.bf16.mxu1 %v1540_v50  ;;  %v1612_v50 = vld [vmem:[#allocation3 + $0xc68] sm:$0xff] }
 0x410   :  { %v1608_v55 = vld [vmem:[#allocation3 + $0xc48] sm:$0xff] }
 0x411   :  { %3113 = vmatpush1.bf16.msra.mxu0 %v1535_v61  ;;  %v1607_v61 = vld [vmem:[#allocation3 + $0xc40] sm:$0xff] }
 0x412   :  { %2582 = vmatpush1.bf16.msra.mxu1 %v1539_v49  ;;  %3114 = vmatprep.subr.bf16.mxu0 %v1542_v62  ;;  %v1611_v49 = vld [vmem:[#allocation3 + $0xc60] sm:$0xff]  ;;  %v1614_v62 = vld [vmem:[#allocation3 + $0xc78] sm:$0xff] }
 0x413   :  { %2583 = vmatprep.subr.bf16.mxu1 %v1546_v51  ;;  %v1618_v51 = vld [vmem:[#allocation3 + $0xc98] sm:$0xff] }
 0x415   :  { %3115 = vmatpush1.bf16.msra.mxu0 %v1541_v17  ;;  %v1613_v17 = vld [vmem:[#allocation3 + $0xc70] sm:$0xff] }
 0x416   :  { %2584 = vmatpush1.bf16.msra.mxu1 %v1545_v56  ;;  %3116 = vmatprep.subr.bf16.mxu0 %v1548_v14  ;;  %v1617_v56 = vld [vmem:[#allocation3 + $0xc90] sm:$0xff]  ;;  %v1620_v14 = vld [vmem:[#allocation3 + $0xca8] sm:$0xff] }
 0x417   :  { %2585 = vmatprep.subr.bf16.mxu1 %v1552_v58  ;;  %v1624_v58 = vld [vmem:[#allocation3 + $0xcc8] sm:$0xff] }
 0x419   :  { %3117 = vmatpush1.bf16.msra.mxu0 %v1547_v2  ;;  %v1619_v2 = vld [vmem:[#allocation3 + $0xca0] sm:$0xff] }
 0x41a   :  { %2586 = vmatpush1.bf16.msra.mxu1 %v1551_v59  ;;  %3118 = vmatprep.subr.bf16.mxu0 %v1554_v7  ;;  %v1623_v59 = vld [vmem:[#allocation3 + $0xcc0] sm:$0xff]  ;;  %v1626_v7 = vld [vmem:[#allocation3 + $0xcd8] sm:$0xff] }
 0x41b   :  { %2587 = vmatprep.subr.bf16.mxu1 %v1558_v63  ;;  %v1630_v63 = vld [vmem:[#allocation3 + $0xcf8] sm:$0xff] }
 0x41d   :  { %3119 = vmatpush1.bf16.msra.mxu0 %v1553_v9  ;;  %v1625_v9 = vld [vmem:[#allocation3 + $0xcd0] sm:$0xff] }
 0x41e   :  { %2588 = vmatpush1.bf16.msra.mxu1 %v1557_v3  ;;  %3120 = vmatprep.subr.bf16.mxu0 %v1560_v10  ;;  %v1629_v3 = vld [vmem:[#allocation3 + $0xcf0] sm:$0xff]  ;;  %v1632_v10 = vld [vmem:[#allocation3 + $0xd08] sm:$0xff] }
 0x41f   :  { %2589 = vmatprep.subr.bf16.mxu1 %v1564_v22  ;;  %v1636_v22 = vld [vmem:[#allocation3 + $0xd28] sm:$0xff] }
 0x421   :  { %3121 = vmatpush1.bf16.msra.mxu0 %v1559_v4  ;;  %v1631_v4 = vld [vmem:[#allocation3 + $0xd00] sm:$0xff] }
 0x422   :  { %2590 = vmatpush1.bf16.msra.mxu1 %v1563_v8  ;;  %3122 = vmatprep.subr.bf16.mxu0 %v1566_v53  ;;  %v1635_v8 = vld [vmem:[#allocation3 + $0xd20] sm:$0xff]  ;;  %v1638_v53 = vld [vmem:[#allocation3 + $0xd38] sm:$0xff] }
 0x423   :  { %2591 = vmatprep.subr.bf16.mxu1 %v1570_v15  ;;  %v1642_v15 = vld [vmem:[#allocation3 + $0xd58] sm:$0xff] }
 0x425   :  { %3123 = vmatpush1.bf16.msra.mxu0 %v1565_v21  ;;  %v1637_v21 = vld [vmem:[#allocation3 + $0xd30] sm:$0xff] }
 0x426   :  { %2592 = vmatpush1.bf16.msra.mxu1 %v1569_v11  ;;  %3124 = vmatprep.subr.bf16.mxu0 %v1572_v25  ;;  %v1641_v11 = vld [vmem:[#allocation3 + $0xd50] sm:$0xff]  ;;  %v1644_v25 = vld [vmem:[#allocation3 + $0xd68] sm:$0xff] }
 0x427   :  { %2593 = vmatprep.subr.bf16.mxu1 %v1576_v12  ;;  %v1648_v12 = vld [vmem:[#allocation3 + $0xd88] sm:$0xff] }
 0x429   :  { %3125 = vmatpush1.bf16.msra.mxu0 %v1571_v30  ;;  %v1643_v30 = vld [vmem:[#allocation3 + $0xd60] sm:$0xff] }
 0x42a   :  { %2594 = vmatpush1.bf16.msra.mxu1 %v1575_v13  ;;  %3126 = vmatprep.subr.bf16.mxu0 %v1578_v60  ;;  %v1647_v13 = vld [vmem:[#allocation3 + $0xd80] sm:$0xff]  ;;  %v1650_v60 = vld [vmem:[#allocation3 + $0xd98] sm:$0xff] }
 0x42b   :  { %2595 = vmatprep.subr.bf16.mxu1 %v1582_v16  ;;  %v1654_v16 = vld [vmem:[#allocation3 + $0xdb8] sm:$0xff] }
 0x42d   :  { %3127 = vmatpush1.bf16.msra.mxu0 %v1577_v34  ;;  %v1649_v34 = vld [vmem:[#allocation3 + $0xd90] sm:$0xff] }
 0x42e   :  { %2596 = vmatpush1.bf16.msra.mxu1 %v1581_v27  ;;  %3128 = vmatprep.subr.bf16.mxu0 %v1584_v35  ;;  %v1653_v27 = vld [vmem:[#allocation3 + $0xdb0] sm:$0xff]  ;;  %v1656_v35 = vld [vmem:[#allocation3 + $0xdc8] sm:$0xff] }
 0x42f   :  { %2597 = vmatprep.subr.bf16.mxu1 %v1588_v29  ;;  %v1660_v29 = vld [vmem:[#allocation3 + $0xde8] sm:$0xff] }
 0x431   :  { %3129 = vmatpush1.bf16.msra.mxu0 %v1583_v40  ;;  %v1662_v40 = vld [vmem:[#allocation3 + $0xdf8] sm:$0xff] }
 0x432   :  { %2598 = vmatpush1.bf16.msra.mxu1 %v1587_v32  ;;  %3130 = vmatprep.subr.bf16.mxu0 %v1590_v41  ;;  %v1659_v32 = vld [vmem:[#allocation3 + $0xde0] sm:$0xff] }
 0x433   :  { %2599 = vmatprep.subr.bf16.mxu1 %v1594_v33  ;;  %v1666_v33 = vld [vmem:[#allocation3 + $0xe18] sm:$0xff]  ;;  %v1671_v41 = vld [vmem:[#allocation3 + $0xe40] sm:$0xff] }
 0x435   :  { %3131 = vmatpush1.bf16.msra.mxu0 %v1589_v44  ;;  %v1668_v44 = vld [vmem:[#allocation3 + $0xe28] sm:$0xff] }
 0x436   :  { %2600 = vmatpush1.bf16.msra.mxu1 %v1593_v37  ;;  %3132 = vmatprep.subr.bf16.mxu0 %v1596_v45  ;;  %v1672_v37 = vld [vmem:[#allocation3 + $0xe48] sm:$0xff]  ;;  %v1090_v45 = vcombine.high %v6385_v28, %v6385_v28 }
 0x437   :  { %2610 = vmatprep.subr.bf16.mxu1 %v1600_v38  ;;  %v1655_v38 = vld [vmem:[#allocation3 + $0xdc0] sm:$0xff] }
 0x439   :  { %2602 = vmatmul.mubr.bf16.vlgmr.msra.gmra.mrb[8].mxu1 %v6395_v39  ;;  %3133 = vmatpush1.bf16.msra.mxu0 %v1595_v47  ;;  %v1667_v47 = vld [vmem:[#allocation3 + $0xe20] sm:$0xff] }
 0x43a   :  { %2611 = vmatpush1.bf16.msra.mxu1 %v1599_v20  ;;  %2642 = vmatprep.mubr.bf16.mxu1 %v6397_v42  ;;  %v1678_v20 = vld [vmem:[#allocation3 + $0xe78] sm:$0xff] }
 0x43b   :  { %2612 = vmatprep.subr.bf16.mxu1 %v1606_v43  ;;  %3143 = vmatprep.subr.bf16.mxu0 %v1602_v48  ;;  %v1661_v43 = vld [vmem:[#allocation3 + $0xdf0] sm:$0xff]  ;;  %v1674_v48 = vld [vmem:[#allocation3 + $0xe58] sm:$0xff] }
 0x43c   :  { %3135 = vmatmul.mubr.bf16.vlgmr.msra.gmra.mrb[24].mxu0 %v6395_v39 }
 0x43d   :  { %3144 = vmatpush1.bf16.msra.mxu0 %v1601_v52  ;;  %3175 = vmatprep.mubr.bf16.mxu0 %v6397_v42  ;;  %v1690_v52 = vld [vmem:[#allocation3 + $0xed8] sm:$0xff] }
 0x43e   :  { %2613 = vmatpush1.bf16.msra.mxu1 %v1605_v46  ;;  %3145 = vmatprep.subr.bf16.mxu0 %v1608_v55  ;;  %v1677_v46 = vld [vmem:[#allocation3 + $0xe70] sm:$0xff] }
 0x43f   :  { %2614 = vmatprep.subr.bf16.mxu1 %v1612_v50  ;;  %v1684_v50 = vld [vmem:[#allocation3 + $0xea8] sm:$0xff]  ;;  %v1673_v55 = vld [vmem:[#allocation3 + $0xe50] sm:$0xff] }
 0x441   :  { %3146 = vmatpush1.bf16.msra.mxu0 %v1607_v61  ;;  %v1696_v61 = vld [vmem:[#allocation3 + $0xf08] sm:$0xff] }
 0x442   :  { %2615 = vmatpush1.bf16.msra.mxu1 %v1611_v49  ;;  %3147 = vmatprep.subr.bf16.mxu0 %v1614_v62  ;;  %v6406_v49 = vrot.slane %v1090_v45, %v6292_v24  ;;  %v6412_v62 = vpack.c.bf16 %v6389_v31, %v6389_v31  ;;  %v1701_v31 = vld [vmem:[#allocation3 + $0xf30] sm:$0xff] }
 0x443   :  { %2616 = vmatprep.subr.bf16.mxu1 %v1618_v51  ;;  %v1683_v51 = vld [vmem:[#allocation3 + $0xea0] sm:$0xff]  ;;  %v1733_v45 = vld [vmem:[#allocation3 + $0x1030] sm:$0xff] }
 0x444   :  { %v1106_v28 = vcombine.high %v6406_v49, %v6406_v49 }
 0x445   :  { %3148 = vmatpush1.bf16.msra.mxu0 %v1613_v17 }
 0x446   :  { %2617 = vmatpush1.bf16.msra.mxu1 %v1617_v56  ;;  %3149 = vmatprep.subr.bf16.mxu0 %v1620_v14  ;;  %v1680_v56 = vld [vmem:[#allocation3 + $0xe88] sm:$0xff]  ;;  %v6414_v17 = vpack.c.bf16 %v1106_v28, %v1106_v28  ;;  %v1695_v14 = vld [vmem:[#allocation3 + $0xf00] sm:$0xff] }
 0x447   :  { %2618 = vmatprep.subr.bf16.mxu1 %v1624_v58  ;;  %v1689_v58 = vld [vmem:[#allocation3 + $0xed0] sm:$0xff]  ;;  %v1752_v28 = vld [vmem:[#allocation3 + $0x10c8] sm:$0xff] }
 0x449   :  { %3150 = vmatpush1.bf16.msra.mxu0 %v1619_v2  ;;  %v1692_v2 = vld [vmem:[#allocation3 + $0xee8] sm:$0xff] }
 0x44a   :  { %2619 = vmatpush1.bf16.msra.mxu1 %v1623_v59  ;;  %3151 = vmatprep.subr.bf16.mxu0 %v1626_v7  ;;  %v1679_v59 = vld [vmem:[#allocation3 + $0xe80] sm:$0xff]  ;;  %v1708_v7 = vld [vmem:[#allocation3 + $0xf68] sm:$0xff] }
 0x44b   :  { %2620 = vmatprep.subr.bf16.mxu1 %v1630_v63  ;;  %v1686_v63 = vld [vmem:[#allocation3 + $0xeb8] sm:$0xff] }
 0x44d   :  { %3152 = vmatpush1.bf16.msra.mxu0 %v1625_v9  ;;  %v1707_v9 = vld [vmem:[#allocation3 + $0xf60] sm:$0xff] }
 0x44e   :  { %2621 = vmatpush1.bf16.msra.mxu1 %v1629_v3  ;;  %3153 = vmatprep.subr.bf16.mxu0 %v1632_v10  ;;  %v1702_v3 = vld [vmem:[#allocation3 + $0xf38] sm:$0xff] }
 0x44f   :  { %2622 = vmatprep.subr.bf16.mxu1 %v1636_v22  ;;  %v1685_v22 = vld [vmem:[#allocation3 + $0xeb0] sm:$0xff]  ;;  %v1714_v10 = vld [vmem:[#allocation3 + $0xf98] sm:$0xff] }
 0x451   :  { %3154 = vmatpush1.bf16.msra.mxu0 %v1631_v4  ;;  %v1713_v4 = vld [vmem:[#allocation3 + $0xf90] sm:$0xff] }
 0x452   :  { %2623 = vmatpush1.bf16.msra.mxu1 %v1635_v8  ;;  %3155 = vmatprep.subr.bf16.mxu0 %v1638_v53  ;;  %v1691_v8 = vld [vmem:[#allocation3 + $0xee0] sm:$0xff]  ;;  %v1720_v53 = vld [vmem:[#allocation3 + $0xfc8] sm:$0xff] }
 0x453   :  { %2624 = vmatprep.subr.bf16.mxu1 %v1642_v15  ;;  %v1698_v15 = vld [vmem:[#allocation3 + $0xf18] sm:$0xff] }
 0x455   :  { %3156 = vmatpush1.bf16.msra.mxu0 %v1637_v21  ;;  %v1719_v21 = vld [vmem:[#allocation3 + $0xfc0] sm:$0xff] }
 0x456   :  { %2625 = vmatpush1.bf16.msra.mxu1 %v1641_v11  ;;  %3157 = vmatprep.subr.bf16.mxu0 %v1644_v25  ;;  %v1697_v11 = vld [vmem:[#allocation3 + $0xf10] sm:$0xff]  ;;  %v1726_v25 = vld [vmem:[#allocation3 + $0xff8] sm:$0xff] }
 0x457   :  { %2626 = vmatprep.subr.bf16.mxu1 %v1648_v12  ;;  %v1704_v12 = vld [vmem:[#allocation3 + $0xf48] sm:$0xff] }
 0x459   :  { %3158 = vmatpush1.bf16.msra.mxu0 %v1643_v30  ;;  %v1725_v30 = vld [vmem:[#allocation3 + $0xff0] sm:$0xff] }
 0x45a   :  { %2627 = vmatpush1.bf16.msra.mxu1 %v1647_v13  ;;  %3159 = vmatprep.subr.bf16.mxu0 %v1650_v60  ;;  %v1703_v13 = vld [vmem:[#allocation3 + $0xf40] sm:$0xff]  ;;  %v1732_v60 = vld [vmem:[#allocation3 + $0x1028] sm:$0xff] }
 0x45b   :  { %2628 = vmatprep.subr.bf16.mxu1 %v1654_v16  ;;  %v1710_v16 = vld [vmem:[#allocation3 + $0xf78] sm:$0xff] }
 0x45d   :  { %3160 = vmatpush1.bf16.msra.mxu0 %v1649_v34  ;;  %v1731_v34 = vld [vmem:[#allocation3 + $0x1020] sm:$0xff] }
 0x45e   :  { %2629 = vmatpush1.bf16.msra.mxu1 %v1653_v27  ;;  %3161 = vmatprep.subr.bf16.mxu0 %v1656_v35  ;;  %v1709_v27 = vld [vmem:[#allocation3 + $0xf70] sm:$0xff]  ;;  %v1738_v35 = vld [vmem:[#allocation3 + $0x1058] sm:$0xff] }
 0x45f   :  { %2630 = vmatprep.subr.bf16.mxu1 %v1660_v29  ;;  %v1716_v29 = vld [vmem:[#allocation3 + $0xfa8] sm:$0xff] }
 0x461   :  { %3162 = vmatpush1.bf16.msra.mxu0 %v1655_v38  ;;  %v1737_v38 = vld [vmem:[#allocation3 + $0x1050] sm:$0xff] }
 0x462   :  { %2631 = vmatpush1.bf16.msra.mxu1 %v1659_v32  ;;  %3163 = vmatprep.subr.bf16.mxu0 %v1662_v40  ;;  %v1715_v32 = vld [vmem:[#allocation3 + $0xfa0] sm:$0xff]  ;;  %v1744_v40 = vld [vmem:[#allocation3 + $0x1088] sm:$0xff] }
 0x463   :  { %2632 = vmatprep.subr.bf16.mxu1 %v1666_v33  ;;  %v1722_v33 = vld [vmem:[#allocation3 + $0xfd8] sm:$0xff] }
 0x465   :  { %3164 = vmatpush1.bf16.msra.mxu0 %v1661_v43  ;;  %v1743_v43 = vld [vmem:[#allocation3 + $0x1080] sm:$0xff] }
 0x466   :  { %2633 = vmatpush1.bf16.msra.mxu1 %v1665_v36  ;;  %3165 = vmatprep.subr.bf16.mxu0 %v1668_v44  ;;  %v1721_v36 = vld [vmem:[#allocation3 + $0xfd0] sm:$0xff]  ;;  %v1750_v44 = vld [vmem:[#allocation3 + $0x10b8] sm:$0xff] }
 0x467   :  { %2634 = vmatprep.subr.bf16.mxu1 %v1672_v37  ;;  %v1728_v37 = vld [vmem:[#allocation3 + $0x1008] sm:$0xff] }
 0x469   :  { %3166 = vmatpush1.bf16.msra.mxu0 %v1667_v47  ;;  %v1756_v47 = vld [vmem:[#allocation3 + $0x10e8] sm:$0xff] }
 0x46a   :  { %2635 = vmatpush1.bf16.msra.mxu1 %v1671_v41  ;;  %3167 = vmatprep.subr.bf16.mxu0 %v1674_v48  ;;  %v1727_v41 = vld [vmem:[#allocation3 + $0x1000] sm:$0xff] }
 0x46b   :  { %2636 = vmatprep.subr.bf16.mxu1 %v1678_v20  ;;  %v1734_v20 = vld [vmem:[#allocation3 + $0x1038] sm:$0xff]  ;;  %v1739_v48 = vld [vmem:[#allocation3 + $0x1060] sm:$0xff] }
 0x46d   :  { %3168 = vmatpush1.bf16.msra.mxu0 %v1673_v55  ;;  %v1762_v55 = vld [vmem:[#allocation3 + $0x1118] sm:$0xff] }
 0x46e   :  { %2637 = vmatpush1.bf16.msra.mxu1 %v1677_v46  ;;  %3169 = vmatprep.subr.bf16.mxu0 %v1680_v56  ;;  %v1740_v46 = vld [vmem:[#allocation3 + $0x1068] sm:$0xff]  ;;  %v1745_v56 = vld [vmem:[#allocation3 + $0x1090] sm:$0xff] }
 0x46f   :  { %2638 = vmatprep.subr.bf16.mxu1 %v1684_v50  ;;  %v1749_v50 = vld [vmem:[#allocation3 + $0x10b0] sm:$0xff] }
 0x471   :  { %3170 = vmatpush1.bf16.msra.mxu0 %v1679_v59  ;;  %v1751_v59 = vld [vmem:[#allocation3 + $0x10c0] sm:$0xff] }
 0x472   :  { %2639 = vmatpush1.bf16.msra.mxu1 %v1683_v51  ;;  %3171 = vmatprep.subr.bf16.mxu0 %v1686_v63  ;;  %v1746_v51 = vld [vmem:[#allocation3 + $0x1098] sm:$0xff] }
 0x473   :  { %2640 = vmatprep.subr.bf16.mxu1 %v1690_v52  ;;  %v1755_v52 = vld [vmem:[#allocation3 + $0x10e0] sm:$0xff]  ;;  %v1758_v63 = vld [vmem:[#allocation3 + $0x10f8] sm:$0xff] }
 0x475   :  { %3172 = vmatpush1.bf16.msra.mxu0 %v1685_v22  ;;  %v1757_v22 = vld [vmem:[#allocation3 + $0x10f0] sm:$0xff] }
 0x476   :  { %2641 = vmatpush1.bf16.msra.mxu1 %v1689_v58  ;;  %3173 = vmatprep.subr.bf16.mxu0 %v1692_v2  ;;  %v1761_v58 = vld [vmem:[#allocation3 + $0x1110] sm:$0xff]  ;;  %v1764_v2 = vld [vmem:[#allocation3 + $0x1128] sm:$0xff] }
 0x477   :  { %2651 = vmatprep.subr.bf16.mxu1 %v1696_v61  ;;  %v1768_v61 = vld [vmem:[#allocation3 + $0x1148] sm:$0xff] }
 0x479   :  { %2643 = vmatmul.mubr.bf16.vlgmr.msra.gmra.mrb[8].mxu1 %v6412_v62  ;;  %3174 = vmatpush1.bf16.msra.mxu0 %v1691_v8  ;;  %v1780_v8 = vld [vmem:[#allocation3 + $0x11a8] sm:$0xff] }
 0x47a   :  { %2652 = vmatpush1.bf16.msra.mxu1 %v1695_v14  ;;  %2683 = vmatprep.mubr.bf16.mxu1 %v6414_v17  ;;  %v1767_v14 = vld [vmem:[#allocation3 + $0x1140] sm:$0xff] }
 0x47b   :  { %2653 = vmatprep.subr.bf16.mxu1 %v1702_v3  ;;  %3184 = vmatprep.subr.bf16.mxu0 %v1698_v15  ;;  %v1774_v3 = vld [vmem:[#allocation3 + $0x1178] sm:$0xff]  ;;  %v1763_v15 = vld [vmem:[#allocation3 + $0x1120] sm:$0xff] }
 0x47c   :  { %3176 = vmatmul.mubr.bf16.vlgmr.msra.gmra.mrb[24].mxu0 %v6412_v62 }
 0x47d   :  { %3185 = vmatpush1.bf16.msra.mxu0 %v1697_v11  ;;  %3216 = vmatprep.mubr.bf16.mxu0 %v6414_v17  ;;  %v1779_v11 = vld [vmem:[#allocation3 + $0x11a0] sm:$0xff] }
 0x47e   :  { %2654 = vmatpush1.bf16.msra.mxu1 %v1701_v31  ;;  %3186 = vmatprep.subr.bf16.mxu0 %v1704_v12  ;;  %v1773_v31 = vld [vmem:[#allocation3 + $0x1170] sm:$0xff]  ;;  %v1786_v12 = vld [vmem:[#allocation3 + $0x11d8] sm:$0xff] }
 0x47f   :  { %2655 = vmatprep.subr.bf16.mxu1 %v1708_v7  ;;  %v6420_v7 = vld [vmem:[#allocation2 + $0x18] sm:$0xff] }
 0x481   :  { %3187 = vmatpush1.bf16.msra.mxu0 %v1703_v13 }
 0x482   :  { %2656 = vmatpush1.bf16.msra.mxu1 %v1707_v9  ;;  %3188 = vmatprep.subr.bf16.mxu0 %v1710_v16  ;;  %v1770_v9 = vld [vmem:[#allocation3 + $0x1158] sm:$0xff]  ;;  %v1785_v16 = vld [vmem:[#allocation3 + $0x11d0] sm:$0xff] }
 0x483   :  { %2657 = vmatprep.subr.bf16.mxu1 %v1714_v10  ;;  %v6424_v10 = vrot.slane %v6420_v7, %v6292_v24 }
 0x485   :  { %3189 = vmatpush1.bf16.msra.mxu0 %v1709_v27  ;;  %v1122_v13 = vcombine.high %v6424_v10, %v6424_v10  ;;  %v1775_v27 = vld [vmem:[#allocation3 + $0x1180] sm:$0xff] }
 0x486   :  { %2658 = vmatpush1.bf16.msra.mxu1 %v1713_v4  ;;  %3190 = vmatprep.subr.bf16.mxu0 %v1716_v29  ;;  %v1769_v4 = vld [vmem:[#allocation3 + $0x1150] sm:$0xff]  ;;  %v1782_v29 = vld [vmem:[#allocation3 + $0x11b8] sm:$0xff] }
 0x487   :  { %2659 = vmatprep.subr.bf16.mxu1 %v1720_v53  ;;  %v1776_v53 = vld [vmem:[#allocation3 + $0x1188] sm:$0xff] }
 0x489   :  { %3191 = vmatpush1.bf16.msra.mxu0 %v1715_v32  ;;  %v1798_v32 = vld [vmem:[#allocation3 + $0x1238] sm:$0xff] }
 0x48a   :  { %2660 = vmatpush1.bf16.msra.mxu1 %v1719_v21  ;;  %3192 = vmatprep.subr.bf16.mxu0 %v1722_v33  ;;  %v1792_v21 = vld [vmem:[#allocation3 + $0x1208] sm:$0xff]  ;;  %v1781_v33 = vld [vmem:[#allocation3 + $0x11b0] sm:$0xff] }
 0x48b   :  { %2661 = vmatprep.subr.bf16.mxu1 %v1726_v25  ;;  %v6430_v25 = vpack.c.bf16 %v6406_v49, %v6406_v49  ;;  %v1797_v49 = vld [vmem:[#allocation3 + $0x1230] sm:$0xff] }
 0x48d   :  { %3193 = vmatpush1.bf16.msra.mxu0 %v1721_v36  ;;  %v1787_v36 = vld [vmem:[#allocation3 + $0x11e0] sm:$0xff] }
 0x48e   :  { %2662 = vmatpush1.bf16.msra.mxu1 %v1725_v30  ;;  %3194 = vmatprep.subr.bf16.mxu0 %v1728_v37  ;;  %v6432_v30 = vpack.c.bf16 %v1122_v13, %v1122_v13  ;;  %v1794_v37 = vld [vmem:[#allocation3 + $0x1218] sm:$0xff]  ;;  %v1851_v13 = vld [vmem:[#allocation3 + $0x13e0] sm:$0xff] }
 0x48f   :  { %2663 = vmatprep.subr.bf16.mxu1 %v1732_v60  ;;  %v1791_v60 = vld [vmem:[#allocation3 + $0x1200] sm:$0xff] }
 0x491   :  { %3195 = vmatpush1.bf16.msra.mxu0 %v1727_v41  ;;  %v1793_v41 = vld [vmem:[#allocation3 + $0x1210] sm:$0xff] }
 0x492   :  { %2664 = vmatpush1.bf16.msra.mxu1 %v1731_v34  ;;  %3196 = vmatprep.subr.bf16.mxu0 %v1734_v20  ;;  %v1788_v34 = vld [vmem:[#allocation3 + $0x11e8] sm:$0xff] }
 0x493   :  { %2665 = vmatprep.subr.bf16.mxu1 %v1738_v35  ;;  %v1804_v35 = vld [vmem:[#allocation3 + $0x1268] sm:$0xff] }
 0x494   :  { %v1800_v20 = vld [vmem:[#allocation3 + $0x1248] sm:$0xff] }
 0x495   :  { %3197 = vmatpush1.bf16.msra.mxu0 %v1733_v45  ;;  %v1799_v45 = vld [vmem:[#allocation3 + $0x1240] sm:$0xff] }
 0x496   :  { %2666 = vmatpush1.bf16.msra.mxu1 %v1737_v38  ;;  %3198 = vmatprep.subr.bf16.mxu0 %v1740_v46  ;;  %v1803_v38 = vld [vmem:[#allocation3 + $0x1260] sm:$0xff]  ;;  %v1806_v46 = vld [vmem:[#allocation3 + $0x1278] sm:$0xff] }
 0x497   :  { %2667 = vmatprep.subr.bf16.mxu1 %v1744_v40  ;;  %v1810_v40 = vld [vmem:[#allocation3 + $0x1298] sm:$0xff] }
 0x499   :  { %3199 = vmatpush1.bf16.msra.mxu0 %v1739_v48  ;;  %v1805_v48 = vld [vmem:[#allocation3 + $0x1270] sm:$0xff] }
 0x49a   :  { %2668 = vmatpush1.bf16.msra.mxu1 %v1743_v43  ;;  %3200 = vmatprep.subr.bf16.mxu0 %v1746_v51  ;;  %v1809_v43 = vld [vmem:[#allocation3 + $0x1290] sm:$0xff]  ;;  %v1812_v51 = vld [vmem:[#allocation3 + $0x12a8] sm:$0xff] }
 0x49b   :  { %2669 = vmatprep.subr.bf16.mxu1 %v1750_v44  ;;  %v1816_v44 = vld [vmem:[#allocation3 + $0x12c8] sm:$0xff] }
 0x49d   :  { %3201 = vmatpush1.bf16.msra.mxu0 %v1745_v56  ;;  %v1811_v56 = vld [vmem:[#allocation3 + $0x12a0] sm:$0xff] }
 0x49e   :  { %2670 = vmatpush1.bf16.msra.mxu1 %v1749_v50  ;;  %3202 = vmatprep.subr.bf16.mxu0 %v1752_v28  ;;  %v1815_v50 = vld [vmem:[#allocation3 + $0x12c0] sm:$0xff]  ;;  %v1818_v28 = vld [vmem:[#allocation3 + $0x12d8] sm:$0xff] }
 0x49f   :  { %2671 = vmatprep.subr.bf16.mxu1 %v1756_v47  ;;  %v1822_v47 = vld [vmem:[#allocation3 + $0x12f8] sm:$0xff] }
 0x4a1   :  { %3203 = vmatpush1.bf16.msra.mxu0 %v1751_v59  ;;  %v1817_v59 = vld [vmem:[#allocation3 + $0x12d0] sm:$0xff] }
 0x4a2   :  { %2672 = vmatpush1.bf16.msra.mxu1 %v1755_v52  ;;  %3204 = vmatprep.subr.bf16.mxu0 %v1758_v63  ;;  %v1821_v52 = vld [vmem:[#allocation3 + $0x12f0] sm:$0xff]  ;;  %v1824_v63 = vld [vmem:[#allocation3 + $0x1308] sm:$0xff] }
 0x4a3   :  { %2673 = vmatprep.subr.bf16.mxu1 %v1762_v55  ;;  %v1828_v55 = vld [vmem:[#allocation3 + $0x1328] sm:$0xff] }
 0x4a5   :  { %3205 = vmatpush1.bf16.msra.mxu0 %v1757_v22  ;;  %v1823_v22 = vld [vmem:[#allocation3 + $0x1300] sm:$0xff] }
 0x4a6   :  { %2674 = vmatpush1.bf16.msra.mxu1 %v1761_v58  ;;  %3206 = vmatprep.subr.bf16.mxu0 %v1764_v2  ;;  %v1827_v58 = vld [vmem:[#allocation3 + $0x1320] sm:$0xff]  ;;  %v1830_v2 = vld [vmem:[#allocation3 + $0x1338] sm:$0xff] }
 0x4a7   :  { %2675 = vmatprep.subr.bf16.mxu1 %v1768_v61  ;;  %v1834_v61 = vld [vmem:[#allocation3 + $0x1358] sm:$0xff] }
 0x4a9   :  { %3207 = vmatpush1.bf16.msra.mxu0 %v1763_v15  ;;  %v1829_v15 = vld [vmem:[#allocation3 + $0x1330] sm:$0xff] }
 0x4aa   :  { %2676 = vmatpush1.bf16.msra.mxu1 %v1767_v14  ;;  %3208 = vmatprep.subr.bf16.mxu0 %v1770_v9  ;;  %v1833_v14 = vld [vmem:[#allocation3 + $0x1350] sm:$0xff]  ;;  %v1836_v9 = vld [vmem:[#allocation3 + $0x1368] sm:$0xff] }
 0x4ab   :  { %2677 = vmatprep.subr.bf16.mxu1 %v1774_v3  ;;  %v1840_v3 = vld [vmem:[#allocation3 + $0x1388] sm:$0xff] }
 0x4ad   :  { %3209 = vmatpush1.bf16.msra.mxu0 %v1769_v4  ;;  %v1835_v4 = vld [vmem:[#allocation3 + $0x1360] sm:$0xff] }
 0x4ae   :  { %2678 = vmatpush1.bf16.msra.mxu1 %v1773_v31  ;;  %3210 = vmatprep.subr.bf16.mxu0 %v1776_v53  ;;  %v1839_v31 = vld [vmem:[#allocation3 + $0x1380] sm:$0xff]  ;;  %v1842_v53 = vld [vmem:[#allocation3 + $0x1398] sm:$0xff] }
 0x4af   :  { %2679 = vmatprep.subr.bf16.mxu1 %v1780_v8  ;;  %v1846_v8 = vld [vmem:[#allocation3 + $0x13b8] sm:$0xff] }
 0x4b1   :  { %3211 = vmatpush1.bf16.msra.mxu0 %v1775_v27  ;;  %v1848_v27 = vld [vmem:[#allocation3 + $0x13c8] sm:$0xff] }
 0x4b2   :  { %2680 = vmatpush1.bf16.msra.mxu1 %v1779_v11  ;;  %3212 = vmatprep.subr.bf16.mxu0 %v1782_v29  ;;  %v1845_v11 = vld [vmem:[#allocation3 + $0x13b0] sm:$0xff] }
 0x4b3   :  { %2681 = vmatprep.subr.bf16.mxu1 %v1786_v12  ;;  %v1852_v12 = vld [vmem:[#allocation3 + $0x13e8] sm:$0xff]  ;;  %v1857_v29 = vld [vmem:[#allocation3 + $0x1410] sm:$0xff] }
 0x4b5   :  { %3213 = vmatpush1.bf16.msra.mxu0 %v1781_v33  ;;  %v1854_v33 = vld [vmem:[#allocation3 + $0x13f8] sm:$0xff] }
 0x4b6   :  { %2682 = vmatpush1.bf16.msra.mxu1 %v1785_v16  ;;  %3214 = vmatprep.subr.bf16.mxu0 %v1788_v34  ;;  %v1858_v16 = vld [vmem:[#allocation3 + $0x1418] sm:$0xff]  ;;  %v1863_v34 = vld [vmem:[#allocation3 + $0x1440] sm:$0xff] }
 0x4b7   :  { %2692 = vmatprep.subr.bf16.mxu1 %v1792_v21  ;;  %v1841_v21 = vld [vmem:[#allocation3 + $0x1390] sm:$0xff] }
 0x4b9   :  { %2684 = vmatmul.mubr.bf16.vlgmr.msra.gmra.mrb[8].mxu1 %v6430_v25  ;;  %3215 = vmatpush1.bf16.msra.mxu0 %v1787_v36  ;;  %v1860_v36 = vld [vmem:[#allocation3 + $0x1428] sm:$0xff] }
 0x4ba   :  { %2693 = vmatpush1.bf16.msra.mxu1 %v1791_v60  ;;  %2724 = vmatprep.mubr.bf16.mxu1 %v6432_v30  ;;  %v1864_v60 = vld [vmem:[#allocation3 + $0x1448] sm:$0xff] }
 0x4bb   :  { %2694 = vmatprep.subr.bf16.mxu1 %v1798_v32  ;;  %3225 = vmatprep.subr.bf16.mxu0 %v1794_v37  ;;  %v1847_v32 = vld [vmem:[#allocation3 + $0x13c0] sm:$0xff]  ;;  %v1107_v37 = vcombine.high %v6420_v7, %v6420_v7 }
 0x4bc   :  { %3217 = vmatmul.mubr.bf16.vlgmr.msra.gmra.mrb[24].mxu0 %v6430_v25 }
 0x4bd   :  { %3226 = vmatpush1.bf16.msra.mxu0 %v1793_v41  ;;  %3257 = vmatprep.mubr.bf16.mxu0 %v6432_v30  ;;  %v1859_v41 = vld [vmem:[#allocation3 + $0x1420] sm:$0xff] }
 0x4be   :  { %2695 = vmatpush1.bf16.msra.mxu1 %v1797_v49  ;;  %3227 = vmatprep.subr.bf16.mxu0 %v1800_v20  ;;  %v1870_v49 = vld [vmem:[#allocation3 + $0x1478] sm:$0xff] }
 0x4bf   :  { %2696 = vmatprep.subr.bf16.mxu1 %v1804_v35  ;;  %v1853_v35 = vld [vmem:[#allocation3 + $0x13f0] sm:$0xff]  ;;  %v1866_v20 = vld [vmem:[#allocation3 + $0x1458] sm:$0xff] }
 0x4c1   :  { %3228 = vmatpush1.bf16.msra.mxu0 %v1799_v45  ;;  %v1882_v45 = vld [vmem:[#allocation3 + $0x14d8] sm:$0xff] }
 0x4c2   :  { %2697 = vmatpush1.bf16.msra.mxu1 %v1803_v38  ;;  %3229 = vmatprep.subr.bf16.mxu0 %v1806_v46  ;;  %v1869_v38 = vld [vmem:[#allocation3 + $0x1470] sm:$0xff] }
 0x4c3   :  { %2698 = vmatprep.subr.bf16.mxu1 %v1810_v40  ;;  %v1876_v40 = vld [vmem:[#allocation3 + $0x14a8] sm:$0xff]  ;;  %v1865_v46 = vld [vmem:[#allocation3 + $0x1450] sm:$0xff] }
 0x4c5   :  { %3230 = vmatpush1.bf16.msra.mxu0 %v1805_v48  ;;  %v1888_v48 = vld [vmem:[#allocation3 + $0x1508] sm:$0xff] }
 0x4c6   :  { %2699 = vmatpush1.bf16.msra.mxu1 %v1809_v43  ;;  %3231 = vmatprep.subr.bf16.mxu0 %v1812_v51  ;;  %v6441_v43 = vrot.slane %v1107_v37, %v6292_v24  ;;  %v6447_v51 = vpack.c.bf16 %v6424_v10, %v6424_v10  ;;  %v1893_v10 = vld [vmem:[#allocation3 + $0x1530] sm:$0xff]  ;;  %v1919_v37 = vld [vmem:[#allocation3 + $0x1600] sm:$0xff] }
 0x4c7   :  { %2700 = vmatprep.subr.bf16.mxu1 %v1816_v44  ;;  %v1875_v44 = vld [vmem:[#allocation3 + $0x14a0] sm:$0xff] }
 0x4c8   :  { %v1123_v7 = vcombine.high %v6441_v43, %v6441_v43 }
 0x4c9   :  { %3232 = vmatpush1.bf16.msra.mxu0 %v1811_v56 }
 0x4ca   :  { %2701 = vmatpush1.bf16.msra.mxu1 %v1815_v50  ;;  %3233 = vmatprep.subr.bf16.mxu0 %v1818_v28  ;;  %v1872_v50 = vld [vmem:[#allocation3 + $0x1488] sm:$0xff]  ;;  %v6449_v56 = vpack.c.bf16 %v1123_v7, %v1123_v7  ;;  %v1887_v28 = vld [vmem:[#allocation3 + $0x1500] sm:$0xff]  ;;  %v1938_v7 = vld [vmem:[#allocation3 + $0x1698] sm:$0xff] }
 0x4cb   :  { %2702 = vmatprep.subr.bf16.mxu1 %v1822_v47  ;;  %v1881_v47 = vld [vmem:[#allocation3 + $0x14d0] sm:$0xff] }
 0x4cd   :  { %3234 = vmatpush1.bf16.msra.mxu0 %v1817_v59  ;;  %v1884_v59 = vld [vmem:[#allocation3 + $0x14e8] sm:$0xff] }
 0x4ce   :  { %2703 = vmatpush1.bf16.msra.mxu1 %v1821_v52  ;;  %3235 = vmatprep.subr.bf16.mxu0 %v1824_v63  ;;  %v1871_v52 = vld [vmem:[#allocation3 + $0x1480] sm:$0xff]  ;;  %v1900_v63 = vld [vmem:[#allocation3 + $0x1568] sm:$0xff] }
 0x4cf   :  { %2704 = vmatprep.subr.bf16.mxu1 %v1828_v55  ;;  %v1878_v55 = vld [vmem:[#allocation3 + $0x14b8] sm:$0xff] }
 0x4d1   :  { %3236 = vmatpush1.bf16.msra.mxu0 %v1823_v22  ;;  %v1899_v22 = vld [vmem:[#allocation3 + $0x1560] sm:$0xff] }
 0x4d2   :  { %2705 = vmatpush1.bf16.msra.mxu1 %v1827_v58  ;;  %3237 = vmatprep.subr.bf16.mxu0 %v1830_v2  ;;  %v1894_v58 = vld [vmem:[#allocation3 + $0x1538] sm:$0xff] }
 0x4d3   :  { %2706 = vmatprep.subr.bf16.mxu1 %v1834_v61  ;;  %v1877_v61 = vld [vmem:[#allocation3 + $0x14b0] sm:$0xff]  ;;  %v1906_v2 = vld [vmem:[#allocation3 + $0x1598] sm:$0xff] }
 0x4d5   :  { %3238 = vmatpush1.bf16.msra.mxu0 %v1829_v15  ;;  %v1905_v15 = vld [vmem:[#allocation3 + $0x1590] sm:$0xff] }
 0x4d6   :  { %2707 = vmatpush1.bf16.msra.mxu1 %v1833_v14  ;;  %3239 = vmatprep.subr.bf16.mxu0 %v1836_v9  ;;  %v1883_v14 = vld [vmem:[#allocation3 + $0x14e0] sm:$0xff]  ;;  %v1912_v9 = vld [vmem:[#allocation3 + $0x15c8] sm:$0xff] }
 0x4d7   :  { %2708 = vmatprep.subr.bf16.mxu1 %v1840_v3  ;;  %v1890_v3 = vld [vmem:[#allocation3 + $0x1518] sm:$0xff] }
 0x4d9   :  { %3240 = vmatpush1.bf16.msra.mxu0 %v1835_v4  ;;  %v1911_v4 = vld [vmem:[#allocation3 + $0x15c0] sm:$0xff] }
 0x4da   :  { %2709 = vmatpush1.bf16.msra.mxu1 %v1839_v31  ;;  %3241 = vmatprep.subr.bf16.mxu0 %v1842_v53  ;;  %v1889_v31 = vld [vmem:[#allocation3 + $0x1510] sm:$0xff]  ;;  %v1918_v53 = vld [vmem:[#allocation3 + $0x15f8] sm:$0xff] }
 0x4db   :  { %2710 = vmatprep.subr.bf16.mxu1 %v1846_v8  ;;  %v1896_v8 = vld [vmem:[#allocation3 + $0x1548] sm:$0xff] }
 0x4dd   :  { %3242 = vmatpush1.bf16.msra.mxu0 %v1841_v21  ;;  %v1917_v21 = vld [vmem:[#allocation3 + $0x15f0] sm:$0xff] }
 0x4de   :  { %2711 = vmatpush1.bf16.msra.mxu1 %v1845_v11  ;;  %3243 = vmatprep.subr.bf16.mxu0 %v1848_v27  ;;  %v1895_v11 = vld [vmem:[#allocation3 + $0x1540] sm:$0xff]  ;;  %v1924_v27 = vld [vmem:[#allocation3 + $0x1628] sm:$0xff] }
 0x4df   :  { %2712 = vmatprep.subr.bf16.mxu1 %v1852_v12  ;;  %v1902_v12 = vld [vmem:[#allocation3 + $0x1578] sm:$0xff] }
 0x4e1   :  { %3244 = vmatpush1.bf16.msra.mxu0 %v1847_v32  ;;  %v1923_v32 = vld [vmem:[#allocation3 + $0x1620] sm:$0xff] }
 0x4e2   :  { %2713 = vmatpush1.bf16.msra.mxu1 %v1851_v13  ;;  %3245 = vmatprep.subr.bf16.mxu0 %v1854_v33  ;;  %v1901_v13 = vld [vmem:[#allocation3 + $0x1570] sm:$0xff]  ;;  %v1930_v33 = vld [vmem:[#allocation3 + $0x1658] sm:$0xff] }
 0x4e3   :  { %2714 = vmatprep.subr.bf16.mxu1 %v1858_v16  ;;  %v1908_v16 = vld [vmem:[#allocation3 + $0x15a8] sm:$0xff] }
 0x4e5   :  { %3246 = vmatpush1.bf16.msra.mxu0 %v1853_v35  ;;  %v1929_v35 = vld [vmem:[#allocation3 + $0x1650] sm:$0xff] }
 0x4e6   :  { %2715 = vmatpush1.bf16.msra.mxu1 %v1857_v29  ;;  %3247 = vmatprep.subr.bf16.mxu0 %v1860_v36  ;;  %v1907_v29 = vld [vmem:[#allocation3 + $0x15a0] sm:$0xff]  ;;  %v1936_v36 = vld [vmem:[#allocation3 + $0x1688] sm:$0xff] }
 0x4e7   :  { %2716 = vmatprep.subr.bf16.mxu1 %v1864_v60  ;;  %v1914_v60 = vld [vmem:[#allocation3 + $0x15d8] sm:$0xff] }
 0x4e9   :  { %3248 = vmatpush1.bf16.msra.mxu0 %v1859_v41  ;;  %v1942_v41 = vld [vmem:[#allocation3 + $0x16b8] sm:$0xff] }
 0x4ea   :  { %2717 = vmatpush1.bf16.msra.mxu1 %v1863_v34  ;;  %3249 = vmatprep.subr.bf16.mxu0 %v1866_v20  ;;  %v1913_v34 = vld [vmem:[#allocation3 + $0x15d0] sm:$0xff] }
 0x4eb   :  { %2718 = vmatprep.subr.bf16.mxu1 %v1870_v49  ;;  %v1920_v49 = vld [vmem:[#allocation3 + $0x1608] sm:$0xff]  ;;  %v1925_v20 = vld [vmem:[#allocation3 + $0x1630] sm:$0xff] }
 0x4ed   :  { %3250 = vmatpush1.bf16.msra.mxu0 %v1865_v46  ;;  %v1948_v46 = vld [vmem:[#allocation3 + $0x16e8] sm:$0xff] }
 0x4ee   :  { %2719 = vmatpush1.bf16.msra.mxu1 %v1869_v38  ;;  %3251 = vmatprep.subr.bf16.mxu0 %v1872_v50  ;;  %v1926_v38 = vld [vmem:[#allocation3 + $0x1638] sm:$0xff]  ;;  %v1931_v50 = vld [vmem:[#allocation3 + $0x1660] sm:$0xff] }
 0x4ef   :  { %2720 = vmatprep.subr.bf16.mxu1 %v1876_v40  ;;  %v1935_v40 = vld [vmem:[#allocation3 + $0x1680] sm:$0xff] }
 0x4f1   :  { %3252 = vmatpush1.bf16.msra.mxu0 %v1871_v52  ;;  %v1937_v52 = vld [vmem:[#allocation3 + $0x1690] sm:$0xff] }
 0x4f2   :  { %2721 = vmatpush1.bf16.msra.mxu1 %v1875_v44  ;;  %3253 = vmatprep.subr.bf16.mxu0 %v1878_v55  ;;  %v1932_v44 = vld [vmem:[#allocation3 + $0x1668] sm:$0xff] }
 0x4f3   :  { %2722 = vmatprep.subr.bf16.mxu1 %v1882_v45  ;;  %v1941_v45 = vld [vmem:[#allocation3 + $0x16b0] sm:$0xff]  ;;  %v1944_v55 = vld [vmem:[#allocation3 + $0x16c8] sm:$0xff] }
 0x4f5   :  { %3254 = vmatpush1.bf16.msra.mxu0 %v1877_v61  ;;  %v1943_v61 = vld [vmem:[#allocation3 + $0x16c0] sm:$0xff] }
 0x4f6   :  { %2723 = vmatpush1.bf16.msra.mxu1 %v1881_v47  ;;  %3255 = vmatprep.subr.bf16.mxu0 %v1884_v59  ;;  %v1947_v47 = vld [vmem:[#allocation3 + $0x16e0] sm:$0xff]  ;;  %v1950_v59 = vld [vmem:[#allocation3 + $0x16f8] sm:$0xff] }
 0x4f7   :  { %2733 = vmatprep.subr.bf16.mxu1 %v1888_v48  ;;  %v1954_v48 = vld [vmem:[#allocation3 + $0x1718] sm:$0xff] }
 0x4f9   :  { %2725 = vmatmul.mubr.bf16.vlgmr.msra.gmra.mrb[8].mxu1 %v6447_v51  ;;  %3256 = vmatpush1.bf16.msra.mxu0 %v1883_v14  ;;  %v1949_v14 = vld [vmem:[#allocation3 + $0x16f0] sm:$0xff] }
 0x4fa   :  { %2734 = vmatpush1.bf16.msra.mxu1 %v1887_v28  ;;  %2765 = vmatprep.mubr.bf16.mxu1 %v6449_v56  ;;  %v1953_v28 = vld [vmem:[#allocation3 + $0x1710] sm:$0xff] }
 0x4fb   :  { %2735 = vmatprep.subr.bf16.mxu1 %v1894_v58  ;;  %3266 = vmatprep.subr.bf16.mxu0 %v1890_v3  ;;  %v1960_v58 = vld [vmem:[#allocation3 + $0x1748] sm:$0xff] }
 0x4fc   :  { %3258 = vmatmul.mubr.bf16.vlgmr.msra.gmra.mrb[24].mxu0 %v6447_v51  ;;  %v1956_v3 = vld [vmem:[#allocation3 + $0x1728] sm:$0xff] }
 0x4fd   :  { %3267 = vmatpush1.bf16.msra.mxu0 %v1889_v31  ;;  %3298 = vmatprep.mubr.bf16.mxu0 %v6449_v56  ;;  %v1972_v31 = vld [vmem:[#allocation3 + $0x17a8] sm:$0xff] }
 0x4fe   :  { %2736 = vmatpush1.bf16.msra.mxu1 %v1893_v10  ;;  %3268 = vmatprep.subr.bf16.mxu0 %v1896_v8  ;;  %v1959_v10 = vld [vmem:[#allocation3 + $0x1740] sm:$0xff] }
 0x4ff   :  { %2737 = vmatprep.subr.bf16.mxu1 %v1900_v63  ;;  %v1966_v63 = vld [vmem:[#allocation3 + $0x1778] sm:$0xff]  ;;  %v1955_v8 = vld [vmem:[#allocation3 + $0x1720] sm:$0xff] }
 0x501   :  { %3269 = vmatpush1.bf16.msra.mxu0 %v1895_v11  ;;  %v1971_v11 = vld [vmem:[#allocation3 + $0x17a0] sm:$0xff] }
 0x502   :  { %2738 = vmatpush1.bf16.msra.mxu1 %v1899_v22  ;;  %3270 = vmatprep.subr.bf16.mxu0 %v1902_v12  ;;  %v1965_v22 = vld [vmem:[#allocation3 + $0x1770] sm:$0xff]  ;;  %v1978_v12 = vld [vmem:[#allocation3 + $0x17d8] sm:$0xff] }
 0x503   :  { %2739 = vmatprep.subr.bf16.mxu1 %v1906_v2  ;;  %v6455_v2 = vld [vmem:[#allocation2 + $0x20] sm:$0xff] }
 0x505   :  { %3271 = vmatpush1.bf16.msra.mxu0 %v1901_v13 }
 0x506   :  { %2740 = vmatpush1.bf16.msra.mxu1 %v1905_v15  ;;  %3272 = vmatprep.subr.bf16.mxu0 %v1908_v16  ;;  %v1962_v15 = vld [vmem:[#allocation3 + $0x1758] sm:$0xff]  ;;  %v1977_v16 = vld [vmem:[#allocation3 + $0x17d0] sm:$0xff] }
 0x507   :  { %2741 = vmatprep.subr.bf16.mxu1 %v1912_v9  ;;  %v6459_v9 = vrot.slane %v6455_v2, %v6292_v24 }
 0x509   :  { %3273 = vmatpush1.bf16.msra.mxu0 %v1907_v29  ;;  %v1139_v13 = vcombine.high %v6459_v9, %v6459_v9  ;;  %v1967_v29 = vld [vmem:[#allocation3 + $0x1780] sm:$0xff] }
 0x50a   :  { %2742 = vmatpush1.bf16.msra.mxu1 %v1911_v4  ;;  %3274 = vmatprep.subr.bf16.mxu0 %v1914_v60  ;;  %v1961_v4 = vld [vmem:[#allocation3 + $0x1750] sm:$0xff]  ;;  %v1974_v60 = vld [vmem:[#allocation3 + $0x17b8] sm:$0xff] }
 0x50b   :  { %2743 = vmatprep.subr.bf16.mxu1 %v1918_v53  ;;  %v1968_v53 = vld [vmem:[#allocation3 + $0x1788] sm:$0xff] }
 0x50d   :  { %3275 = vmatpush1.bf16.msra.mxu0 %v1913_v34  ;;  %v1990_v34 = vld [vmem:[#allocation3 + $0x1838] sm:$0xff] }
 0x50e   :  { %2744 = vmatpush1.bf16.msra.mxu1 %v1917_v21  ;;  %3276 = vmatprep.subr.bf16.mxu0 %v1920_v49  ;;  %v1984_v21 = vld [vmem:[#allocation3 + $0x1808] sm:$0xff]  ;;  %v1973_v49 = vld [vmem:[#allocation3 + $0x17b0] sm:$0xff] }
 0x50f   :  { %2745 = vmatprep.subr.bf16.mxu1 %v1924_v27  ;;  %v6465_v27 = vpack.c.bf16 %v6441_v43, %v6441_v43  ;;  %v1989_v43 = vld [vmem:[#allocation3 + $0x1830] sm:$0xff] }
 0x511   :  { %3277 = vmatpush1.bf16.msra.mxu0 %v1919_v37  ;;  %v1979_v37 = vld [vmem:[#allocation3 + $0x17e0] sm:$0xff] }
 0x512   :  { %2746 = vmatpush1.bf16.msra.mxu1 %v1923_v32  ;;  %3278 = vmatprep.subr.bf16.mxu0 %v1926_v38  ;;  %v6467_v32 = vpack.c.bf16 %v1139_v13, %v1139_v13  ;;  %v1986_v38 = vld [vmem:[#allocation3 + $0x1818] sm:$0xff]  ;;  %v2037_v13 = vld [vmem:[#allocation3 + $0x19b0] sm:$0xff] }
 0x513   :  { %2747 = vmatprep.subr.bf16.mxu1 %v1930_v33  ;;  %v1983_v33 = vld [vmem:[#allocation3 + $0x1800] sm:$0xff] }
 0x515   :  { %3279 = vmatpush1.bf16.msra.mxu0 %v1925_v20  ;;  %v1985_v20 = vld [vmem:[#allocation3 + $0x1810] sm:$0xff] }
 0x516   :  { %2748 = vmatpush1.bf16.msra.mxu1 %v1929_v35  ;;  %3280 = vmatprep.subr.bf16.mxu0 %v1932_v44  ;;  %v1980_v35 = vld [vmem:[#allocation3 + $0x17e8] sm:$0xff] }
 0x517   :  { %2749 = vmatprep.subr.bf16.mxu1 %v1936_v36  ;;  %v1996_v36 = vld [vmem:[#allocation3 + $0x1868] sm:$0xff] }
 0x518   :  { %v1992_v44 = vld [vmem:[#allocation3 + $0x1848] sm:$0xff] }
 0x519   :  { %3281 = vmatpush1.bf16.msra.mxu0 %v1931_v50  ;;  %v1991_v50 = vld [vmem:[#allocation3 + $0x1840] sm:$0xff] }
 0x51a   :  { %2750 = vmatpush1.bf16.msra.mxu1 %v1935_v40  ;;  %3282 = vmatprep.subr.bf16.mxu0 %v1938_v7  ;;  %v1995_v40 = vld [vmem:[#allocation3 + $0x1860] sm:$0xff]  ;;  %v1998_v7 = vld [vmem:[#allocation3 + $0x1878] sm:$0xff] }
 0x51b   :  { %2751 = vmatprep.subr.bf16.mxu1 %v1942_v41  ;;  %v2002_v41 = vld [vmem:[#allocation3 + $0x1898] sm:$0xff] }
 0x51d   :  { %3283 = vmatpush1.bf16.msra.mxu0 %v1937_v52  ;;  %v1997_v52 = vld [vmem:[#allocation3 + $0x1870] sm:$0xff] }
 0x51e   :  { %2752 = vmatpush1.bf16.msra.mxu1 %v1941_v45  ;;  %3284 = vmatprep.subr.bf16.mxu0 %v1944_v55  ;;  %v2001_v45 = vld [vmem:[#allocation3 + $0x1890] sm:$0xff]  ;;  %v2004_v55 = vld [vmem:[#allocation3 + $0x18a8] sm:$0xff] }
 0x51f   :  { %2753 = vmatprep.subr.bf16.mxu1 %v1948_v46  ;;  %v2008_v46 = vld [vmem:[#allocation3 + $0x18c8] sm:$0xff] }
 0x521   :  { %3285 = vmatpush1.bf16.msra.mxu0 %v1943_v61  ;;  %v2003_v61 = vld [vmem:[#allocation3 + $0x18a0] sm:$0xff] }
 0x522   :  { %2754 = vmatpush1.bf16.msra.mxu1 %v1947_v47  ;;  %3286 = vmatprep.subr.bf16.mxu0 %v1950_v59  ;;  %v2007_v47 = vld [vmem:[#allocation3 + $0x18c0] sm:$0xff]  ;;  %v2010_v59 = vld [vmem:[#allocation3 + $0x18d8] sm:$0xff] }
 0x523   :  { %2755 = vmatprep.subr.bf16.mxu1 %v1954_v48  ;;  %v2014_v48 = vld [vmem:[#allocation3 + $0x18f8] sm:$0xff] }
 0x525   :  { %3287 = vmatpush1.bf16.msra.mxu0 %v1949_v14  ;;  %v2009_v14 = vld [vmem:[#allocation3 + $0x18d0] sm:$0xff] }
 0x526   :  { %2756 = vmatpush1.bf16.msra.mxu1 %v1953_v28  ;;  %3288 = vmatprep.subr.bf16.mxu0 %v1956_v3  ;;  %v2013_v28 = vld [vmem:[#allocation3 + $0x18f0] sm:$0xff]  ;;  %v2016_v3 = vld [vmem:[#allocation3 + $0x1908] sm:$0xff] }
 0x527   :  { %2757 = vmatprep.subr.bf16.mxu1 %v1960_v58  ;;  %v2020_v58 = vld [vmem:[#allocation3 + $0x1928] sm:$0xff] }
 0x529   :  { %3289 = vmatpush1.bf16.msra.mxu0 %v1955_v8  ;;  %v2015_v8 = vld [vmem:[#allocation3 + $0x1900] sm:$0xff] }
 0x52a   :  { %2758 = vmatpush1.bf16.msra.mxu1 %v1959_v10  ;;  %3290 = vmatprep.subr.bf16.mxu0 %v1962_v15  ;;  %v2019_v10 = vld [vmem:[#allocation3 + $0x1920] sm:$0xff]  ;;  %v2022_v15 = vld [vmem:[#allocation3 + $0x1938] sm:$0xff] }
 0x52b   :  { %2759 = vmatprep.subr.bf16.mxu1 %v1966_v63  ;;  %v2026_v63 = vld [vmem:[#allocation3 + $0x1958] sm:$0xff] }
 0x52d   :  { %3291 = vmatpush1.bf16.msra.mxu0 %v1961_v4  ;;  %v2021_v4 = vld [vmem:[#allocation3 + $0x1930] sm:$0xff] }
 0x52e   :  { %2760 = vmatpush1.bf16.msra.mxu1 %v1965_v22  ;;  %3292 = vmatprep.subr.bf16.mxu0 %v1968_v53  ;;  %v2025_v22 = vld [vmem:[#allocation3 + $0x1950] sm:$0xff]  ;;  %v2028_v53 = vld [vmem:[#allocation3 + $0x1968] sm:$0xff] }
 0x52f   :  { %2761 = vmatprep.subr.bf16.mxu1 %v1972_v31  ;;  %v2032_v31 = vld [vmem:[#allocation3 + $0x1988] sm:$0xff] }
 0x531   :  { %3293 = vmatpush1.bf16.msra.mxu0 %v1967_v29  ;;  %v2034_v29 = vld [vmem:[#allocation3 + $0x1998] sm:$0xff] }
 0x532   :  { %2762 = vmatpush1.bf16.msra.mxu1 %v1971_v11  ;;  %3294 = vmatprep.subr.bf16.mxu0 %v1974_v60  ;;  %v2031_v11 = vld [vmem:[#allocation3 + $0x1980] sm:$0xff] }
 0x533   :  { %2763 = vmatprep.subr.bf16.mxu1 %v1978_v12  ;;  %v2038_v12 = vld [vmem:[#allocation3 + $0x19b8] sm:$0xff]  ;;  %v2043_v60 = vld [vmem:[#allocation3 + $0x19e0] sm:$0xff] }
 0x535   :  { %3295 = vmatpush1.bf16.msra.mxu0 %v1973_v49  ;;  %v2040_v49 = vld [vmem:[#allocation3 + $0x19c8] sm:$0xff] }
 0x536   :  { %2764 = vmatpush1.bf16.msra.mxu1 %v1977_v16  ;;  %3296 = vmatprep.subr.bf16.mxu0 %v1980_v35  ;;  %v2044_v16 = vld [vmem:[#allocation3 + $0x19e8] sm:$0xff]  ;;  %v2049_v35 = vld [vmem:[#allocation3 + $0x1a10] sm:$0xff] }
 0x537   :  { %2774 = vmatprep.subr.bf16.mxu1 %v1984_v21  ;;  %v2027_v21 = vld [vmem:[#allocation3 + $0x1960] sm:$0xff] }
 0x539   :  { %2766 = vmatmul.mubr.bf16.vlgmr.msra.gmra.mrb[8].mxu1 %v6465_v27  ;;  %3297 = vmatpush1.bf16.msra.mxu0 %v1979_v37  ;;  %v2046_v37 = vld [vmem:[#allocation3 + $0x19f8] sm:$0xff] }
 0x53a   :  { %2775 = vmatpush1.bf16.msra.mxu1 %v1983_v33  ;;  %2806 = vmatprep.mubr.bf16.mxu1 %v6467_v32  ;;  %v2050_v33 = vld [vmem:[#allocation3 + $0x1a18] sm:$0xff] }
 0x53b   :  { %2776 = vmatprep.subr.bf16.mxu1 %v1990_v34  ;;  %3307 = vmatprep.subr.bf16.mxu0 %v1986_v38  ;;  %v2033_v34 = vld [vmem:[#allocation3 + $0x1990] sm:$0xff]  ;;  %v2055_v38 = vld [vmem:[#allocation3 + $0x1a40] sm:$0xff] }
 0x53c   :  { %3299 = vmatmul.mubr.bf16.vlgmr.msra.gmra.mrb[24].mxu0 %v6465_v27 }
 0x53d   :  { %3308 = vmatpush1.bf16.msra.mxu0 %v1985_v20  ;;  %3339 = vmatprep.mubr.bf16.mxu0 %v6467_v32  ;;  %v2052_v20 = vld [vmem:[#allocation3 + $0x1a28] sm:$0xff] }
 0x53e   :  { %2777 = vmatpush1.bf16.msra.mxu1 %v1989_v43  ;;  %3309 = vmatprep.subr.bf16.mxu0 %v1992_v44  ;;  %v2056_v43 = vld [vmem:[#allocation3 + $0x1a48] sm:$0xff]  ;;  %v1124_v44 = vcombine.high %v6455_v2, %v6455_v2 }
 0x53f   :  { %2778 = vmatprep.subr.bf16.mxu1 %v1996_v36  ;;  %v2039_v36 = vld [vmem:[#allocation3 + $0x19c0] sm:$0xff] }
 0x541   :  { %3310 = vmatpush1.bf16.msra.mxu0 %v1991_v50  ;;  %v2051_v50 = vld [vmem:[#allocation3 + $0x1a20] sm:$0xff] }
 0x542   :  { %2779 = vmatpush1.bf16.msra.mxu1 %v1995_v40  ;;  %3311 = vmatprep.subr.bf16.mxu0 %v1998_v7  ;;  %v2062_v40 = vld [vmem:[#allocation3 + $0x1a78] sm:$0xff] }
 0x543   :  { %2780 = vmatprep.subr.bf16.mxu1 %v2002_v41  ;;  %v2045_v41 = vld [vmem:[#allocation3 + $0x19f0] sm:$0xff]  ;;  %v2058_v7 = vld [vmem:[#allocation3 + $0x1a58] sm:$0xff] }
 0x545   :  { %3312 = vmatpush1.bf16.msra.mxu0 %v1997_v52  ;;  %v2074_v52 = vld [vmem:[#allocation3 + $0x1ad8] sm:$0xff] }
 0x546   :  { %2781 = vmatpush1.bf16.msra.mxu1 %v2001_v45  ;;  %3313 = vmatprep.subr.bf16.mxu0 %v2004_v55  ;;  %v2061_v45 = vld [vmem:[#allocation3 + $0x1a70] sm:$0xff] }
 0x547   :  { %2782 = vmatprep.subr.bf16.mxu1 %v2008_v46  ;;  %v2068_v46 = vld [vmem:[#allocation3 + $0x1aa8] sm:$0xff]  ;;  %v2057_v55 = vld [vmem:[#allocation3 + $0x1a50] sm:$0xff] }
 0x549   :  { %3314 = vmatpush1.bf16.msra.mxu0 %v2003_v61  ;;  %v2080_v61 = vld [vmem:[#allocation3 + $0x1b08] sm:$0xff] }
 0x54a   :  { %2783 = vmatpush1.bf16.msra.mxu1 %v2007_v47  ;;  %3315 = vmatprep.subr.bf16.mxu0 %v2010_v59  ;;  %v6476_v47 = vrot.slane %v1124_v44, %v6292_v24  ;;  %v6482_v59 = vpack.c.bf16 %v6459_v9, %v6459_v9  ;;  %v2085_v9 = vld [vmem:[#allocation3 + $0x1b30] sm:$0xff] }
 0x54b   :  { %2784 = vmatprep.subr.bf16.mxu1 %v2014_v48  ;;  %v2067_v48 = vld [vmem:[#allocation3 + $0x1aa0] sm:$0xff]  ;;  %v2105_v44 = vld [vmem:[#allocation3 + $0x1bd0] sm:$0xff] }
 0x54c   :  { %v1140_v2 = vcombine.high %v6476_v47, %v6476_v47 }
 0x54d   :  { %3316 = vmatpush1.bf16.msra.mxu0 %v2009_v14 }
 0x54e   :  { %2785 = vmatpush1.bf16.msra.mxu1 %v2013_v28  ;;  %3317 = vmatprep.subr.bf16.mxu0 %v2016_v3  ;;  %v2064_v28 = vld [vmem:[#allocation3 + $0x1a88] sm:$0xff]  ;;  %v6484_v14 = vpack.c.bf16 %v1140_v2, %v1140_v2  ;;  %v2079_v3 = vld [vmem:[#allocation3 + $0x1b00] sm:$0xff] }
 0x54f   :  { %2786 = vmatprep.subr.bf16.mxu1 %v2020_v58  ;;  %v2073_v58 = vld [vmem:[#allocation3 + $0x1ad0] sm:$0xff]  ;;  %v2124_v2 = vld [vmem:[#allocation3 + $0x1c68] sm:$0xff] }
 0x551   :  { %3318 = vmatpush1.bf16.msra.mxu0 %v2015_v8  ;;  %v2076_v8 = vld [vmem:[#allocation3 + $0x1ae8] sm:$0xff] }
 0x552   :  { %2787 = vmatpush1.bf16.msra.mxu1 %v2019_v10  ;;  %3319 = vmatprep.subr.bf16.mxu0 %v2022_v15  ;;  %v2063_v10 = vld [vmem:[#allocation3 + $0x1a80] sm:$0xff]  ;;  %v2092_v15 = vld [vmem:[#allocation3 + $0x1b68] sm:$0xff] }
 0x553   :  { %2788 = vmatprep.subr.bf16.mxu1 %v2026_v63  ;;  %v2070_v63 = vld [vmem:[#allocation3 + $0x1ab8] sm:$0xff] }
 0x555   :  { %3320 = vmatpush1.bf16.msra.mxu0 %v2021_v4  ;;  %v2091_v4 = vld [vmem:[#allocation3 + $0x1b60] sm:$0xff] }
 0x556   :  { %2789 = vmatpush1.bf16.msra.mxu1 %v2025_v22  ;;  %3321 = vmatprep.subr.bf16.mxu0 %v2028_v53  ;;  %v2086_v22 = vld [vmem:[#allocation3 + $0x1b38] sm:$0xff] }
 0x557   :  { %2790 = vmatprep.subr.bf16.mxu1 %v2032_v31  ;;  %v2069_v31 = vld [vmem:[#allocation3 + $0x1ab0] sm:$0xff]  ;;  %v2098_v53 = vld [vmem:[#allocation3 + $0x1b98] sm:$0xff] }
 0x559   :  { %3322 = vmatpush1.bf16.msra.mxu0 %v2027_v21  ;;  %v2097_v21 = vld [vmem:[#allocation3 + $0x1b90] sm:$0xff] }
 0x55a   :  { %2791 = vmatpush1.bf16.msra.mxu1 %v2031_v11  ;;  %3323 = vmatprep.subr.bf16.mxu0 %v2034_v29  ;;  %v2075_v11 = vld [vmem:[#allocation3 + $0x1ae0] sm:$0xff]  ;;  %v2104_v29 = vld [vmem:[#allocation3 + $0x1bc8] sm:$0xff] }
 0x55b   :  { %2792 = vmatprep.subr.bf16.mxu1 %v2038_v12  ;;  %v2082_v12 = vld [vmem:[#allocation3 + $0x1b18] sm:$0xff] }
 0x55d   :  { %3324 = vmatpush1.bf16.msra.mxu0 %v2033_v34  ;;  %v2103_v34 = vld [vmem:[#allocation3 + $0x1bc0] sm:$0xff] }
 0x55e   :  { %2793 = vmatpush1.bf16.msra.mxu1 %v2037_v13  ;;  %3325 = vmatprep.subr.bf16.mxu0 %v2040_v49  ;;  %v2081_v13 = vld [vmem:[#allocation3 + $0x1b10] sm:$0xff]  ;;  %v2110_v49 = vld [vmem:[#allocation3 + $0x1bf8] sm:$0xff] }
 0x55f   :  { %2794 = vmatprep.subr.bf16.mxu1 %v2044_v16  ;;  %v2088_v16 = vld [vmem:[#allocation3 + $0x1b48] sm:$0xff] }
 0x561   :  { %3326 = vmatpush1.bf16.msra.mxu0 %v2039_v36  ;;  %v2109_v36 = vld [vmem:[#allocation3 + $0x1bf0] sm:$0xff] }
 0x562   :  { %2795 = vmatpush1.bf16.msra.mxu1 %v2043_v60  ;;  %3327 = vmatprep.subr.bf16.mxu0 %v2046_v37  ;;  %v2087_v60 = vld [vmem:[#allocation3 + $0x1b40] sm:$0xff]  ;;  %v2116_v37 = vld [vmem:[#allocation3 + $0x1c28] sm:$0xff] }
 0x563   :  { %2796 = vmatprep.subr.bf16.mxu1 %v2050_v33  ;;  %v2094_v33 = vld [vmem:[#allocation3 + $0x1b78] sm:$0xff] }
 0x565   :  { %3328 = vmatpush1.bf16.msra.mxu0 %v2045_v41  ;;  %v2115_v41 = vld [vmem:[#allocation3 + $0x1c20] sm:$0xff] }
 0x566   :  { %2797 = vmatpush1.bf16.msra.mxu1 %v2049_v35  ;;  %3329 = vmatprep.subr.bf16.mxu0 %v2052_v20  ;;  %v2093_v35 = vld [vmem:[#allocation3 + $0x1b70] sm:$0xff]  ;;  %v2122_v20 = vld [vmem:[#allocation3 + $0x1c58] sm:$0xff] }
 0x567   :  { %2798 = vmatprep.subr.bf16.mxu1 %v2056_v43  ;;  %v2100_v43 = vld [vmem:[#allocation3 + $0x1ba8] sm:$0xff] }
 0x569   :  { %3330 = vmatpush1.bf16.msra.mxu0 %v2051_v50  ;;  %v2128_v50 = vld [vmem:[#allocation3 + $0x1c88] sm:$0xff] }
 0x56a   :  { %2799 = vmatpush1.bf16.msra.mxu1 %v2055_v38  ;;  %3331 = vmatprep.subr.bf16.mxu0 %v2058_v7  ;;  %v2099_v38 = vld [vmem:[#allocation3 + $0x1ba0] sm:$0xff] }
 0x56b   :  { %2800 = vmatprep.subr.bf16.mxu1 %v2062_v40  ;;  %v2106_v40 = vld [vmem:[#allocation3 + $0x1bd8] sm:$0xff]  ;;  %v2111_v7 = vld [vmem:[#allocation3 + $0x1c00] sm:$0xff] }
 0x56d   :  { %3332 = vmatpush1.bf16.msra.mxu0 %v2057_v55  ;;  %v2134_v55 = vld [vmem:[#allocation3 + $0x1cb8] sm:$0xff] }
 0x56e   :  { %2801 = vmatpush1.bf16.msra.mxu1 %v2061_v45  ;;  %3333 = vmatprep.subr.bf16.mxu0 %v2064_v28  ;;  %v2112_v45 = vld [vmem:[#allocation3 + $0x1c08] sm:$0xff]  ;;  %v2117_v28 = vld [vmem:[#allocation3 + $0x1c30] sm:$0xff] }
 0x56f   :  { %2802 = vmatprep.subr.bf16.mxu1 %v2068_v46  ;;  %v2121_v46 = vld [vmem:[#allocation3 + $0x1c50] sm:$0xff] }
 0x571   :  { %3334 = vmatpush1.bf16.msra.mxu0 %v2063_v10  ;;  %v2123_v10 = vld [vmem:[#allocation3 + $0x1c60] sm:$0xff] }
 0x572   :  { %2803 = vmatpush1.bf16.msra.mxu1 %v2067_v48  ;;  %3335 = vmatprep.subr.bf16.mxu0 %v2070_v63  ;;  %v2118_v48 = vld [vmem:[#allocation3 + $0x1c38] sm:$0xff] }
 0x573   :  { %2804 = vmatprep.subr.bf16.mxu1 %v2074_v52  ;;  %v2127_v52 = vld [vmem:[#allocation3 + $0x1c80] sm:$0xff]  ;;  %v2130_v63 = vld [vmem:[#allocation3 + $0x1c98] sm:$0xff] }
 0x575   :  { %3336 = vmatpush1.bf16.msra.mxu0 %v2069_v31  ;;  %v2129_v31 = vld [vmem:[#allocation3 + $0x1c90] sm:$0xff] }
 0x576   :  { %2805 = vmatpush1.bf16.msra.mxu1 %v2073_v58  ;;  %3337 = vmatprep.subr.bf16.mxu0 %v2076_v8  ;;  %v2133_v58 = vld [vmem:[#allocation3 + $0x1cb0] sm:$0xff]  ;;  %v2136_v8 = vld [vmem:[#allocation3 + $0x1cc8] sm:$0xff] }
 0x577   :  { %2815 = vmatprep.subr.bf16.mxu1 %v2080_v61  ;;  %v2140_v61 = vld [vmem:[#allocation3 + $0x1ce8] sm:$0xff] }
 0x579   :  { %2807 = vmatmul.mubr.bf16.vlgmr.msra.gmra.mrb[8].mxu1 %v6482_v59  ;;  %3338 = vmatpush1.bf16.msra.mxu0 %v2075_v11  ;;  %v2135_v11 = vld [vmem:[#allocation3 + $0x1cc0] sm:$0xff] }
 0x57a   :  { %2816 = vmatpush1.bf16.msra.mxu1 %v2079_v3  ;;  %2847 = vmatprep.mubr.bf16.mxu1 %v6484_v14  ;;  %v2139_v3 = vld [vmem:[#allocation3 + $0x1ce0] sm:$0xff] }
 0x57b   :  { %2817 = vmatprep.subr.bf16.mxu1 %v2086_v22  ;;  %3348 = vmatprep.subr.bf16.mxu0 %v2082_v12  ;;  %v2146_v22 = vld [vmem:[#allocation3 + $0x1d18] sm:$0xff] }
 0x57c   :  { %3340 = vmatmul.mubr.bf16.vlgmr.msra.gmra.mrb[24].mxu0 %v6482_v59  ;;  %v2142_v12 = vld [vmem:[#allocation3 + $0x1cf8] sm:$0xff] }
 0x57d   :  { %3349 = vmatpush1.bf16.msra.mxu0 %v2081_v13  ;;  %3380 = vmatprep.mubr.bf16.mxu0 %v6484_v14  ;;  %v2141_v13 = vld [vmem:[#allocation3 + $0x1cf0] sm:$0xff] }
 0x57e   :  { %2818 = vmatpush1.bf16.msra.mxu1 %v2085_v9  ;;  %3350 = vmatprep.subr.bf16.mxu0 %v2088_v16  ;;  %v2145_v9 = vld [vmem:[#allocation3 + $0x1d10] sm:$0xff]  ;;  %v2148_v16 = vld [vmem:[#allocation3 + $0x1d28] sm:$0xff] }
 0x57f   :  { %2819 = vmatprep.subr.bf16.mxu1 %v2092_v15  ;;  %v2152_v15 = vld [vmem:[#allocation3 + $0x1d48] sm:$0xff] }
 0x581   :  { %3351 = vmatpush1.bf16.msra.mxu0 %v2087_v60  ;;  %v2164_v60 = vld [vmem:[#allocation3 + $0x1da8] sm:$0xff] }
 0x582   :  { %2820 = vmatpush1.bf16.msra.mxu1 %v2091_v4  ;;  %3352 = vmatprep.subr.bf16.mxu0 %v2094_v33  ;;  %v2151_v4 = vld [vmem:[#allocation3 + $0x1d40] sm:$0xff] }
 0x583   :  { %2821 = vmatprep.subr.bf16.mxu1 %v2098_v53  ;;  %v2158_v53 = vld [vmem:[#allocation3 + $0x1d78] sm:$0xff]  ;;  %v2147_v33 = vld [vmem:[#allocation3 + $0x1d20] sm:$0xff] }
 0x585   :  { %3353 = vmatpush1.bf16.msra.mxu0 %v2093_v35  ;;  %v2163_v35 = vld [vmem:[#allocation3 + $0x1da0] sm:$0xff] }
 0x586   :  { %2822 = vmatpush1.bf16.msra.mxu1 %v2097_v21  ;;  %3354 = vmatprep.subr.bf16.mxu0 %v2100_v43  ;;  %v2157_v21 = vld [vmem:[#allocation3 + $0x1d70] sm:$0xff]  ;;  %v2170_v43 = vld [vmem:[#allocation3 + $0x1dd8] sm:$0xff] }
 0x587   :  { %2823 = vmatprep.subr.bf16.mxu1 %v2104_v29  ;;  %v6490_v29 = vld [vmem:[#allocation2 + $0x28] sm:$0xff] }
 0x589   :  { %3355 = vmatpush1.bf16.msra.mxu0 %v2099_v38 }
 0x58a   :  { %2824 = vmatpush1.bf16.msra.mxu1 %v2103_v34  ;;  %3356 = vmatprep.subr.bf16.mxu0 %v2106_v40  ;;  %v2154_v34 = vld [vmem:[#allocation3 + $0x1d58] sm:$0xff]  ;;  %v2169_v40 = vld [vmem:[#allocation3 + $0x1dd0] sm:$0xff] }
 0x58b   :  { %2825 = vmatprep.subr.bf16.mxu1 %v2110_v49  ;;  %v6494_v49 = vrot.slane %v6490_v29, %v6292_v24 }
 0x58d   :  { %3357 = vmatpush1.bf16.msra.mxu0 %v2105_v44  ;;  %v1156_v38 = vcombine.high %v6494_v49, %v6494_v49  ;;  %v2159_v44 = vld [vmem:[#allocation3 + $0x1d80] sm:$0xff] }
 0x58e   :  { %2826 = vmatpush1.bf16.msra.mxu1 %v2109_v36  ;;  %3358 = vmatprep.subr.bf16.mxu0 %v2112_v45  ;;  %v2153_v36 = vld [vmem:[#allocation3 + $0x1d50] sm:$0xff]  ;;  %v2166_v45 = vld [vmem:[#allocation3 + $0x1db8] sm:$0xff] }
 0x58f   :  { %2827 = vmatprep.subr.bf16.mxu1 %v2116_v37  ;;  %v2160_v37 = vld [vmem:[#allocation3 + $0x1d88] sm:$0xff] }
 0x591   :  { %3359 = vmatpush1.bf16.msra.mxu0 %v2111_v7  ;;  %v2182_v7 = vld [vmem:[#allocation3 + $0x1e38] sm:$0xff] }
 0x592   :  { %2828 = vmatpush1.bf16.msra.mxu1 %v2115_v41  ;;  %3360 = vmatprep.subr.bf16.mxu0 %v2118_v48  ;;  %v2176_v41 = vld [vmem:[#allocation3 + $0x1e08] sm:$0xff]  ;;  %v2165_v48 = vld [vmem:[#allocation3 + $0x1db0] sm:$0xff] }
 0x593   :  { %2829 = vmatprep.subr.bf16.mxu1 %v2122_v20  ;;  %v6500_v20 = vpack.c.bf16 %v6476_v47, %v6476_v47  ;;  %v2181_v47 = vld [vmem:[#allocation3 + $0x1e30] sm:$0xff] }
 0x595   :  { %3361 = vmatpush1.bf16.msra.mxu0 %v2117_v28  ;;  %v2171_v28 = vld [vmem:[#allocation3 + $0x1de0] sm:$0xff] }
 0x596   :  { %2830 = vmatpush1.bf16.msra.mxu1 %v2121_v46  ;;  %3362 = vmatprep.subr.bf16.mxu0 %v2124_v2  ;;  %v6502_v46 = vpack.c.bf16 %v1156_v38, %v1156_v38  ;;  %v2178_v2 = vld [vmem:[#allocation3 + $0x1e18] sm:$0xff]  ;;  %v2223_v38 = vld [vmem:[#allocation3 + $0x1f80] sm:$0xff] }
 0x597   :  { %2831 = vmatprep.subr.bf16.mxu1 %v2128_v50  ;;  %v2175_v50 = vld [vmem:[#allocation3 + $0x1e00] sm:$0xff] }
 0x599   :  { %3363 = vmatpush1.bf16.msra.mxu0 %v2123_v10  ;;  %v2177_v10 = vld [vmem:[#allocation3 + $0x1e10] sm:$0xff] }
 0x59a   :  { %2832 = vmatpush1.bf16.msra.mxu1 %v2127_v52  ;;  %3364 = vmatprep.subr.bf16.mxu0 %v2130_v63  ;;  %v2172_v52 = vld [vmem:[#allocation3 + $0x1de8] sm:$0xff] }
 0x59b   :  { %2833 = vmatprep.subr.bf16.mxu1 %v2134_v55  ;;  %v2188_v55 = vld [vmem:[#allocation3 + $0x1e68] sm:$0xff] }
 0x59c   :  { %v2184_v63 = vld [vmem:[#allocation3 + $0x1e48] sm:$0xff] }
 0x59d   :  { %3365 = vmatpush1.bf16.msra.mxu0 %v2129_v31  ;;  %v2183_v31 = vld [vmem:[#allocation3 + $0x1e40] sm:$0xff] }
 0x59e   :  { %2834 = vmatpush1.bf16.msra.mxu1 %v2133_v58  ;;  %3366 = vmatprep.subr.bf16.mxu0 %v2136_v8  ;;  %v2187_v58 = vld [vmem:[#allocation3 + $0x1e60] sm:$0xff]  ;;  %v2190_v8 = vld [vmem:[#allocation3 + $0x1e78] sm:$0xff] }
 0x59f   :  { %2835 = vmatprep.subr.bf16.mxu1 %v2140_v61  ;;  %v2194_v61 = vld [vmem:[#allocation3 + $0x1e98] sm:$0xff] }
 0x5a1   :  { %3367 = vmatpush1.bf16.msra.mxu0 %v2135_v11  ;;  %v2189_v11 = vld [vmem:[#allocation3 + $0x1e70] sm:$0xff] }
 0x5a2   :  { %2836 = vmatpush1.bf16.msra.mxu1 %v2139_v3  ;;  %3368 = vmatprep.subr.bf16.mxu0 %v2142_v12  ;;  %v2193_v3 = vld [vmem:[#allocation3 + $0x1e90] sm:$0xff]  ;;  %v2196_v12 = vld [vmem:[#allocation3 + $0x1ea8] sm:$0xff] }
 0x5a3   :  { %2837 = vmatprep.subr.bf16.mxu1 %v2146_v22  ;;  %v2200_v22 = vld [vmem:[#allocation3 + $0x1ec8] sm:$0xff] }
 0x5a5   :  { %3369 = vmatpush1.bf16.msra.mxu0 %v2141_v13  ;;  %v2195_v13 = vld [vmem:[#allocation3 + $0x1ea0] sm:$0xff] }
 0x5a6   :  { %2838 = vmatpush1.bf16.msra.mxu1 %v2145_v9  ;;  %3370 = vmatprep.subr.bf16.mxu0 %v2148_v16  ;;  %v2199_v9 = vld [vmem:[#allocation3 + $0x1ec0] sm:$0xff]  ;;  %v2202_v16 = vld [vmem:[#allocation3 + $0x1ed8] sm:$0xff] }
 0x5a7   :  { %2839 = vmatprep.subr.bf16.mxu1 %v2152_v15  ;;  %v2206_v15 = vld [vmem:[#allocation3 + $0x1ef8] sm:$0xff] }
 0x5a9   :  { %3371 = vmatpush1.bf16.msra.mxu0 %v2147_v33  ;;  %v2201_v33 = vld [vmem:[#allocation3 + $0x1ed0] sm:$0xff] }
 0x5aa   :  { %2840 = vmatpush1.bf16.msra.mxu1 %v2151_v4  ;;  %3372 = vmatprep.subr.bf16.mxu0 %v2154_v34  ;;  %v2205_v4 = vld [vmem:[#allocation3 + $0x1ef0] sm:$0xff]  ;;  %v2208_v34 = vld [vmem:[#allocation3 + $0x1f08] sm:$0xff] }
 0x5ab   :  { %2841 = vmatprep.subr.bf16.mxu1 %v2158_v53  ;;  %v2212_v53 = vld [vmem:[#allocation3 + $0x1f28] sm:$0xff] }
 0x5ad   :  { %3373 = vmatpush1.bf16.msra.mxu0 %v2153_v36  ;;  %v2207_v36 = vld [vmem:[#allocation3 + $0x1f00] sm:$0xff] }
 0x5ae   :  { %2842 = vmatpush1.bf16.msra.mxu1 %v2157_v21  ;;  %3374 = vmatprep.subr.bf16.mxu0 %v2160_v37  ;;  %v2211_v21 = vld [vmem:[#allocation3 + $0x1f20] sm:$0xff]  ;;  %v2214_v37 = vld [vmem:[#allocation3 + $0x1f38] sm:$0xff] }
 0x5af   :  { %2843 = vmatprep.subr.bf16.mxu1 %v2164_v60  ;;  %v2218_v60 = vld [vmem:[#allocation3 + $0x1f58] sm:$0xff] }
 0x5b1   :  { %3375 = vmatpush1.bf16.msra.mxu0 %v2159_v44  ;;  %v2220_v44 = vld [vmem:[#allocation3 + $0x1f68] sm:$0xff] }
 0x5b2   :  { %2844 = vmatpush1.bf16.msra.mxu1 %v2163_v35  ;;  %3376 = vmatprep.subr.bf16.mxu0 %v2166_v45  ;;  %v2217_v35 = vld [vmem:[#allocation3 + $0x1f50] sm:$0xff] }
 0x5b3   :  { %2845 = vmatprep.subr.bf16.mxu1 %v2170_v43  ;;  %v2224_v43 = vld [vmem:[#allocation3 + $0x1f88] sm:$0xff]  ;;  %v2229_v45 = vld [vmem:[#allocation3 + $0x1fb0] sm:$0xff] }
 0x5b5   :  { %3377 = vmatpush1.bf16.msra.mxu0 %v2165_v48  ;;  %v2226_v48 = vld [vmem:[#allocation3 + $0x1f98] sm:$0xff] }
 0x5b6   :  { %2846 = vmatpush1.bf16.msra.mxu1 %v2169_v40  ;;  %3378 = vmatprep.subr.bf16.mxu0 %v2172_v52  ;;  %v2230_v40 = vld [vmem:[#allocation3 + $0x1fb8] sm:$0xff]  ;;  %v2235_v52 = vld [vmem:[#allocation3 + $0x1fe0] sm:$0xff] }
 0x5b7   :  { %2856 = vmatprep.subr.bf16.mxu1 %v2176_v41  ;;  %v2213_v41 = vld [vmem:[#allocation3 + $0x1f30] sm:$0xff] }
 0x5b9   :  { %2848 = vmatmul.mubr.bf16.vlgmr.msra.gmra.mrb[8].mxu1 %v6500_v20  ;;  %3379 = vmatpush1.bf16.msra.mxu0 %v2171_v28  ;;  %v2232_v28 = vld [vmem:[#allocation3 + $0x1fc8] sm:$0xff] }
 0x5ba   :  { %2857 = vmatpush1.bf16.msra.mxu1 %v2175_v50  ;;  %2888 = vmatprep.mubr.bf16.mxu1 %v6502_v46  ;;  %v2236_v50 = vld [vmem:[#allocation3 + $0x1fe8] sm:$0xff] }
 0x5bb   :  { %2858 = vmatprep.subr.bf16.mxu1 %v2182_v7  ;;  %3389 = vmatprep.subr.bf16.mxu0 %v2178_v2  ;;  %v2219_v7 = vld [vmem:[#allocation3 + $0x1f60] sm:$0xff]  ;;  %v2241_v2 = vld [vmem:[#allocation3 + $0x2010] sm:$0xff] }
 0x5bc   :  { %3381 = vmatmul.mubr.bf16.vlgmr.msra.gmra.mrb[24].mxu0 %v6500_v20 }
 0x5bd   :  { %3390 = vmatpush1.bf16.msra.mxu0 %v2177_v10  ;;  %3421 = vmatprep.mubr.bf16.mxu0 %v6502_v46  ;;  %v2238_v10 = vld [vmem:[#allocation3 + $0x1ff8] sm:$0xff] }
 0x5be   :  { %2859 = vmatpush1.bf16.msra.mxu1 %v2181_v47  ;;  %3391 = vmatprep.subr.bf16.mxu0 %v2184_v63  ;;  %v2242_v47 = vld [vmem:[#allocation3 + $0x2018] sm:$0xff]  ;;  %v2247_v63 = vld [vmem:[#allocation3 + $0x2040] sm:$0xff] }
 0x5bf   :  { %2860 = vmatprep.subr.bf16.mxu1 %v2188_v55  ;;  %v2225_v55 = vld [vmem:[#allocation3 + $0x1f90] sm:$0xff] }
 0x5c1   :  { %3392 = vmatpush1.bf16.msra.mxu0 %v2183_v31  ;;  %v2244_v31 = vld [vmem:[#allocation3 + $0x2028] sm:$0xff] }
 0x5c2   :  { %2861 = vmatpush1.bf16.msra.mxu1 %v2187_v58  ;;  %3393 = vmatprep.subr.bf16.mxu0 %v2190_v8  ;;  %v2248_v58 = vld [vmem:[#allocation3 + $0x2048] sm:$0xff]  ;;  %v1141_v8 = vcombine.high %v6490_v29, %v6490_v29 }
 0x5c3   :  { %2862 = vmatprep.subr.bf16.mxu1 %v2194_v61  ;;  %v2231_v61 = vld [vmem:[#allocation3 + $0x1fc0] sm:$0xff] }
 0x5c5   :  { %3394 = vmatpush1.bf16.msra.mxu0 %v2189_v11  ;;  %v2243_v11 = vld [vmem:[#allocation3 + $0x2020] sm:$0xff] }
 0x5c6   :  { %2863 = vmatpush1.bf16.msra.mxu1 %v2193_v3  ;;  %3395 = vmatprep.subr.bf16.mxu0 %v2196_v12  ;;  %v2254_v3 = vld [vmem:[#allocation3 + $0x2078] sm:$0xff] }
 0x5c7   :  { %2864 = vmatprep.subr.bf16.mxu1 %v2200_v22  ;;  %v2237_v22 = vld [vmem:[#allocation3 + $0x1ff0] sm:$0xff]  ;;  %v2250_v12 = vld [vmem:[#allocation3 + $0x2058] sm:$0xff] }
 0x5c9   :  { %3396 = vmatpush1.bf16.msra.mxu0 %v2195_v13  ;;  %v2266_v13 = vld [vmem:[#allocation3 + $0x20d8] sm:$0xff] }
 0x5ca   :  { %2865 = vmatpush1.bf16.msra.mxu1 %v2199_v9  ;;  %3397 = vmatprep.subr.bf16.mxu0 %v2202_v16  ;;  %v2253_v9 = vld [vmem:[#allocation3 + $0x2070] sm:$0xff] }
 0x5cb   :  { %2866 = vmatprep.subr.bf16.mxu1 %v2206_v15  ;;  %v2260_v15 = vld [vmem:[#allocation3 + $0x20a8] sm:$0xff]  ;;  %v2249_v16 = vld [vmem:[#allocation3 + $0x2050] sm:$0xff] }
 0x5cd   :  { %3398 = vmatpush1.bf16.msra.mxu0 %v2201_v33  ;;  %v2272_v33 = vld [vmem:[#allocation3 + $0x2108] sm:$0xff] }
 0x5ce   :  { %2867 = vmatpush1.bf16.msra.mxu1 %v2205_v4  ;;  %3399 = vmatprep.subr.bf16.mxu0 %v2208_v34  ;;  %v6511_v4 = vrot.slane %v1141_v8, %v6292_v24  ;;  %v6517_v34 = vpack.c.bf16 %v6494_v49, %v6494_v49  ;;  %v2277_v49 = vld [vmem:[#allocation3 + $0x2130] sm:$0xff]  ;;  %v2291_v8 = vld [vmem:[#allocation3 + $0x21a0] sm:$0xff] }
 0x5cf   :  { %2868 = vmatprep.subr.bf16.mxu1 %v2212_v53  ;;  %v2259_v53 = vld [vmem:[#allocation3 + $0x20a0] sm:$0xff] }
 0x5d0   :  { %v1157_v29 = vcombine.high %v6511_v4, %v6511_v4 }
 0x5d1   :  { %3400 = vmatpush1.bf16.msra.mxu0 %v2207_v36 }
 0x5d2   :  { %2869 = vmatpush1.bf16.msra.mxu1 %v2211_v21  ;;  %3401 = vmatprep.subr.bf16.mxu0 %v2214_v37  ;;  %v2256_v21 = vld [vmem:[#allocation3 + $0x2088] sm:$0xff]  ;;  %v6519_v36 = vpack.c.bf16 %v1157_v29, %v1157_v29  ;;  %v2271_v37 = vld [vmem:[#allocation3 + $0x2100] sm:$0xff]  ;;  %v2310_v29 = vld [vmem:[#allocation3 + $0x2238] sm:$0xff] }
 0x5d3   :  { %2870 = vmatprep.subr.bf16.mxu1 %v2218_v60  ;;  %v2265_v60 = vld [vmem:[#allocation3 + $0x20d0] sm:$0xff] }
 0x5d5   :  { %3402 = vmatpush1.bf16.msra.mxu0 %v2213_v41  ;;  %v2268_v41 = vld [vmem:[#allocation3 + $0x20e8] sm:$0xff] }
 0x5d6   :  { %2871 = vmatpush1.bf16.msra.mxu1 %v2217_v35  ;;  %3403 = vmatprep.subr.bf16.mxu0 %v2220_v44  ;;  %v2255_v35 = vld [vmem:[#allocation3 + $0x2080] sm:$0xff]  ;;  %v2284_v44 = vld [vmem:[#allocation3 + $0x2168] sm:$0xff] }
 0x5d7   :  { %2872 = vmatprep.subr.bf16.mxu1 %v2224_v43  ;;  %v2262_v43 = vld [vmem:[#allocation3 + $0x20b8] sm:$0xff] }
 0x5d9   :  { %3404 = vmatpush1.bf16.msra.mxu0 %v2219_v7  ;;  %v2283_v7 = vld [vmem:[#allocation3 + $0x2160] sm:$0xff] }
 0x5da   :  { %2873 = vmatpush1.bf16.msra.mxu1 %v2223_v38  ;;  %3405 = vmatprep.subr.bf16.mxu0 %v2226_v48  ;;  %v2278_v38 = vld [vmem:[#allocation3 + $0x2138] sm:$0xff] }
 0x5db   :  { %2874 = vmatprep.subr.bf16.mxu1 %v2230_v40  ;;  %v2261_v40 = vld [vmem:[#allocation3 + $0x20b0] sm:$0xff]  ;;  %v2290_v48 = vld [vmem:[#allocation3 + $0x2198] sm:$0xff] }
 0x5dd   :  { %3406 = vmatpush1.bf16.msra.mxu0 %v2225_v55  ;;  %v2289_v55 = vld [vmem:[#allocation3 + $0x2190] sm:$0xff] }
 0x5de   :  { %2875 = vmatpush1.bf16.msra.mxu1 %v2229_v45  ;;  %3407 = vmatprep.subr.bf16.mxu0 %v2232_v28  ;;  %v2267_v45 = vld [vmem:[#allocation3 + $0x20e0] sm:$0xff]  ;;  %v2296_v28 = vld [vmem:[#allocation3 + $0x21c8] sm:$0xff] }
 0x5df   :  { %2876 = vmatprep.subr.bf16.mxu1 %v2236_v50  ;;  %v2274_v50 = vld [vmem:[#allocation3 + $0x2118] sm:$0xff] }
 0x5e1   :  { %3408 = vmatpush1.bf16.msra.mxu0 %v2231_v61  ;;  %v2295_v61 = vld [vmem:[#allocation3 + $0x21c0] sm:$0xff] }
 0x5e2   :  { %2877 = vmatpush1.bf16.msra.mxu1 %v2235_v52  ;;  %3409 = vmatprep.subr.bf16.mxu0 %v2238_v10  ;;  %v2273_v52 = vld [vmem:[#allocation3 + $0x2110] sm:$0xff]  ;;  %v2302_v10 = vld [vmem:[#allocation3 + $0x21f8] sm:$0xff] }
 0x5e3   :  { %2878 = vmatprep.subr.bf16.mxu1 %v2242_v47  ;;  %v2280_v47 = vld [vmem:[#allocation3 + $0x2148] sm:$0xff] }
 0x5e5   :  { %3410 = vmatpush1.bf16.msra.mxu0 %v2237_v22  ;;  %v2301_v22 = vld [vmem:[#allocation3 + $0x21f0] sm:$0xff] }
 0x5e6   :  { %2879 = vmatpush1.bf16.msra.mxu1 %v2241_v2  ;;  %3411 = vmatprep.subr.bf16.mxu0 %v2244_v31  ;;  %v2279_v2 = vld [vmem:[#allocation3 + $0x2140] sm:$0xff]  ;;  %v2308_v31 = vld [vmem:[#allocation3 + $0x2228] sm:$0xff] }
 0x5e7   :  { %2880 = vmatprep.subr.bf16.mxu1 %v2248_v58  ;;  %v2286_v58 = vld [vmem:[#allocation3 + $0x2178] sm:$0xff] }
 0x5e9   :  { %3412 = vmatpush1.bf16.msra.mxu0 %v2243_v11  ;;  %v2314_v11 = vld [vmem:[#allocation3 + $0x2258] sm:$0xff] }
 0x5ea   :  { %2881 = vmatpush1.bf16.msra.mxu1 %v2247_v63  ;;  %3413 = vmatprep.subr.bf16.mxu0 %v2250_v12  ;;  %v2285_v63 = vld [vmem:[#allocation3 + $0x2170] sm:$0xff] }
 0x5eb   :  { %2882 = vmatprep.subr.bf16.mxu1 %v2254_v3  ;;  %v2292_v3 = vld [vmem:[#allocation3 + $0x21a8] sm:$0xff]  ;;  %v2297_v12 = vld [vmem:[#allocation3 + $0x21d0] sm:$0xff] }
 0x5ed   :  { %3414 = vmatpush1.bf16.msra.mxu0 %v2249_v16  ;;  %v2320_v16 = vld [vmem:[#allocation3 + $0x2288] sm:$0xff] }
 0x5ee   :  { %2883 = vmatpush1.bf16.msra.mxu1 %v2253_v9  ;;  %3415 = vmatprep.subr.bf16.mxu0 %v2256_v21  ;;  %v2298_v9 = vld [vmem:[#allocation3 + $0x21d8] sm:$0xff]  ;;  %v2303_v21 = vld [vmem:[#allocation3 + $0x2200] sm:$0xff] }
 0x5ef   :  { %2884 = vmatprep.subr.bf16.mxu1 %v2260_v15  ;;  %v2307_v15 = vld [vmem:[#allocation3 + $0x2220] sm:$0xff] }
 0x5f1   :  { %3416 = vmatpush1.bf16.msra.mxu0 %v2255_v35  ;;  %v2309_v35 = vld [vmem:[#allocation3 + $0x2230] sm:$0xff] }
 0x5f2   :  { %2885 = vmatpush1.bf16.msra.mxu1 %v2259_v53  ;;  %3417 = vmatprep.subr.bf16.mxu0 %v2262_v43  ;;  %v2304_v53 = vld [vmem:[#allocation3 + $0x2208] sm:$0xff] }
 0x5f3   :  { %2886 = vmatprep.subr.bf16.mxu1 %v2266_v13  ;;  %v2313_v13 = vld [vmem:[#allocation3 + $0x2250] sm:$0xff]  ;;  %v2316_v43 = vld [vmem:[#allocation3 + $0x2268] sm:$0xff] }
 0x5f5   :  { %3418 = vmatpush1.bf16.msra.mxu0 %v2261_v40  ;;  %v2315_v40 = vld [vmem:[#allocation3 + $0x2260] sm:$0xff] }
 0x5f6   :  { %2887 = vmatpush1.bf16.msra.mxu1 %v2265_v60  ;;  %3419 = vmatprep.subr.bf16.mxu0 %v2268_v41  ;;  %v2319_v60 = vld [vmem:[#allocation3 + $0x2280] sm:$0xff]  ;;  %v2322_v41 = vld [vmem:[#allocation3 + $0x2298] sm:$0xff] }
 0x5f7   :  { %2897 = vmatprep.subr.bf16.mxu1 %v2272_v33  ;;  %v2326_v33 = vld [vmem:[#allocation3 + $0x22b8] sm:$0xff] }
 0x5f9   :  { %2889 = vmatmul.mubr.bf16.vlgmr.msra.gmra.mrb[8].mxu1 %v6517_v34  ;;  %3420 = vmatpush1.bf16.msra.mxu0 %v2267_v45  ;;  %v2321_v45 = vld [vmem:[#allocation3 + $0x2290] sm:$0xff] }
 0x5fa   :  { %2898 = vmatpush1.bf16.msra.mxu1 %v2271_v37  ;;  %2929 = vmatprep.mubr.bf16.mxu1 %v6519_v36  ;;  %v2325_v37 = vld [vmem:[#allocation3 + $0x22b0] sm:$0xff] }
 0x5fb   :  { %2899 = vmatprep.subr.bf16.mxu1 %v2278_v38  ;;  %3430 = vmatprep.subr.bf16.mxu0 %v2274_v50  ;;  %v2332_v38 = vld [vmem:[#allocation3 + $0x22e8] sm:$0xff] }
 0x5fc   :  { %3422 = vmatmul.mubr.bf16.vlgmr.msra.gmra.mrb[24].mxu0 %v6517_v34  ;;  %v2328_v50 = vld [vmem:[#allocation3 + $0x22c8] sm:$0xff] }
 0x5fd   :  { %3431 = vmatpush1.bf16.msra.mxu0 %v2273_v52  ;;  %3462 = vmatprep.mubr.bf16.mxu0 %v6519_v36  ;;  %v2327_v52 = vld [vmem:[#allocation3 + $0x22c0] sm:$0xff] }
 0x5fe   :  { %2900 = vmatpush1.bf16.msra.mxu1 %v2277_v49  ;;  %3432 = vmatprep.subr.bf16.mxu0 %v2280_v47  ;;  %v2331_v49 = vld [vmem:[#allocation3 + $0x22e0] sm:$0xff]  ;;  %v2334_v47 = vld [vmem:[#allocation3 + $0x22f8] sm:$0xff] }
 0x5ff   :  { %2901 = vmatprep.subr.bf16.mxu1 %v2284_v44  ;;  %v2338_v44 = vld [vmem:[#allocation3 + $0x2318] sm:$0xff] }
 0x601   :  { %3433 = vmatpush1.bf16.msra.mxu0 %v2279_v2  ;;  %v2333_v2 = vld [vmem:[#allocation3 + $0x22f0] sm:$0xff] }
 0x602   :  { %2902 = vmatpush1.bf16.msra.mxu1 %v2283_v7  ;;  %3434 = vmatprep.subr.bf16.mxu0 %v2286_v58  ;;  %v2337_v7 = vld [vmem:[#allocation3 + $0x2310] sm:$0xff]  ;;  %v2340_v58 = vld [vmem:[#allocation3 + $0x2328] sm:$0xff] }
 0x603   :  { %2903 = vmatprep.subr.bf16.mxu1 %v2290_v48  ;;  %v2344_v48 = vld [vmem:[#allocation3 + $0x2348] sm:$0xff] }
 0x605   :  { %3435 = vmatpush1.bf16.msra.mxu0 %v2285_v63  ;;  %v2339_v63 = vld [vmem:[#allocation3 + $0x2320] sm:$0xff] }
 0x606   :  { %2904 = vmatpush1.bf16.msra.mxu1 %v2289_v55  ;;  %3436 = vmatprep.subr.bf16.mxu0 %v2292_v3  ;;  %v2343_v55 = vld [vmem:[#allocation3 + $0x2340] sm:$0xff]  ;;  %v2346_v3 = vld [vmem:[#allocation3 + $0x2358] sm:$0xff] }
 0x607   :  { %2905 = vmatprep.subr.bf16.mxu1 %v2296_v28  ;;  %v2350_v28 = vld [vmem:[#allocation3 + $0x2378] sm:$0xff] }
 0x609   :  { %3437 = vmatpush1.bf16.msra.mxu0 %v2291_v8  ;;  %v2345_v8 = vld [vmem:[#allocation3 + $0x2350] sm:$0xff] }
 0x60a   :  { %2906 = vmatpush1.bf16.msra.mxu1 %v2295_v61  ;;  %3438 = vmatprep.subr.bf16.mxu0 %v2298_v9  ;;  %v2349_v61 = vld [vmem:[#allocation3 + $0x2370] sm:$0xff]  ;;  %v2352_v9 = vld [vmem:[#allocation3 + $0x2388] sm:$0xff] }
 0x60b   :  { %2907 = vmatprep.subr.bf16.mxu1 %v2302_v10  ;;  %v2356_v10 = vld [vmem:[#allocation3 + $0x23a8] sm:$0xff] }
 0x60d   :  { %3439 = vmatpush1.bf16.msra.mxu0 %v2297_v12  ;;  %v6527_v12 = vpack.c.bf16 %v6511_v4, %v6511_v4  ;;  %v2373_v4 = vld [vmem:[#allocation3 + $0x2430] sm:$0xff] }
 0x60e   :  { %2908 = vmatpush1.bf16.msra.mxu1 %v2301_v22  ;;  %3440 = vmatprep.subr.bf16.mxu0 %v2304_v53  ;;  %v2355_v22 = vld [vmem:[#allocation3 + $0x23a0] sm:$0xff] }
 0x60f   :  { %2909 = vmatprep.subr.bf16.mxu1 %v2308_v31  ;;  %v2362_v31 = vld [vmem:[#allocation3 + $0x23d8] sm:$0xff]  ;;  %v2351_v53 = vld [vmem:[#allocation3 + $0x2380] sm:$0xff] }
 0x611   :  { %3441 = vmatpush1.bf16.msra.mxu0 %v2303_v21  ;;  %v2374_v21 = vld [vmem:[#allocation3 + $0x2438] sm:$0xff] }
 0x612   :  { %2910 = vmatpush1.bf16.msra.mxu1 %v2307_v15  ;;  %3442 = vmatprep.subr.bf16.mxu0 %v2310_v29  ;;  %v2361_v15 = vld [vmem:[#allocation3 + $0x23d0] sm:$0xff] }
 0x613   :  { %2911 = vmatprep.subr.bf16.mxu1 %v2314_v11  ;;  %v2368_v11 = vld [vmem:[#allocation3 + $0x2408] sm:$0xff]  ;;  %v2357_v29 = vld [vmem:[#allocation3 + $0x23b0] sm:$0xff] }
 0x615   :  { %3443 = vmatpush1.bf16.msra.mxu0 %v2309_v35  ;;  %v2380_v35 = vld [vmem:[#allocation3 + $0x2468] sm:$0xff] }
 0x616   :  { %2912 = vmatpush1.bf16.msra.mxu1 %v2313_v13  ;;  %3444 = vmatprep.subr.bf16.mxu0 %v2316_v43  ;;  %v2358_v13 = vld [vmem:[#allocation3 + $0x23b8] sm:$0xff]  ;;  %v2363_v43 = vld [vmem:[#allocation3 + $0x23e0] sm:$0xff] }
 0x617   :  { %2913 = vmatprep.subr.bf16.mxu1 %v2320_v16  ;;  %v2367_v16 = vld [vmem:[#allocation3 + $0x2400] sm:$0xff] }
 0x619   :  { %3445 = vmatpush1.bf16.msra.mxu0 %v2315_v40  ;;  %v2386_v40 = vld [vmem:[#allocation3 + $0x2498] sm:$0xff] }
 0x61a   :  { %2914 = vmatpush1.bf16.msra.mxu1 %v2319_v60  ;;  %3446 = vmatprep.subr.bf16.mxu0 %v2322_v41  ;;  %v5843_v60 = vmov 0   ;;  %v2369_v41 = vld [vmem:[#allocation3 + $0x2410] sm:$0xff] }
 0x61b   :  { %2915 = vmatprep.subr.bf16.mxu1 %v2326_v33  ;;  %v2364_v33 = vld [vmem:[#allocation3 + $0x23e8] sm:$0xff] }
 0x61d   :  { %3447 = vmatpush1.bf16.msra.mxu0 %v2321_v45  ;;  %v2392_v45 = vld [vmem:[#allocation3 + $0x24c8] sm:$0xff] }
 0x61e   :  { %2916 = vmatpush1.bf16.msra.mxu1 %v2325_v37  ;;  %3448 = vmatprep.subr.bf16.mxu0 %v2328_v50  ;;  %v2370_v37 = vld [vmem:[#allocation3 + $0x2418] sm:$0xff]  ;;  %v2375_v50 = vld [vmem:[#allocation3 + $0x2440] sm:$0xff] }
 0x61f   :  { %2917 = vmatprep.subr.bf16.mxu1 %v2332_v38  ;;  %v2379_v38 = vld [vmem:[#allocation3 + $0x2460] sm:$0xff] }
 0x621   :  { %3449 = vmatpush1.bf16.msra.mxu0 %v2327_v52  ;;  %v2398_v52 = vld [vmem:[#allocation3 + $0x24f8] sm:$0xff] }
 0x622   :  { %2918 = vmatpush1.bf16.msra.mxu1 %v2331_v49  ;;  %3450 = vmatprep.subr.bf16.mxu0 %v2334_v47  ;;  %v2376_v49 = vld [vmem:[#allocation3 + $0x2448] sm:$0xff]  ;;  %v2381_v47 = vld [vmem:[#allocation3 + $0x2470] sm:$0xff] }
 0x623   :  { %2919 = vmatprep.subr.bf16.mxu1 %v2338_v44  ;;  %v2385_v44 = vld [vmem:[#allocation3 + $0x2490] sm:$0xff] }
 0x625   :  { %3451 = vmatpush1.bf16.msra.mxu0 %v2333_v2  ;;  %v2404_v2 = vld [vmem:[#allocation3 + $0x2528] sm:$0xff] }
 0x626   :  { %2920 = vmatpush1.bf16.msra.mxu1 %v2337_v7  ;;  %3452 = vmatprep.subr.bf16.mxu0 %v2340_v58  ;;  %v2382_v7 = vld [vmem:[#allocation3 + $0x2478] sm:$0xff]  ;;  %v2387_v58 = vld [vmem:[#allocation3 + $0x24a0] sm:$0xff] }
 0x627   :  { %2921 = vmatprep.subr.bf16.mxu1 %v2344_v48  ;;  %v2391_v48 = vld [vmem:[#allocation3 + $0x24c0] sm:$0xff] }
 0x629   :  { %3453 = vmatpush1.bf16.msra.mxu0 %v2339_v63  ;;  %v2410_v63 = vld [vmem:[#allocation3 + $0x2558] sm:$0xff] }
 0x62a   :  { %2922 = vmatpush1.bf16.msra.mxu1 %v2343_v55  ;;  %3454 = vmatprep.subr.bf16.mxu0 %v2346_v3  ;;  %v2388_v55 = vld [vmem:[#allocation3 + $0x24a8] sm:$0xff]  ;;  %v2393_v3 = vld [vmem:[#allocation3 + $0x24d0] sm:$0xff] }
 0x62b   :  { %2923 = vmatprep.subr.bf16.mxu1 %v2350_v28  ;;  %v2397_v28 = vld [vmem:[#allocation3 + $0x24f0] sm:$0xff] }
 0x62d   :  { %3455 = vmatpush1.bf16.msra.mxu0 %v2345_v8  ;;  %v2409_v8 = vld [vmem:[#allocation3 + $0x2550] sm:$0xff] }
 0x62e   :  { %2924 = vmatpush1.bf16.msra.mxu1 %v2349_v61  ;;  %3456 = vmatprep.subr.bf16.mxu0 %v2352_v9  ;;  %v2394_v61 = vld [vmem:[#allocation3 + $0x24d8] sm:$0xff]  ;;  %v1220_v9 = vld [vmem:[#allocation3 + $0x28] sm:$0xff] }
 0x62f   :  { %2925 = vmatprep.subr.bf16.mxu1 %v2356_v10  ;;  %v2403_v10 = vld [vmem:[#allocation3 + $0x2520] sm:$0xff] }
 0x631   :  { %3457 = vmatpush1.bf16.msra.mxu0 %v2351_v53  ;;  %v2406_v53 = vld [vmem:[#allocation3 + $0x2538] sm:$0xff] }
 0x632   :  { %2926 = vmatpush1.bf16.msra.mxu1 %v2355_v22  ;;  %3458 = vmatprep.subr.bf16.mxu0 %v2358_v13  ;;  %v5144_v22 = vld.sshfl [vmem:[#allocation2 + $0x30] sm:$0x3 pattern:$0x76325410]  ;;  %v1219_v13 = vld [vmem:[#allocation3 + $0x20] sm:$0xff] }
 0x633   :  { %2927 = vmatprep.subr.bf16.mxu1 %v2362_v31  ;;  %v2400_v31 = vld [vmem:[#allocation3 + $0x2508] sm:$0xff] }
 0x635   :  { %3459 = vmatpush1.bf16.msra.mxu0 %v2357_v29  ;;  %v2412_v29 = vld [vmem:[#allocation3 + $0x2568] sm:$0xff] }
 0x636   :  { %2928 = vmatpush1.bf16.msra.mxu1 %v2361_v15  ;;  %3460 = vmatprep.subr.bf16.mxu0 %v2364_v33  ;;  %v6533_v15 = vpack.c.bf16 %v5144_v22, %v5144_v22  ;;  %v1225_v33 = vld [vmem:[#allocation3 + $0x50] sm:$0xff] }
 0x637   :  { %2938 = vmatprep.subr.bf16.mxu1 %v2368_v11  ;;  %v2399_v11 = vld [vmem:[#allocation3 + $0x2500] sm:$0xff]  ;;  %v1297_v22 = vld [vmem:[#allocation3 + $0x290] sm:$0xff] }
 0x639   :  { %2930 = vmatmul.mubr.bf16.vlgmr.msra.gmra.mrb[8].mxu1 %v6527_v12  ;;  %3461 = vmatpush1.bf16.msra.mxu0 %v2363_v43  ;;  %v1231_v43 = vld [vmem:[#allocation3 + $0x80] sm:$0xff] }
 0x63a   :  { %2939 = vmatpush1.bf16.msra.mxu1 %v2367_v16  ;;  %2970 = vmatprep.mubr.bf16.mxu1 %v5843_v60  ;;  %v1226_v16 = vld [vmem:[#allocation3 + $0x58] sm:$0xff] }
 0x63b   :  { %2940 = vmatprep.subr.bf16.mxu1 %v2374_v21  ;;  %3471 = vmatprep.subr.bf16.mxu0 %v2370_v37  ;;  %v2405_v21 = vld [vmem:[#allocation3 + $0x2530] sm:$0xff]  ;;  %v1238_v37 = vld [vmem:[#allocation3 + $0xb8] sm:$0xff] }
 0x63c   :  { %3463 = vmatmul.mubr.bf16.vlgmr.msra.gmra.mrb[24].mxu0 %v6527_v12 }
 0x63d   :  { %3472 = vmatpush1.bf16.msra.mxu0 %v2369_v41  ;;  %3503 = vmatprep.mubr.bf16.mxu0 %v5843_v60  ;;  %v1250_v41 = vld [vmem:[#allocation3 + $0x118] sm:$0xff] }
 0x63e   :  { %2941 = vmatpush1.bf16.msra.mxu1 %v2373_v4  ;;  %3473 = vmatprep.subr.bf16.mxu0 %v2376_v49  ;;  %v1232_v4 = vld [vmem:[#allocation3 + $0x88] sm:$0xff]  ;;  %v1249_v49 = vld [vmem:[#allocation3 + $0x110] sm:$0xff] }
 0x63f   :  { %2942 = vmatprep.subr.bf16.mxu1 %v2380_v35  ;;  %v2411_v35 = vld [vmem:[#allocation3 + $0x2560] sm:$0xff] }
 0x641   :  { %3474 = vmatpush1.bf16.msra.mxu0 %v2375_v50  ;;  %v1262_v50 = vld [vmem:[#allocation3 + $0x178] sm:$0xff] }
 0x642   :  { %2943 = vmatpush1.bf16.msra.mxu1 %v2379_v38  ;;  %3475 = vmatprep.subr.bf16.mxu0 %v2382_v7  ;;  %v1237_v38 = vld [vmem:[#allocation3 + $0xb0] sm:$0xff] }
 0x643   :  { %2944 = vmatprep.subr.bf16.mxu1 %v2386_v40  ;;  %v1244_v40 = vld [vmem:[#allocation3 + $0xe8] sm:$0xff]  ;;  %v1261_v7 = vld [vmem:[#allocation3 + $0x170] sm:$0xff] }
 0x645   :  { %3476 = vmatpush1.bf16.msra.mxu0 %v2381_v47  ;;  %v1274_v47 = vld [vmem:[#allocation3 + $0x1d8] sm:$0xff] }
 0x646   :  { %2945 = vmatpush1.bf16.msra.mxu1 %v2385_v44  ;;  %3477 = vmatprep.subr.bf16.mxu0 %v2388_v55  ;;  %v1256_v44 = vld [vmem:[#allocation3 + $0x148] sm:$0xff]  ;;  %v1273_v55 = vld [vmem:[#allocation3 + $0x1d0] sm:$0xff] }
 0x647   :  { %2946 = vmatprep.subr.bf16.mxu1 %v2392_v45  ;;  %v1255_v45 = vld [vmem:[#allocation3 + $0x140] sm:$0xff] }
 0x649   :  { %3478 = vmatpush1.bf16.msra.mxu0 %v2387_v58  ;;  %v1286_v58 = vld [vmem:[#allocation3 + $0x238] sm:$0xff] }
 0x64a   :  { %2947 = vmatpush1.bf16.msra.mxu1 %v2391_v48  ;;  %3479 = vmatprep.subr.bf16.mxu0 %v2394_v61  ;;  %v1268_v48 = vld [vmem:[#allocation3 + $0x1a8] sm:$0xff]  ;;  %v1285_v61 = vld [vmem:[#allocation3 + $0x230] sm:$0xff] }
 0x64b   :  { %2948 = vmatprep.subr.bf16.mxu1 %v2398_v52  ;;  %v1267_v52 = vld [vmem:[#allocation3 + $0x1a0] sm:$0xff] }
 0x64d   :  { %3480 = vmatpush1.bf16.msra.mxu0 %v2393_v3  ;;  %v1298_v3 = vld [vmem:[#allocation3 + $0x298] sm:$0xff] }
 0x64e   :  { %2949 = vmatpush1.bf16.msra.mxu1 %v2397_v28  ;;  %3481 = vmatprep.subr.bf16.mxu0 %v2400_v31  ;;  %v1280_v28 = vld [vmem:[#allocation3 + $0x208] sm:$0xff] }
 0x64f   :  { %2950 = vmatprep.subr.bf16.mxu1 %v2404_v2  ;;  %v1279_v2 = vld [vmem:[#allocation3 + $0x200] sm:$0xff]  ;;  %v1304_v31 = vld [vmem:[#allocation3 + $0x2c8] sm:$0xff] }
 0x651   :  { %3482 = vmatpush1.bf16.msra.mxu0 %v2399_v11  ;;  %v1309_v11 = vld [vmem:[#allocation3 + $0x2f0] sm:$0xff] }
 0x652   :  { %2951 = vmatpush1.bf16.msra.mxu1 %v2403_v10  ;;  %3483 = vmatprep.subr.bf16.mxu0 %v2406_v53  ;;  %v1292_v10 = vld [vmem:[#allocation3 + $0x268] sm:$0xff] }
 0x653   :  { %2952 = vmatprep.subr.bf16.mxu1 %v2410_v63  ;;  %v1291_v63 = vld [vmem:[#allocation3 + $0x260] sm:$0xff]  ;;  %v1316_v53 = vld [vmem:[#allocation3 + $0x328] sm:$0xff] }
 0x655   :  { %3484 = vmatpush1.bf16.msra.mxu0 %v2405_v21  ;;  %v1321_v21 = vld [vmem:[#allocation3 + $0x350] sm:$0xff] }
 0x656   :  { %2953 = vmatpush1.bf16.msra.mxu1 %v2409_v8  ;;  %3485 = vmatprep.subr.bf16.mxu0 %v2412_v29  ;;  %v1303_v8 = vld [vmem:[#allocation3 + $0x2c0] sm:$0xff]  ;;  %v1328_v29 = vld [vmem:[#allocation3 + $0x388] sm:$0xff] }
 0x657   :  { %3512 = vmatprep.subr.bf16.mxu1 %v1220_v9  ;;  %v1310_v9 = vld [vmem:[#allocation3 + $0x2f8] sm:$0xff] }
 0x659   :  { %2971 = vmatmul.mubr.bf16.vlgmr.msra.gmra.mrb[8].mxu1 %v6533_v15  ;;  %3486 = vmatpush1.bf16.msra.mxu0 %v2411_v35  ;;  %v1333_v35 = vld [vmem:[#allocation3 + $0x3b0] sm:$0xff] }
 0x65a   :  { %3513 = vmatpush1.bf16.msra.mxu1 %v1219_v13  ;;  %3544 = vmatprep.mubr.bf16.mxu1 %v6329_v5  ;;  %v1243_v5 = vld [vmem:[#allocation3 + $0xe0] sm:$0xff] }
 0x65b   :  { %3514 = vmatprep.subr.bf16.mxu1 %v1226_v16  ;;  %v1315_v13 = vld [vmem:[#allocation3 + $0x320] sm:$0xff]  ;;  %v1322_v16 = vld [vmem:[#allocation3 + $0x358] sm:$0xff] }
 0x65c   :  { %3504 = vmatmul.mubr.bf16.vlgmr.msra.gmra.mrb[24].mxu0 %v6533_v15 }
 0x65e   :  { %3515 = vmatpush1.bf16.msra.mxu1 %v1225_v33  ;;  %v1327_v33 = vld [vmem:[#allocation3 + $0x380] sm:$0xff] }
 0x65f   :  { %3516 = vmatprep.subr.bf16.mxu1 %v1232_v4  ;;  %v1334_v4 = vld [vmem:[#allocation3 + $0x3b8] sm:$0xff] }
 0x662   :  { %3517 = vmatpush1.bf16.msra.mxu1 %v1231_v43  ;;  %v1340_v43 = vld [vmem:[#allocation3 + $0x3e8] sm:$0xff] }
 0x663   :  { %3518 = vmatprep.subr.bf16.mxu1 %v1238_v37  ;;  %v1339_v37 = vld [vmem:[#allocation3 + $0x3e0] sm:$0xff] }
 0x666   :  { %3519 = vmatpush1.bf16.msra.mxu1 %v1237_v38  ;;  %v1346_v38 = vld [vmem:[#allocation3 + $0x418] sm:$0xff] }
 0x667   :  { %3520 = vmatprep.subr.bf16.mxu1 %v1244_v40  ;;  %v1352_v40 = vld [vmem:[#allocation3 + $0x448] sm:$0xff] }
 0x66a   :  { %3521 = vmatpush1.bf16.msra.mxu1 %v1243_v5  ;;  %v1358_v5 = vld [vmem:[#allocation3 + $0x478] sm:$0xff] }
 0x66b   :  { %3522 = vmatprep.subr.bf16.mxu1 %v1250_v41  ;;  %v1357_v41 = vld [vmem:[#allocation3 + $0x470] sm:$0xff] }
 0x66e   :  { %3523 = vmatpush1.bf16.msra.mxu1 %v1249_v49  ;;  %v1364_v49 = vld [vmem:[#allocation3 + $0x4a8] sm:$0xff] }
 0x66f   :  { %3524 = vmatprep.subr.bf16.mxu1 %v1256_v44  ;;  %v1363_v44 = vld [vmem:[#allocation3 + $0x4a0] sm:$0xff] }
 0x672   :  { %3525 = vmatpush1.bf16.msra.mxu1 %v1255_v45  ;;  %v1370_v45 = vld [vmem:[#allocation3 + $0x4d8] sm:$0xff] }
 0x673   :  { %3526 = vmatprep.subr.bf16.mxu1 %v1262_v50  ;;  %v1369_v50 = vld [vmem:[#allocation3 + $0x4d0] sm:$0xff] }
 0x676   :  { %3527 = vmatpush1.bf16.msra.mxu1 %v1261_v7  ;;  %v1376_v7 = vld [vmem:[#allocation3 + $0x508] sm:$0xff] }
 0x677   :  { %3528 = vmatprep.subr.bf16.mxu1 %v1268_v48  ;;  %v1375_v48 = vld [vmem:[#allocation3 + $0x500] sm:$0xff] }
 0x67a   :  { %3529 = vmatpush1.bf16.msra.mxu1 %v1267_v52  ;;  %v1382_v52 = vld [vmem:[#allocation3 + $0x538] sm:$0xff] }
 0x67b   :  { %3530 = vmatprep.subr.bf16.mxu1 %v1274_v47  ;;  %v1381_v47 = vld [vmem:[#allocation3 + $0x530] sm:$0xff] }
 0x67e   :  { %3531 = vmatpush1.bf16.msra.mxu1 %v1273_v55  ;;  %v1388_v55 = vld [vmem:[#allocation3 + $0x568] sm:$0xff] }
 0x67f   :  { %3532 = vmatprep.subr.bf16.mxu1 %v1280_v28  ;;  %v1387_v28 = vld [vmem:[#allocation3 + $0x560] sm:$0xff] }
 0x682   :  { %3533 = vmatpush1.bf16.msra.mxu1 %v1279_v2  ;;  %v1394_v2 = vld [vmem:[#allocation3 + $0x598] sm:$0xff] }
 0x683   :  { %3534 = vmatprep.subr.bf16.mxu1 %v1286_v58  ;;  %v1393_v58 = vld [vmem:[#allocation3 + $0x590] sm:$0xff] }
 0x686   :  { %3535 = vmatpush1.bf16.msra.mxu1 %v1285_v61  ;;  %v1400_v61 = vld [vmem:[#allocation3 + $0x5c8] sm:$0xff] }
 0x687   :  { %3536 = vmatprep.subr.bf16.mxu1 %v1292_v10  ;;  %v1399_v10 = vld [vmem:[#allocation3 + $0x5c0] sm:$0xff] }
 0x68a   :  { %3537 = vmatpush1.bf16.msra.mxu1 %v1291_v63  ;;  %v1406_v63 = vld [vmem:[#allocation3 + $0x5f8] sm:$0xff] }
 0x68b   :  { %3538 = vmatprep.subr.bf16.mxu1 %v1298_v3  ;;  %v1405_v3 = vld [vmem:[#allocation3 + $0x5f0] sm:$0xff] }
 0x68e   :  { %3539 = vmatpush1.bf16.msra.mxu1 %v1297_v22  ;;  %v1412_v22 = vld [vmem:[#allocation3 + $0x628] sm:$0xff] }
 0x68f   :  { %3540 = vmatprep.subr.bf16.mxu1 %v1304_v31  ;;  %v1411_v31 = vld [vmem:[#allocation3 + $0x620] sm:$0xff] }
 0x692   :  { %3541 = vmatpush1.bf16.msra.mxu1 %v1303_v8  ;;  %v1418_v8 = vld [vmem:[#allocation3 + $0x658] sm:$0xff] }
 0x693   :  { %3542 = vmatprep.subr.bf16.mxu1 %v1310_v9  ;;  %v1417_v9 = vld [vmem:[#allocation3 + $0x650] sm:$0xff] }
 0x696   :  { %3543 = vmatpush1.bf16.msra.mxu1 %v1309_v11  ;;  %v1424_v11 = vld [vmem:[#allocation3 + $0x688] sm:$0xff] }
 0x697   :  { %3553 = vmatprep.subr.bf16.mxu1 %v1316_v53  ;;  %v1423_v53 = vld [vmem:[#allocation3 + $0x680] sm:$0xff] }
 0x699   :  { %3545 = vmatmul.mubr.bf16.vlgmr.msra.gmra.mrb[12].mxu1 %v6342_v54  ;;  %v1345_v54 = vld [vmem:[#allocation3 + $0x410] sm:$0xff] }
 0x69a   :  { %3554 = vmatpush1.bf16.msra.mxu1 %v1315_v13  ;;  %3585 = vmatprep.mubr.bf16.mxu1 %v6344_v57  ;;  %v1351_v57 = vld [vmem:[#allocation3 + $0x440] sm:$0xff]  ;;  %v1430_v13 = vld [vmem:[#allocation3 + $0x6b8] sm:$0xff] }
 0x69b   :  { %3555 = vmatprep.subr.bf16.mxu1 %v1322_v16  ;;  %v1429_v16 = vld [vmem:[#allocation3 + $0x6b0] sm:$0xff] }
 0x69e   :  { %3556 = vmatpush1.bf16.msra.mxu1 %v1321_v21  ;;  %v1436_v21 = vld [vmem:[#allocation3 + $0x6e8] sm:$0xff] }
 0x69f   :  { %3557 = vmatprep.subr.bf16.mxu1 %v1328_v29  ;;  %v1435_v29 = vld [vmem:[#allocation3 + $0x6e0] sm:$0xff] }
 0x6a2   :  { %3558 = vmatpush1.bf16.msra.mxu1 %v1327_v33  ;;  %v1442_v33 = vld [vmem:[#allocation3 + $0x718] sm:$0xff] }
 0x6a3   :  { %3559 = vmatprep.subr.bf16.mxu1 %v1334_v4  ;;  %v1448_v4 = vld [vmem:[#allocation3 + $0x748] sm:$0xff] }
 0x6a6   :  { %3560 = vmatpush1.bf16.msra.mxu1 %v1333_v35  ;;  %v1454_v35 = vld [vmem:[#allocation3 + $0x778] sm:$0xff] }
 0x6a7   :  { %3561 = vmatprep.subr.bf16.mxu1 %v1340_v43  ;;  %v1453_v43 = vld [vmem:[#allocation3 + $0x770] sm:$0xff] }
 0x6aa   :  { %3562 = vmatpush1.bf16.msra.mxu1 %v1339_v37  ;;  %v1460_v37 = vld [vmem:[#allocation3 + $0x7a8] sm:$0xff] }
 0x6ab   :  { %3563 = vmatprep.subr.bf16.mxu1 %v1346_v38  ;;  %v1459_v38 = vld [vmem:[#allocation3 + $0x7a0] sm:$0xff] }
 0x6ae   :  { %3564 = vmatpush1.bf16.msra.mxu1 %v1345_v54  ;;  %v1466_v54 = vld [vmem:[#allocation3 + $0x7d8] sm:$0xff] }
 0x6af   :  { %3565 = vmatprep.subr.bf16.mxu1 %v1352_v40  ;;  %v1465_v40 = vld [vmem:[#allocation3 + $0x7d0] sm:$0xff] }
 0x6b2   :  { %3566 = vmatpush1.bf16.msra.mxu1 %v1351_v57  ;;  %v1472_v57 = vld [vmem:[#allocation3 + $0x808] sm:$0xff] }
 0x6b3   :  { %3567 = vmatprep.subr.bf16.mxu1 %v1358_v5  ;;  %v1471_v5 = vld [vmem:[#allocation3 + $0x800] sm:$0xff] }
 0x6b6   :  { %3568 = vmatpush1.bf16.msra.mxu1 %v1357_v41  ;;  %v1478_v41 = vld [vmem:[#allocation3 + $0x838] sm:$0xff] }
 0x6b7   :  { %3569 = vmatprep.subr.bf16.mxu1 %v1364_v49  ;;  %v1477_v49 = vld [vmem:[#allocation3 + $0x830] sm:$0xff] }
 0x6ba   :  { %3570 = vmatpush1.bf16.msra.mxu1 %v1363_v44  ;;  %v1484_v44 = vld [vmem:[#allocation3 + $0x868] sm:$0xff] }
 0x6bb   :  { %3571 = vmatprep.subr.bf16.mxu1 %v1370_v45  ;;  %v1483_v45 = vld [vmem:[#allocation3 + $0x860] sm:$0xff] }
 0x6be   :  { %3572 = vmatpush1.bf16.msra.mxu1 %v1369_v50  ;;  %v1490_v50 = vld [vmem:[#allocation3 + $0x898] sm:$0xff] }
 0x6bf   :  { %3573 = vmatprep.subr.bf16.mxu1 %v1376_v7  ;;  %v1489_v7 = vld [vmem:[#allocation3 + $0x890] sm:$0xff] }
 0x6c2   :  { %3574 = vmatpush1.bf16.msra.mxu1 %v1375_v48  ;;  %v1496_v48 = vld [vmem:[#allocation3 + $0x8c8] sm:$0xff] }
 0x6c3   :  { %3575 = vmatprep.subr.bf16.mxu1 %v1382_v52  ;;  %v1495_v52 = vld [vmem:[#allocation3 + $0x8c0] sm:$0xff] }
 0x6c6   :  { %3576 = vmatpush1.bf16.msra.mxu1 %v1381_v47  ;;  %v1502_v47 = vld [vmem:[#allocation3 + $0x8f8] sm:$0xff] }
 0x6c7   :  { %3577 = vmatprep.subr.bf16.mxu1 %v1388_v55  ;;  %v1501_v55 = vld [vmem:[#allocation3 + $0x8f0] sm:$0xff] }
 0x6ca   :  { %3578 = vmatpush1.bf16.msra.mxu1 %v1387_v28  ;;  %v1508_v28 = vld [vmem:[#allocation3 + $0x928] sm:$0xff] }
 0x6cb   :  { %3579 = vmatprep.subr.bf16.mxu1 %v1394_v2  ;;  %v1507_v2 = vld [vmem:[#allocation3 + $0x920] sm:$0xff] }
 0x6ce   :  { %3580 = vmatpush1.bf16.msra.mxu1 %v1393_v58  ;;  %v1514_v58 = vld [vmem:[#allocation3 + $0x958] sm:$0xff] }
 0x6cf   :  { %3581 = vmatprep.subr.bf16.mxu1 %v1400_v61  ;;  %v1513_v61 = vld [vmem:[#allocation3 + $0x950] sm:$0xff] }
 0x6d2   :  { %3582 = vmatpush1.bf16.msra.mxu1 %v1399_v10  ;;  %v1520_v10 = vld [vmem:[#allocation3 + $0x988] sm:$0xff] }
 0x6d3   :  { %3583 = vmatprep.subr.bf16.mxu1 %v1406_v63  ;;  %v1519_v63 = vld [vmem:[#allocation3 + $0x980] sm:$0xff] }
 0x6d6   :  { %3584 = vmatpush1.bf16.msra.mxu1 %v1405_v3  ;;  %v1526_v3 = vld [vmem:[#allocation3 + $0x9b8] sm:$0xff] }
 0x6d7   :  { %3594 = vmatprep.subr.bf16.mxu1 %v1412_v22  ;;  %v1525_v22 = vld [vmem:[#allocation3 + $0x9b0] sm:$0xff] }
 0x6d9   :  { %3586 = vmatmul.mubr.bf16.vlgmr.msra.gmra.mrb[12].mxu1 %v6360_v19  ;;  %v1441_v19 = vld [vmem:[#allocation3 + $0x710] sm:$0xff] }
 0x6da   :  { %3595 = vmatpush1.bf16.msra.mxu1 %v1411_v31  ;;  %3626 = vmatprep.mubr.bf16.mxu1 %v6362_v23  ;;  %v1447_v23 = vld [vmem:[#allocation3 + $0x740] sm:$0xff]  ;;  %v1532_v31 = vld [vmem:[#allocation3 + $0x9e8] sm:$0xff] }
 0x6db   :  { %3596 = vmatprep.subr.bf16.mxu1 %v1418_v8  ;;  %v2418_v8 = vsub.s32 0, %v6286_v6 }
 0x6de   :  { %3597 = vmatpush1.bf16.msra.mxu1 %v1417_v9  ;;  %v2422_v9 = vsub.s32 1, %v6286_v6 }
 0x6df   :  { %3598 = vmatprep.subr.bf16.mxu1 %v1424_v11  ;;  %v1538_v11 = vld [vmem:[#allocation3 + $0xa18] sm:$0xff] }
 0x6e2   :  { %3599 = vmatpush1.bf16.msra.mxu1 %v1423_v53  ;;  %v2423_v53 = vrot.slane %v5936_v0, %v2422_v9 }
 0x6e3   :  { %3600 = vmatprep.subr.bf16.mxu1 %v1430_v13  ;;  %v1537_v13 = vld [vmem:[#allocation3 + $0xa10] sm:$0xff] }
 0x6e6   :  { %3601 = vmatpush1.bf16.msra.mxu1 %v1429_v16 }
 0x6e7   :  { %3602 = vmatprep.subr.bf16.mxu1 %v1436_v21  ;;  %v1544_v21 = vld [vmem:[#allocation3 + $0xa48] sm:$0xff] }
 0x6ea   :  { %3603 = vmatpush1.bf16.msra.mxu1 %v1435_v29 }
 0x6eb   :  { %3604 = vmatprep.subr.bf16.mxu1 %v1442_v33 }
 0x6ee   :  { %3605 = vmatpush1.bf16.msra.mxu1 %v1441_v19 }
 0x6ef   :  { %3606 = vmatprep.subr.bf16.mxu1 %v1448_v4 }
 0x6f2   :  { %3607 = vmatpush1.bf16.msra.mxu1 %v1447_v23 }
 0x6f3   :  { %3608 = vmatprep.subr.bf16.mxu1 %v1454_v35 }
 0x6f6   :  { %3609 = vmatpush1.bf16.msra.mxu1 %v1453_v43  ;;  %v1543_v43 = vld [vmem:[#allocation3 + $0xa40] sm:$0xff] }
 0x6f7   :  { %3610 = vmatprep.subr.bf16.mxu1 %v1460_v37  ;;  %v2426_v37 = vsub.s32 2, %v6286_v6 }
 0x6fa   :  { %3611 = vmatpush1.bf16.msra.mxu1 %v1459_v38 }
 0x6fb   :  { %3612 = vmatprep.subr.bf16.mxu1 %v1466_v54  ;;  %v1550_v54 = vld [vmem:[#allocation3 + $0xa78] sm:$0xff] }
 0x6fe   :  { %3613 = vmatpush1.bf16.msra.mxu1 %v1465_v40  ;;  %v2430_v40 = vsub.s32 3, %v6286_v6 }
 0x6ff   :  { %3614 = vmatprep.subr.bf16.mxu1 %v1472_v57  ;;  %v1549_v57 = vld [vmem:[#allocation3 + $0xa70] sm:$0xff] }
 0x702   :  { %3615 = vmatpush1.bf16.msra.mxu1 %v1471_v5  ;;  %v2427_v5 = vrot.slane %v5936_v0, %v2426_v37 }
 0x703   :  { %3616 = vmatprep.subr.bf16.mxu1 %v1478_v41  ;;  %v1556_v41 = vld [vmem:[#allocation3 + $0xaa8] sm:$0xff] }
 0x706   :  { %3617 = vmatpush1.bf16.msra.mxu1 %v1477_v49  ;;  %v2431_v49 = vrot.slane %v5936_v0, %v2430_v40 }
 0x707   :  { %3618 = vmatprep.subr.bf16.mxu1 %v1484_v44 }
 0x70a   :  { %3619 = vmatpush1.bf16.msra.mxu1 %v1483_v45  ;;  %v1555_v45 = vld [vmem:[#allocation3 + $0xaa0] sm:$0xff] }
 0x70b   :  { %3620 = vmatprep.subr.bf16.mxu1 %v1490_v50 }
 0x70e   :  { %3621 = vmatpush1.bf16.msra.mxu1 %v1489_v7 }
 0x70f   :  { %3622 = vmatprep.subr.bf16.mxu1 %v1496_v48  ;;  %v1562_v48 = vld [vmem:[#allocation3 + $0xad8] sm:$0xff] }
 0x712   :  { %3623 = vmatpush1.bf16.msra.mxu1 %v1495_v52 }
 0x713   :  { %3624 = vmatprep.subr.bf16.mxu1 %v1502_v47 }
 0x716   :  { %3625 = vmatpush1.bf16.msra.mxu1 %v1501_v55 }
 0x717   :  { %3635 = vmatprep.subr.bf16.mxu1 %v1508_v28 }
 0x719   :  { %3627 = vmatmul.mubr.bf16.vlgmr.msra.gmra.mrb[12].mxu1 %v6377_v18  ;;  %v1531_v18 = vld [vmem:[#allocation3 + $0x9e0] sm:$0xff] }
 0x71a   :  { %3636 = vmatpush1.bf16.msra.mxu1 %v1507_v2  ;;  %3667 = vmatprep.mubr.bf16.mxu1 %v6379_v26  ;;  %v2419_v26 = vrot.slane %v5936_v0, %v2418_v8 }
 0x71b   :  { %3637 = vmatprep.subr.bf16.mxu1 %v1514_v58  ;;  %v1561_v58 = vld [vmem:[#allocation3 + $0xad0] sm:$0xff] }
 0x71e   :  { %3638 = vmatpush1.bf16.msra.mxu1 %v1513_v61  ;;  %v1568_v61 = vld [vmem:[#allocation3 + $0xb08] sm:$0xff] }
 0x71f   :  { %3639 = vmatprep.subr.bf16.mxu1 %v1520_v10  ;;  %v1567_v10 = vld [vmem:[#allocation3 + $0xb00] sm:$0xff] }
 0x722   :  { %3640 = vmatpush1.bf16.msra.mxu1 %v1519_v63  ;;  %v1574_v63 = vld [vmem:[#allocation3 + $0xb38] sm:$0xff] }
 0x723   :  { %3641 = vmatprep.subr.bf16.mxu1 %v1526_v3  ;;  %v1573_v3 = vld [vmem:[#allocation3 + $0xb30] sm:$0xff] }
 0x726   :  { %3642 = vmatpush1.bf16.msra.mxu1 %v1525_v22  ;;  %v1580_v22 = vld [vmem:[#allocation3 + $0xb68] sm:$0xff] }
 0x727   :  { %3643 = vmatprep.subr.bf16.mxu1 %v1532_v31  ;;  %v1579_v31 = vld [vmem:[#allocation3 + $0xb60] sm:$0xff] }
 0x72a   :  { %3644 = vmatpush1.bf16.msra.mxu1 %v1531_v18  ;;  %v1586_v18 = vld [vmem:[#allocation3 + $0xb98] sm:$0xff] }
 0x72b   :  { %3645 = vmatprep.subr.bf16.mxu1 %v1538_v11  ;;  %v1585_v11 = vld [vmem:[#allocation3 + $0xb90] sm:$0xff] }
 0x72c   :  { %v2972_v16 = vpop.f32.mrb[8].mxu1 }
 0x72d   :  { %v6552_v29 = vadd.f32 %v2972_v16, %v2419_v26  ;;  %v2974_v33 = vpop.f32.mrb[9].mxu1  ;;  %v1592_v26 = vld [vmem:[#allocation3 + $0xbc8] sm:$0xff]  ;;  %v1597_v16 = vld [vmem:[#allocation3 + $0xbf0] sm:$0xff] }
 0x72e   :  { %v6554_v19 = vadd.f32 %v2974_v33, %v2423_v53  ;;  %v2976_v4 = vpop.f32.mrb[10].mxu1  ;;  %3646 = vmatpush1.bf16.msra.mxu1 %v1537_v13  ;;  %v1591_v53 = vld [vmem:[#allocation3 + $0xbc0] sm:$0xff]  ;;  %v1598_v13 = vld [vmem:[#allocation3 + $0xbf8] sm:$0xff] }
 0x72f   :  { %v4045_v23 = vmax.f32 %v6552_v29, 0.0  ;;  %v2977_v35 = vpop.f32.mrb[11].mxu1  ;;  %3647 = vmatprep.subr.bf16.mxu1 %v1544_v21  ;;  %v3505_v44 = vpop.f32.mrb[24].mxu0  ;;  %v1604_v21 = vld [vmem:[#allocation3 + $0xc28] sm:$0xff]  ;;  %v1603_v33 = vld [vmem:[#allocation3 + $0xc20] sm:$0xff]  ;;  %v1610_v4 = vld [vmem:[#allocation3 + $0xc58] sm:$0xff] }
 0x730   :  { %v4046_v38 = vmax.f32 %v6554_v19, 0.0  ;;  %v6566_v50 = vadd.f32 %v3505_v44, %v2427_v5  ;;  %v3507_v7 = vpop.f32.mrb[25].mxu0  ;;  %v1609_v35 = vld [vmem:[#allocation3 + $0xc50] sm:$0xff]  ;;  %v1634_v44 = vld [vmem:[#allocation3 + $0xd18] sm:$0xff] }
 0x731   :  { %v6568_v52 = vadd.f32 %v3507_v7, %v2431_v49  ;;  %v3509_v47 = vpop.f32.mrb[26].mxu0  ;;  %v1621_v5 = vld [vmem:[#allocation3 + $0xcb0] sm:$0xff]  ;;  %v1627_v49 = vld [vmem:[#allocation3 + $0xce0] sm:$0xff]  ;;  %v1646_v7 = vld [vmem:[#allocation3 + $0xd78] sm:$0xff] }
 0x732   :  { %3648 = vmatpush1.bf16.msra.mxu1 %v1543_v43  ;;  %v4047_v55 = vmax.f32 %v6566_v50, 0.0  ;;  %v3510_v28 = vpop.f32.mrb[27].mxu0  ;;  %v1616_v43 = vld [vmem:[#allocation3 + $0xc88] sm:$0xff] }
 0x733   :  { %3649 = vmatprep.subr.bf16.mxu1 %v1550_v54  ;;  %v4048_v2 = vmax.f32 %v6568_v52, 0.0  ;;  %v1615_v54 = vld [vmem:[#allocation3 + $0xc80] sm:$0xff]  ;;  %v1652_v47 = vld [vmem:[#allocation3 + $0xda8] sm:$0xff] }
 0x734   :  { %v1651_v28 = vld [vmem:[#allocation3 + $0xda0] sm:$0xff] }
 0x736   :  { %3650 = vmatpush1.bf16.msra.mxu1 %v1549_v57  ;;  %v1622_v57 = vld [vmem:[#allocation3 + $0xcb8] sm:$0xff] }
 0x737   :  { %3651 = vmatprep.subr.bf16.mxu1 %v1556_v41  ;;  %v1628_v41 = vld [vmem:[#allocation3 + $0xce8] sm:$0xff] }
 0x73a   :  { %3652 = vmatpush1.bf16.msra.mxu1 %v1555_v45  ;;  %v1640_v45 = vld [vmem:[#allocation3 + $0xd48] sm:$0xff] }
 0x73b   :  { %3653 = vmatprep.subr.bf16.mxu1 %v1562_v48  ;;  %v1645_v48 = vld [vmem:[#allocation3 + $0xd70] sm:$0xff] }
 0x73e   :  { %3654 = vmatpush1.bf16.msra.mxu1 %v1561_v58  ;;  %v1658_v58 = vld [vmem:[#allocation3 + $0xdd8] sm:$0xff] }
 0x73f   :  { %3655 = vmatprep.subr.bf16.mxu1 %v1568_v61  ;;  %v1657_v61 = vld [vmem:[#allocation3 + $0xdd0] sm:$0xff] }
 0x742   :  { %3656 = vmatpush1.bf16.msra.mxu1 %v1567_v10  ;;  %v1664_v10 = vld [vmem:[#allocation3 + $0xe08] sm:$0xff] }
 0x743   :  { %3657 = vmatprep.subr.bf16.mxu1 %v1574_v63  ;;  %v1663_v63 = vld [vmem:[#allocation3 + $0xe00] sm:$0xff] }
 0x746   :  { %3658 = vmatpush1.bf16.msra.mxu1 %v1573_v3  ;;  %v1670_v3 = vld [vmem:[#allocation3 + $0xe38] sm:$0xff] }
 0x747   :  { %3659 = vmatprep.subr.bf16.mxu1 %v1580_v22  ;;  %v1669_v22 = vld [vmem:[#allocation3 + $0xe30] sm:$0xff] }
 0x74a   :  { %3660 = vmatpush1.bf16.msra.mxu1 %v1579_v31  ;;  %v1676_v31 = vld [vmem:[#allocation3 + $0xe68] sm:$0xff] }
 0x74b   :  { %3661 = vmatprep.subr.bf16.mxu1 %v1586_v18  ;;  %v1675_v18 = vld [vmem:[#allocation3 + $0xe60] sm:$0xff] }
 0x74e   :  { %3662 = vmatpush1.bf16.msra.mxu1 %v1585_v11  ;;  %v1682_v11 = vld [vmem:[#allocation3 + $0xe98] sm:$0xff] }
 0x74f   :  { %3663 = vmatprep.subr.bf16.mxu1 %v1592_v26  ;;  %v1681_v26 = vld [vmem:[#allocation3 + $0xe90] sm:$0xff] }
 0x752   :  { %3664 = vmatpush1.bf16.msra.mxu1 %v1591_v53  ;;  %v1688_v53 = vld [vmem:[#allocation3 + $0xec8] sm:$0xff] }
 0x753   :  { %3665 = vmatprep.subr.bf16.mxu1 %v1598_v13  ;;  %v1687_v13 = vld [vmem:[#allocation3 + $0xec0] sm:$0xff] }
 0x756   :  { %3666 = vmatpush1.bf16.msra.mxu1 %v1597_v16  ;;  %v1694_v16 = vld [vmem:[#allocation3 + $0xef8] sm:$0xff] }
 0x757   :  { %3676 = vmatprep.subr.bf16.mxu1 %v1604_v21  ;;  %v1693_v21 = vld [vmem:[#allocation3 + $0xef0] sm:$0xff] }
 0x759   :  { %3668 = vmatmul.mubr.bf16.vlgmr.msra.gmra.mrb[12].mxu1 %v6395_v39  ;;  %v1633_v39 = vld [vmem:[#allocation3 + $0xd10] sm:$0xff] }
 0x75a   :  { %3677 = vmatpush1.bf16.msra.mxu1 %v1603_v33  ;;  %3708 = vmatprep.mubr.bf16.mxu1 %v6397_v42  ;;  %v1639_v42 = vld [vmem:[#allocation3 + $0xd40] sm:$0xff]  ;;  %v1700_v33 = vld [vmem:[#allocation3 + $0xf28] sm:$0xff] }
 0x75b   :  { %3678 = vmatprep.subr.bf16.mxu1 %v1610_v4  ;;  %v1699_v4 = vld [vmem:[#allocation3 + $0xf20] sm:$0xff] }
 0x75e   :  { %3679 = vmatpush1.bf16.msra.mxu1 %v1609_v35  ;;  %v1706_v35 = vld [vmem:[#allocation3 + $0xf58] sm:$0xff] }
 0x75f   :  { %3680 = vmatprep.subr.bf16.mxu1 %v1616_v43  ;;  %v1705_v43 = vld [vmem:[#allocation3 + $0xf50] sm:$0xff] }
 0x762   :  { %3681 = vmatpush1.bf16.msra.mxu1 %v1615_v54  ;;  %v1712_v54 = vld [vmem:[#allocation3 + $0xf88] sm:$0xff] }
 0x763   :  { %3682 = vmatprep.subr.bf16.mxu1 %v1622_v57  ;;  %v1711_v57 = vld [vmem:[#allocation3 + $0xf80] sm:$0xff] }
 0x766   :  { %3683 = vmatpush1.bf16.msra.mxu1 %v1621_v5  ;;  %v1718_v5 = vld [vmem:[#allocation3 + $0xfb8] sm:$0xff] }
 0x767   :  { %3684 = vmatprep.subr.bf16.mxu1 %v1628_v41  ;;  %v1717_v41 = vld [vmem:[#allocation3 + $0xfb0] sm:$0xff] }
 0x76a   :  { %3685 = vmatpush1.bf16.msra.mxu1 %v1627_v49  ;;  %v1724_v49 = vld [vmem:[#allocation3 + $0xfe8] sm:$0xff] }
 0x76b   :  { %3686 = vmatprep.subr.bf16.mxu1 %v1634_v44  ;;  %v1723_v44 = vld [vmem:[#allocation3 + $0xfe0] sm:$0xff] }
 0x76e   :  { %3687 = vmatpush1.bf16.msra.mxu1 %v1633_v39  ;;  %v1730_v39 = vld [vmem:[#allocation3 + $0x1018] sm:$0xff] }
 0x76f   :  { %3688 = vmatprep.subr.bf16.mxu1 %v1640_v45  ;;  %v1736_v45 = vld [vmem:[#allocation3 + $0x1048] sm:$0xff] }
 0x772   :  { %3689 = vmatpush1.bf16.msra.mxu1 %v1639_v42  ;;  %v1742_v42 = vld [vmem:[#allocation3 + $0x1078] sm:$0xff] }
 0x773   :  { %3690 = vmatprep.subr.bf16.mxu1 %v1646_v7  ;;  %v1741_v7 = vld [vmem:[#allocation3 + $0x1070] sm:$0xff] }
 0x776   :  { %3691 = vmatpush1.bf16.msra.mxu1 %v1645_v48  ;;  %v1748_v48 = vld [vmem:[#allocation3 + $0x10a8] sm:$0xff] }
 0x777   :  { %3692 = vmatprep.subr.bf16.mxu1 %v1652_v47  ;;  %v1747_v47 = vld [vmem:[#allocation3 + $0x10a0] sm:$0xff] }
 0x77a   :  { %3693 = vmatpush1.bf16.msra.mxu1 %v1651_v28  ;;  %v1754_v28 = vld [vmem:[#allocation3 + $0x10d8] sm:$0xff] }
 0x77b   :  { %3694 = vmatprep.subr.bf16.mxu1 %v1658_v58  ;;  %v1753_v58 = vld [vmem:[#allocation3 + $0x10d0] sm:$0xff] }
 0x77e   :  { %3695 = vmatpush1.bf16.msra.mxu1 %v1657_v61  ;;  %v1760_v61 = vld [vmem:[#allocation3 + $0x1108] sm:$0xff] }
 0x77f   :  { %3696 = vmatprep.subr.bf16.mxu1 %v1664_v10  ;;  %v1759_v10 = vld [vmem:[#allocation3 + $0x1100] sm:$0xff] }
 0x782   :  { %3697 = vmatpush1.bf16.msra.mxu1 %v1663_v63  ;;  %v1766_v63 = vld [vmem:[#allocation3 + $0x1138] sm:$0xff] }
 0x783   :  { %3698 = vmatprep.subr.bf16.mxu1 %v1670_v3  ;;  %v1765_v3 = vld [vmem:[#allocation3 + $0x1130] sm:$0xff] }
 0x786   :  { %3699 = vmatpush1.bf16.msra.mxu1 %v1669_v22  ;;  %v1772_v22 = vld [vmem:[#allocation3 + $0x1168] sm:$0xff] }
 0x787   :  { %3700 = vmatprep.subr.bf16.mxu1 %v1676_v31  ;;  %v1771_v31 = vld [vmem:[#allocation3 + $0x1160] sm:$0xff] }
 0x78a   :  { %3701 = vmatpush1.bf16.msra.mxu1 %v1675_v18  ;;  %v1778_v18 = vld [vmem:[#allocation3 + $0x1198] sm:$0xff] }
 0x78b   :  { %3702 = vmatprep.subr.bf16.mxu1 %v1682_v11  ;;  %v1777_v11 = vld [vmem:[#allocation3 + $0x1190] sm:$0xff] }
 0x78e   :  { %3703 = vmatpush1.bf16.msra.mxu1 %v1681_v26  ;;  %v1784_v26 = vld [vmem:[#allocation3 + $0x11c8] sm:$0xff] }
 0x78f   :  { %3704 = vmatprep.subr.bf16.mxu1 %v1688_v53  ;;  %v1783_v53 = vld [vmem:[#allocation3 + $0x11c0] sm:$0xff] }
 0x792   :  { %3705 = vmatpush1.bf16.msra.mxu1 %v1687_v13  ;;  %v1790_v13 = vld [vmem:[#allocation3 + $0x11f8] sm:$0xff] }
 0x793   :  { %3706 = vmatprep.subr.bf16.mxu1 %v1694_v16  ;;  %v1789_v16 = vld [vmem:[#allocation3 + $0x11f0] sm:$0xff] }
 0x796   :  { %3707 = vmatpush1.bf16.msra.mxu1 %v1693_v21  ;;  %v1796_v21 = vld [vmem:[#allocation3 + $0x1228] sm:$0xff] }
 0x797   :  { %3717 = vmatprep.subr.bf16.mxu1 %v1700_v33  ;;  %v1795_v33 = vld [vmem:[#allocation3 + $0x1220] sm:$0xff] }
 0x799   :  { %3709 = vmatmul.mubr.bf16.vlgmr.msra.gmra.mrb[12].mxu1 %v6412_v62  ;;  %v1729_v62 = vld [vmem:[#allocation3 + $0x1010] sm:$0xff] }
 0x79a   :  { %3718 = vmatpush1.bf16.msra.mxu1 %v1699_v4  ;;  %3749 = vmatprep.mubr.bf16.mxu1 %v6414_v17  ;;  %v1735_v17 = vld [vmem:[#allocation3 + $0x1040] sm:$0xff]  ;;  %v1802_v4 = vld [vmem:[#allocation3 + $0x1258] sm:$0xff] }
 0x79b   :  { %3719 = vmatprep.subr.bf16.mxu1 %v1706_v35  ;;  %v1801_v35 = vld [vmem:[#allocation3 + $0x1250] sm:$0xff] }
 0x79e   :  { %3720 = vmatpush1.bf16.msra.mxu1 %v1705_v43  ;;  %v1808_v43 = vld [vmem:[#allocation3 + $0x1288] sm:$0xff] }
 0x79f   :  { %3721 = vmatprep.subr.bf16.mxu1 %v1712_v54  ;;  %v1807_v54 = vld [vmem:[#allocation3 + $0x1280] sm:$0xff] }
 0x7a2   :  { %3722 = vmatpush1.bf16.msra.mxu1 %v1711_v57  ;;  %v1814_v57 = vld [vmem:[#allocation3 + $0x12b8] sm:$0xff] }
 0x7a3   :  { %3723 = vmatprep.subr.bf16.mxu1 %v1718_v5  ;;  %v1813_v5 = vld [vmem:[#allocation3 + $0x12b0] sm:$0xff] }
 0x7a6   :  { %3724 = vmatpush1.bf16.msra.mxu1 %v1717_v41  ;;  %v1820_v41 = vld [vmem:[#allocation3 + $0x12e8] sm:$0xff] }
 0x7a7   :  { %3725 = vmatprep.subr.bf16.mxu1 %v1724_v49  ;;  %v1819_v49 = vld [vmem:[#allocation3 + $0x12e0] sm:$0xff] }
 0x7aa   :  { %3726 = vmatpush1.bf16.msra.mxu1 %v1723_v44  ;;  %v1826_v44 = vld [vmem:[#allocation3 + $0x1318] sm:$0xff] }
 0x7ab   :  { %3727 = vmatprep.subr.bf16.mxu1 %v1730_v39  ;;  %v1832_v39 = vld [vmem:[#allocation3 + $0x1348] sm:$0xff] }
 0x7ae   :  { %3728 = vmatpush1.bf16.msra.mxu1 %v1729_v62  ;;  %v1838_v62 = vld [vmem:[#allocation3 + $0x1378] sm:$0xff] }
 0x7af   :  { %3729 = vmatprep.subr.bf16.mxu1 %v1736_v45  ;;  %v1837_v45 = vld [vmem:[#allocation3 + $0x1370] sm:$0xff] }
 0x7b2   :  { %3730 = vmatpush1.bf16.msra.mxu1 %v1735_v17  ;;  %v1844_v17 = vld [vmem:[#allocation3 + $0x13a8] sm:$0xff] }
 0x7b3   :  { %3731 = vmatprep.subr.bf16.mxu1 %v1742_v42  ;;  %v1843_v42 = vld [vmem:[#allocation3 + $0x13a0] sm:$0xff] }
 0x7b6   :  { %3732 = vmatpush1.bf16.msra.mxu1 %v1741_v7  ;;  %v1850_v7 = vld [vmem:[#allocation3 + $0x13d8] sm:$0xff] }
 0x7b7   :  { %3733 = vmatprep.subr.bf16.mxu1 %v1748_v48  ;;  %v1849_v48 = vld [vmem:[#allocation3 + $0x13d0] sm:$0xff] }
 0x7ba   :  { %3734 = vmatpush1.bf16.msra.mxu1 %v1747_v47  ;;  %v1856_v47 = vld [vmem:[#allocation3 + $0x1408] sm:$0xff] }
 0x7bb   :  { %3735 = vmatprep.subr.bf16.mxu1 %v1754_v28  ;;  %v1855_v28 = vld [vmem:[#allocation3 + $0x1400] sm:$0xff] }
 0x7be   :  { %3736 = vmatpush1.bf16.msra.mxu1 %v1753_v58  ;;  %v1862_v58 = vld [vmem:[#allocation3 + $0x1438] sm:$0xff] }
 0x7bf   :  { %3737 = vmatprep.subr.bf16.mxu1 %v1760_v61  ;;  %v1861_v61 = vld [vmem:[#allocation3 + $0x1430] sm:$0xff] }
 0x7c2   :  { %3738 = vmatpush1.bf16.msra.mxu1 %v1759_v10  ;;  %v1868_v10 = vld [vmem:[#allocation3 + $0x1468] sm:$0xff] }
 0x7c3   :  { %3739 = vmatprep.subr.bf16.mxu1 %v1766_v63  ;;  %v1867_v63 = vld [vmem:[#allocation3 + $0x1460] sm:$0xff] }
 0x7c6   :  { %3740 = vmatpush1.bf16.msra.mxu1 %v1765_v3  ;;  %v1874_v3 = vld [vmem:[#allocation3 + $0x1498] sm:$0xff] }
 0x7c7   :  { %3741 = vmatprep.subr.bf16.mxu1 %v1772_v22  ;;  %v1873_v22 = vld [vmem:[#allocation3 + $0x1490] sm:$0xff] }
 0x7ca   :  { %3742 = vmatpush1.bf16.msra.mxu1 %v1771_v31  ;;  %v1880_v31 = vld [vmem:[#allocation3 + $0x14c8] sm:$0xff] }
 0x7cb   :  { %3743 = vmatprep.subr.bf16.mxu1 %v1778_v18  ;;  %v1879_v18 = vld [vmem:[#allocation3 + $0x14c0] sm:$0xff] }
 0x7ce   :  { %3744 = vmatpush1.bf16.msra.mxu1 %v1777_v11  ;;  %v1886_v11 = vld [vmem:[#allocation3 + $0x14f8] sm:$0xff] }
 0x7cf   :  { %3745 = vmatprep.subr.bf16.mxu1 %v1784_v26  ;;  %v1885_v26 = vld [vmem:[#allocation3 + $0x14f0] sm:$0xff] }
 0x7d2   :  { %3746 = vmatpush1.bf16.msra.mxu1 %v1783_v53  ;;  %v1892_v53 = vld [vmem:[#allocation3 + $0x1528] sm:$0xff] }
 0x7d3   :  { %3747 = vmatprep.subr.bf16.mxu1 %v1790_v13  ;;  %v1891_v13 = vld [vmem:[#allocation3 + $0x1520] sm:$0xff] }
 0x7d6   :  { %3748 = vmatpush1.bf16.msra.mxu1 %v1789_v16  ;;  %v1898_v16 = vld [vmem:[#allocation3 + $0x1558] sm:$0xff] }
 0x7d7   :  { %3758 = vmatprep.subr.bf16.mxu1 %v1796_v21  ;;  %v1897_v21 = vld [vmem:[#allocation3 + $0x1550] sm:$0xff] }
 0x7d9   :  { %3750 = vmatmul.mubr.bf16.vlgmr.msra.gmra.mrb[12].mxu1 %v6430_v25  ;;  %v1825_v25 = vld [vmem:[#allocation3 + $0x1310] sm:$0xff] }
 0x7da   :  { %3759 = vmatpush1.bf16.msra.mxu1 %v1795_v33  ;;  %3790 = vmatprep.mubr.bf16.mxu1 %v6432_v30  ;;  %v1831_v30 = vld [vmem:[#allocation3 + $0x1340] sm:$0xff]  ;;  %v1904_v33 = vld [vmem:[#allocation3 + $0x1588] sm:$0xff] }
 0x7db   :  { %3760 = vmatprep.subr.bf16.mxu1 %v1802_v4  ;;  %v1903_v4 = vld [vmem:[#allocation3 + $0x1580] sm:$0xff] }
 0x7de   :  { %3761 = vmatpush1.bf16.msra.mxu1 %v1801_v35  ;;  %v1910_v35 = vld [vmem:[#allocation3 + $0x15b8] sm:$0xff] }
 0x7df   :  { %3762 = vmatprep.subr.bf16.mxu1 %v1808_v43  ;;  %v1909_v43 = vld [vmem:[#allocation3 + $0x15b0] sm:$0xff] }
 0x7e2   :  { %3763 = vmatpush1.bf16.msra.mxu1 %v1807_v54  ;;  %v1916_v54 = vld [vmem:[#allocation3 + $0x15e8] sm:$0xff] }
 0x7e3   :  { %3764 = vmatprep.subr.bf16.mxu1 %v1814_v57  ;;  %v1915_v57 = vld [vmem:[#allocation3 + $0x15e0] sm:$0xff] }
 0x7e6   :  { %3765 = vmatpush1.bf16.msra.mxu1 %v1813_v5  ;;  %v1922_v5 = vld [vmem:[#allocation3 + $0x1618] sm:$0xff] }
 0x7e7   :  { %3766 = vmatprep.subr.bf16.mxu1 %v1820_v41  ;;  %v1928_v41 = vld [vmem:[#allocation3 + $0x1648] sm:$0xff] }
 0x7ea   :  { %3767 = vmatpush1.bf16.msra.mxu1 %v1819_v49  ;;  %v1934_v49 = vld [vmem:[#allocation3 + $0x1678] sm:$0xff] }
 0x7eb   :  { %3768 = vmatprep.subr.bf16.mxu1 %v1826_v44  ;;  %v1933_v44 = vld [vmem:[#allocation3 + $0x1670] sm:$0xff] }
 0x7ee   :  { %3769 = vmatpush1.bf16.msra.mxu1 %v1825_v25  ;;  %v1940_v25 = vld [vmem:[#allocation3 + $0x16a8] sm:$0xff] }
 0x7ef   :  { %3770 = vmatprep.subr.bf16.mxu1 %v1832_v39  ;;  %v1939_v39 = vld [vmem:[#allocation3 + $0x16a0] sm:$0xff] }
 0x7f2   :  { %3771 = vmatpush1.bf16.msra.mxu1 %v1831_v30  ;;  %v1946_v30 = vld [vmem:[#allocation3 + $0x16d8] sm:$0xff] }
 0x7f3   :  { %3772 = vmatprep.subr.bf16.mxu1 %v1838_v62  ;;  %v1945_v62 = vld [vmem:[#allocation3 + $0x16d0] sm:$0xff] }
 0x7f6   :  { %3773 = vmatpush1.bf16.msra.mxu1 %v1837_v45  ;;  %v1952_v45 = vld [vmem:[#allocation3 + $0x1708] sm:$0xff] }
 0x7f7   :  { %3774 = vmatprep.subr.bf16.mxu1 %v1844_v17  ;;  %v1951_v17 = vld [vmem:[#allocation3 + $0x1700] sm:$0xff] }
 0x7fa   :  { %3775 = vmatpush1.bf16.msra.mxu1 %v1843_v42  ;;  %v1958_v42 = vld [vmem:[#allocation3 + $0x1738] sm:$0xff] }
 0x7fb   :  { %3776 = vmatprep.subr.bf16.mxu1 %v1850_v7  ;;  %v1957_v7 = vld [vmem:[#allocation3 + $0x1730] sm:$0xff] }
 0x7fe   :  { %3777 = vmatpush1.bf16.msra.mxu1 %v1849_v48  ;;  %v1964_v48 = vld [vmem:[#allocation3 + $0x1768] sm:$0xff] }
 0x7ff   :  { %3778 = vmatprep.subr.bf16.mxu1 %v1856_v47  ;;  %v1963_v47 = vld [vmem:[#allocation3 + $0x1760] sm:$0xff] }
 0x802   :  { %3779 = vmatpush1.bf16.msra.mxu1 %v1855_v28  ;;  %v1970_v28 = vld [vmem:[#allocation3 + $0x1798] sm:$0xff] }
 0x803   :  { %3780 = vmatprep.subr.bf16.mxu1 %v1862_v58  ;;  %v1969_v58 = vld [vmem:[#allocation3 + $0x1790] sm:$0xff] }
 0x806   :  { %3781 = vmatpush1.bf16.msra.mxu1 %v1861_v61  ;;  %v1976_v61 = vld [vmem:[#allocation3 + $0x17c8] sm:$0xff] }
 0x807   :  { %3782 = vmatprep.subr.bf16.mxu1 %v1868_v10  ;;  %v1975_v10 = vld [vmem:[#allocation3 + $0x17c0] sm:$0xff] }
 0x80a   :  { %3783 = vmatpush1.bf16.msra.mxu1 %v1867_v63  ;;  %v1982_v63 = vld [vmem:[#allocation3 + $0x17f8] sm:$0xff] }
 0x80b   :  { %3784 = vmatprep.subr.bf16.mxu1 %v1874_v3  ;;  %v1981_v3 = vld [vmem:[#allocation3 + $0x17f0] sm:$0xff] }
 0x80e   :  { %3785 = vmatpush1.bf16.msra.mxu1 %v1873_v22  ;;  %v1988_v22 = vld [vmem:[#allocation3 + $0x1828] sm:$0xff] }
 0x80f   :  { %3786 = vmatprep.subr.bf16.mxu1 %v1880_v31  ;;  %v1987_v31 = vld [vmem:[#allocation3 + $0x1820] sm:$0xff] }
 0x812   :  { %3787 = vmatpush1.bf16.msra.mxu1 %v1879_v18  ;;  %v1994_v18 = vld [vmem:[#allocation3 + $0x1858] sm:$0xff] }
 0x813   :  { %3788 = vmatprep.subr.bf16.mxu1 %v1886_v11  ;;  %v1993_v11 = vld [vmem:[#allocation3 + $0x1850] sm:$0xff] }
 0x816   :  { %3789 = vmatpush1.bf16.msra.mxu1 %v1885_v26  ;;  %v2000_v26 = vld [vmem:[#allocation3 + $0x1888] sm:$0xff] }
 0x817   :  { %3799 = vmatprep.subr.bf16.mxu1 %v1892_v53  ;;  %v1999_v53 = vld [vmem:[#allocation3 + $0x1880] sm:$0xff] }
 0x819   :  { %3791 = vmatmul.mubr.bf16.vlgmr.msra.gmra.mrb[12].mxu1 %v6447_v51  ;;  %v1921_v51 = vld [vmem:[#allocation3 + $0x1610] sm:$0xff] }
 0x81a   :  { %3800 = vmatpush1.bf16.msra.mxu1 %v1891_v13  ;;  %3831 = vmatprep.mubr.bf16.mxu1 %v6449_v56  ;;  %v1927_v56 = vld [vmem:[#allocation3 + $0x1640] sm:$0xff]  ;;  %v2006_v13 = vld [vmem:[#allocation3 + $0x18b8] sm:$0xff] }
 0x81b   :  { %3801 = vmatprep.subr.bf16.mxu1 %v1898_v16  ;;  %v2005_v16 = vld [vmem:[#allocation3 + $0x18b0] sm:$0xff] }
 0x81e   :  { %3802 = vmatpush1.bf16.msra.mxu1 %v1897_v21  ;;  %v2012_v21 = vld [vmem:[#allocation3 + $0x18e8] sm:$0xff] }
 0x81f   :  { %3803 = vmatprep.subr.bf16.mxu1 %v1904_v33  ;;  %v2011_v33 = vld [vmem:[#allocation3 + $0x18e0] sm:$0xff] }
 0x822   :  { %3804 = vmatpush1.bf16.msra.mxu1 %v1903_v4  ;;  %v2018_v4 = vld [vmem:[#allocation3 + $0x1918] sm:$0xff] }
 0x823   :  { %3805 = vmatprep.subr.bf16.mxu1 %v1910_v35  ;;  %v2024_v35 = vld [vmem:[#allocation3 + $0x1948] sm:$0xff] }
 0x826   :  { %3806 = vmatpush1.bf16.msra.mxu1 %v1909_v43  ;;  %v2030_v43 = vld [vmem:[#allocation3 + $0x1978] sm:$0xff] }
 0x827   :  { %3807 = vmatprep.subr.bf16.mxu1 %v1916_v54  ;;  %v2029_v54 = vld [vmem:[#allocation3 + $0x1970] sm:$0xff] }
 0x82a   :  { %3808 = vmatpush1.bf16.msra.mxu1 %v1915_v57  ;;  %v2036_v57 = vld [vmem:[#allocation3 + $0x19a8] sm:$0xff] }
 0x82b   :  { %3809 = vmatprep.subr.bf16.mxu1 %v1922_v5  ;;  %v2035_v5 = vld [vmem:[#allocation3 + $0x19a0] sm:$0xff] }
 0x82e   :  { %3810 = vmatpush1.bf16.msra.mxu1 %v1921_v51  ;;  %v2042_v51 = vld [vmem:[#allocation3 + $0x19d8] sm:$0xff] }
 0x82f   :  { %3811 = vmatprep.subr.bf16.mxu1 %v1928_v41  ;;  %v2041_v41 = vld [vmem:[#allocation3 + $0x19d0] sm:$0xff] }
 0x832   :  { %3812 = vmatpush1.bf16.msra.mxu1 %v1927_v56  ;;  %v2048_v56 = vld [vmem:[#allocation3 + $0x1a08] sm:$0xff] }
 0x833   :  { %3813 = vmatprep.subr.bf16.mxu1 %v1934_v49  ;;  %v2047_v49 = vld [vmem:[#allocation3 + $0x1a00] sm:$0xff] }
 0x836   :  { %3814 = vmatpush1.bf16.msra.mxu1 %v1933_v44  ;;  %v2054_v44 = vld [vmem:[#allocation3 + $0x1a38] sm:$0xff] }
 0x837   :  { %3815 = vmatprep.subr.bf16.mxu1 %v1940_v25  ;;  %v2053_v25 = vld [vmem:[#allocation3 + $0x1a30] sm:$0xff] }
 0x83a   :  { %3816 = vmatpush1.bf16.msra.mxu1 %v1939_v39  ;;  %v2060_v39 = vld [vmem:[#allocation3 + $0x1a68] sm:$0xff] }
 0x83b   :  { %3817 = vmatprep.subr.bf16.mxu1 %v1946_v30  ;;  %v2059_v30 = vld [vmem:[#allocation3 + $0x1a60] sm:$0xff] }
 0x83e   :  { %3818 = vmatpush1.bf16.msra.mxu1 %v1945_v62  ;;  %v2066_v62 = vld [vmem:[#allocation3 + $0x1a98] sm:$0xff] }
 0x83f   :  { %3819 = vmatprep.subr.bf16.mxu1 %v1952_v45  ;;  %v2065_v45 = vld [vmem:[#allocation3 + $0x1a90] sm:$0xff] }
 0x842   :  { %3820 = vmatpush1.bf16.msra.mxu1 %v1951_v17  ;;  %v2072_v17 = vld [vmem:[#allocation3 + $0x1ac8] sm:$0xff] }
 0x843   :  { %3821 = vmatprep.subr.bf16.mxu1 %v1958_v42  ;;  %v2071_v42 = vld [vmem:[#allocation3 + $0x1ac0] sm:$0xff] }
 0x846   :  { %3822 = vmatpush1.bf16.msra.mxu1 %v1957_v7  ;;  %v2078_v7 = vld [vmem:[#allocation3 + $0x1af8] sm:$0xff] }
 0x847   :  { %3823 = vmatprep.subr.bf16.mxu1 %v1964_v48  ;;  %v2077_v48 = vld [vmem:[#allocation3 + $0x1af0] sm:$0xff] }
 0x84a   :  { %3824 = vmatpush1.bf16.msra.mxu1 %v1963_v47  ;;  %v2084_v47 = vld [vmem:[#allocation3 + $0x1b28] sm:$0xff] }
 0x84b   :  { %3825 = vmatprep.subr.bf16.mxu1 %v1970_v28  ;;  %v2083_v28 = vld [vmem:[#allocation3 + $0x1b20] sm:$0xff] }
 0x84e   :  { %3826 = vmatpush1.bf16.msra.mxu1 %v1969_v58  ;;  %v2090_v58 = vld [vmem:[#allocation3 + $0x1b58] sm:$0xff] }
 0x84f   :  { %3827 = vmatprep.subr.bf16.mxu1 %v1976_v61  ;;  %v2089_v61 = vld [vmem:[#allocation3 + $0x1b50] sm:$0xff] }
 0x852   :  { %3828 = vmatpush1.bf16.msra.mxu1 %v1975_v10  ;;  %v2096_v10 = vld [vmem:[#allocation3 + $0x1b88] sm:$0xff] }
 0x853   :  { %3829 = vmatprep.subr.bf16.mxu1 %v1982_v63  ;;  %v2095_v63 = vld [vmem:[#allocation3 + $0x1b80] sm:$0xff] }
 0x856   :  { %3830 = vmatpush1.bf16.msra.mxu1 %v1981_v3  ;;  %v2102_v3 = vld [vmem:[#allocation3 + $0x1bb8] sm:$0xff] }
 0x857   :  { %3840 = vmatprep.subr.bf16.mxu1 %v1988_v22  ;;  %v2101_v22 = vld [vmem:[#allocation3 + $0x1bb0] sm:$0xff] }
 0x859   :  { %3832 = vmatmul.mubr.bf16.vlgmr.msra.gmra.mrb[12].mxu1 %v6465_v27  ;;  %v2017_v27 = vld [vmem:[#allocation3 + $0x1910] sm:$0xff] }
 0x85a   :  { %3841 = vmatpush1.bf16.msra.mxu1 %v1987_v31  ;;  %3872 = vmatprep.mubr.bf16.mxu1 %v6467_v32  ;;  %v2023_v32 = vld [vmem:[#allocation3 + $0x1940] sm:$0xff]  ;;  %v2108_v31 = vld [vmem:[#allocation3 + $0x1be8] sm:$0xff] }
 0x85b   :  { %3842 = vmatprep.subr.bf16.mxu1 %v1994_v18  ;;  %v2107_v18 = vld [vmem:[#allocation3 + $0x1be0] sm:$0xff] }
 0x85e   :  { %3843 = vmatpush1.bf16.msra.mxu1 %v1993_v11  ;;  %v2114_v11 = vld [vmem:[#allocation3 + $0x1c18] sm:$0xff] }
 0x85f   :  { %3844 = vmatprep.subr.bf16.mxu1 %v2000_v26  ;;  %v2120_v26 = vld [vmem:[#allocation3 + $0x1c48] sm:$0xff] }
 0x862   :  { %3845 = vmatpush1.bf16.msra.mxu1 %v1999_v53  ;;  %v2126_v53 = vld [vmem:[#allocation3 + $0x1c78] sm:$0xff] }
 0x863   :  { %3846 = vmatprep.subr.bf16.mxu1 %v2006_v13  ;;  %v2125_v13 = vld [vmem:[#allocation3 + $0x1c70] sm:$0xff] }
 0x866   :  { %3847 = vmatpush1.bf16.msra.mxu1 %v2005_v16  ;;  %v2132_v16 = vld [vmem:[#allocation3 + $0x1ca8] sm:$0xff] }
 0x867   :  { %3848 = vmatprep.subr.bf16.mxu1 %v2012_v21  ;;  %v2131_v21 = vld [vmem:[#allocation3 + $0x1ca0] sm:$0xff] }
 0x86a   :  { %3849 = vmatpush1.bf16.msra.mxu1 %v2011_v33  ;;  %v2138_v33 = vld [vmem:[#allocation3 + $0x1cd8] sm:$0xff] }
 0x86b   :  { %3850 = vmatprep.subr.bf16.mxu1 %v2018_v4  ;;  %v2137_v4 = vld [vmem:[#allocation3 + $0x1cd0] sm:$0xff] }
 0x86e   :  { %3851 = vmatpush1.bf16.msra.mxu1 %v2017_v27  ;;  %v2144_v27 = vld [vmem:[#allocation3 + $0x1d08] sm:$0xff] }
 0x86f   :  { %3852 = vmatprep.subr.bf16.mxu1 %v2024_v35  ;;  %v2143_v35 = vld [vmem:[#allocation3 + $0x1d00] sm:$0xff] }
 0x872   :  { %3853 = vmatpush1.bf16.msra.mxu1 %v2023_v32  ;;  %v2150_v32 = vld [vmem:[#allocation3 + $0x1d38] sm:$0xff] }
 0x873   :  { %3854 = vmatprep.subr.bf16.mxu1 %v2030_v43  ;;  %v2149_v43 = vld [vmem:[#allocation3 + $0x1d30] sm:$0xff] }
 0x876   :  { %3855 = vmatpush1.bf16.msra.mxu1 %v2029_v54  ;;  %v2156_v54 = vld [vmem:[#allocation3 + $0x1d68] sm:$0xff] }
 0x877   :  { %3856 = vmatprep.subr.bf16.mxu1 %v2036_v57  ;;  %v2155_v57 = vld [vmem:[#allocation3 + $0x1d60] sm:$0xff] }
 0x87a   :  { %3857 = vmatpush1.bf16.msra.mxu1 %v2035_v5  ;;  %v2162_v5 = vld [vmem:[#allocation3 + $0x1d98] sm:$0xff] }
 0x87b   :  { %3858 = vmatprep.subr.bf16.mxu1 %v2042_v51  ;;  %v2161_v51 = vld [vmem:[#allocation3 + $0x1d90] sm:$0xff] }
 0x87e   :  { %3859 = vmatpush1.bf16.msra.mxu1 %v2041_v41  ;;  %v2168_v41 = vld [vmem:[#allocation3 + $0x1dc8] sm:$0xff] }
 0x87f   :  { %3860 = vmatprep.subr.bf16.mxu1 %v2048_v56  ;;  %v2167_v56 = vld [vmem:[#allocation3 + $0x1dc0] sm:$0xff] }
 0x882   :  { %3861 = vmatpush1.bf16.msra.mxu1 %v2047_v49  ;;  %v2174_v49 = vld [vmem:[#allocation3 + $0x1df8] sm:$0xff] }
 0x883   :  { %3862 = vmatprep.subr.bf16.mxu1 %v2054_v44  ;;  %v2173_v44 = vld [vmem:[#allocation3 + $0x1df0] sm:$0xff] }
 0x886   :  { %3863 = vmatpush1.bf16.msra.mxu1 %v2053_v25  ;;  %v2180_v25 = vld [vmem:[#allocation3 + $0x1e28] sm:$0xff] }
 0x887   :  { %3864 = vmatprep.subr.bf16.mxu1 %v2060_v39  ;;  %v2179_v39 = vld [vmem:[#allocation3 + $0x1e20] sm:$0xff] }
 0x88a   :  { %3865 = vmatpush1.bf16.msra.mxu1 %v2059_v30  ;;  %v2186_v30 = vld [vmem:[#allocation3 + $0x1e58] sm:$0xff] }
 0x88b   :  { %3866 = vmatprep.subr.bf16.mxu1 %v2066_v62  ;;  %v2185_v62 = vld [vmem:[#allocation3 + $0x1e50] sm:$0xff] }
 0x88e   :  { %3867 = vmatpush1.bf16.msra.mxu1 %v2065_v45  ;;  %v2192_v45 = vld [vmem:[#allocation3 + $0x1e88] sm:$0xff] }
 0x88f   :  { %3868 = vmatprep.subr.bf16.mxu1 %v2072_v17  ;;  %v2191_v17 = vld [vmem:[#allocation3 + $0x1e80] sm:$0xff] }
 0x892   :  { %3869 = vmatpush1.bf16.msra.mxu1 %v2071_v42  ;;  %v2198_v42 = vld [vmem:[#allocation3 + $0x1eb8] sm:$0xff] }
 0x893   :  { %3870 = vmatprep.subr.bf16.mxu1 %v2078_v7  ;;  %v2197_v7 = vld [vmem:[#allocation3 + $0x1eb0] sm:$0xff] }
 0x896   :  { %3871 = vmatpush1.bf16.msra.mxu1 %v2077_v48  ;;  %v2204_v48 = vld [vmem:[#allocation3 + $0x1ee8] sm:$0xff] }
 0x897   :  { %3881 = vmatprep.subr.bf16.mxu1 %v2084_v47  ;;  %v2203_v47 = vld [vmem:[#allocation3 + $0x1ee0] sm:$0xff] }
 0x899   :  { %3873 = vmatmul.mubr.bf16.vlgmr.msra.gmra.mrb[12].mxu1 %v6482_v59  ;;  %v2113_v59 = vld [vmem:[#allocation3 + $0x1c10] sm:$0xff] }
 0x89a   :  { %3882 = vmatpush1.bf16.msra.mxu1 %v2083_v28  ;;  %3913 = vmatprep.mubr.bf16.mxu1 %v6484_v14  ;;  %v2119_v14 = vld [vmem:[#allocation3 + $0x1c40] sm:$0xff]  ;;  %v2210_v28 = vld [vmem:[#allocation3 + $0x1f18] sm:$0xff] }
 0x89b   :  { %3883 = vmatprep.subr.bf16.mxu1 %v2090_v58  ;;  %v2216_v58 = vld [vmem:[#allocation3 + $0x1f48] sm:$0xff] }
 0x89e   :  { %3884 = vmatpush1.bf16.msra.mxu1 %v2089_v61  ;;  %v2222_v61 = vld [vmem:[#allocation3 + $0x1f78] sm:$0xff] }
 0x89f   :  { %3885 = vmatprep.subr.bf16.mxu1 %v2096_v10  ;;  %v2221_v10 = vld [vmem:[#allocation3 + $0x1f70] sm:$0xff] }
 0x8a2   :  { %3886 = vmatpush1.bf16.msra.mxu1 %v2095_v63  ;;  %v2228_v63 = vld [vmem:[#allocation3 + $0x1fa8] sm:$0xff] }
 0x8a3   :  { %3887 = vmatprep.subr.bf16.mxu1 %v2102_v3  ;;  %v2227_v3 = vld [vmem:[#allocation3 + $0x1fa0] sm:$0xff] }
 0x8a6   :  { %3888 = vmatpush1.bf16.msra.mxu1 %v2101_v22  ;;  %v2234_v22 = vld [vmem:[#allocation3 + $0x1fd8] sm:$0xff] }
 0x8a7   :  { %3889 = vmatprep.subr.bf16.mxu1 %v2108_v31  ;;  %v2233_v31 = vld [vmem:[#allocation3 + $0x1fd0] sm:$0xff] }
 0x8aa   :  { %3890 = vmatpush1.bf16.msra.mxu1 %v2107_v18  ;;  %v2240_v18 = vld [vmem:[#allocation3 + $0x2008] sm:$0xff] }
 0x8ab   :  { %3891 = vmatprep.subr.bf16.mxu1 %v2114_v11  ;;  %v2239_v11 = vld [vmem:[#allocation3 + $0x2000] sm:$0xff] }
 0x8ae   :  { %3892 = vmatpush1.bf16.msra.mxu1 %v2113_v59  ;;  %v2246_v59 = vld [vmem:[#allocation3 + $0x2038] sm:$0xff] }
 0x8af   :  { %3893 = vmatprep.subr.bf16.mxu1 %v2120_v26  ;;  %v2245_v26 = vld [vmem:[#allocation3 + $0x2030] sm:$0xff] }
 0x8b2   :  { %3894 = vmatpush1.bf16.msra.mxu1 %v2119_v14  ;;  %v2252_v14 = vld [vmem:[#allocation3 + $0x2068] sm:$0xff] }
 0x8b3   :  { %3895 = vmatprep.subr.bf16.mxu1 %v2126_v53  ;;  %v2251_v53 = vld [vmem:[#allocation3 + $0x2060] sm:$0xff] }
 0x8b6   :  { %3896 = vmatpush1.bf16.msra.mxu1 %v2125_v13  ;;  %v2258_v13 = vld [vmem:[#allocation3 + $0x2098] sm:$0xff] }
 0x8b7   :  { %3897 = vmatprep.subr.bf16.mxu1 %v2132_v16  ;;  %v2257_v16 = vld [vmem:[#allocation3 + $0x2090] sm:$0xff] }
 0x8ba   :  { %3898 = vmatpush1.bf16.msra.mxu1 %v2131_v21  ;;  %v2264_v21 = vld [vmem:[#allocation3 + $0x20c8] sm:$0xff] }
 0x8bb   :  { %3899 = vmatprep.subr.bf16.mxu1 %v2138_v33  ;;  %v2263_v33 = vld [vmem:[#allocation3 + $0x20c0] sm:$0xff] }
 0x8be   :  { %3900 = vmatpush1.bf16.msra.mxu1 %v2137_v4  ;;  %v2270_v4 = vld [vmem:[#allocation3 + $0x20f8] sm:$0xff] }
 0x8bf   :  { %3901 = vmatprep.subr.bf16.mxu1 %v2144_v27  ;;  %v2269_v27 = vld [vmem:[#allocation3 + $0x20f0] sm:$0xff] }
 0x8c2   :  { %3902 = vmatpush1.bf16.msra.mxu1 %v2143_v35  ;;  %v2276_v35 = vld [vmem:[#allocation3 + $0x2128] sm:$0xff] }
 0x8c3   :  { %3903 = vmatprep.subr.bf16.mxu1 %v2150_v32  ;;  %v2275_v32 = vld [vmem:[#allocation3 + $0x2120] sm:$0xff] }
 0x8c6   :  { %3904 = vmatpush1.bf16.msra.mxu1 %v2149_v43  ;;  %v2282_v43 = vld [vmem:[#allocation3 + $0x2158] sm:$0xff] }
 0x8c7   :  { %3905 = vmatprep.subr.bf16.mxu1 %v2156_v54  ;;  %v2281_v54 = vld [vmem:[#allocation3 + $0x2150] sm:$0xff] }
 0x8ca   :  { %3906 = vmatpush1.bf16.msra.mxu1 %v2155_v57  ;;  %v2288_v57 = vld [vmem:[#allocation3 + $0x2188] sm:$0xff] }
 0x8cb   :  { %3907 = vmatprep.subr.bf16.mxu1 %v2162_v5  ;;  %v2287_v5 = vld [vmem:[#allocation3 + $0x2180] sm:$0xff] }
 0x8ce   :  { %3908 = vmatpush1.bf16.msra.mxu1 %v2161_v51  ;;  %v2294_v51 = vld [vmem:[#allocation3 + $0x21b8] sm:$0xff] }
 0x8cf   :  { %3909 = vmatprep.subr.bf16.mxu1 %v2168_v41  ;;  %v2293_v41 = vld [vmem:[#allocation3 + $0x21b0] sm:$0xff] }
 0x8d2   :  { %3910 = vmatpush1.bf16.msra.mxu1 %v2167_v56  ;;  %v2300_v56 = vld [vmem:[#allocation3 + $0x21e8] sm:$0xff] }
 0x8d3   :  { %3911 = vmatprep.subr.bf16.mxu1 %v2174_v49  ;;  %v2299_v49 = vld [vmem:[#allocation3 + $0x21e0] sm:$0xff] }
 0x8d6   :  { %3912 = vmatpush1.bf16.msra.mxu1 %v2173_v44  ;;  %v2306_v44 = vld [vmem:[#allocation3 + $0x2218] sm:$0xff] }
 0x8d7   :  { %3922 = vmatprep.subr.bf16.mxu1 %v2180_v25  ;;  %v2312_v25 = vld [vmem:[#allocation3 + $0x2248] sm:$0xff] }
 0x8d9   :  { %3914 = vmatmul.mubr.bf16.vlgmr.msra.gmra.mrb[12].mxu1 %v6500_v20  ;;  %v2209_v20 = vld [vmem:[#allocation3 + $0x1f10] sm:$0xff] }
 0x8da   :  { %3923 = vmatpush1.bf16.msra.mxu1 %v2179_v39  ;;  %3954 = vmatprep.mubr.bf16.mxu1 %v6502_v46  ;;  %v2215_v46 = vld [vmem:[#allocation3 + $0x1f40] sm:$0xff]  ;;  %v2318_v39 = vld [vmem:[#allocation3 + $0x2278] sm:$0xff] }
 0x8db   :  { %3924 = vmatprep.subr.bf16.mxu1 %v2186_v30  ;;  %v2317_v30 = vld [vmem:[#allocation3 + $0x2270] sm:$0xff] }
 0x8de   :  { %3925 = vmatpush1.bf16.msra.mxu1 %v2185_v62  ;;  %v2324_v62 = vld [vmem:[#allocation3 + $0x22a8] sm:$0xff] }
 0x8df   :  { %3926 = vmatprep.subr.bf16.mxu1 %v2192_v45  ;;  %v2323_v45 = vld [vmem:[#allocation3 + $0x22a0] sm:$0xff] }
 0x8e2   :  { %3927 = vmatpush1.bf16.msra.mxu1 %v2191_v17  ;;  %v2330_v17 = vld [vmem:[#allocation3 + $0x22d8] sm:$0xff] }
 0x8e3   :  { %3928 = vmatprep.subr.bf16.mxu1 %v2198_v42  ;;  %v2329_v42 = vld [vmem:[#allocation3 + $0x22d0] sm:$0xff] }
 0x8e6   :  { %3929 = vmatpush1.bf16.msra.mxu1 %v2197_v7  ;;  %v2336_v7 = vld [vmem:[#allocation3 + $0x2308] sm:$0xff] }
 0x8e7   :  { %3930 = vmatprep.subr.bf16.mxu1 %v2204_v48  ;;  %v2335_v48 = vld [vmem:[#allocation3 + $0x2300] sm:$0xff] }
 0x8ea   :  { %3931 = vmatpush1.bf16.msra.mxu1 %v2203_v47  ;;  %v2342_v47 = vld [vmem:[#allocation3 + $0x2338] sm:$0xff] }
 0x8eb   :  { %3932 = vmatprep.subr.bf16.mxu1 %v2210_v28  ;;  %v2341_v28 = vld [vmem:[#allocation3 + $0x2330] sm:$0xff] }
 0x8ee   :  { %3933 = vmatpush1.bf16.msra.mxu1 %v2209_v20  ;;  %v2348_v20 = vld [vmem:[#allocation3 + $0x2368] sm:$0xff] }
 0x8ef   :  { %3934 = vmatprep.subr.bf16.mxu1 %v2216_v58  ;;  %v2347_v58 = vld [vmem:[#allocation3 + $0x2360] sm:$0xff] }
 0x8f2   :  { %3935 = vmatpush1.bf16.msra.mxu1 %v2215_v46  ;;  %v2354_v46 = vld [vmem:[#allocation3 + $0x2398] sm:$0xff] }
 0x8f3   :  { %3936 = vmatprep.subr.bf16.mxu1 %v2222_v61  ;;  %v2353_v61 = vld [vmem:[#allocation3 + $0x2390] sm:$0xff] }
 0x8f6   :  { %3937 = vmatpush1.bf16.msra.mxu1 %v2221_v10  ;;  %v2360_v10 = vld [vmem:[#allocation3 + $0x23c8] sm:$0xff] }
 0x8f7   :  { %3938 = vmatprep.subr.bf16.mxu1 %v2228_v63  ;;  %v2359_v63 = vld [vmem:[#allocation3 + $0x23c0] sm:$0xff] }
 0x8fa   :  { %3939 = vmatpush1.bf16.msra.mxu1 %v2227_v3  ;;  %v2366_v3 = vld [vmem:[#allocation3 + $0x23f8] sm:$0xff] }
 0x8fb   :  { %3940 = vmatprep.subr.bf16.mxu1 %v2234_v22  ;;  %v2365_v22 = vld [vmem:[#allocation3 + $0x23f0] sm:$0xff] }
 0x8fe   :  { %3941 = vmatpush1.bf16.msra.mxu1 %v2233_v31  ;;  %v2372_v31 = vld [vmem:[#allocation3 + $0x2428] sm:$0xff] }
 0x8ff   :  { %3942 = vmatprep.subr.bf16.mxu1 %v2240_v18  ;;  %v2371_v18 = vld [vmem:[#allocation3 + $0x2420] sm:$0xff] }
 0x902   :  { %3943 = vmatpush1.bf16.msra.mxu1 %v2239_v11  ;;  %v2378_v11 = vld [vmem:[#allocation3 + $0x2458] sm:$0xff] }
 0x903   :  { %3944 = vmatprep.subr.bf16.mxu1 %v2246_v59  ;;  %v2377_v59 = vld [vmem:[#allocation3 + $0x2450] sm:$0xff] }
 0x906   :  { %3945 = vmatpush1.bf16.msra.mxu1 %v2245_v26  ;;  %v2384_v26 = vld [vmem:[#allocation3 + $0x2488] sm:$0xff] }
 0x907   :  { %3946 = vmatprep.subr.bf16.mxu1 %v2252_v14  ;;  %v2383_v14 = vld [vmem:[#allocation3 + $0x2480] sm:$0xff] }
 0x90a   :  { %3947 = vmatpush1.bf16.msra.mxu1 %v2251_v53  ;;  %v2390_v53 = vld [vmem:[#allocation3 + $0x24b8] sm:$0xff] }
 0x90b   :  { %3948 = vmatprep.subr.bf16.mxu1 %v2258_v13  ;;  %v2389_v13 = vld [vmem:[#allocation3 + $0x24b0] sm:$0xff] }
 0x90e   :  { %3949 = vmatpush1.bf16.msra.mxu1 %v2257_v16  ;;  %v2396_v16 = vld [vmem:[#allocation3 + $0x24e8] sm:$0xff] }
 0x90f   :  { %3950 = vmatprep.subr.bf16.mxu1 %v2264_v21  ;;  %v2395_v21 = vld [vmem:[#allocation3 + $0x24e0] sm:$0xff] }
 0x912   :  { %3951 = vmatpush1.bf16.msra.mxu1 %v2263_v33  ;;  %v2402_v33 = vld [vmem:[#allocation3 + $0x2518] sm:$0xff] }
 0x913   :  { %3952 = vmatprep.subr.bf16.mxu1 %v2270_v4  ;;  %v2408_v4 = vld [vmem:[#allocation3 + $0x2548] sm:$0xff] }
 0x916   :  { %3953 = vmatpush1.bf16.msra.mxu1 %v2269_v27  ;;  %v2414_v27 = vld [vmem:[#allocation3 + $0x2578] sm:$0xff] }
 0x917   :  { %3963 = vmatprep.subr.bf16.mxu1 %v2276_v35  ;;  %v2413_v35 = vld [vmem:[#allocation3 + $0x2570] sm:$0xff] }
 0x919   :  { %3955 = vmatmul.mubr.bf16.vlgmr.msra.gmra.mrb[12].mxu1 %v6517_v34  ;;  %v2305_v34 = vld [vmem:[#allocation3 + $0x2210] sm:$0xff] }
 0x91a   :  { %3964 = vmatpush1.bf16.msra.mxu1 %v2275_v32  ;;  %3995 = vmatprep.mubr.bf16.mxu1 %v6519_v36  ;;  %v2311_v36 = vld [vmem:[#allocation3 + $0x2240] sm:$0xff]  ;;  %v2434_v32 = vsub.s32 4, %v6286_v6 }
 0x91b   :  { %3965 = vmatprep.subr.bf16.mxu1 %v2282_v43  ;;  %v2438_v43 = vsub.s32 5, %v6286_v6 }
 0x91e   :  { %3966 = vmatpush1.bf16.msra.mxu1 %v2281_v54  ;;  %v2435_v54 = vrot.slane %v5936_v0, %v2434_v32 }
 0x91f   :  { %3967 = vmatprep.subr.bf16.mxu1 %v2288_v57  ;;  %v2439_v57 = vrot.slane %v5936_v0, %v2438_v43 }
 0x922   :  { %3968 = vmatpush1.bf16.msra.mxu1 %v2287_v5 }
 0x923   :  { %3969 = vmatprep.subr.bf16.mxu1 %v2294_v51 }
 0x926   :  { %3970 = vmatpush1.bf16.msra.mxu1 %v2293_v41 }
 0x927   :  { %3971 = vmatprep.subr.bf16.mxu1 %v2300_v56 }
 0x92a   :  { %3972 = vmatpush1.bf16.msra.mxu1 %v2299_v49 }
 0x92b   :  { %3973 = vmatprep.subr.bf16.mxu1 %v2306_v44 }
 0x92e   :  { %3974 = vmatpush1.bf16.msra.mxu1 %v2305_v34 }
 0x92f   :  { %3975 = vmatprep.subr.bf16.mxu1 %v2312_v25 }
 0x932   :  { %3976 = vmatpush1.bf16.msra.mxu1 %v2311_v36 }
 0x933   :  { %3977 = vmatprep.subr.bf16.mxu1 %v2318_v39 }
 0x936   :  { %3978 = vmatpush1.bf16.msra.mxu1 %v2317_v30 }
 0x937   :  { %3979 = vmatprep.subr.bf16.mxu1 %v2324_v62 }
 0x93a   :  { %3980 = vmatpush1.bf16.msra.mxu1 %v2323_v45 }
 0x93b   :  { %3981 = vmatprep.subr.bf16.mxu1 %v2330_v17 }
 0x93e   :  { %3982 = vmatpush1.bf16.msra.mxu1 %v2329_v42 }
 0x93f   :  { %3983 = vmatprep.subr.bf16.mxu1 %v2336_v7 }
 0x942   :  { %3984 = vmatpush1.bf16.msra.mxu1 %v2335_v48 }
 0x943   :  { %3985 = vmatprep.subr.bf16.mxu1 %v2342_v47 }
 0x946   :  { %3986 = vmatpush1.bf16.msra.mxu1 %v2341_v28 }
 0x947   :  { %3987 = vmatprep.subr.bf16.mxu1 %v2348_v20 }
 0x94a   :  { %3988 = vmatpush1.bf16.msra.mxu1 %v2347_v58 }
 0x94b   :  { %3989 = vmatprep.subr.bf16.mxu1 %v2354_v46 }
 0x94e   :  { %3990 = vmatpush1.bf16.msra.mxu1 %v2353_v61 }
 0x94f   :  { %3991 = vmatprep.subr.bf16.mxu1 %v2360_v10 }
 0x952   :  { %3992 = vmatpush1.bf16.msra.mxu1 %v2359_v63 }
 0x953   :  { %3993 = vmatprep.subr.bf16.mxu1 %v2366_v3 }
 0x956   :  { %3994 = vmatpush1.bf16.msra.mxu1 %v2365_v22 }
 0x957   :  { %4004 = vmatprep.subr.bf16.mxu1 %v2372_v31 }
 0x959   :  { %3996 = vmatmul.mubr.bf16.vlgmr.msra.gmra.mrb[12].mxu1 %v6527_v12  ;;  %v2401_v12 = vld [vmem:[#allocation3 + $0x2510] sm:$0xff] }
 0x95a   :  { %4005 = vmatpush1.bf16.msra.mxu1 %v2371_v18  ;;  %4036 = vmatprep.mubr.bf16.mxu1 %v5843_v60  ;;  %v2407_v60 = vld [vmem:[#allocation3 + $0x2540] sm:$0xff] }
 0x95b   :  { %4006 = vmatprep.subr.bf16.mxu1 %v2378_v11 }
 0x95e   :  { %4007 = vmatpush1.bf16.msra.mxu1 %v2377_v59 }
 0x95f   :  { %4008 = vmatprep.subr.bf16.mxu1 %v2384_v26 }
 0x962   :  { %4009 = vmatpush1.bf16.msra.mxu1 %v2383_v14 }
 0x963   :  { %4010 = vmatprep.subr.bf16.mxu1 %v2390_v53 }
 0x966   :  { %4011 = vmatpush1.bf16.msra.mxu1 %v2389_v13 }
 0x967   :  { %4012 = vmatprep.subr.bf16.mxu1 %v2396_v16 }
 0x96a   :  { %4013 = vmatpush1.bf16.msra.mxu1 %v2395_v21 }
 0x96b   :  { %4014 = vmatprep.subr.bf16.mxu1 %v2402_v33 }
 0x96e   :  { %4015 = vmatpush1.bf16.msra.mxu1 %v2401_v12 }
 0x96f   :  { %4016 = vmatprep.subr.bf16.mxu1 %v2408_v4 }
 0x972   :  { %4017 = vmatpush1.bf16.msra.mxu1 %v2407_v60 }
 0x973   :  { %4018 = vmatprep.subr.bf16.mxu1 %v2414_v27 }
 0x976   :  { %4019 = vmatpush1.bf16.msra.mxu1 %v2413_v35 }
 0x979   :  { %4037 = vmatmul.mubr.bf16.vlgmr.msra.gmra.mrb[12].mxu1 %v6533_v15 }
 0xa4c   :  { %v4038_v5 = vpop.f32.mrb[12].mxu1 }
 0xa4d   :  { %v6599_v51 = vadd.f32 %v4038_v5, %v2435_v54  ;;  %v4040_v41 = vpop.f32.mrb[13].mxu1 }
 0xa4e   :  { %v6601_v56 = vadd.f32 %v4040_v41, %v2439_v57  ;;  %v4042_v49 = vpop.f32.mrb[14].mxu1 }
 0xa4f   :  { %v4049_v15 = vmax.f32 %v6599_v51, 0.0  ;;  %v4043_v44 = vpop.f32.mrb[15].mxu1 }
 0xa50   :  { %v4050_v34 = vmax.f32 %v6601_v56, 0.0 }
 0xa51   :  { %5818 = dma.done.wait [#allocation5 + $0x1], 49152 }
 0xa52   :  { %5819 = vsyncadd [#allocation5 + $0x1], 4294918144  ;;  %v6608_v25 = vpack.c.bf16 %v4046_v38, %v4046_v38  ;;  %v4062_v0 = vld [vmem:[#allocation4 + $0x8] sm:$0xff]  ;;  %v4061_v36 = vld [vmem:[#allocation4] sm:$0xff]  ;;  %v6614_v12 = vpack.c.bf16 %v4045_v23, %v4045_v23  ;;  %v6619_v4 = vpack.c.bf16 %v4048_v2, %v4048_v2  ;;  %s5844_s0 = smov [#allocation12]  }
 0xa53   :  { %v4070_v39 = vld [vmem:[#allocation4 + $0x48] sm:$0xff]  ;;  %4486 = vmatprep.subr.bf16.mxu0 %v4062_v0  ;;  %v4069_v30 = vld [vmem:[#allocation4 + $0x40] sm:$0xff]  ;;  %v4087_v51 = vld [vmem:[#allocation4 + $0xd0] sm:$0xff]  ;;  %s5030_s22 = sshll.u32 %s5844_s0, 4  ;;  %s5031_s22 = int_to_ptr.vmem [resolvable:$true] %s5030_s22 }
 0xa54   :  { %4518 = vmatprep.mubr.bf16.mxu0 %v6608_v25  ;;  %4487 = vmatpush1.bf16.msra.mxu0 %v4061_v36  ;;  %v4078_v62 = vld [vmem:[#allocation4 + $0x88] sm:$0xff]  ;;  %v4077_v45 = vld [vmem:[#allocation4 + $0x80] sm:$0xff]  ;;  %s5790_s23 = scalar_lea.vmem %s5031_s22, 256  ;;  %p5795_p11 = scmp.lt.s32.totalorder %s5031_s22, %s5031_s22 }
 0xa55   :  { %4488 = vmatprep.subr.bf16.mxu0 %v4070_v39  ;;  %v4086_v17 = vld [vmem:[#allocation4 + $0xc8] sm:$0xff]  ;;  %v4085_v19 = vld [vmem:[#allocation4 + $0xc0] sm:$0xff]  ;;  %p5791_p10 = scmp.ne.s32.totalorder %s5031_s22, %s5790_s23  ;;  %p5796_p12 = scmp.lt.s32.totalorder %s5790_s23, %s5790_s23 }
 0xa56   :  { %v4094_v42 = vld [vmem:[#allocation4 + $0x108] sm:$0xff]  ;;  %v4093_v38 = vld [vmem:[#allocation4 + $0x100] sm:$0xff] }
 0xa57   :  { %v4102_v7 = vld [vmem:[#allocation4 + $0x148] sm:$0xff]  ;;  %v4101_v48 = vld [vmem:[#allocation4 + $0x140] sm:$0xff]  ;;  %p5797_p13 = por %p5796_p12, %p5795_p11 }
 0xa58   :  { %4489 = vmatpush1.bf16.msra.mxu0 %v4069_v30  ;;  %v4110_v47 = vld [vmem:[#allocation4 + $0x188] sm:$0xff]  ;;  %v4109_v28 = vld [vmem:[#allocation4 + $0x180] sm:$0xff] }
 0xa59   :  { %4490 = vmatprep.subr.bf16.mxu0 %v4078_v62  ;;  %v4118_v20 = vld [vmem:[#allocation4 + $0x1c8] sm:$0xff]  ;;  %v4117_v58 = vld [vmem:[#allocation4 + $0x1c0] sm:$0xff]  ;;  %p5798_p0 = pnand %p5797_p13, %p5791_p10 }
 0xa5a   :  { %v4126_v46 = vld [vmem:[#allocation4 + $0x208] sm:$0xff]  ;;  %v4125_v61 = vld [vmem:[#allocation4 + $0x200] sm:$0xff] }
 0xa5b   :  { %v4134_v10 = vld [vmem:[#allocation4 + $0x248] sm:$0xff]  ;;  %v4133_v63 = vld [vmem:[#allocation4 + $0x240] sm:$0xff] }
 0xa5c   :  { %4491 = vmatpush1.bf16.msra.mxu0 %v4077_v45  ;;  %v4142_v3 = vld [vmem:[#allocation4 + $0x288] sm:$0xff]  ;;  %v4141_v22 = vld [vmem:[#allocation4 + $0x280] sm:$0xff] }
 0xa5d   :  { %4492 = vmatprep.subr.bf16.mxu0 %v4086_v17  ;;  %v4150_v31 = vld [vmem:[#allocation4 + $0x2c8] sm:$0xff]  ;;  %v4149_v18 = vld [vmem:[#allocation4 + $0x2c0] sm:$0xff] }
 0xa5e   :  { %v4158_v11 = vld [vmem:[#allocation4 + $0x308] sm:$0xff]  ;;  %v4157_v59 = vld [vmem:[#allocation4 + $0x300] sm:$0xff] }
 0xa5f   :  { %v4166_v26 = vld [vmem:[#allocation4 + $0x348] sm:$0xff]  ;;  %v4165_v14 = vld [vmem:[#allocation4 + $0x340] sm:$0xff] }
 0xa60   :  { %4493 = vmatpush1.bf16.msra.mxu0 %v4085_v19  ;;  %v4174_v53 = vld [vmem:[#allocation4 + $0x388] sm:$0xff]  ;;  %v4173_v13 = vld [vmem:[#allocation4 + $0x380] sm:$0xff] }
 0xa61   :  { %4494 = vmatprep.subr.bf16.mxu0 %v4094_v42  ;;  %v4182_v16 = vld [vmem:[#allocation4 + $0x3c8] sm:$0xff]  ;;  %v4181_v21 = vld [vmem:[#allocation4 + $0x3c0] sm:$0xff] }
 0xa62   :  { %v4190_v33 = vld [vmem:[#allocation4 + $0x408] sm:$0xff]  ;;  %v4189_v60 = vld [vmem:[#allocation4 + $0x400] sm:$0xff] }
 0xa63   :  { %v4198_v27 = vld [vmem:[#allocation4 + $0x448] sm:$0xff]  ;;  %v4197_v35 = vld [vmem:[#allocation4 + $0x440] sm:$0xff] }
 0xa64   :  { %4495 = vmatpush1.bf16.msra.mxu0 %v4093_v38  ;;  %v4206_v29 = vld [vmem:[#allocation4 + $0x488] sm:$0xff]  ;;  %v4205_v23 = vld [vmem:[#allocation4 + $0x480] sm:$0xff] }
 0xa65   :  { %4496 = vmatprep.subr.bf16.mxu0 %v4102_v7  ;;  %v4214_v54 = vld [vmem:[#allocation4 + $0x4c8] sm:$0xff]  ;;  %v4213_v52 = vld [vmem:[#allocation4 + $0x4c0] sm:$0xff] }
 0xa66   :  { %v4222_v2 = vld [vmem:[#allocation4 + $0x508] sm:$0xff]  ;;  %v4221_v57 = vld [vmem:[#allocation4 + $0x500] sm:$0xff] }
 0xa67   :  { %v4230_v5 = vld [vmem:[#allocation4 + $0x548] sm:$0xff]  ;;  %v4229_v41 = vld [vmem:[#allocation4 + $0x540] sm:$0xff] }
 0xa68   :  { %4497 = vmatpush1.bf16.msra.mxu0 %v4101_v48  ;;  %v4238_v49 = vld [vmem:[#allocation4 + $0x588] sm:$0xff]  ;;  %v4237_v44 = vld [vmem:[#allocation4 + $0x580] sm:$0xff] }
 0xa69   :  { %4498 = vmatprep.subr.bf16.mxu0 %v4110_v47  ;;  %v4246_v0 = vld [vmem:[#allocation4 + $0x5c8] sm:$0xff]  ;;  %v4245_v36 = vld [vmem:[#allocation4 + $0x5c0] sm:$0xff] }
 0xa6a   :  { %v4254_v39 = vld [vmem:[#allocation4 + $0x608] sm:$0xff]  ;;  %v4253_v30 = vld [vmem:[#allocation4 + $0x600] sm:$0xff] }
 0xa6b   :  { %v4262_v62 = vld [vmem:[#allocation4 + $0x648] sm:$0xff]  ;;  %v4261_v45 = vld [vmem:[#allocation4 + $0x640] sm:$0xff] }
 0xa6c   :  { %4499 = vmatpush1.bf16.msra.mxu0 %v4109_v28  ;;  %v4270_v17 = vld [vmem:[#allocation4 + $0x688] sm:$0xff]  ;;  %v4269_v19 = vld [vmem:[#allocation4 + $0x680] sm:$0xff] }
 0xa6d   :  { %4500 = vmatprep.subr.bf16.mxu0 %v4118_v20  ;;  %v4278_v42 = vld [vmem:[#allocation4 + $0x6c8] sm:$0xff]  ;;  %v4277_v38 = vld [vmem:[#allocation4 + $0x6c0] sm:$0xff] }
 0xa6e   :  { %v4286_v7 = vld [vmem:[#allocation4 + $0x708] sm:$0xff]  ;;  %v4285_v48 = vld [vmem:[#allocation4 + $0x700] sm:$0xff] }
 0xa6f   :  { %v4294_v47 = vld [vmem:[#allocation4 + $0x748] sm:$0xff]  ;;  %v4293_v28 = vld [vmem:[#allocation4 + $0x740] sm:$0xff] }
 0xa70   :  { %4501 = vmatpush1.bf16.msra.mxu0 %v4117_v58  ;;  %v4302_v20 = vld [vmem:[#allocation4 + $0x788] sm:$0xff]  ;;  %v4301_v58 = vld [vmem:[#allocation4 + $0x780] sm:$0xff] }
 0xa71   :  { %4502 = vmatprep.subr.bf16.mxu0 %v4126_v46  ;;  %v4310_v46 = vld [vmem:[#allocation4 + $0x7c8] sm:$0xff]  ;;  %v4341_v56 = vld [vmem:[#allocation4 + $0x8c0] sm:$0xff] }
 0xa72   :  { %v4334_v50 = vld [vmem:[#allocation4 + $0x888] sm:$0xff] }
 0xa74   :  { %4503 = vmatpush1.bf16.msra.mxu0 %v4125_v61  ;;  %v4309_v61 = vld [vmem:[#allocation4 + $0x7c0] sm:$0xff] }
 0xa75   :  { %4504 = vmatprep.subr.bf16.mxu0 %v4134_v10  ;;  %v4318_v10 = vld [vmem:[#allocation4 + $0x808] sm:$0xff] }
 0xa78   :  { %4505 = vmatpush1.bf16.msra.mxu0 %v4133_v63  ;;  %v6626_v63 = vpack.c.bf16 %v4047_v55, %v4047_v55  ;;  %v4333_v55 = vld [vmem:[#allocation4 + $0x880] sm:$0xff] }
 0xa79   :  { %4506 = vmatprep.subr.bf16.mxu0 %v4142_v3  ;;  %v6631_v3 = vpack.c.bf16 %v4050_v34, %v4050_v34  ;;  %v4350_v34 = vld [vmem:[#allocation4 + $0x908] sm:$0xff] }
 0xa7c   :  { %4507 = vmatpush1.bf16.msra.mxu0 %v4141_v22  ;;  %v4317_v22 = vld [vmem:[#allocation4 + $0x800] sm:$0xff] }
 0xa7d   :  { %4508 = vmatprep.subr.bf16.mxu0 %v4150_v31  ;;  %v4326_v31 = vld [vmem:[#allocation4 + $0x848] sm:$0xff] }
 0xa80   :  { %4509 = vmatpush1.bf16.msra.mxu0 %v4149_v18  ;;  %v4325_v18 = vld [vmem:[#allocation4 + $0x840] sm:$0xff] }
 0xa81   :  { %4510 = vmatprep.subr.bf16.mxu0 %v4158_v11  ;;  %v4342_v11 = vld [vmem:[#allocation4 + $0x8c8] sm:$0xff] }
 0xa84   :  { %4511 = vmatpush1.bf16.msra.mxu0 %v4157_v59  ;;  %v4349_v59 = vld [vmem:[#allocation4 + $0x900] sm:$0xff] }
 0xa85   :  { %4512 = vmatprep.subr.bf16.mxu0 %v4166_v26  ;;  %v4358_v26 = vld [vmem:[#allocation4 + $0x948] sm:$0xff] }
 0xa88   :  { %4513 = vmatpush1.bf16.msra.mxu0 %v4165_v14  ;;  %v4357_v14 = vld [vmem:[#allocation4 + $0x940] sm:$0xff] }
 0xa89   :  { %4514 = vmatprep.subr.bf16.mxu0 %v4174_v53  ;;  %v4366_v53 = vld [vmem:[#allocation4 + $0x988] sm:$0xff] }
 0xa8c   :  { %4515 = vmatpush1.bf16.msra.mxu0 %v4173_v13  ;;  %v4365_v13 = vld [vmem:[#allocation4 + $0x980] sm:$0xff] }
 0xa8d   :  { %4516 = vmatprep.subr.bf16.mxu0 %v4182_v16  ;;  %v4374_v16 = vld [vmem:[#allocation4 + $0x9c8] sm:$0xff] }
 0xa90   :  { %4517 = vmatpush1.bf16.msra.mxu0 %v4181_v21  ;;  %v4373_v21 = vld [vmem:[#allocation4 + $0x9c0] sm:$0xff] }
 0xa91   :  { %4527 = vmatprep.subr.bf16.mxu0 %v4190_v33  ;;  %v4382_v33 = vld [vmem:[#allocation4 + $0xa08] sm:$0xff] }
 0xa93   :  { %4519 = vmatmul.mubr.bf16.vlgmr.msra.gmra.mrb[28].mxu0 %v6614_v12 }
 0xa94   :  { %4528 = vmatpush1.bf16.msra.mxu0 %v4189_v60  ;;  %4559 = vmatprep.mubr.bf16.mxu0 %v6619_v4  ;;  %v4381_v60 = vld [vmem:[#allocation4 + $0xa00] sm:$0xff] }
 0xa95   :  { %4529 = vmatprep.subr.bf16.mxu0 %v4198_v27  ;;  %v4390_v27 = vld [vmem:[#allocation4 + $0xa48] sm:$0xff] }
 0xa98   :  { %4530 = vmatpush1.bf16.msra.mxu0 %v4197_v35  ;;  %v4389_v35 = vld [vmem:[#allocation4 + $0xa40] sm:$0xff] }
 0xa99   :  { %4531 = vmatprep.subr.bf16.mxu0 %v4206_v29  ;;  %v4398_v29 = vld [vmem:[#allocation4 + $0xa88] sm:$0xff] }
 0xa9c   :  { %4532 = vmatpush1.bf16.msra.mxu0 %v4205_v23  ;;  %v4397_v23 = vld [vmem:[#allocation4 + $0xa80] sm:$0xff] }
 0xa9d   :  { %4533 = vmatprep.subr.bf16.mxu0 %v4214_v54  ;;  %v4406_v54 = vld [vmem:[#allocation4 + $0xac8] sm:$0xff] }
 0xaa0   :  { %4534 = vmatpush1.bf16.msra.mxu0 %v4213_v52  ;;  %v4405_v52 = vld [vmem:[#allocation4 + $0xac0] sm:$0xff] }
 0xaa1   :  { %4535 = vmatprep.subr.bf16.mxu0 %v4222_v2  ;;  %v4414_v2 = vld [vmem:[#allocation4 + $0xb08] sm:$0xff] }
 0xaa4   :  { %4536 = vmatpush1.bf16.msra.mxu0 %v4221_v57  ;;  %v4413_v57 = vld [vmem:[#allocation4 + $0xb00] sm:$0xff] }
 0xaa5   :  { %4537 = vmatprep.subr.bf16.mxu0 %v4230_v5  ;;  %v4422_v5 = vld [vmem:[#allocation4 + $0xb48] sm:$0xff] }
 0xaa8   :  { %4538 = vmatpush1.bf16.msra.mxu0 %v4229_v41  ;;  %v4421_v41 = vld [vmem:[#allocation4 + $0xb40] sm:$0xff] }
 0xaa9   :  { %4539 = vmatprep.subr.bf16.mxu0 %v4238_v49  ;;  %v4430_v49 = vld [vmem:[#allocation4 + $0xb88] sm:$0xff] }
 0xaac   :  { %4540 = vmatpush1.bf16.msra.mxu0 %v4237_v44  ;;  %v4429_v44 = vld [vmem:[#allocation4 + $0xb80] sm:$0xff] }
 0xaad   :  { %4541 = vmatprep.subr.bf16.mxu0 %v4246_v0  ;;  %v4438_v0 = vld [vmem:[#allocation4 + $0xbc8] sm:$0xff] }
 0xab0   :  { %4542 = vmatpush1.bf16.msra.mxu0 %v4245_v36  ;;  %v4437_v36 = vld [vmem:[#allocation4 + $0xbc0] sm:$0xff] }
 0xab1   :  { %4543 = vmatprep.subr.bf16.mxu0 %v4254_v39  ;;  %v4064_v39 = vld [vmem:[#allocation4 + $0x18] sm:$0xff] }
 0xab4   :  { %4544 = vmatpush1.bf16.msra.mxu0 %v4253_v30  ;;  %v6638_v30 = vpack.c.bf16 %v4049_v15, %v4049_v15  ;;  %v4096_v15 = vld [vmem:[#allocation4 + $0x118] sm:$0xff] }
 0xab5   :  { %4545 = vmatprep.subr.bf16.mxu0 %v4262_v62  ;;  %v4063_v62 = vld [vmem:[#allocation4 + $0x10] sm:$0xff] }
 0xab8   :  { %4546 = vmatpush1.bf16.msra.mxu0 %v4261_v45  ;;  %v4072_v45 = vld [vmem:[#allocation4 + $0x58] sm:$0xff] }
 0xab9   :  { %4547 = vmatprep.subr.bf16.mxu0 %v4270_v17  ;;  %v4071_v17 = vld [vmem:[#allocation4 + $0x50] sm:$0xff] }
 0xabc   :  { %4548 = vmatpush1.bf16.msra.mxu0 %v4269_v19  ;;  %v4080_v19 = vld [vmem:[#allocation4 + $0x98] sm:$0xff] }
 0xabd   :  { %4549 = vmatprep.subr.bf16.mxu0 %v4278_v42  ;;  %v4079_v42 = vld [vmem:[#allocation4 + $0x90] sm:$0xff] }
 0xac0   :  { %4550 = vmatpush1.bf16.msra.mxu0 %v4277_v38  ;;  %v4088_v38 = vld [vmem:[#allocation4 + $0xd8] sm:$0xff] }
 0xac1   :  { %4551 = vmatprep.subr.bf16.mxu0 %v4286_v7  ;;  %v4095_v7 = vld [vmem:[#allocation4 + $0x110] sm:$0xff] }
 0xac4   :  { %4552 = vmatpush1.bf16.msra.mxu0 %v4285_v48  ;;  %v4104_v48 = vld [vmem:[#allocation4 + $0x158] sm:$0xff] }
 0xac5   :  { %4553 = vmatprep.subr.bf16.mxu0 %v4294_v47  ;;  %v4103_v47 = vld [vmem:[#allocation4 + $0x150] sm:$0xff] }
 0xac8   :  { %4554 = vmatpush1.bf16.msra.mxu0 %v4293_v28  ;;  %v4112_v28 = vld [vmem:[#allocation4 + $0x198] sm:$0xff] }
 0xac9   :  { %4555 = vmatprep.subr.bf16.mxu0 %v4302_v20  ;;  %v4111_v20 = vld [vmem:[#allocation4 + $0x190] sm:$0xff] }
 0xacc   :  { %4556 = vmatpush1.bf16.msra.mxu0 %v4301_v58  ;;  %v4120_v58 = vld [vmem:[#allocation4 + $0x1d8] sm:$0xff] }
 0xacd   :  { %4557 = vmatprep.subr.bf16.mxu0 %v4310_v46  ;;  %v4119_v46 = vld [vmem:[#allocation4 + $0x1d0] sm:$0xff] }
 0xad0   :  { %4558 = vmatpush1.bf16.msra.mxu0 %v4309_v61  ;;  %v4128_v61 = vld [vmem:[#allocation4 + $0x218] sm:$0xff] }
 0xad1   :  { %4568 = vmatprep.subr.bf16.mxu0 %v4318_v10  ;;  %v4127_v10 = vld [vmem:[#allocation4 + $0x210] sm:$0xff] }
 0xad3   :  { %4560 = vmatmul.mubr.bf16.vlgmr.msra.gmra.mrb[28].mxu0 %v6626_v63 }
 0xad4   :  { %4569 = vmatpush1.bf16.msra.mxu0 %v4317_v22  ;;  %4600 = vmatprep.mubr.bf16.mxu0 %v6631_v3  ;;  %v4136_v22 = vld [vmem:[#allocation4 + $0x258] sm:$0xff] }
 0xad5   :  { %4570 = vmatprep.subr.bf16.mxu0 %v4326_v31  ;;  %v4135_v31 = vld [vmem:[#allocation4 + $0x250] sm:$0xff] }
 0xad8   :  { %4571 = vmatpush1.bf16.msra.mxu0 %v4325_v18  ;;  %v4144_v18 = vld [vmem:[#allocation4 + $0x298] sm:$0xff] }
 0xad9   :  { %4572 = vmatprep.subr.bf16.mxu0 %v4334_v50  ;;  %v4143_v50 = vld [vmem:[#allocation4 + $0x290] sm:$0xff] }
 0xadc   :  { %4573 = vmatpush1.bf16.msra.mxu0 %v4333_v55  ;;  %v4152_v55 = vld [vmem:[#allocation4 + $0x2d8] sm:$0xff] }
 0xadd   :  { %4574 = vmatprep.subr.bf16.mxu0 %v4342_v11  ;;  %v4151_v11 = vld [vmem:[#allocation4 + $0x2d0] sm:$0xff] }
 0xae0   :  { %4575 = vmatpush1.bf16.msra.mxu0 %v4341_v56  ;;  %v4160_v56 = vld [vmem:[#allocation4 + $0x318] sm:$0xff] }
 0xae1   :  { %4576 = vmatprep.subr.bf16.mxu0 %v4350_v34  ;;  %v4159_v34 = vld [vmem:[#allocation4 + $0x310] sm:$0xff] }
 0xae4   :  { %4577 = vmatpush1.bf16.msra.mxu0 %v4349_v59  ;;  %v4168_v59 = vld [vmem:[#allocation4 + $0x358] sm:$0xff] }
 0xae5   :  { %4578 = vmatprep.subr.bf16.mxu0 %v4358_v26  ;;  %v4167_v26 = vld [vmem:[#allocation4 + $0x350] sm:$0xff] }
 0xae8   :  { %4579 = vmatpush1.bf16.msra.mxu0 %v4357_v14  ;;  %v4176_v14 = vld [vmem:[#allocation4 + $0x398] sm:$0xff] }
 0xae9   :  { %4580 = vmatprep.subr.bf16.mxu0 %v4366_v53  ;;  %v4175_v53 = vld [vmem:[#allocation4 + $0x390] sm:$0xff] }
 0xaec   :  { %4581 = vmatpush1.bf16.msra.mxu0 %v4365_v13  ;;  %v4184_v13 = vld [vmem:[#allocation4 + $0x3d8] sm:$0xff] }
 0xaed   :  { %4582 = vmatprep.subr.bf16.mxu0 %v4374_v16  ;;  %v4183_v16 = vld [vmem:[#allocation4 + $0x3d0] sm:$0xff] }
 0xaf0   :  { %4583 = vmatpush1.bf16.msra.mxu0 %v4373_v21  ;;  %v4192_v21 = vld [vmem:[#allocation4 + $0x418] sm:$0xff] }
 0xaf1   :  { %4584 = vmatprep.subr.bf16.mxu0 %v4382_v33  ;;  %v4191_v33 = vld [vmem:[#allocation4 + $0x410] sm:$0xff] }
 0xaf4   :  { %4585 = vmatpush1.bf16.msra.mxu0 %v4381_v60  ;;  %v4200_v60 = vld [vmem:[#allocation4 + $0x458] sm:$0xff] }
 0xaf5   :  { %4586 = vmatprep.subr.bf16.mxu0 %v4390_v27  ;;  %v4199_v27 = vld [vmem:[#allocation4 + $0x450] sm:$0xff] }
 0xaf8   :  { %4587 = vmatpush1.bf16.msra.mxu0 %v4389_v35  ;;  %v4208_v35 = vld [vmem:[#allocation4 + $0x498] sm:$0xff] }
 0xaf9   :  { %4588 = vmatprep.subr.bf16.mxu0 %v4398_v29  ;;  %v4207_v29 = vld [vmem:[#allocation4 + $0x490] sm:$0xff] }
 0xafc   :  { %4589 = vmatpush1.bf16.msra.mxu0 %v4397_v23  ;;  %v4216_v23 = vld [vmem:[#allocation4 + $0x4d8] sm:$0xff] }
 0xafd   :  { %4590 = vmatprep.subr.bf16.mxu0 %v4406_v54  ;;  %v4215_v54 = vld [vmem:[#allocation4 + $0x4d0] sm:$0xff] }
 0xb00   :  { %4591 = vmatpush1.bf16.msra.mxu0 %v4405_v52  ;;  %v4224_v52 = vld [vmem:[#allocation4 + $0x518] sm:$0xff] }
 0xb01   :  { %4592 = vmatprep.subr.bf16.mxu0 %v4414_v2  ;;  %v4223_v2 = vld [vmem:[#allocation4 + $0x510] sm:$0xff] }
 0xb04   :  { %4593 = vmatpush1.bf16.msra.mxu0 %v4413_v57  ;;  %v4232_v57 = vld [vmem:[#allocation4 + $0x558] sm:$0xff] }
 0xb05   :  { %4594 = vmatprep.subr.bf16.mxu0 %v4422_v5  ;;  %v4231_v5 = vld [vmem:[#allocation4 + $0x550] sm:$0xff] }
 0xb08   :  { %4595 = vmatpush1.bf16.msra.mxu0 %v4421_v41  ;;  %v4240_v41 = vld [vmem:[#allocation4 + $0x598] sm:$0xff] }
 0xb09   :  { %4596 = vmatprep.subr.bf16.mxu0 %v4430_v49  ;;  %v4239_v49 = vld [vmem:[#allocation4 + $0x590] sm:$0xff] }
 0xb0c   :  { %4597 = vmatpush1.bf16.msra.mxu0 %v4429_v44  ;;  %v4248_v44 = vld [vmem:[#allocation4 + $0x5d8] sm:$0xff] }
 0xb0d   :  { %4598 = vmatprep.subr.bf16.mxu0 %v4438_v0  ;;  %v4247_v0 = vld [vmem:[#allocation4 + $0x5d0] sm:$0xff] }
 0xb10   :  { %4599 = vmatpush1.bf16.msra.mxu0 %v4437_v36  ;;  %v4256_v36 = vld [vmem:[#allocation4 + $0x618] sm:$0xff] }
 0xb11   :  { %4609 = vmatprep.subr.bf16.mxu0 %v4064_v39  ;;  %v4255_v39 = vld [vmem:[#allocation4 + $0x610] sm:$0xff] }
 0xb13   :  { %4601 = vmatmul.mubr.bf16.vlgmr.msra.gmra.mrb[28].mxu0 %v6638_v30 }
 0xb14   :  { %4610 = vmatpush1.bf16.msra.mxu0 %v4063_v62  ;;  %4641 = vmatprep.mubr.bf16.mxu0 %v6608_v25  ;;  %v4264_v62 = vld [vmem:[#allocation4 + $0x658] sm:$0xff] }
 0xb15   :  { %4611 = vmatprep.subr.bf16.mxu0 %v4072_v45  ;;  %v4263_v45 = vld [vmem:[#allocation4 + $0x650] sm:$0xff] }
 0xb18   :  { %4612 = vmatpush1.bf16.msra.mxu0 %v4071_v17  ;;  %v4272_v17 = vld [vmem:[#allocation4 + $0x698] sm:$0xff] }
 0xb19   :  { %4613 = vmatprep.subr.bf16.mxu0 %v4080_v19  ;;  %v4271_v19 = vld [vmem:[#allocation4 + $0x690] sm:$0xff] }
 0xb1c   :  { %4614 = vmatpush1.bf16.msra.mxu0 %v4079_v42  ;;  %v4280_v42 = vld [vmem:[#allocation4 + $0x6d8] sm:$0xff] }
 0xb1d   :  { %4615 = vmatprep.subr.bf16.mxu0 %v4088_v38  ;;  %v4279_v38 = vld [vmem:[#allocation4 + $0x6d0] sm:$0xff] }
 0xb20   :  { %4616 = vmatpush1.bf16.msra.mxu0 %v4087_v51  ;;  %v4288_v51 = vld [vmem:[#allocation4 + $0x718] sm:$0xff] }
 0xb21   :  { %4617 = vmatprep.subr.bf16.mxu0 %v4096_v15  ;;  %v4287_v15 = vld [vmem:[#allocation4 + $0x710] sm:$0xff] }
 0xb24   :  { %4618 = vmatpush1.bf16.msra.mxu0 %v4095_v7  ;;  %v4296_v7 = vld [vmem:[#allocation4 + $0x758] sm:$0xff] }
 0xb25   :  { %4619 = vmatprep.subr.bf16.mxu0 %v4104_v48  ;;  %v4295_v48 = vld [vmem:[#allocation4 + $0x750] sm:$0xff] }
 0xb28   :  { %4620 = vmatpush1.bf16.msra.mxu0 %v4103_v47  ;;  %v4304_v47 = vld [vmem:[#allocation4 + $0x798] sm:$0xff] }
 0xb29   :  { %4621 = vmatprep.subr.bf16.mxu0 %v4112_v28  ;;  %v4303_v28 = vld [vmem:[#allocation4 + $0x790] sm:$0xff] }
 0xb2c   :  { %4622 = vmatpush1.bf16.msra.mxu0 %v4111_v20  ;;  %v4312_v20 = vld [vmem:[#allocation4 + $0x7d8] sm:$0xff] }
 0xb2d   :  { %4623 = vmatprep.subr.bf16.mxu0 %v4120_v58  ;;  %v4311_v58 = vld [vmem:[#allocation4 + $0x7d0] sm:$0xff] }
 0xb30   :  { %4624 = vmatpush1.bf16.msra.mxu0 %v4119_v46  ;;  %v4320_v46 = vld [vmem:[#allocation4 + $0x818] sm:$0xff] }
 0xb31   :  { %4625 = vmatprep.subr.bf16.mxu0 %v4128_v61  ;;  %v4319_v61 = vld [vmem:[#allocation4 + $0x810] sm:$0xff] }
 0xb34   :  { %4626 = vmatpush1.bf16.msra.mxu0 %v4127_v10  ;;  %v4328_v10 = vld [vmem:[#allocation4 + $0x858] sm:$0xff] }
 0xb35   :  { %4627 = vmatprep.subr.bf16.mxu0 %v4136_v22  ;;  %v4327_v22 = vld [vmem:[#allocation4 + $0x850] sm:$0xff] }
 0xb38   :  { %4628 = vmatpush1.bf16.msra.mxu0 %v4135_v31  ;;  %v4336_v31 = vld [vmem:[#allocation4 + $0x898] sm:$0xff] }
 0xb39   :  { %4629 = vmatprep.subr.bf16.mxu0 %v4144_v18  ;;  %v4335_v18 = vld [vmem:[#allocation4 + $0x890] sm:$0xff] }
 0xb3c   :  { %4630 = vmatpush1.bf16.msra.mxu0 %v4143_v50  ;;  %v4344_v50 = vld [vmem:[#allocation4 + $0x8d8] sm:$0xff] }
 0xb3d   :  { %4631 = vmatprep.subr.bf16.mxu0 %v4152_v55  ;;  %v4343_v55 = vld [vmem:[#allocation4 + $0x8d0] sm:$0xff] }
 0xb40   :  { %4632 = vmatpush1.bf16.msra.mxu0 %v4151_v11  ;;  %v4352_v11 = vld [vmem:[#allocation4 + $0x918] sm:$0xff] }
 0xb41   :  { %4633 = vmatprep.subr.bf16.mxu0 %v4160_v56  ;;  %v4351_v56 = vld [vmem:[#allocation4 + $0x910] sm:$0xff] }
 0xb44   :  { %4634 = vmatpush1.bf16.msra.mxu0 %v4159_v34  ;;  %v4360_v34 = vld [vmem:[#allocation4 + $0x958] sm:$0xff] }
 0xb45   :  { %4635 = vmatprep.subr.bf16.mxu0 %v4168_v59  ;;  %v4359_v59 = vld [vmem:[#allocation4 + $0x950] sm:$0xff] }
 0xb48   :  { %4636 = vmatpush1.bf16.msra.mxu0 %v4167_v26  ;;  %v4368_v26 = vld [vmem:[#allocation4 + $0x998] sm:$0xff] }
 0xb49   :  { %4637 = vmatprep.subr.bf16.mxu0 %v4176_v14  ;;  %v4367_v14 = vld [vmem:[#allocation4 + $0x990] sm:$0xff] }
 0xb4c   :  { %4638 = vmatpush1.bf16.msra.mxu0 %v4175_v53  ;;  %v4376_v53 = vld [vmem:[#allocation4 + $0x9d8] sm:$0xff] }
 0xb4d   :  { %4639 = vmatprep.subr.bf16.mxu0 %v4184_v13  ;;  %v4375_v13 = vld [vmem:[#allocation4 + $0x9d0] sm:$0xff] }
 0xb50   :  { %4640 = vmatpush1.bf16.msra.mxu0 %v4183_v16  ;;  %v4384_v16 = vld [vmem:[#allocation4 + $0xa18] sm:$0xff] }
 0xb51   :  { %4650 = vmatprep.subr.bf16.mxu0 %v4192_v21  ;;  %v4383_v21 = vld [vmem:[#allocation4 + $0xa10] sm:$0xff] }
 0xb53   :  { %4642 = vmatmul.mubr.bf16.vlgmr.msra.gmra.mrb[32].mxu0 %v6614_v12 }
 0xb54   :  { %4651 = vmatpush1.bf16.msra.mxu0 %v4191_v33  ;;  %4682 = vmatprep.mubr.bf16.mxu0 %v6619_v4  ;;  %v4392_v33 = vld [vmem:[#allocation4 + $0xa58] sm:$0xff] }
 0xb55   :  { %4652 = vmatprep.subr.bf16.mxu0 %v4200_v60  ;;  %v4391_v60 = vld [vmem:[#allocation4 + $0xa50] sm:$0xff] }
 0xb58   :  { %4653 = vmatpush1.bf16.msra.mxu0 %v4199_v27  ;;  %v4400_v27 = vld [vmem:[#allocation4 + $0xa98] sm:$0xff] }
 0xb59   :  { %4654 = vmatprep.subr.bf16.mxu0 %v4208_v35  ;;  %v4399_v35 = vld [vmem:[#allocation4 + $0xa90] sm:$0xff] }
 0xb5c   :  { %4655 = vmatpush1.bf16.msra.mxu0 %v4207_v29  ;;  %v4408_v29 = vld [vmem:[#allocation4 + $0xad8] sm:$0xff] }
 0xb5d   :  { %4656 = vmatprep.subr.bf16.mxu0 %v4216_v23  ;;  %v4407_v23 = vld [vmem:[#allocation4 + $0xad0] sm:$0xff] }
 0xb60   :  { %4657 = vmatpush1.bf16.msra.mxu0 %v4215_v54  ;;  %v4416_v54 = vld [vmem:[#allocation4 + $0xb18] sm:$0xff] }
 0xb61   :  { %4658 = vmatprep.subr.bf16.mxu0 %v4224_v52  ;;  %v4415_v52 = vld [vmem:[#allocation4 + $0xb10] sm:$0xff] }
 0xb64   :  { %4659 = vmatpush1.bf16.msra.mxu0 %v4223_v2  ;;  %v4424_v2 = vld [vmem:[#allocation4 + $0xb58] sm:$0xff] }
 0xb65   :  { %4660 = vmatprep.subr.bf16.mxu0 %v4232_v57  ;;  %v4423_v57 = vld [vmem:[#allocation4 + $0xb50] sm:$0xff] }
 0xb68   :  { %4661 = vmatpush1.bf16.msra.mxu0 %v4231_v5  ;;  %v4432_v5 = vld [vmem:[#allocation4 + $0xb98] sm:$0xff] }
 0xb69   :  { %4662 = vmatprep.subr.bf16.mxu0 %v4240_v41  ;;  %v4431_v41 = vld [vmem:[#allocation4 + $0xb90] sm:$0xff] }
 0xb6c   :  { %4663 = vmatpush1.bf16.msra.mxu0 %v4239_v49  ;;  %v4440_v49 = vld [vmem:[#allocation4 + $0xbd8] sm:$0xff] }
 0xb6d   :  { %4664 = vmatprep.subr.bf16.mxu0 %v4248_v44  ;;  %v4439_v44 = vld [vmem:[#allocation4 + $0xbd0] sm:$0xff] }
 0xb70   :  { %4665 = vmatpush1.bf16.msra.mxu0 %v4247_v0  ;;  %v4066_v0 = vld [vmem:[#allocation4 + $0x28] sm:$0xff] }
 0xb71   :  { %4666 = vmatprep.subr.bf16.mxu0 %v4256_v36  ;;  %v4065_v36 = vld [vmem:[#allocation4 + $0x20] sm:$0xff] }
 0xb74   :  { %4667 = vmatpush1.bf16.msra.mxu0 %v4255_v39  ;;  %v4074_v39 = vld [vmem:[#allocation4 + $0x68] sm:$0xff] }
 0xb75   :  { %4668 = vmatprep.subr.bf16.mxu0 %v4264_v62  ;;  %v4073_v62 = vld [vmem:[#allocation4 + $0x60] sm:$0xff] }
 0xb78   :  { %4669 = vmatpush1.bf16.msra.mxu0 %v4263_v45  ;;  %v4082_v45 = vld [vmem:[#allocation4 + $0xa8] sm:$0xff] }
 0xb79   :  { %4670 = vmatprep.subr.bf16.mxu0 %v4272_v17  ;;  %v4081_v17 = vld [vmem:[#allocation4 + $0xa0] sm:$0xff] }
 0xb7c   :  { %4671 = vmatpush1.bf16.msra.mxu0 %v4271_v19  ;;  %v4090_v19 = vld [vmem:[#allocation4 + $0xe8] sm:$0xff] }
 0xb7d   :  { %4672 = vmatprep.subr.bf16.mxu0 %v4280_v42  ;;  %v4089_v42 = vld [vmem:[#allocation4 + $0xe0] sm:$0xff] }
 0xb80   :  { %4673 = vmatpush1.bf16.msra.mxu0 %v4279_v38  ;;  %v4098_v38 = vld [vmem:[#allocation4 + $0x128] sm:$0xff] }
 0xb81   :  { %4674 = vmatprep.subr.bf16.mxu0 %v4288_v51  ;;  %v4097_v51 = vld [vmem:[#allocation4 + $0x120] sm:$0xff] }
 0xb84   :  { %4675 = vmatpush1.bf16.msra.mxu0 %v4287_v15  ;;  %v4106_v15 = vld [vmem:[#allocation4 + $0x168] sm:$0xff] }
 0xb85   :  { %4676 = vmatprep.subr.bf16.mxu0 %v4296_v7  ;;  %v4449_v7 = vrot.slane %v5938_v1, %v2418_v8 }
 0xb88   :  { %4677 = vmatpush1.bf16.msra.mxu0 %v4295_v48  ;;  %v4453_v48 = vrot.slane %v5938_v1, %v2422_v9  ;;  %v4121_v9 = vld [vmem:[#allocation4 + $0x1e0] sm:$0xff] }
 0xb89   :  { %4678 = vmatprep.subr.bf16.mxu0 %v4304_v47  ;;  %v4105_v47 = vld [vmem:[#allocation4 + $0x160] sm:$0xff] }
 0xb8c   :  { %4679 = vmatpush1.bf16.msra.mxu0 %v4303_v28 }
 0xb8d   :  { %4680 = vmatprep.subr.bf16.mxu0 %v4312_v20  ;;  %v4114_v20 = vld [vmem:[#allocation4 + $0x1a8] sm:$0xff] }
 0xb90   :  { %4681 = vmatpush1.bf16.msra.mxu0 %v4311_v58 }
 0xb91   :  { %4691 = vmatprep.subr.bf16.mxu0 %v4320_v46 }
 0xb93   :  { %4683 = vmatmul.mubr.bf16.vlgmr.msra.gmra.mrb[32].mxu0 %v6626_v63 }
 0xb94   :  { %4692 = vmatpush1.bf16.msra.mxu0 %v4319_v61  ;;  %4723 = vmatprep.mubr.bf16.mxu0 %v6631_v3 }
 0xb95   :  { %4693 = vmatprep.subr.bf16.mxu0 %v4328_v10 }
 0xb98   :  { %4694 = vmatpush1.bf16.msra.mxu0 %v4327_v22 }
 0xb99   :  { %4695 = vmatprep.subr.bf16.mxu0 %v4336_v31  ;;  %v4113_v31 = vld [vmem:[#allocation4 + $0x1a0] sm:$0xff] }
 0xb9c   :  { %4696 = vmatpush1.bf16.msra.mxu0 %v4335_v18  ;;  %v4122_v18 = vld [vmem:[#allocation4 + $0x1e8] sm:$0xff] }
 0xb9d   :  { %4697 = vmatprep.subr.bf16.mxu0 %v4344_v50  ;;  %v4130_v50 = vld [vmem:[#allocation4 + $0x228] sm:$0xff] }
 0xba0   :  { %4698 = vmatpush1.bf16.msra.mxu0 %v4343_v55  ;;  %v4129_v55 = vld [vmem:[#allocation4 + $0x220] sm:$0xff] }
 0xba1   :  { %4699 = vmatprep.subr.bf16.mxu0 %v4352_v11  ;;  %v4138_v11 = vld [vmem:[#allocation4 + $0x268] sm:$0xff] }
 0xba4   :  { %4700 = vmatpush1.bf16.msra.mxu0 %v4351_v56  ;;  %v4137_v56 = vld [vmem:[#allocation4 + $0x260] sm:$0xff] }
 0xba5   :  { %4701 = vmatprep.subr.bf16.mxu0 %v4360_v34  ;;  %v4146_v34 = vld [vmem:[#allocation4 + $0x2a8] sm:$0xff] }
 0xba8   :  { %4702 = vmatpush1.bf16.msra.mxu0 %v4359_v59  ;;  %v4145_v59 = vld [vmem:[#allocation4 + $0x2a0] sm:$0xff] }
 0xba9   :  { %4703 = vmatprep.subr.bf16.mxu0 %v4368_v26  ;;  %v4154_v26 = vld [vmem:[#allocation4 + $0x2e8] sm:$0xff] }
 0xbac   :  { %4704 = vmatpush1.bf16.msra.mxu0 %v4367_v14  ;;  %v4153_v14 = vld [vmem:[#allocation4 + $0x2e0] sm:$0xff] }
 0xbad   :  { %4705 = vmatprep.subr.bf16.mxu0 %v4376_v53  ;;  %v4162_v53 = vld [vmem:[#allocation4 + $0x328] sm:$0xff] }
 0xbb0   :  { %4706 = vmatpush1.bf16.msra.mxu0 %v4375_v13  ;;  %v4161_v13 = vld [vmem:[#allocation4 + $0x320] sm:$0xff] }
 0xbb1   :  { %4707 = vmatprep.subr.bf16.mxu0 %v4384_v16  ;;  %v4170_v16 = vld [vmem:[#allocation4 + $0x368] sm:$0xff] }
 0xbb4   :  { %4708 = vmatpush1.bf16.msra.mxu0 %v4383_v21  ;;  %v4169_v21 = vld [vmem:[#allocation4 + $0x360] sm:$0xff] }
 0xbb5   :  { %4709 = vmatprep.subr.bf16.mxu0 %v4392_v33  ;;  %v4178_v33 = vld [vmem:[#allocation4 + $0x3a8] sm:$0xff] }
 0xbb8   :  { %4710 = vmatpush1.bf16.msra.mxu0 %v4391_v60  ;;  %v4177_v60 = vld [vmem:[#allocation4 + $0x3a0] sm:$0xff] }
 0xbb9   :  { %4711 = vmatprep.subr.bf16.mxu0 %v4400_v27  ;;  %v4186_v27 = vld [vmem:[#allocation4 + $0x3e8] sm:$0xff] }
 0xbbc   :  { %4712 = vmatpush1.bf16.msra.mxu0 %v4399_v35  ;;  %v4185_v35 = vld [vmem:[#allocation4 + $0x3e0] sm:$0xff] }
 0xbbd   :  { %4713 = vmatprep.subr.bf16.mxu0 %v4408_v29  ;;  %v4194_v29 = vld [vmem:[#allocation4 + $0x428] sm:$0xff] }
 0xbc0   :  { %4714 = vmatpush1.bf16.msra.mxu0 %v4407_v23  ;;  %v4193_v23 = vld [vmem:[#allocation4 + $0x420] sm:$0xff] }
 0xbc1   :  { %4715 = vmatprep.subr.bf16.mxu0 %v4416_v54  ;;  %v4202_v54 = vld [vmem:[#allocation4 + $0x468] sm:$0xff] }
 0xbc4   :  { %4716 = vmatpush1.bf16.msra.mxu0 %v4415_v52  ;;  %v4201_v52 = vld [vmem:[#allocation4 + $0x460] sm:$0xff] }
 0xbc5   :  { %4717 = vmatprep.subr.bf16.mxu0 %v4424_v2  ;;  %v4210_v2 = vld [vmem:[#allocation4 + $0x4a8] sm:$0xff] }
 0xbc8   :  { %4718 = vmatpush1.bf16.msra.mxu0 %v4423_v57  ;;  %v4209_v57 = vld [vmem:[#allocation4 + $0x4a0] sm:$0xff] }
 0xbc9   :  { %4719 = vmatprep.subr.bf16.mxu0 %v4432_v5  ;;  %v4218_v5 = vld [vmem:[#allocation4 + $0x4e8] sm:$0xff] }
 0xbcc   :  { %4720 = vmatpush1.bf16.msra.mxu0 %v4431_v41  ;;  %v4217_v41 = vld [vmem:[#allocation4 + $0x4e0] sm:$0xff] }
 0xbcd   :  { %4721 = vmatprep.subr.bf16.mxu0 %v4440_v49  ;;  %v4226_v49 = vld [vmem:[#allocation4 + $0x528] sm:$0xff] }
 0xbd0   :  { %4722 = vmatpush1.bf16.msra.mxu0 %v4439_v44  ;;  %v4225_v44 = vld [vmem:[#allocation4 + $0x520] sm:$0xff] }
 0xbd1   :  { %4732 = vmatprep.subr.bf16.mxu0 %v4066_v0  ;;  %v4234_v0 = vld [vmem:[#allocation4 + $0x568] sm:$0xff] }
 0xbd3   :  { %4724 = vmatmul.mubr.bf16.vlgmr.msra.gmra.mrb[32].mxu0 %v6638_v30 }
 0xbd4   :  { %4733 = vmatpush1.bf16.msra.mxu0 %v4065_v36  ;;  %4764 = vmatprep.mubr.bf16.mxu0 %v6608_v25  ;;  %v4233_v36 = vld [vmem:[#allocation4 + $0x560] sm:$0xff] }
 0xbd5   :  { %4734 = vmatprep.subr.bf16.mxu0 %v4074_v39  ;;  %v4242_v39 = vld [vmem:[#allocation4 + $0x5a8] sm:$0xff] }
 0xbd8   :  { %4735 = vmatpush1.bf16.msra.mxu0 %v4073_v62  ;;  %v4241_v62 = vld [vmem:[#allocation4 + $0x5a0] sm:$0xff] }
 0xbd9   :  { %4736 = vmatprep.subr.bf16.mxu0 %v4082_v45  ;;  %v4250_v45 = vld [vmem:[#allocation4 + $0x5e8] sm:$0xff] }
 0xbdc   :  { %4737 = vmatpush1.bf16.msra.mxu0 %v4081_v17  ;;  %v4249_v17 = vld [vmem:[#allocation4 + $0x5e0] sm:$0xff] }
 0xbdd   :  { %4738 = vmatprep.subr.bf16.mxu0 %v4090_v19  ;;  %v4258_v19 = vld [vmem:[#allocation4 + $0x628] sm:$0xff] }
 0xbe0   :  { %4739 = vmatpush1.bf16.msra.mxu0 %v4089_v42  ;;  %v4257_v42 = vld [vmem:[#allocation4 + $0x620] sm:$0xff] }
 0xbe1   :  { %4740 = vmatprep.subr.bf16.mxu0 %v4098_v38  ;;  %v4266_v38 = vld [vmem:[#allocation4 + $0x668] sm:$0xff] }
 0xbe4   :  { %4741 = vmatpush1.bf16.msra.mxu0 %v4097_v51  ;;  %v4265_v51 = vld [vmem:[#allocation4 + $0x660] sm:$0xff] }
 0xbe5   :  { %4742 = vmatprep.subr.bf16.mxu0 %v4106_v15  ;;  %v4274_v15 = vld [vmem:[#allocation4 + $0x6a8] sm:$0xff] }
 0xbe6   :  { %v4602_v28 = vpop.f32.mrb[28].mxu0 }
 0xbe7   :  { %v6654_v58 = vadd.f32 %v4602_v28, %v4449_v7  ;;  %v4604_v46 = vpop.f32.mrb[29].mxu0  ;;  %v4273_v7 = vld [vmem:[#allocation4 + $0x6a0] sm:$0xff]  ;;  %v4290_v28 = vld [vmem:[#allocation4 + $0x728] sm:$0xff] }
 0xbe8   :  { %v6656_v61 = vadd.f32 %v4604_v46, %v4453_v48  ;;  %v4606_v10 = vpop.f32.mrb[30].mxu0  ;;  %4743 = vmatpush1.bf16.msra.mxu0 %v4105_v47  ;;  %v4282_v48 = vld [vmem:[#allocation4 + $0x6e8] sm:$0xff]  ;;  %v4281_v47 = vld [vmem:[#allocation4 + $0x6e0] sm:$0xff] }
 0xbe9   :  { %v4607_v22 = vpop.f32.mrb[31].mxu0  ;;  %4744 = vmatprep.subr.bf16.mxu0 %v4114_v20  ;;  %v4289_v20 = vld [vmem:[#allocation4 + $0x720] sm:$0xff]  ;;  %v4298_v46 = vld [vmem:[#allocation4 + $0x768] sm:$0xff] }
 0xbea   :  { %v4986_v8 = vcombine.low %v6654_v58, %v6656_v61  ;;  %v4297_v10 = vld [vmem:[#allocation4 + $0x760] sm:$0xff]  ;;  %v4306_v22 = vld [vmem:[#allocation4 + $0x7a8] sm:$0xff]  ;;  %v4147_v58 = vld [vmem:[#allocation4 + $0x2b0] sm:$0xff] }
 0xbeb   :  { %v4156_v61 = vld [vmem:[#allocation4 + $0x2f8] sm:$0xff] }
 0xbec   :  { %4745 = vmatpush1.bf16.msra.mxu0 %v4113_v31  ;;  %v4305_v31 = vld [vmem:[#allocation4 + $0x7a0] sm:$0xff] }
 0xbed   :  { %4746 = vmatprep.subr.bf16.mxu0 %v4122_v18  ;;  %v4314_v18 = vld [vmem:[#allocation4 + $0x7e8] sm:$0xff] }
 0xbf0   :  { %4747 = vmatpush1.bf16.msra.mxu0 %v4121_v9  ;;  %v4313_v9 = vld [vmem:[#allocation4 + $0x7e0] sm:$0xff] }
 0xbf1   :  { %4748 = vmatprep.subr.bf16.mxu0 %v4130_v50  ;;  %v4322_v50 = vld [vmem:[#allocation4 + $0x828] sm:$0xff] }
 0xbf4   :  { %4749 = vmatpush1.bf16.msra.mxu0 %v4129_v55  ;;  %v4321_v55 = vld [vmem:[#allocation4 + $0x820] sm:$0xff] }
 0xbf5   :  { %4750 = vmatprep.subr.bf16.mxu0 %v4138_v11  ;;  %v4330_v11 = vld [vmem:[#allocation4 + $0x868] sm:$0xff] }
 0xbf8   :  { %4751 = vmatpush1.bf16.msra.mxu0 %v4137_v56  ;;  %v4329_v56 = vld [vmem:[#allocation4 + $0x860] sm:$0xff] }
 0xbf9   :  { %4752 = vmatprep.subr.bf16.mxu0 %v4146_v34  ;;  %v4338_v34 = vld [vmem:[#allocation4 + $0x8a8] sm:$0xff] }
 0xbfc   :  { %4753 = vmatpush1.bf16.msra.mxu0 %v4145_v59  ;;  %v4337_v59 = vld [vmem:[#allocation4 + $0x8a0] sm:$0xff] }
 0xbfd   :  { %4754 = vmatprep.subr.bf16.mxu0 %v4154_v26  ;;  %v4346_v26 = vld [vmem:[#allocation4 + $0x8e8] sm:$0xff] }
 0xc00   :  { %4755 = vmatpush1.bf16.msra.mxu0 %v4153_v14  ;;  %v4345_v14 = vld [vmem:[#allocation4 + $0x8e0] sm:$0xff] }
 0xc01   :  { %4756 = vmatprep.subr.bf16.mxu0 %v4162_v53  ;;  %v4354_v53 = vld [vmem:[#allocation4 + $0x928] sm:$0xff] }
 0xc04   :  { %4757 = vmatpush1.bf16.msra.mxu0 %v4161_v13  ;;  %v4353_v13 = vld [vmem:[#allocation4 + $0x920] sm:$0xff] }
 0xc05   :  { %4758 = vmatprep.subr.bf16.mxu0 %v4170_v16  ;;  %v4362_v16 = vld [vmem:[#allocation4 + $0x968] sm:$0xff] }
 0xc08   :  { %4759 = vmatpush1.bf16.msra.mxu0 %v4169_v21  ;;  %v4361_v21 = vld [vmem:[#allocation4 + $0x960] sm:$0xff] }
 0xc09   :  { %4760 = vmatprep.subr.bf16.mxu0 %v4178_v33  ;;  %v4370_v33 = vld [vmem:[#allocation4 + $0x9a8] sm:$0xff] }
 0xc0c   :  { %4761 = vmatpush1.bf16.msra.mxu0 %v4177_v60  ;;  %v4369_v60 = vld [vmem:[#allocation4 + $0x9a0] sm:$0xff] }
 0xc0d   :  { %4762 = vmatprep.subr.bf16.mxu0 %v4186_v27  ;;  %v4378_v27 = vld [vmem:[#allocation4 + $0x9e8] sm:$0xff] }
 0xc10   :  { %4763 = vmatpush1.bf16.msra.mxu0 %v4185_v35  ;;  %v4377_v35 = vld [vmem:[#allocation4 + $0x9e0] sm:$0xff] }
 0xc11   :  { %4773 = vmatprep.subr.bf16.mxu0 %v4194_v29  ;;  %v4386_v29 = vld [vmem:[#allocation4 + $0xa28] sm:$0xff] }
 0xc13   :  { %4765 = vmatmul.mubr.bf16.vlgmr.msra.gmra.mrb[36].mxu0 %v6614_v12 }
 0xc14   :  { %4774 = vmatpush1.bf16.msra.mxu0 %v4193_v23  ;;  %4805 = vmatprep.mubr.bf16.mxu0 %v6619_v4  ;;  %v4385_v23 = vld [vmem:[#allocation4 + $0xa20] sm:$0xff] }
 0xc15   :  { %4775 = vmatprep.subr.bf16.mxu0 %v4202_v54  ;;  %v4394_v54 = vld [vmem:[#allocation4 + $0xa68] sm:$0xff] }
 0xc18   :  { %4776 = vmatpush1.bf16.msra.mxu0 %v4201_v52  ;;  %v4393_v52 = vld [vmem:[#allocation4 + $0xa60] sm:$0xff] }
 0xc19   :  { %4777 = vmatprep.subr.bf16.mxu0 %v4210_v2  ;;  %v4402_v2 = vld [vmem:[#allocation4 + $0xaa8] sm:$0xff] }
 0xc1c   :  { %4778 = vmatpush1.bf16.msra.mxu0 %v4209_v57  ;;  %v4401_v57 = vld [vmem:[#allocation4 + $0xaa0] sm:$0xff] }
 0xc1d   :  { %4779 = vmatprep.subr.bf16.mxu0 %v4218_v5  ;;  %v4410_v5 = vld [vmem:[#allocation4 + $0xae8] sm:$0xff] }
 0xc20   :  { %4780 = vmatpush1.bf16.msra.mxu0 %v4217_v41  ;;  %v4409_v41 = vld [vmem:[#allocation4 + $0xae0] sm:$0xff] }
 0xc21   :  { %4781 = vmatprep.subr.bf16.mxu0 %v4226_v49  ;;  %v4418_v49 = vld [vmem:[#allocation4 + $0xb28] sm:$0xff] }
 0xc24   :  { %4782 = vmatpush1.bf16.msra.mxu0 %v4225_v44  ;;  %v4417_v44 = vld [vmem:[#allocation4 + $0xb20] sm:$0xff] }
 0xc25   :  { %4783 = vmatprep.subr.bf16.mxu0 %v4234_v0  ;;  %v4426_v0 = vld [vmem:[#allocation4 + $0xb68] sm:$0xff] }
 0xc28   :  { %4784 = vmatpush1.bf16.msra.mxu0 %v4233_v36  ;;  %v4425_v36 = vld [vmem:[#allocation4 + $0xb60] sm:$0xff] }
 0xc29   :  { %4785 = vmatprep.subr.bf16.mxu0 %v4242_v39  ;;  %v4434_v39 = vld [vmem:[#allocation4 + $0xba8] sm:$0xff] }
 0xc2c   :  { %4786 = vmatpush1.bf16.msra.mxu0 %v4241_v62  ;;  %v4433_v62 = vld [vmem:[#allocation4 + $0xba0] sm:$0xff] }
 0xc2d   :  { %4787 = vmatprep.subr.bf16.mxu0 %v4250_v45  ;;  %v4442_v45 = vld [vmem:[#allocation4 + $0xbe8] sm:$0xff] }
 0xc30   :  { %4788 = vmatpush1.bf16.msra.mxu0 %v4249_v17  ;;  %v4441_v17 = vld [vmem:[#allocation4 + $0xbe0] sm:$0xff] }
 0xc31   :  { %4789 = vmatprep.subr.bf16.mxu0 %v4258_v19  ;;  %v4068_v19 = vld [vmem:[#allocation4 + $0x38] sm:$0xff] }
 0xc34   :  { %4790 = vmatpush1.bf16.msra.mxu0 %v4257_v42  ;;  %v4067_v42 = vld [vmem:[#allocation4 + $0x30] sm:$0xff] }
 0xc35   :  { %4791 = vmatprep.subr.bf16.mxu0 %v4266_v38  ;;  %v4076_v38 = vld [vmem:[#allocation4 + $0x78] sm:$0xff] }
 0xc38   :  { %4792 = vmatpush1.bf16.msra.mxu0 %v4265_v51  ;;  %v4075_v51 = vld [vmem:[#allocation4 + $0x70] sm:$0xff] }
 0xc39   :  { %4793 = vmatprep.subr.bf16.mxu0 %v4274_v15  ;;  %v4084_v15 = vld [vmem:[#allocation4 + $0xb8] sm:$0xff] }
 0xc3c   :  { %4794 = vmatpush1.bf16.msra.mxu0 %v4273_v7  ;;  %v4083_v7 = vld [vmem:[#allocation4 + $0xb0] sm:$0xff] }
 0xc3d   :  { %4795 = vmatprep.subr.bf16.mxu0 %v4282_v48  ;;  %v4092_v48 = vld [vmem:[#allocation4 + $0xf8] sm:$0xff] }
 0xc40   :  { %4796 = vmatpush1.bf16.msra.mxu0 %v4281_v47  ;;  %v4091_v47 = vld [vmem:[#allocation4 + $0xf0] sm:$0xff] }
 0xc41   :  { %4797 = vmatprep.subr.bf16.mxu0 %v4290_v28  ;;  %v4100_v28 = vld [vmem:[#allocation4 + $0x138] sm:$0xff] }
 0xc44   :  { %4798 = vmatpush1.bf16.msra.mxu0 %v4289_v20  ;;  %v4099_v20 = vld [vmem:[#allocation4 + $0x130] sm:$0xff] }
 0xc45   :  { %4799 = vmatprep.subr.bf16.mxu0 %v4298_v46  ;;  %v4108_v46 = vld [vmem:[#allocation4 + $0x178] sm:$0xff] }
 0xc48   :  { %4800 = vmatpush1.bf16.msra.mxu0 %v4297_v10  ;;  %v4457_v10 = vrot.slane %v5938_v1, %v2426_v37  ;;  %v4994_v37 = vrot.slane %v4986_v8, %v6292_v24  ;;  %v4155_v8 = vld [vmem:[#allocation4 + $0x2f0] sm:$0xff] }
 0xc49   :  { %4801 = vmatprep.subr.bf16.mxu0 %v4306_v22  ;;  %v4107_v22 = vld [vmem:[#allocation4 + $0x170] sm:$0xff] }
 0xc4c   :  { %4802 = vmatpush1.bf16.msra.mxu0 %v4305_v31 }
 0xc4d   :  { %4803 = vmatprep.subr.bf16.mxu0 %v4314_v18  ;;  %v4116_v18 = vld [vmem:[#allocation4 + $0x1b8] sm:$0xff] }
 0xc50   :  { %4804 = vmatpush1.bf16.msra.mxu0 %v4313_v9 }
 0xc51   :  { %4814 = vmatprep.subr.bf16.mxu0 %v4322_v50 }
 0xc53   :  { %4806 = vmatmul.mubr.bf16.vlgmr.msra.gmra.mrb[36].mxu0 %v6626_v63 }
 0xc54   :  { %4815 = vmatpush1.bf16.msra.mxu0 %v4321_v55  ;;  %4846 = vmatprep.mubr.bf16.mxu0 %v6631_v3 }
 0xc55   :  { %4816 = vmatprep.subr.bf16.mxu0 %v4330_v11 }
 0xc58   :  { %4817 = vmatpush1.bf16.msra.mxu0 %v4329_v56 }
 0xc59   :  { %4818 = vmatprep.subr.bf16.mxu0 %v4338_v34  ;;  %v4115_v34 = vld [vmem:[#allocation4 + $0x1b0] sm:$0xff] }
 0xc5c   :  { %4819 = vmatpush1.bf16.msra.mxu0 %v4337_v59 }
 0xc5d   :  { %4820 = vmatprep.subr.bf16.mxu0 %v4346_v26  ;;  %v4124_v26 = vld [vmem:[#allocation4 + $0x1f8] sm:$0xff] }
 0xc60   :  { %4821 = vmatpush1.bf16.msra.mxu0 %v4345_v14  ;;  %v4123_v14 = vld [vmem:[#allocation4 + $0x1f0] sm:$0xff] }
 0xc61   :  { %4822 = vmatprep.subr.bf16.mxu0 %v4354_v53 }
 0xc64   :  { %4823 = vmatpush1.bf16.msra.mxu0 %v4353_v13  ;;  %v4132_v13 = vld [vmem:[#allocation4 + $0x238] sm:$0xff] }
 0xc65   :  { %4824 = vmatprep.subr.bf16.mxu0 %v4362_v16  ;;  %v4131_v16 = vld [vmem:[#allocation4 + $0x230] sm:$0xff] }
 0xc68   :  { %4825 = vmatpush1.bf16.msra.mxu0 %v4361_v21  ;;  %v4140_v21 = vld [vmem:[#allocation4 + $0x278] sm:$0xff] }
 0xc69   :  { %4826 = vmatprep.subr.bf16.mxu0 %v4370_v33  ;;  %v4139_v33 = vld [vmem:[#allocation4 + $0x270] sm:$0xff] }
 0xc6c   :  { %4827 = vmatpush1.bf16.msra.mxu0 %v4369_v60  ;;  %v4148_v60 = vld [vmem:[#allocation4 + $0x2b8] sm:$0xff] }
 0xc6d   :  { %4828 = vmatprep.subr.bf16.mxu0 %v4378_v27  ;;  %v4164_v27 = vld [vmem:[#allocation4 + $0x338] sm:$0xff] }
 0xc70   :  { %4829 = vmatpush1.bf16.msra.mxu0 %v4377_v35  ;;  %v4163_v35 = vld [vmem:[#allocation4 + $0x330] sm:$0xff] }
 0xc71   :  { %4830 = vmatprep.subr.bf16.mxu0 %v4386_v29  ;;  %v4172_v29 = vld [vmem:[#allocation4 + $0x378] sm:$0xff] }
 0xc74   :  { %4831 = vmatpush1.bf16.msra.mxu0 %v4385_v23  ;;  %v4171_v23 = vld [vmem:[#allocation4 + $0x370] sm:$0xff] }
 0xc75   :  { %4832 = vmatprep.subr.bf16.mxu0 %v4394_v54  ;;  %v4180_v54 = vld [vmem:[#allocation4 + $0x3b8] sm:$0xff] }
 0xc78   :  { %4833 = vmatpush1.bf16.msra.mxu0 %v4393_v52  ;;  %v4179_v52 = vld [vmem:[#allocation4 + $0x3b0] sm:$0xff] }
 0xc79   :  { %4834 = vmatprep.subr.bf16.mxu0 %v4402_v2  ;;  %v4188_v2 = vld [vmem:[#allocation4 + $0x3f8] sm:$0xff] }
 0xc7c   :  { %4835 = vmatpush1.bf16.msra.mxu0 %v4401_v57  ;;  %v4187_v57 = vld [vmem:[#allocation4 + $0x3f0] sm:$0xff] }
 0xc7d   :  { %4836 = vmatprep.subr.bf16.mxu0 %v4410_v5  ;;  %v4196_v5 = vld [vmem:[#allocation4 + $0x438] sm:$0xff] }
 0xc80   :  { %4837 = vmatpush1.bf16.msra.mxu0 %v4409_v41  ;;  %v4195_v41 = vld [vmem:[#allocation4 + $0x430] sm:$0xff] }
 0xc81   :  { %4838 = vmatprep.subr.bf16.mxu0 %v4418_v49  ;;  %v4204_v49 = vld [vmem:[#allocation4 + $0x478] sm:$0xff] }
 0xc84   :  { %4839 = vmatpush1.bf16.msra.mxu0 %v4417_v44  ;;  %v4203_v44 = vld [vmem:[#allocation4 + $0x470] sm:$0xff] }
 0xc85   :  { %4840 = vmatprep.subr.bf16.mxu0 %v4426_v0  ;;  %v4212_v0 = vld [vmem:[#allocation4 + $0x4b8] sm:$0xff] }
 0xc88   :  { %4841 = vmatpush1.bf16.msra.mxu0 %v4425_v36  ;;  %v4211_v36 = vld [vmem:[#allocation4 + $0x4b0] sm:$0xff] }
 0xc89   :  { %4842 = vmatprep.subr.bf16.mxu0 %v4434_v39  ;;  %v4220_v39 = vld [vmem:[#allocation4 + $0x4f8] sm:$0xff] }
 0xc8c   :  { %4843 = vmatpush1.bf16.msra.mxu0 %v4433_v62  ;;  %v4219_v62 = vld [vmem:[#allocation4 + $0x4f0] sm:$0xff] }
 0xc8d   :  { %4844 = vmatprep.subr.bf16.mxu0 %v4442_v45  ;;  %v4228_v45 = vld [vmem:[#allocation4 + $0x538] sm:$0xff] }
 0xc90   :  { %4845 = vmatpush1.bf16.msra.mxu0 %v4441_v17  ;;  %v4227_v17 = vld [vmem:[#allocation4 + $0x530] sm:$0xff] }
 0xc91   :  { %4855 = vmatprep.subr.bf16.mxu0 %v4068_v19  ;;  %v4236_v19 = vld [vmem:[#allocation4 + $0x578] sm:$0xff] }
 0xc93   :  { %4847 = vmatmul.mubr.bf16.vlgmr.msra.gmra.mrb[36].mxu0 %v6638_v30 }
 0xc94   :  { %4856 = vmatpush1.bf16.msra.mxu0 %v4067_v42  ;;  %4887 = vmatprep.mubr.bf16.mxu0 %v6608_v25  ;;  %v4461_v25 = vrot.slane %v5938_v1, %v2430_v40  ;;  %v4244_v42 = vld [vmem:[#allocation4 + $0x5b8] sm:$0xff] }
 0xc95   :  { %4857 = vmatprep.subr.bf16.mxu0 %v4076_v38  ;;  %v4252_v38 = vld [vmem:[#allocation4 + $0x5f8] sm:$0xff] }
 0xc98   :  { %4858 = vmatpush1.bf16.msra.mxu0 %v4075_v51  ;;  %v4251_v51 = vld [vmem:[#allocation4 + $0x5f0] sm:$0xff] }
 0xc99   :  { %4859 = vmatprep.subr.bf16.mxu0 %v4084_v15  ;;  %v4260_v15 = vld [vmem:[#allocation4 + $0x638] sm:$0xff] }
 0xc9c   :  { %4860 = vmatpush1.bf16.msra.mxu0 %v4083_v7  ;;  %v4259_v7 = vld [vmem:[#allocation4 + $0x630] sm:$0xff] }
 0xc9d   :  { %4861 = vmatprep.subr.bf16.mxu0 %v4092_v48  ;;  %v4268_v48 = vld [vmem:[#allocation4 + $0x678] sm:$0xff] }
 0xca0   :  { %4862 = vmatpush1.bf16.msra.mxu0 %v4091_v47  ;;  %v4267_v47 = vld [vmem:[#allocation4 + $0x670] sm:$0xff] }
 0xca1   :  { %4863 = vmatprep.subr.bf16.mxu0 %v4100_v28  ;;  %v4276_v28 = vld [vmem:[#allocation4 + $0x6b8] sm:$0xff] }
 0xca4   :  { %4864 = vmatpush1.bf16.msra.mxu0 %v4099_v20  ;;  %v4275_v20 = vld [vmem:[#allocation4 + $0x6b0] sm:$0xff] }
 0xca5   :  { %4865 = vmatprep.subr.bf16.mxu0 %v4108_v46  ;;  %v4284_v46 = vld [vmem:[#allocation4 + $0x6f8] sm:$0xff] }
 0xca6   :  { %v4725_v31 = vpop.f32.mrb[32].mxu0 }
 0xca7   :  { %v5513_v9 = vadd.f32 %v4725_v31, %v4457_v10  ;;  %v4727_v50 = vpop.f32.mrb[33].mxu0  ;;  %v4283_v10 = vld [vmem:[#allocation4 + $0x6f0] sm:$0xff]  ;;  %v4300_v31 = vld [vmem:[#allocation4 + $0x778] sm:$0xff] }
 0xca8   :  { %v5514_v55 = vadd.f32 %v4727_v50, %v4461_v25  ;;  %v4729_v11 = vpop.f32.mrb[34].mxu0  ;;  %4866 = vmatpush1.bf16.msra.mxu0 %v4107_v22  ;;  %v4292_v25 = vld [vmem:[#allocation4 + $0x738] sm:$0xff]  ;;  %v4291_v22 = vld [vmem:[#allocation4 + $0x730] sm:$0xff] }
 0xca9   :  { %v4730_v56 = vpop.f32.mrb[35].mxu0  ;;  %4867 = vmatprep.subr.bf16.mxu0 %v4116_v18  ;;  %v4299_v18 = vld [vmem:[#allocation4 + $0x770] sm:$0xff] }
 0xcaa   :  { %v4987_v59 = vcombine.low %v5513_v9, %v5514_v55  ;;  %v4308_v9 = vld [vmem:[#allocation4 + $0x7b8] sm:$0xff]  ;;  %v4307_v50 = vld [vmem:[#allocation4 + $0x7b0] sm:$0xff] }
 0xcab   :  { %v4316_v55 = vld [vmem:[#allocation4 + $0x7f8] sm:$0xff]  ;;  %v4315_v11 = vld [vmem:[#allocation4 + $0x7f0] sm:$0xff] }
 0xcac   :  { %v5001_v40 = vrot.slane %v4987_v59, %v6292_v24  ;;  %4868 = vmatpush1.bf16.msra.mxu0 %v4115_v34  ;;  %v4324_v56 = vld [vmem:[#allocation4 + $0x838] sm:$0xff]  ;;  %v4323_v34 = vld [vmem:[#allocation4 + $0x830] sm:$0xff] }
 0xcad   :  { %4869 = vmatprep.subr.bf16.mxu0 %v4124_v26  ;;  %v4332_v59 = vld [vmem:[#allocation4 + $0x878] sm:$0xff]  ;;  %v4331_v26 = vld [vmem:[#allocation4 + $0x870] sm:$0xff] }
 0xcae   :  { %v5002_v53 = vcombine.low %v4994_v37, %v5001_v40  ;;  %v4340_v37 = vld [vmem:[#allocation4 + $0x8b8] sm:$0xff]  ;;  %v4339_v40 = vld [vmem:[#allocation4 + $0x8b0] sm:$0xff] }
 0xcb0   :  { %5022 = vst [vmem:[#allocation12] sm:$0xff] %v5002_v53  ;;  %4870 = vmatpush1.bf16.msra.mxu0 %v4123_v14  ;;  %v4348_v14 = vld [vmem:[#allocation4 + $0x8f8] sm:$0xff]  ;;  %v4347_v53 = vld [vmem:[#allocation4 + $0x8f0] sm:$0xff] }
 0xcb1   :  { %4871 = vmatprep.subr.bf16.mxu0 %v4132_v13  ;;  %v4356_v13 = vld [vmem:[#allocation4 + $0x938] sm:$0xff] }
 0xcb4   :  { %4872 = vmatpush1.bf16.msra.mxu0 %v4131_v16  ;;  %v4355_v16 = vld [vmem:[#allocation4 + $0x930] sm:$0xff] }
 0xcb5   :  { %4873 = vmatprep.subr.bf16.mxu0 %v4140_v21  ;;  %v4364_v21 = vld [vmem:[#allocation4 + $0x978] sm:$0xff] }
 0xcb8   :  { %4874 = vmatpush1.bf16.msra.mxu0 %v4139_v33  ;;  %v4372_v33 = vld [vmem:[#allocation4 + $0x9b8] sm:$0xff] }
 0xcb9   :  { %4875 = vmatprep.subr.bf16.mxu0 %v4148_v60  ;;  %v4380_v60 = vld [vmem:[#allocation4 + $0x9f8] sm:$0xff] }
 0xcbc   :  { %4876 = vmatpush1.bf16.msra.mxu0 %v4147_v58  ;;  %v4379_v58 = vld [vmem:[#allocation4 + $0x9f0] sm:$0xff] }
 0xcbd   :  { %4877 = vmatprep.subr.bf16.mxu0 %v4156_v61  ;;  %v4388_v61 = vld [vmem:[#allocation4 + $0xa38] sm:$0xff] }
 0xcc0   :  { %4878 = vmatpush1.bf16.msra.mxu0 %v4155_v8  ;;  %v4387_v8 = vld [vmem:[#allocation4 + $0xa30] sm:$0xff] }
 0xcc1   :  { %4879 = vmatprep.subr.bf16.mxu0 %v4164_v27  ;;  %v4396_v27 = vld [vmem:[#allocation4 + $0xa78] sm:$0xff] }
 0xcc4   :  { %4880 = vmatpush1.bf16.msra.mxu0 %v4163_v35  ;;  %v4395_v35 = vld [vmem:[#allocation4 + $0xa70] sm:$0xff] }
 0xcc5   :  { %4881 = vmatprep.subr.bf16.mxu0 %v4172_v29  ;;  %v4404_v29 = vld [vmem:[#allocation4 + $0xab8] sm:$0xff] }
 0xcc8   :  { %4882 = vmatpush1.bf16.msra.mxu0 %v4171_v23  ;;  %v4403_v23 = vld [vmem:[#allocation4 + $0xab0] sm:$0xff] }
 0xcc9   :  { %4883 = vmatprep.subr.bf16.mxu0 %v4180_v54  ;;  %v4412_v54 = vld [vmem:[#allocation4 + $0xaf8] sm:$0xff] }
 0xccc   :  { %4884 = vmatpush1.bf16.msra.mxu0 %v4179_v52  ;;  %v4411_v52 = vld [vmem:[#allocation4 + $0xaf0] sm:$0xff] }
 0xccd   :  { %4885 = vmatprep.subr.bf16.mxu0 %v4188_v2  ;;  %v4420_v2 = vld [vmem:[#allocation4 + $0xb38] sm:$0xff] }
 0xcd0   :  { %4886 = vmatpush1.bf16.msra.mxu0 %v4187_v57  ;;  %v4419_v57 = vld [vmem:[#allocation4 + $0xb30] sm:$0xff] }
 0xcd1   :  { %4896 = vmatprep.subr.bf16.mxu0 %v4196_v5  ;;  %v4428_v5 = vld [vmem:[#allocation4 + $0xb78] sm:$0xff] }
 0xcd3   :  { %4888 = vmatmul.mubr.bf16.vlgmr.msra.gmra.mrb[40].mxu0 %v6614_v12  ;;  %v4235_v12 = vld [vmem:[#allocation4 + $0x570] sm:$0xff] }
 0xcd4   :  { %4897 = vmatpush1.bf16.msra.mxu0 %v4195_v41  ;;  %4928 = vmatprep.mubr.bf16.mxu0 %v6619_v4  ;;  %v4243_v4 = vld [vmem:[#allocation4 + $0x5b0] sm:$0xff] }
 0xcd5   :  { %4898 = vmatprep.subr.bf16.mxu0 %v4204_v49  ;;  %v4427_v41 = vld [vmem:[#allocation4 + $0xb70] sm:$0xff]  ;;  %v4436_v49 = vld [vmem:[#allocation4 + $0xbb8] sm:$0xff] }
 0xcd8   :  { %4899 = vmatpush1.bf16.msra.mxu0 %v4203_v44  ;;  %v4435_v44 = vld [vmem:[#allocation4 + $0xbb0] sm:$0xff] }
 0xcd9   :  { %4900 = vmatprep.subr.bf16.mxu0 %v4212_v0  ;;  %v4444_v0 = vld [vmem:[#allocation4 + $0xbf8] sm:$0xff] }
 0xcdc   :  { %4901 = vmatpush1.bf16.msra.mxu0 %v4211_v36  ;;  %v4443_v36 = vld [vmem:[#allocation4 + $0xbf0] sm:$0xff] }
 0xcdd   :  { %4902 = vmatprep.subr.bf16.mxu0 %v4220_v39  ;;  %v4465_v39 = vrot.slane %v5938_v1, %v2434_v32 }
 0xce0   :  { %4903 = vmatpush1.bf16.msra.mxu0 %v4219_v62  ;;  %v4469_v62 = vrot.slane %v5938_v1, %v2438_v43 }
 0xce1   :  { %4904 = vmatprep.subr.bf16.mxu0 %v4228_v45 }
 0xce4   :  { %4905 = vmatpush1.bf16.msra.mxu0 %v4227_v17 }
 0xce5   :  { %4906 = vmatprep.subr.bf16.mxu0 %v4236_v19 }
 0xce8   :  { %4907 = vmatpush1.bf16.msra.mxu0 %v4235_v12 }
 0xce9   :  { %4908 = vmatprep.subr.bf16.mxu0 %v4244_v42 }
 0xcec   :  { %4909 = vmatpush1.bf16.msra.mxu0 %v4243_v4 }
 0xced   :  { %4910 = vmatprep.subr.bf16.mxu0 %v4252_v38 }
 0xcf0   :  { %4911 = vmatpush1.bf16.msra.mxu0 %v4251_v51  ;;  %v4472_v51 = vsub.s32 6, %v6286_v6 }
 0xcf1   :  { %4912 = vmatprep.subr.bf16.mxu0 %v4260_v15  ;;  %v4476_v15 = vsub.s32 7, %v6286_v6 }
 0xcf4   :  { %4913 = vmatpush1.bf16.msra.mxu0 %v4259_v7  ;;  %v4477_v7 = vrot.slane %v5938_v1, %v4476_v15 }
 0xcf5   :  { %4914 = vmatprep.subr.bf16.mxu0 %v4268_v48 }
 0xcf8   :  { %4915 = vmatpush1.bf16.msra.mxu0 %v4267_v47 }
 0xcf9   :  { %4916 = vmatprep.subr.bf16.mxu0 %v4276_v28 }
 0xcfc   :  { %4917 = vmatpush1.bf16.msra.mxu0 %v4275_v20 }
 0xcfd   :  { %4918 = vmatprep.subr.bf16.mxu0 %v4284_v46 }
 0xd00   :  { %4919 = vmatpush1.bf16.msra.mxu0 %v4283_v10 }
 0xd01   :  { %4920 = vmatprep.subr.bf16.mxu0 %v4292_v25 }
 0xd04   :  { %4921 = vmatpush1.bf16.msra.mxu0 %v4291_v22 }
 0xd05   :  { %4922 = vmatprep.subr.bf16.mxu0 %v4300_v31 }
 0xd08   :  { %4923 = vmatpush1.bf16.msra.mxu0 %v4299_v18 }
 0xd09   :  { %4924 = vmatprep.subr.bf16.mxu0 %v4308_v9 }
 0xd0c   :  { %4925 = vmatpush1.bf16.msra.mxu0 %v4307_v50 }
 0xd0d   :  { %4926 = vmatprep.subr.bf16.mxu0 %v4316_v55 }
 0xd10   :  { %4927 = vmatpush1.bf16.msra.mxu0 %v4315_v11 }
 0xd11   :  { %4937 = vmatprep.subr.bf16.mxu0 %v4324_v56 }
 0xd13   :  { %4929 = vmatmul.mubr.bf16.vlgmr.msra.gmra.mrb[40].mxu0 %v6626_v63  ;;  %v4363_v63 = vld [vmem:[#allocation4 + $0x970] sm:$0xff] }
 0xd14   :  { %4938 = vmatpush1.bf16.msra.mxu0 %v4323_v34  ;;  %4969 = vmatprep.mubr.bf16.mxu0 %v6631_v3  ;;  %v4371_v3 = vld [vmem:[#allocation4 + $0x9b0] sm:$0xff] }
 0xd15   :  { %4939 = vmatprep.subr.bf16.mxu0 %v4332_v59 }
 0xd18   :  { %4940 = vmatpush1.bf16.msra.mxu0 %v4331_v26 }
 0xd19   :  { %4941 = vmatprep.subr.bf16.mxu0 %v4340_v37 }
 0xd1c   :  { %4942 = vmatpush1.bf16.msra.mxu0 %v4339_v40 }
 0xd1d   :  { %4943 = vmatprep.subr.bf16.mxu0 %v4348_v14 }
 0xd20   :  { %4944 = vmatpush1.bf16.msra.mxu0 %v4347_v53 }
 0xd21   :  { %4945 = vmatprep.subr.bf16.mxu0 %v4356_v13 }
 0xd24   :  { %4946 = vmatpush1.bf16.msra.mxu0 %v4355_v16 }
 0xd25   :  { %4947 = vmatprep.subr.bf16.mxu0 %v4364_v21 }
 0xd28   :  { %4948 = vmatpush1.bf16.msra.mxu0 %v4363_v63 }
 0xd29   :  { %4949 = vmatprep.subr.bf16.mxu0 %v4372_v33 }
 0xd2c   :  { %4950 = vmatpush1.bf16.msra.mxu0 %v4371_v3 }
 0xd2d   :  { %4951 = vmatprep.subr.bf16.mxu0 %v4380_v60 }
 0xd30   :  { %4952 = vmatpush1.bf16.msra.mxu0 %v4379_v58 }
 0xd31   :  { %4953 = vmatprep.subr.bf16.mxu0 %v4388_v61 }
 0xd34   :  { %4954 = vmatpush1.bf16.msra.mxu0 %v4387_v8 }
 0xd35   :  { %4955 = vmatprep.subr.bf16.mxu0 %v4396_v27 }
 0xd38   :  { %4956 = vmatpush1.bf16.msra.mxu0 %v4395_v35 }
 0xd39   :  { %4957 = vmatprep.subr.bf16.mxu0 %v4404_v29 }
 0xd3c   :  { %4958 = vmatpush1.bf16.msra.mxu0 %v4403_v23 }
 0xd3d   :  { %4959 = vmatprep.subr.bf16.mxu0 %v4412_v54 }
 0xd40   :  { %4960 = vmatpush1.bf16.msra.mxu0 %v4411_v52 }
 0xd41   :  { %4961 = vmatprep.subr.bf16.mxu0 %v4420_v2 }
 0xd44   :  { %4962 = vmatpush1.bf16.msra.mxu0 %v4419_v57 }
 0xd45   :  { %4963 = vmatprep.subr.bf16.mxu0 %v4428_v5 }
 0xd48   :  { %4964 = vmatpush1.bf16.msra.mxu0 %v4427_v41 }
 0xd49   :  { %4965 = vmatprep.subr.bf16.mxu0 %v4436_v49 }
 0xd4c   :  { %4966 = vmatpush1.bf16.msra.mxu0 %v4435_v44 }
 0xd4d   :  { %4967 = vmatprep.subr.bf16.mxu0 %v4444_v0 }
 0xd50   :  { %4968 = vmatpush1.bf16.msra.mxu0 %v4443_v36 }
 0xd53   :  { %4970 = vmatmul.mubr.bf16.vlgmr.msra.gmra.mrb[40].mxu0 %v6638_v30  ;;  %v4473_v30 = vrot.slane %v5938_v1, %v4472_v51 }
 0xd66   :  { %v4848_v45 = vpop.f32.mrb[36].mxu0 }
 0xd67   :  { %v5515_v17 = vadd.f32 %v4848_v45, %v4465_v39  ;;  %v4850_v19 = vpop.f32.mrb[37].mxu0 }
 0xd68   :  { %v5516_v12 = vadd.f32 %v4850_v19, %v4469_v62  ;;  %v4852_v42 = vpop.f32.mrb[38].mxu0 }
 0xd69   :  { %v4853_v4 = vpop.f32.mrb[39].mxu0 }
 0xd6a   :  { %v5003_v38 = vcombine.low %v5515_v17, %v5516_v12 }
 0xd6c   :  { %v5011_v10 = vrot.slane %v5003_v38, %v6292_v24 }
 0xe26   :  { %v4971_v32 = vpop.f32.mrb[40].mxu0 }
 0xe27   :  { %v5517_v48 = vadd.f32 %v4971_v32, %v4473_v30  ;;  %v4973_v47 = vpop.f32.mrb[41].mxu0 }
 0xe28   :  { %v5518_v28 = vadd.f32 %v4973_v47, %v4477_v7  ;;  %v4975_v43 = vpop.f32.mrb[42].mxu0 }
 0xe29   :  { %v4976_v20 = vpop.f32.mrb[43].mxu0 }
 0xe2a   :  { %v5004_v46 = vcombine.low %v5517_v48, %v5518_v28 }
 0xe2c   :  { %v5018_v25 = vrot.slane %v5004_v46, %v6292_v24 }
 0xe2e   :  { %v5019_v22 = vcombine.low %v5011_v10, %v5018_v25 }
 0xe30   :  { %5023 = vst [vmem:[#allocation12 + $0x8] sm:$0xff] %v5019_v22 }
 0xe31   :  { %5801 = shalt.err (!%p5798_p0)
}
 0xe32   :  { %s5802_s26 = scalar_lea.hbm %s6712_s6, 256 }
 0xe33   :  { %p5803_p1 = scmp.ne.s32.totalorder %s6712_s6, %s5802_s26  ;;  %p5806_p2 = scmp.lt.u32.totalorder %s5802_s26, %s6712_s6 }
 0xe35   :  { %p5808_p3 = pnand %p5806_p2, %p5803_p1 }
 0xe37   :  { %5811 = shalt.err (!%p5808_p3)
}
 0xe38   :  { %5033 = dma.vmem_to_hbm [thread:$0]  %s5031_s22, 256, %s6712_s6, [#allocation8]  }
 0xe39   :  { %5820 = dma.done.wait [#allocation8], 256  }
 0xe3a   :  { %5821 = vsyncadd [#allocation8], 4294967040 }
 0xe3b   :  { %5037 = vsyncpa [#allocation7], 1 }
 0xe3c   :  { %5038 = vsyncpa [#allocation10], 1 }
 0xe3d   :  { %5039 = vsyncpa [#allocation8], 1 }
 0xe3e   :  { %5040 = vsyncmov [#allocation5] }
 0xe41   :  { %s5041_s8 = vpop.sfrf %5040 }
 0xe42   :  { %p5145_p4 = scmp.ne.s32.totalorder %s5041_s8, 0 }
 0xe44   :  { %5045 = shalt.err (%p5145_p4)  }
 0xe45   :  { %5047 = vsyncmov [#allocation5 + $0x1] }
 0xe48   :  { %s5048_s1 = vpop.sfrf %5047 }
 0xe49   :  { %p5146_p5 = scmp.ne.s32.totalorder %s5048_s1, 0 }
 0xe4b   :  { %5052 = shalt.err (%p5146_p5)  }

</bundles_post_ra>
